<compile_context>
chip_gen: v7x
topology: tpu7x:2x2x1
jax: 0.10.0
libtpu: 0.0.40
codegen_flags: <defaults>
</compile_context>

<pallas_src>
import numpy as np
import jax
import jax.numpy as jnp
from jax.experimental import pallas as pl
from jax.experimental.pallas import tpu as pltpu

# ----------------------------- configuration --------------------------------
B = 2
H = W = 8                    # input_resolution
C = 32                       # dim
NUM_HEADS = 4
HEAD_DIM = C // NUM_HEADS
WS = 4                       # window_size
SHIFT = WS // 2              # shift_size for odd blocks (SW-MSA)
DEPTH = 2                    # BasicLayer_up depth (W-MSA, SW-MSA)
MLP_HIDDEN = int(C * 4.0)
L = H * W
N = WS * WS                  # tokens per window
NW = (H // WS) * (W // WS)   # windows per image
BN = B * L                   # total tokens handled by the kernel (128)
SCALE = HEAD_DIM ** (-0.5)
EPS = 1e-5
NEG_INF = np.float32(-1e9)   # cross-window / cross-batch mask value


# ------------------------------- reference helpers ---------------------------
def window_partition(x, ws):
    b, h, w, c = x.shape
    x = x.reshape(b, h // ws, ws, w // ws, ws, c)
    return x.transpose(0, 1, 3, 2, 4, 5).reshape(-1, ws, ws, c)


def window_reverse(windows, ws, h, w):
    b = windows.shape[0] // (h * w // ws // ws)
    x = windows.reshape(b, h // ws, w // ws, ws, ws, -1)
    return x.transpose(0, 1, 3, 2, 4, 5).reshape(b, h, w, -1)


def _relative_position_index(ws):
    coords = np.stack(np.meshgrid(np.arange(ws), np.arange(ws), indexing="ij"))
    cf = coords.reshape(2, -1)
    rel = cf[:, :, None] - cf[:, None, :]
    rel = rel.transpose(1, 2, 0).copy()
    rel[:, :, 0] += ws - 1
    rel[:, :, 1] += ws - 1
    rel[:, :, 0] *= 2 * ws - 1
    return rel.sum(-1)                                   # (N, N) int


def _window_shift_mask(shift):
    """Reference-style per-window (-100/0) mask, (NW, N, N)."""
    if shift == 0:
        return np.zeros((NW, N, N), np.float32)
    img_mask = np.zeros((1, H, W, 1), np.float32)
    cnt = 0
    sl = (slice(0, -WS), slice(-WS, -shift), slice(-shift, None))
    for hs in sl:
        for ws_ in sl:
            img_mask[:, hs, ws_, :] = cnt
            cnt += 1
    m = img_mask.reshape(1, H // WS, WS, W // WS, WS, 1)
    m = m.transpose(0, 1, 3, 2, 4, 5).reshape(-1, N)
    diff = m[:, None, :] - m[:, :, None]
    return np.where(diff != 0, -100.0, 0.0).astype(np.float32)


def _dense_attn_bias(rel_bias, shift):
    """Fold roll + window partition + rel-pos bias + SW-MSA mask into a dense
    additive bias over the ORIGINAL token ordering.
    rel_bias: (NUM_HEADS, N, N) -> returns (NUM_HEADS, B*L, B*L) float32."""
    rel_bias = np.asarray(rel_bias, np.float32)
    img_mask = np.zeros((H, W), np.float32)
    if shift > 0:
        cnt = 0
        sl = (slice(0, -WS), slice(-WS, -shift), slice(-shift, None))
        for hs in sl:
            for ws_ in sl:
                img_mask[hs, ws_] = cnt
                cnt += 1
    win_id = np.zeros((B, L), np.int64)
    win_pos = np.zeros((B, L), np.int64)
    region = np.zeros((B, L), np.float32)
    for b in range(B):
        for r in range(H):
            for c in range(W):
                t = r * W + c
                rs, cs = (r - shift) % H, (c - shift) % W     # position after roll(-shift)
                win_id[b, t] = b * NW + (rs // WS) * (W // WS) + (cs // WS)
                win_pos[b, t] = (rs % WS) * WS + (cs % WS)
                region[b, t] = img_mask[rs, cs]
    win_id, win_pos, region = win_id.reshape(-1), win_pos.reshape(-1), region.reshape(-1)
    same_win = win_id[:, None] == win_id[None, :]
    smask = np.where(region[:, None] != region[None, :], -100.0, 0.0).astype(np.float32)
    out = np.empty((NUM_HEADS, BN, BN), np.float32)
    for h in range(NUM_HEADS):
        rb = rel_bias[h][win_pos[:, None], win_pos[None, :]]
        out[h] = np.where(same_win, rb + smask, NEG_INF)
    return out


# --------------------------- in-kernel helpers --------------------------------
def _layernorm_plain(x):
    # affine (gamma, beta) is pre-folded into the subsequent linear layer.
    mu = jnp.mean(x, axis=-1, keepdims=True)
    xc = x - mu
    var = jnp.mean(xc * xc, axis=-1, keepdims=True)
    return xc * jax.lax.rsqrt(var + EPS)


def _gelu_tanh(x):
    # tanh-approx GELU (EUP); max abs deviation from exact erf GELU ~3e-4.
    c = np.float32(0.7978845608028654)          # sqrt(2/pi)
    return 0.5 * x * (1.0 + jnp.tanh(c * (x + np.float32(0.044715) * x * x * x)))


# ------------------------------ fused Pallas kernel ---------------------------
def _swin_layer_kernel(x_ref, wqkv_ref, bqkv_ref, wproj_ref, bproj_ref, bias_ref,
                       w1_ref, b1_ref, w2_ref, b2_ref, o_ref):
    x = x_ref[...]                                         # (BN, C) f32

    for d in range(DEPTH):                                 # depth folded into body
        # ---- branch 1: LN1 (affine pre-folded) -> qkv -> dense masked MHSA ----
        xn = _layernorm_plain(x)
        qkv = jnp.dot(xn.astype(jnp.bfloat16), wqkv_ref[d],
                      preferred_element_type=jnp.float32) + bqkv_ref[d]   # (BN, 3C) f32

        p_parts, vw_parts = [], []
        for h in range(NUM_HEADS):                         # small static unroll
            q = qkv[:, h * HEAD_DIM:(h + 1) * HEAD_DIM].astype(jnp.bfloat16)
            k = qkv[:, C + h * HEAD_DIM:C + (h + 1) * HEAD_DIM].astype(jnp.bfloat16)
            v = qkv[:, 2 * C + h * HEAD_DIM:2 * C + (h + 1) * HEAD_DIM].astype(jnp.bfloat16)
            s = jax.lax.dot_general(q, k, (((1,), (1,)), ((), ())),
                                    preferred_element_type=jnp.float32)   # (BN, BN) f32
            s = s + bias_ref[d, h]                         # rel-pos + shift + window mask (bf16)
            s = s - jnp.max(s, axis=-1, keepdims=True)
            e = jnp.exp(s)
            p = e * pl.reciprocal(jnp.sum(e, axis=-1, keepdims=True), approx=True)
            p_parts.append(p.astype(jnp.bfloat16))
            # per-head v projected through its W_proj row slice (8 x 32)
            vw = jnp.dot(v, wproj_ref[d, h], preferred_element_type=jnp.float32)
            vw_parts.append(vw.astype(jnp.bfloat16))

        p_all = jnp.concatenate(p_parts, axis=1)           # (BN, NUM_HEADS*BN) bf16
        vw_all = jnp.concatenate(vw_parts, axis=0)         # (NUM_HEADS*BN, C)  bf16
        attn_out = jnp.dot(p_all, vw_all,
                           preferred_element_type=jnp.float32)            # (BN, C) f32
        x1 = x + attn_out + bproj_ref[d]                   # residual 1

        # ---- branch 2: LN2 (affine pre-folded) -> fc1 -> GELU -> fc2 ----------
        x1n = _layernorm_plain(x1)
        h1 = jnp.dot(x1n.astype(jnp.bfloat16), w1_ref[d],
                     preferred_element_type=jnp.float32) + b1_ref[d]
        h1 = _gelu_tanh(h1)
        y = jnp.dot(h1.astype(jnp.bfloat16), w2_ref[d],
                    preferred_element_type=jnp.float32) + b2_ref[d]
        x = x1 + y                                         # residual 2

    o_ref[...] = x


# ------------------------------- wrapper --------------------------------------
def swin_layer_pallas(x, KP):
    x2d = x.reshape(BN, C)
    vmem = pltpu.MemorySpace.VMEM
    out = pl.pallas_call(
        _swin_layer_kernel,
        out_shape=jax.ShapeDtypeStruct((BN, C), jnp.float32),
        in_specs=[pl.BlockSpec(memory_space=vmem)] * 10,   # whole arrays, VMEM resident
        out_specs=pl.BlockSpec(memory_space=vmem),
    )(x2d, KP["wqkv"], KP["bqkv"], KP["wproj"], KP["bproj"], KP["bias"],
      KP["w1"], KP["b1"], KP["w2"], KP["b2"])
    return out.reshape(B, L, C)


# ----------------------- pure-JAX reference (sanity) ---------------------------
def swin_layer_reference(x, P, rel_biases, shifts, masks):
    hp = jax.lax.Precision.HIGHEST

    def ln(v, g, b):
        mu = jnp.mean(v, -1, keepdims=True)
        var = jnp.mean((v - mu) ** 2, -1, keepdims=True)
        return (v - mu) / jnp.sqrt(var + EPS) * g + b

    for i in range(DEPTH):
        shift = shifts[i]
        rel_bias = rel_biases[i]
        attn_mask = jnp.asarray(masks[i])
        b_, l, c = x.shape
        shortcut = x
        xn = ln(x, P["g1"][i], P["be1"][i])
        ximg = xn.reshape(b_, H, W, c)
        if shift > 0:
            ximg = jnp.roll(ximg, (-shift, -shift), (1, 2))
        xw = window_partition(ximg, WS).reshape(-1, N, c)
        qkv = jnp.einsum("bnc,cd->bnd", xw, P["wqkv"][i], precision=hp) + P["bqkv"][i]
        qkv = qkv.reshape(-1, N, 3, NUM_HEADS, HEAD_DIM).transpose(2, 0, 3, 1, 4)
        q, k, v = qkv[0] * SCALE, qkv[1], qkv[2]
        attn = jnp.einsum("bhnd,bhmd->bhnm", q, k, precision=hp)
        attn = attn + rel_bias[None]
        attn = attn.reshape(b_, NW, NUM_HEADS, N, N) + attn_mask[None, :, None]
        attn = jax.nn.softmax(attn.reshape(-1, NUM_HEADS, N, N), axis=-1)
        out = jnp.einsum("bhnm,bhmd->bhnd", attn, v, precision=hp)
        out = out.transpose(0, 2, 1, 3).reshape(-1, N, c)
        out = jnp.einsum("bnc,cd->bnd", out, P["wproj"][i], precision=hp) + P["bproj"][i]
        out = window_reverse(out.reshape(-1, WS, WS, c), WS, H, W)
        if shift > 0:
            out = jnp.roll(out, (shift, shift), (1, 2))
        x1 = shortcut + out.reshape(b_, l, c)
        xn2 = ln(x1, P["g2"][i], P["be2"][i])
        hdn = jnp.einsum("blc,ch->blh", xn2, P["w1"][i], precision=hp) + P["b1"][i]
        hdn = jax.nn.gelu(hdn, approximate=False)
        y = jnp.einsum("blh,hc->blc", hdn, P["w2"][i], precision=hp) + P["b2"][i]
        x = x1 + y
    return x


# --------------------------------- params --------------------------------------
def make_layer_params(key):
    f32 = jnp.float32
    rel_idx = _relative_position_index(WS)
    per_block, rel_biases = [], []
    for i in range(DEPTH):
        ks = jax.random.split(jax.random.fold_in(key, i), 13)
        p = {
            "g1":    1.0 + 0.05 * jax.random.normal(ks[0], (1, C), f32),
            "be1":   0.05 * jax.random.normal(ks[1], (1, C), f32),
            "wqkv":  0.05 * jax.random.normal(ks[2], (C, 3 * C), f32),
            "bqkv":  0.05 * jax.random.normal(ks[3], (1, 3 * C), f32),
            "wproj": 0.05 * jax.random.normal(ks[4], (C, C), f32),
            "bproj": 0.05 * jax.random.normal(ks[5], (1, C), f32),
            "g2":    1.0 + 0.05 * jax.random.normal(ks[6], (1, C), f32),
            "be2":   0.05 * jax.random.normal(ks[7], (1, C), f32),
            "w1":    0.05 * jax.random.normal(ks[8], (C, MLP_HIDDEN), f32),
            "b1":    0.05 * jax.random.normal(ks[9], (1, MLP_HIDDEN), f32),
            "w2":    0.05 * jax.random.normal(ks[10], (MLP_HIDDEN, C), f32),
            "b2":    0.05 * jax.random.normal(ks[11], (1, C), f32),
        }
        table = 0.02 * jax.random.normal(ks[12], ((2 * WS - 1) ** 2, NUM_HEADS), f32)
        rb = table[rel_idx.reshape(-1)].reshape(N, N, NUM_HEADS).transpose(2, 0, 1)
        per_block.append(p)
        rel_biases.append(rb)

    stacked = {k: jnp.stack([p[k] for p in per_block]) for k in per_block[0]}
    shifts = [0 if i % 2 == 0 else SHIFT for i in range(DEPTH)]
    masks = [_window_shift_mask(s) for s in shifts]
    return stacked, rel_biases, shifts, masks


def make_kernel_params(P, rel_biases, shifts):
    """Host-side pre-folding: LN affines into the following linears, qk scale
    into the q-columns of W_qkv, weights + dense attention bias pre-cast bf16."""
    f32, bf16 = np.float32, jnp.bfloat16
    wqkv = np.asarray(P["wqkv"], f32).copy()      # (DEPTH, C, 3C)
    bqkv = np.asarray(P["bqkv"], f32).copy()      # (DEPTH, 1, 3C)
    g1 = np.asarray(P["g1"], f32)                 # (DEPTH, 1, C)
    be1 = np.asarray(P["be1"], f32)
    w1 = np.asarray(P["w1"], f32).copy()          # (DEPTH, C, MLP_HIDDEN)
    b1 = np.asarray(P["b1"], f32).copy()          # (DEPTH, 1, MLP_HIDDEN)
    g2 = np.asarray(P["g2"], f32)
    be2 = np.asarray(P["be2"], f32)

    # LN1 affine -> qkv linear; qk scale -> q columns
    wqkv_f = g1.transpose(0, 2, 1) * wqkv
    bqkv_f = np.einsum("dic,dce->die", be1, wqkv) + bqkv
    wqkv_f[:, :, :C] *= SCALE
    bqkv_f[:, :, :C] *= SCALE

    # LN2 affine -> fc1 linear
    w1_f = g2.transpose(0, 2, 1) * w1
    b1_f = np.einsum("dic,dch->dih", be2, w1) + b1

    # W_proj reshaped per head for clean (head_dim, C) row slices
    wproj = np.asarray(P["wproj"], f32).reshape(DEPTH, NUM_HEADS, HEAD_DIM, C)

    dense = np.stack(
        [_dense_attn_bias(np.asarray(rel_biases[i]), shifts[i]) for i in range(DEPTH)],
        axis=0)                                   # (DEPTH, NUM_HEADS, BN, BN)

    return {
        "wqkv":  jnp.asarray(wqkv_f, bf16),
        "bqkv":  jnp.asarray(bqkv_f, jnp.float32),
        "wproj": jnp.asarray(wproj, bf16),
        "bproj": jnp.asarray(P["bproj"], jnp.float32),
        "bias":  jnp.asarray(dense, bf16),
        "w1":    jnp.asarray(w1_f, bf16),
        "b1":    jnp.asarray(b1_f, jnp.float32),
        "w2":    jnp.asarray(P["w2"], bf16),
        "b2":    jnp.asarray(P["b2"], jnp.float32),
    }


# ----------------------------------- main --------------------------------------
if __name__ == "__main__":
    key = jax.random.PRNGKey(0)
    pkey, xkey = jax.random.split(key)
    P, rel_biases, shifts, masks = make_layer_params(pkey)
    KP = make_kernel_params(P, rel_biases, shifts)
    x = jax.random.normal(xkey, (B, L, C), jnp.float32)     # (B, H*W, C)

    out = swin_layer_pallas(x, KP)
    out = jax.block_until_ready(out)
    assert out.shape == (B, L, C)

    ref = swin_layer_reference(x, P, rel_biases, shifts, masks)
    np.testing.assert_allclose(np.asarray(out), np.asarray(ref), atol=2e-2, rtol=2e-2)
    print("KERNEL_OK")
</pallas_src>

<mosaic_0001>
module attributes {stable_mosaic.version = 11 : i64} {
  func.func @_swin_layer_kernel(%arg0: memref<128x32xf32, #tpu.memory_space<vmem>>, %arg1: memref<2x32x96xbf16, #tpu.memory_space<vmem>>, %arg2: memref<2x1x96xf32, #tpu.memory_space<vmem>>, %arg3: memref<2x4x8x32xbf16, #tpu.memory_space<vmem>>, %arg4: memref<2x1x32xf32, #tpu.memory_space<vmem>>, %arg5: memref<2x4x128x128xbf16, #tpu.memory_space<vmem>>, %arg6: memref<2x32x128xbf16, #tpu.memory_space<vmem>>, %arg7: memref<2x1x128xf32, #tpu.memory_space<vmem>>, %arg8: memref<2x128x32xbf16, #tpu.memory_space<vmem>>, %arg9: memref<2x1x32xf32, #tpu.memory_space<vmem>>, %arg10: memref<128x32xf32, #tpu.memory_space<vmem>>) attributes {dimension_semantics = [], scalar_prefetch = 0 : i64, scratch_operands = 0 : i64, tpu.core_type = #tpu.core_type<tc>} {
    %c0 = arith.constant 0 : index
    %c0_0 = arith.constant 0 : index
    %0 = vector.load %arg0[%c0, %c0_0] : memref<128x32xf32, #tpu.memory_space<vmem>>, vector<128x32xf32>
    %cst = arith.constant dense<0.000000e+00> : vector<128xf32>
    %1 = vector.multi_reduction <add>, %0, %cst [1] : vector<128x32xf32> to vector<128xf32>
    %2 = vector.shape_cast %1 : vector<128xf32> to vector<128x1xf32>
    %cst_1 = arith.constant 3.200000e+01 : f32
    %3 = vector.broadcast %cst_1 : f32 to vector<128x1xf32>
    %4 = arith.divf %2, %3 : vector<128x1xf32>
    %5 = vector.broadcast %4 : vector<128x1xf32> to vector<128x32xf32>
    %6 = arith.subf %0, %5 : vector<128x32xf32>
    %7 = arith.mulf %6, %6 : vector<128x32xf32>
    %cst_2 = arith.constant dense<0.000000e+00> : vector<128xf32>
    %8 = vector.multi_reduction <add>, %7, %cst_2 [1] : vector<128x32xf32> to vector<128xf32>
    %9 = vector.shape_cast %8 : vector<128xf32> to vector<128x1xf32>
    %cst_3 = arith.constant 3.200000e+01 : f32
    %10 = vector.broadcast %cst_3 : f32 to vector<128x1xf32>
    %11 = arith.divf %9, %10 : vector<128x1xf32>
    %cst_4 = arith.constant 9.99999974E-6 : f32
    %12 = vector.broadcast %cst_4 : f32 to vector<128x1xf32>
    %13 = arith.addf %11, %12 : vector<128x1xf32>
    %14 = math.rsqrt %13 : vector<128x1xf32>
    %15 = vector.broadcast %14 : vector<128x1xf32> to vector<128x32xf32>
    %16 = arith.mulf %6, %15 : vector<128x32xf32>
    %17 = arith.truncf %16 : vector<128x32xf32> to vector<128x32xbf16>
    %c0_5 = arith.constant 0 : index
    %c0_6 = arith.constant 0 : index
    %c0_7 = arith.constant 0 : index
    %18 = vector.load %arg1[%c0_5, %c0_6, %c0_7] : memref<2x32x96xbf16, #tpu.memory_space<vmem>>, vector<1x32x96xbf16>
    %19 = vector.shape_cast %18 : vector<1x32x96xbf16> to vector<32x96xbf16>
    %cst_8 = arith.constant dense<0.000000e+00> : vector<128x96xf32>
    %20 = tpu.matmul %17, %19, %cst_8 {dimension_numbers = #tpu.dot_dimension_numbers<[1], [0], [0], [1], [0, 0, 1, 1], [], []>} : vector<128x32xbf16>, vector<32x96xbf16>, vector<128x96xf32> -> vector<128x96xf32>
    %c0_9 = arith.constant 0 : index
    %c0_10 = arith.constant 0 : index
    %c0_11 = arith.constant 0 : index
    %21 = vector.load %arg2[%c0_9, %c0_10, %c0_11] : memref<2x1x96xf32, #tpu.memory_space<vmem>>, vector<1x1x96xf32>
    %22 = vector.shape_cast %21 : vector<1x1x96xf32> to vector<1x96xf32>
    %23 = vector.broadcast %22 : vector<1x96xf32> to vector<128x96xf32>
    %24 = arith.addf %20, %23 : vector<128x96xf32>
    %25 = vector.extract_strided_slice %24 {offsets = [0, 0], sizes = [128, 8], strides = [1, 1]} : vector<128x96xf32> to vector<128x8xf32>
    %26 = arith.truncf %25 : vector<128x8xf32> to vector<128x8xbf16>
    %27 = vector.extract_strided_slice %24 {offsets = [0, 32], sizes = [128, 8], strides = [1, 1]} : vector<128x96xf32> to vector<128x8xf32>
    %28 = arith.truncf %27 : vector<128x8xf32> to vector<128x8xbf16>
    %29 = vector.extract_strided_slice %24 {offsets = [0, 64], sizes = [128, 8], strides = [1, 1]} : vector<128x96xf32> to vector<128x8xf32>
    %30 = arith.truncf %29 : vector<128x8xf32> to vector<128x8xbf16>
    %cst_12 = arith.constant dense<0.000000e+00> : vector<128x128xf32>
    %31 = tpu.matmul %26, %28, %cst_12 {dimension_numbers = #tpu.dot_dimension_numbers<[1], [1], [0], [0], [0, 0, 1, 0], [], []>} : vector<128x8xbf16>, vector<128x8xbf16>, vector<128x128xf32> -> vector<128x128xf32>
    %c0_13 = arith.constant 0 : index
    %c0_14 = arith.constant 0 : index
    %c0_15 = arith.constant 0 : index
    %c0_16 = arith.constant 0 : index
    %32 = vector.load %arg5[%c0_13, %c0_14, %c0_15, %c0_16] : memref<2x4x128x128xbf16, #tpu.memory_space<vmem>>, vector<1x1x128x128xbf16>
    %33 = vector.shape_cast %32 : vector<1x1x128x128xbf16> to vector<128x128xbf16>
    %34 = arith.extf %33 : vector<128x128xbf16> to vector<128x128xf32>
    %35 = arith.addf %31, %34 : vector<128x128xf32>
    %cst_17 = arith.constant dense<0xFF800000> : vector<128xf32>
    %36 = vector.multi_reduction <maximumf>, %35, %cst_17 [1] : vector<128x128xf32> to vector<128xf32>
    %37 = vector.shape_cast %36 : vector<128xf32> to vector<128x1xf32>
    %38 = vector.broadcast %37 : vector<128x1xf32> to vector<128x128xf32>
    %39 = arith.subf %35, %38 : vector<128x128xf32>
    %40 = math.exp %39 : vector<128x128xf32>
    %cst_18 = arith.constant dense<0.000000e+00> : vector<128xf32>
    %41 = vector.multi_reduction <add>, %40, %cst_18 [1] : vector<128x128xf32> to vector<128xf32>
    %42 = vector.shape_cast %41 : vector<128xf32> to vector<128x1xf32>
    %43 = tpu.reciprocal %42 {approx = true} : vector<128x1xf32> -> vector<128x1xf32>
    %44 = vector.broadcast %43 : vector<128x1xf32> to vector<128x128xf32>
    %45 = arith.mulf %40, %44 : vector<128x128xf32>
    %46 = arith.truncf %45 : vector<128x128xf32> to vector<128x128xbf16>
    %c0_19 = arith.constant 0 : index
    %c0_20 = arith.constant 0 : index
    %c0_21 = arith.constant 0 : index
    %c0_22 = arith.constant 0 : index
    %47 = vector.load %arg3[%c0_19, %c0_20, %c0_21, %c0_22] : memref<2x4x8x32xbf16, #tpu.memory_space<vmem>>, vector<1x1x8x32xbf16>
    %48 = vector.shape_cast %47 : vector<1x1x8x32xbf16> to vector<8x32xbf16>
    %cst_23 = arith.constant dense<0.000000e+00> : vector<128x32xf32>
    %49 = tpu.matmul %30, %48, %cst_23 {dimension_numbers = #tpu.dot_dimension_numbers<[1], [0], [0], [1], [0, 0, 1, 1], [], []>} : vector<128x8xbf16>, vector<8x32xbf16>, vector<128x32xf32> -> vector<128x32xf32>
    %50 = arith.truncf %49 : vector<128x32xf32> to vector<128x32xbf16>
    %51 = vector.extract_strided_slice %24 {offsets = [0, 8], sizes = [128, 8], strides = [1, 1]} : vector<128x96xf32> to vector<128x8xf32>
    %52 = arith.truncf %51 : vector<128x8xf32> to vector<128x8xbf16>
    %53 = vector.extract_strided_slice %24 {offsets = [0, 40], sizes = [128, 8], strides = [1, 1]} : vector<128x96xf32> to vector<128x8xf32>
    %54 = arith.truncf %53 : vector<128x8xf32> to vector<128x8xbf16>
    %55 = vector.extract_strided_slice %24 {offsets = [0, 72], sizes = [128, 8], strides = [1, 1]} : vector<128x96xf32> to vector<128x8xf32>
    %56 = arith.truncf %55 : vector<128x8xf32> to vector<128x8xbf16>
    %cst_24 = arith.constant dense<0.000000e+00> : vector<128x128xf32>
    %57 = tpu.matmul %52, %54, %cst_24 {dimension_numbers = #tpu.dot_dimension_numbers<[1], [1], [0], [0], [0, 0, 1, 0], [], []>} : vector<128x8xbf16>, vector<128x8xbf16>, vector<128x128xf32> -> vector<128x128xf32>
    %c0_25 = arith.constant 0 : index
    %c1 = arith.constant 1 : index
    %c0_26 = arith.constant 0 : index
    %c0_27 = arith.constant 0 : index
    %58 = vector.load %arg5[%c0_25, %c1, %c0_26, %c0_27] : memref<2x4x128x128xbf16, #tpu.memory_space<vmem>>, vector<1x1x128x128xbf16>
    %59 = vector.shape_cast %58 : vector<1x1x128x128xbf16> to vector<128x128xbf16>
    %60 = arith.extf %59 : vector<128x128xbf16> to vector<128x128xf32>
    %61 = arith.addf %57, %60 : vector<128x128xf32>
    %cst_28 = arith.constant dense<0xFF800000> : vector<128xf32>
    %62 = vector.multi_reduction <maximumf>, %61, %cst_28 [1] : vector<128x128xf32> to vector<128xf32>
    %63 = vector.shape_cast %62 : vector<128xf32> to vector<128x1xf32>
    %64 = vector.broadcast %63 : vector<128x1xf32> to vector<128x128xf32>
    %65 = arith.subf %61, %64 : vector<128x128xf32>
    %66 = math.exp %65 : vector<128x128xf32>
    %cst_29 = arith.constant dense<0.000000e+00> : vector<128xf32>
    %67 = vector.multi_reduction <add>, %66, %cst_29 [1] : vector<128x128xf32> to vector<128xf32>
    %68 = vector.shape_cast %67 : vector<128xf32> to vector<128x1xf32>
    %69 = tpu.reciprocal %68 {approx = true} : vector<128x1xf32> -> vector<128x1xf32>
    %70 = vector.broadcast %69 : vector<128x1xf32> to vector<128x128xf32>
    %71 = arith.mulf %66, %70 : vector<128x128xf32>
    %72 = arith.truncf %71 : vector<128x128xf32> to vector<128x128xbf16>
    %c0_30 = arith.constant 0 : index
    %c1_31 = arith.constant 1 : index
    %c0_32 = arith.constant 0 : index
    %c0_33 = arith.constant 0 : index
    %73 = vector.load %arg3[%c0_30, %c1_31, %c0_32, %c0_33] : memref<2x4x8x32xbf16, #tpu.memory_space<vmem>>, vector<1x1x8x32xbf16>
    %74 = vector.shape_cast %73 : vector<1x1x8x32xbf16> to vector<8x32xbf16>
    %cst_34 = arith.constant dense<0.000000e+00> : vector<128x32xf32>
    %75 = tpu.matmul %56, %74, %cst_34 {dimension_numbers = #tpu.dot_dimension_numbers<[1], [0], [0], [1], [0, 0, 1, 1], [], []>} : vector<128x8xbf16>, vector<8x32xbf16>, vector<128x32xf32> -> vector<128x32xf32>
    %76 = arith.truncf %75 : vector<128x32xf32> to vector<128x32xbf16>
    %77 = vector.extract_strided_slice %24 {offsets = [0, 16], sizes = [128, 8], strides = [1, 1]} : vector<128x96xf32> to vector<128x8xf32>
    %78 = arith.truncf %77 : vector<128x8xf32> to vector<128x8xbf16>
    %79 = vector.extract_strided_slice %24 {offsets = [0, 48], sizes = [128, 8], strides = [1, 1]} : vector<128x96xf32> to vector<128x8xf32>
    %80 = arith.truncf %79 : vector<128x8xf32> to vector<128x8xbf16>
    %81 = vector.extract_strided_slice %24 {offsets = [0, 80], sizes = [128, 8], strides = [1, 1]} : vector<128x96xf32> to vector<128x8xf32>
    %82 = arith.truncf %81 : vector<128x8xf32> to vector<128x8xbf16>
    %cst_35 = arith.constant dense<0.000000e+00> : vector<128x128xf32>
    %83 = tpu.matmul %78, %80, %cst_35 {dimension_numbers = #tpu.dot_dimension_numbers<[1], [1], [0], [0], [0, 0, 1, 0], [], []>} : vector<128x8xbf16>, vector<128x8xbf16>, vector<128x128xf32> -> vector<128x128xf32>
    %c0_36 = arith.constant 0 : index
    %c2 = arith.constant 2 : index
    %c0_37 = arith.constant 0 : index
    %c0_38 = arith.constant 0 : index
    %84 = vector.load %arg5[%c0_36, %c2, %c0_37, %c0_38] : memref<2x4x128x128xbf16, #tpu.memory_space<vmem>>, vector<1x1x128x128xbf16>
    %85 = vector.shape_cast %84 : vector<1x1x128x128xbf16> to vector<128x128xbf16>
    %86 = arith.extf %85 : vector<128x128xbf16> to vector<128x128xf32>
    %87 = arith.addf %83, %86 : vector<128x128xf32>
    %cst_39 = arith.constant dense<0xFF800000> : vector<128xf32>
    %88 = vector.multi_reduction <maximumf>, %87, %cst_39 [1] : vector<128x128xf32> to vector<128xf32>
    %89 = vector.shape_cast %88 : vector<128xf32> to vector<128x1xf32>
    %90 = vector.broadcast %89 : vector<128x1xf32> to vector<128x128xf32>
    %91 = arith.subf %87, %90 : vector<128x128xf32>
    %92 = math.exp %91 : vector<128x128xf32>
    %cst_40 = arith.constant dense<0.000000e+00> : vector<128xf32>
    %93 = vector.multi_reduction <add>, %92, %cst_40 [1] : vector<128x128xf32> to vector<128xf32>
    %94 = vector.shape_cast %93 : vector<128xf32> to vector<128x1xf32>
    %95 = tpu.reciprocal %94 {approx = true} : vector<128x1xf32> -> vector<128x1xf32>
    %96 = vector.broadcast %95 : vector<128x1xf32> to vector<128x128xf32>
    %97 = arith.mulf %92, %96 : vector<128x128xf32>
    %98 = arith.truncf %97 : vector<128x128xf32> to vector<128x128xbf16>
    %c0_41 = arith.constant 0 : index
    %c2_42 = arith.constant 2 : index
    %c0_43 = arith.constant 0 : index
    %c0_44 = arith.constant 0 : index
    %99 = vector.load %arg3[%c0_41, %c2_42, %c0_43, %c0_44] : memref<2x4x8x32xbf16, #tpu.memory_space<vmem>>, vector<1x1x8x32xbf16>
    %100 = vector.shape_cast %99 : vector<1x1x8x32xbf16> to vector<8x32xbf16>
    %cst_45 = arith.constant dense<0.000000e+00> : vector<128x32xf32>
    %101 = tpu.matmul %82, %100, %cst_45 {dimension_numbers = #tpu.dot_dimension_numbers<[1], [0], [0], [1], [0, 0, 1, 1], [], []>} : vector<128x8xbf16>, vector<8x32xbf16>, vector<128x32xf32> -> vector<128x32xf32>
    %102 = arith.truncf %101 : vector<128x32xf32> to vector<128x32xbf16>
    %103 = vector.extract_strided_slice %24 {offsets = [0, 24], sizes = [128, 8], strides = [1, 1]} : vector<128x96xf32> to vector<128x8xf32>
    %104 = arith.truncf %103 : vector<128x8xf32> to vector<128x8xbf16>
    %105 = vector.extract_strided_slice %24 {offsets = [0, 56], sizes = [128, 8], strides = [1, 1]} : vector<128x96xf32> to vector<128x8xf32>
    %106 = arith.truncf %105 : vector<128x8xf32> to vector<128x8xbf16>
    %107 = vector.extract_strided_slice %24 {offsets = [0, 88], sizes = [128, 8], strides = [1, 1]} : vector<128x96xf32> to vector<128x8xf32>
    %108 = arith.truncf %107 : vector<128x8xf32> to vector<128x8xbf16>
    %cst_46 = arith.constant dense<0.000000e+00> : vector<128x128xf32>
    %109 = tpu.matmul %104, %106, %cst_46 {dimension_numbers = #tpu.dot_dimension_numbers<[1], [1], [0], [0], [0, 0, 1, 0], [], []>} : vector<128x8xbf16>, vector<128x8xbf16>, vector<128x128xf32> -> vector<128x128xf32>
    %c0_47 = arith.constant 0 : index
    %c3 = arith.constant 3 : index
    %c0_48 = arith.constant 0 : index
    %c0_49 = arith.constant 0 : index
    %110 = vector.load %arg5[%c0_47, %c3, %c0_48, %c0_49] : memref<2x4x128x128xbf16, #tpu.memory_space<vmem>>, vector<1x1x128x128xbf16>
    %111 = vector.shape_cast %110 : vector<1x1x128x128xbf16> to vector<128x128xbf16>
    %112 = arith.extf %111 : vector<128x128xbf16> to vector<128x128xf32>
    %113 = arith.addf %109, %112 : vector<128x128xf32>
    %cst_50 = arith.constant dense<0xFF800000> : vector<128xf32>
    %114 = vector.multi_reduction <maximumf>, %113, %cst_50 [1] : vector<128x128xf32> to vector<128xf32>
    %115 = vector.shape_cast %114 : vector<128xf32> to vector<128x1xf32>
    %116 = vector.broadcast %115 : vector<128x1xf32> to vector<128x128xf32>
    %117 = arith.subf %113, %116 : vector<128x128xf32>
    %118 = math.exp %117 : vector<128x128xf32>
    %cst_51 = arith.constant dense<0.000000e+00> : vector<128xf32>
    %119 = vector.multi_reduction <add>, %118, %cst_51 [1] : vector<128x128xf32> to vector<128xf32>
    %120 = vector.shape_cast %119 : vector<128xf32> to vector<128x1xf32>
    %121 = tpu.reciprocal %120 {approx = true} : vector<128x1xf32> -> vector<128x1xf32>
    %122 = vector.broadcast %121 : vector<128x1xf32> to vector<128x128xf32>
    %123 = arith.mulf %118, %122 : vector<128x128xf32>
    %124 = arith.truncf %123 : vector<128x128xf32> to vector<128x128xbf16>
    %c0_52 = arith.constant 0 : index
    %c3_53 = arith.constant 3 : index
    %c0_54 = arith.constant 0 : index
    %c0_55 = arith.constant 0 : index
    %125 = vector.load %arg3[%c0_52, %c3_53, %c0_54, %c0_55] : memref<2x4x8x32xbf16, #tpu.memory_space<vmem>>, vector<1x1x8x32xbf16>
    %126 = vector.shape_cast %125 : vector<1x1x8x32xbf16> to vector<8x32xbf16>
    %cst_56 = arith.constant dense<0.000000e+00> : vector<128x32xf32>
    %127 = tpu.matmul %108, %126, %cst_56 {dimension_numbers = #tpu.dot_dimension_numbers<[1], [0], [0], [1], [0, 0, 1, 1], [], []>} : vector<128x8xbf16>, vector<8x32xbf16>, vector<128x32xf32> -> vector<128x32xf32>
    %128 = arith.truncf %127 : vector<128x32xf32> to vector<128x32xbf16>
    %129 = tpu.concatenate %46, %72, %98, %124 in 1 : vector<128x128xbf16>, vector<128x128xbf16>, vector<128x128xbf16>, vector<128x128xbf16> -> vector<128x512xbf16>
    %130 = tpu.concatenate %50, %76, %102, %128 in 0 : vector<128x32xbf16>, vector<128x32xbf16>, vector<128x32xbf16>, vector<128x32xbf16> -> vector<512x32xbf16>
    %cst_57 = arith.constant dense<0.000000e+00> : vector<128x32xf32>
    %131 = tpu.matmul %129, %130, %cst_57 {dimension_numbers = #tpu.dot_dimension_numbers<[1], [0], [0], [1], [0, 0, 1, 1], [], []>} : vector<128x512xbf16>, vector<512x32xbf16>, vector<128x32xf32> -> vector<128x32xf32>
    %132 = arith.addf %0, %131 : vector<128x32xf32>
    %c0_58 = arith.constant 0 : index
    %c0_59 = arith.constant 0 : index
    %c0_60 = arith.constant 0 : index
    %133 = vector.load %arg4[%c0_58, %c0_59, %c0_60] : memref<2x1x32xf32, #tpu.memory_space<vmem>>, vector<1x1x32xf32>
    %134 = vector.shape_cast %133 : vector<1x1x32xf32> to vector<1x32xf32>
    %135 = vector.broadcast %134 : vector<1x32xf32> to vector<128x32xf32>
    %136 = arith.addf %132, %135 : vector<128x32xf32>
    %cst_61 = arith.constant dense<0.000000e+00> : vector<128xf32>
    %137 = vector.multi_reduction <add>, %136, %cst_61 [1] : vector<128x32xf32> to vector<128xf32>
    %138 = vector.shape_cast %137 : vector<128xf32> to vector<128x1xf32>
    %cst_62 = arith.constant 3.200000e+01 : f32
    %139 = vector.broadcast %cst_62 : f32 to vector<128x1xf32>
    %140 = arith.divf %138, %139 : vector<128x1xf32>
    %141 = vector.broadcast %140 : vector<128x1xf32> to vector<128x32xf32>
    %142 = arith.subf %136, %141 : vector<128x32xf32>
    %143 = arith.mulf %142, %142 : vector<128x32xf32>
    %cst_63 = arith.constant dense<0.000000e+00> : vector<128xf32>
    %144 = vector.multi_reduction <add>, %143, %cst_63 [1] : vector<128x32xf32> to vector<128xf32>
    %145 = vector.shape_cast %144 : vector<128xf32> to vector<128x1xf32>
    %cst_64 = arith.constant 3.200000e+01 : f32
    %146 = vector.broadcast %cst_64 : f32 to vector<128x1xf32>
    %147 = arith.divf %145, %146 : vector<128x1xf32>
    %cst_65 = arith.constant 9.99999974E-6 : f32
    %148 = vector.broadcast %cst_65 : f32 to vector<128x1xf32>
    %149 = arith.addf %147, %148 : vector<128x1xf32>
    %150 = math.rsqrt %149 : vector<128x1xf32>
    %151 = vector.broadcast %150 : vector<128x1xf32> to vector<128x32xf32>
    %152 = arith.mulf %142, %151 : vector<128x32xf32>
    %153 = arith.truncf %152 : vector<128x32xf32> to vector<128x32xbf16>
    %c0_66 = arith.constant 0 : index
    %c0_67 = arith.constant 0 : index
    %c0_68 = arith.constant 0 : index
    %154 = vector.load %arg6[%c0_66, %c0_67, %c0_68] : memref<2x32x128xbf16, #tpu.memory_space<vmem>>, vector<1x32x128xbf16>
    %155 = vector.shape_cast %154 : vector<1x32x128xbf16> to vector<32x128xbf16>
    %cst_69 = arith.constant dense<0.000000e+00> : vector<128x128xf32>
    %156 = tpu.matmul %153, %155, %cst_69 {dimension_numbers = #tpu.dot_dimension_numbers<[1], [0], [0], [1], [0, 0, 1, 1], [], []>} : vector<128x32xbf16>, vector<32x128xbf16>, vector<128x128xf32> -> vector<128x128xf32>
    %c0_70 = arith.constant 0 : index
    %c0_71 = arith.constant 0 : index
    %c0_72 = arith.constant 0 : index
    %157 = vector.load %arg7[%c0_70, %c0_71, %c0_72] : memref<2x1x128xf32, #tpu.memory_space<vmem>>, vector<1x1x128xf32>
    %158 = vector.shape_cast %157 : vector<1x1x128xf32> to vector<1x128xf32>
    %159 = vector.broadcast %158 : vector<1x128xf32> to vector<128x128xf32>
    %160 = arith.addf %156, %159 : vector<128x128xf32>
    %cst_73 = arith.constant 5.000000e-01 : f32
    %161 = vector.broadcast %cst_73 : f32 to vector<128x128xf32>
    %162 = arith.mulf %161, %160 : vector<128x128xf32>
    %cst_74 = arith.constant 4.471500e-02 : f32
    %163 = vector.broadcast %cst_74 : f32 to vector<128x128xf32>
    %164 = arith.mulf %163, %160 : vector<128x128xf32>
    %165 = arith.mulf %164, %160 : vector<128x128xf32>
    %166 = arith.mulf %165, %160 : vector<128x128xf32>
    %167 = arith.addf %160, %166 : vector<128x128xf32>
    %cst_75 = arith.constant 0.797884583 : f32
    %168 = vector.broadcast %cst_75 : f32 to vector<128x128xf32>
    %169 = arith.mulf %168, %167 : vector<128x128xf32>
    %170 = math.tanh %169 : vector<128x128xf32>
    %cst_76 = arith.constant 1.000000e+00 : f32
    %171 = vector.broadcast %cst_76 : f32 to vector<128x128xf32>
    %172 = arith.addf %171, %170 : vector<128x128xf32>
    %173 = arith.mulf %162, %172 : vector<128x128xf32>
    %174 = arith.truncf %173 : vector<128x128xf32> to vector<128x128xbf16>
    %c0_77 = arith.constant 0 : index
    %c0_78 = arith.constant 0 : index
    %c0_79 = arith.constant 0 : index
    %175 = vector.load %arg8[%c0_77, %c0_78, %c0_79] : memref<2x128x32xbf16, #tpu.memory_space<vmem>>, vector<1x128x32xbf16>
    %176 = vector.shape_cast %175 : vector<1x128x32xbf16> to vector<128x32xbf16>
    %cst_80 = arith.constant dense<0.000000e+00> : vector<128x32xf32>
    %177 = tpu.matmul %174, %176, %cst_80 {dimension_numbers = #tpu.dot_dimension_numbers<[1], [0], [0], [1], [0, 0, 1, 1], [], []>} : vector<128x128xbf16>, vector<128x32xbf16>, vector<128x32xf32> -> vector<128x32xf32>
    %c0_81 = arith.constant 0 : index
    %c0_82 = arith.constant 0 : index
    %c0_83 = arith.constant 0 : index
    %178 = vector.load %arg9[%c0_81, %c0_82, %c0_83] : memref<2x1x32xf32, #tpu.memory_space<vmem>>, vector<1x1x32xf32>
    %179 = vector.shape_cast %178 : vector<1x1x32xf32> to vector<1x32xf32>
    %180 = vector.broadcast %179 : vector<1x32xf32> to vector<128x32xf32>
    %181 = arith.addf %177, %180 : vector<128x32xf32>
    %182 = arith.addf %136, %181 : vector<128x32xf32>
    %cst_84 = arith.constant dense<0.000000e+00> : vector<128xf32>
    %183 = vector.multi_reduction <add>, %182, %cst_84 [1] : vector<128x32xf32> to vector<128xf32>
    %184 = vector.shape_cast %183 : vector<128xf32> to vector<128x1xf32>
    %cst_85 = arith.constant 3.200000e+01 : f32
    %185 = vector.broadcast %cst_85 : f32 to vector<128x1xf32>
    %186 = arith.divf %184, %185 : vector<128x1xf32>
    %187 = vector.broadcast %186 : vector<128x1xf32> to vector<128x32xf32>
    %188 = arith.subf %182, %187 : vector<128x32xf32>
    %189 = arith.mulf %188, %188 : vector<128x32xf32>
    %cst_86 = arith.constant dense<0.000000e+00> : vector<128xf32>
    %190 = vector.multi_reduction <add>, %189, %cst_86 [1] : vector<128x32xf32> to vector<128xf32>
    %191 = vector.shape_cast %190 : vector<128xf32> to vector<128x1xf32>
    %cst_87 = arith.constant 3.200000e+01 : f32
    %192 = vector.broadcast %cst_87 : f32 to vector<128x1xf32>
    %193 = arith.divf %191, %192 : vector<128x1xf32>
    %cst_88 = arith.constant 9.99999974E-6 : f32
    %194 = vector.broadcast %cst_88 : f32 to vector<128x1xf32>
    %195 = arith.addf %193, %194 : vector<128x1xf32>
    %196 = math.rsqrt %195 : vector<128x1xf32>
    %197 = vector.broadcast %196 : vector<128x1xf32> to vector<128x32xf32>
    %198 = arith.mulf %188, %197 : vector<128x32xf32>
    %199 = arith.truncf %198 : vector<128x32xf32> to vector<128x32xbf16>
    %c1_89 = arith.constant 1 : index
    %c0_90 = arith.constant 0 : index
    %c0_91 = arith.constant 0 : index
    %200 = vector.load %arg1[%c1_89, %c0_90, %c0_91] : memref<2x32x96xbf16, #tpu.memory_space<vmem>>, vector<1x32x96xbf16>
    %201 = vector.shape_cast %200 : vector<1x32x96xbf16> to vector<32x96xbf16>
    %cst_92 = arith.constant dense<0.000000e+00> : vector<128x96xf32>
    %202 = tpu.matmul %199, %201, %cst_92 {dimension_numbers = #tpu.dot_dimension_numbers<[1], [0], [0], [1], [0, 0, 1, 1], [], []>} : vector<128x32xbf16>, vector<32x96xbf16>, vector<128x96xf32> -> vector<128x96xf32>
    %c1_93 = arith.constant 1 : index
    %c0_94 = arith.constant 0 : index
    %c0_95 = arith.constant 0 : index
    %203 = vector.load %arg2[%c1_93, %c0_94, %c0_95] : memref<2x1x96xf32, #tpu.memory_space<vmem>>, vector<1x1x96xf32>
    %204 = vector.shape_cast %203 : vector<1x1x96xf32> to vector<1x96xf32>
    %205 = vector.broadcast %204 : vector<1x96xf32> to vector<128x96xf32>
    %206 = arith.addf %202, %205 : vector<128x96xf32>
    %207 = vector.extract_strided_slice %206 {offsets = [0, 0], sizes = [128, 8], strides = [1, 1]} : vector<128x96xf32> to vector<128x8xf32>
    %208 = arith.truncf %207 : vector<128x8xf32> to vector<128x8xbf16>
    %209 = vector.extract_strided_slice %206 {offsets = [0, 32], sizes = [128, 8], strides = [1, 1]} : vector<128x96xf32> to vector<128x8xf32>
    %210 = arith.truncf %209 : vector<128x8xf32> to vector<128x8xbf16>
    %211 = vector.extract_strided_slice %206 {offsets = [0, 64], sizes = [128, 8], strides = [1, 1]} : vector<128x96xf32> to vector<128x8xf32>
    %212 = arith.truncf %211 : vector<128x8xf32> to vector<128x8xbf16>
    %cst_96 = arith.constant dense<0.000000e+00> : vector<128x128xf32>
    %213 = tpu.matmul %208, %210, %cst_96 {dimension_numbers = #tpu.dot_dimension_numbers<[1], [1], [0], [0], [0, 0, 1, 0], [], []>} : vector<128x8xbf16>, vector<128x8xbf16>, vector<128x128xf32> -> vector<128x128xf32>
    %c1_97 = arith.constant 1 : index
    %c0_98 = arith.constant 0 : index
    %c0_99 = arith.constant 0 : index
    %c0_100 = arith.constant 0 : index
    %214 = vector.load %arg5[%c1_97, %c0_98, %c0_99, %c0_100] : memref<2x4x128x128xbf16, #tpu.memory_space<vmem>>, vector<1x1x128x128xbf16>
    %215 = vector.shape_cast %214 : vector<1x1x128x128xbf16> to vector<128x128xbf16>
    %216 = arith.extf %215 : vector<128x128xbf16> to vector<128x128xf32>
    %217 = arith.addf %213, %216 : vector<128x128xf32>
    %cst_101 = arith.constant dense<0xFF800000> : vector<128xf32>
    %218 = vector.multi_reduction <maximumf>, %217, %cst_101 [1] : vector<128x128xf32> to vector<128xf32>
    %219 = vector.shape_cast %218 : vector<128xf32> to vector<128x1xf32>
    %220 = vector.broadcast %219 : vector<128x1xf32> to vector<128x128xf32>
    %221 = arith.subf %217, %220 : vector<128x128xf32>
    %222 = math.exp %221 : vector<128x128xf32>
    %cst_102 = arith.constant dense<0.000000e+00> : vector<128xf32>
    %223 = vector.multi_reduction <add>, %222, %cst_102 [1] : vector<128x128xf32> to vector<128xf32>
    %224 = vector.shape_cast %223 : vector<128xf32> to vector<128x1xf32>
    %225 = tpu.reciprocal %224 {approx = true} : vector<128x1xf32> -> vector<128x1xf32>
    %226 = vector.broadcast %225 : vector<128x1xf32> to vector<128x128xf32>
    %227 = arith.mulf %222, %226 : vector<128x128xf32>
    %228 = arith.truncf %227 : vector<128x128xf32> to vector<128x128xbf16>
    %c1_103 = arith.constant 1 : index
    %c0_104 = arith.constant 0 : index
    %c0_105 = arith.constant 0 : index
    %c0_106 = arith.constant 0 : index
    %229 = vector.load %arg3[%c1_103, %c0_104, %c0_105, %c0_106] : memref<2x4x8x32xbf16, #tpu.memory_space<vmem>>, vector<1x1x8x32xbf16>
    %230 = vector.shape_cast %229 : vector<1x1x8x32xbf16> to vector<8x32xbf16>
    %cst_107 = arith.constant dense<0.000000e+00> : vector<128x32xf32>
    %231 = tpu.matmul %212, %230, %cst_107 {dimension_numbers = #tpu.dot_dimension_numbers<[1], [0], [0], [1], [0, 0, 1, 1], [], []>} : vector<128x8xbf16>, vector<8x32xbf16>, vector<128x32xf32> -> vector<128x32xf32>
    %232 = arith.truncf %231 : vector<128x32xf32> to vector<128x32xbf16>
    %233 = vector.extract_strided_slice %206 {offsets = [0, 8], sizes = [128, 8], strides = [1, 1]} : vector<128x96xf32> to vector<128x8xf32>
    %234 = arith.truncf %233 : vector<128x8xf32> to vector<128x8xbf16>
    %235 = vector.extract_strided_slice %206 {offsets = [0, 40], sizes = [128, 8], strides = [1, 1]} : vector<128x96xf32> to vector<128x8xf32>
    %236 = arith.truncf %235 : vector<128x8xf32> to vector<128x8xbf16>
    %237 = vector.extract_strided_slice %206 {offsets = [0, 72], sizes = [128, 8], strides = [1, 1]} : vector<128x96xf32> to vector<128x8xf32>
    %238 = arith.truncf %237 : vector<128x8xf32> to vector<128x8xbf16>
    %cst_108 = arith.constant dense<0.000000e+00> : vector<128x128xf32>
    %239 = tpu.matmul %234, %236, %cst_108 {dimension_numbers = #tpu.dot_dimension_numbers<[1], [1], [0], [0], [0, 0, 1, 0], [], []>} : vector<128x8xbf16>, vector<128x8xbf16>, vector<128x128xf32> -> vector<128x128xf32>
    %c1_109 = arith.constant 1 : index
    %c1_110 = arith.constant 1 : index
    %c0_111 = arith.constant 0 : index
    %c0_112 = arith.constant 0 : index
    %240 = vector.load %arg5[%c1_109, %c1_110, %c0_111, %c0_112] : memref<2x4x128x128xbf16, #tpu.memory_space<vmem>>, vector<1x1x128x128xbf16>
    %241 = vector.shape_cast %240 : vector<1x1x128x128xbf16> to vector<128x128xbf16>
    %242 = arith.extf %241 : vector<128x128xbf16> to vector<128x128xf32>
    %243 = arith.addf %239, %242 : vector<128x128xf32>
    %cst_113 = arith.constant dense<0xFF800000> : vector<128xf32>
    %244 = vector.multi_reduction <maximumf>, %243, %cst_113 [1] : vector<128x128xf32> to vector<128xf32>
    %245 = vector.shape_cast %244 : vector<128xf32> to vector<128x1xf32>
    %246 = vector.broadcast %245 : vector<128x1xf32> to vector<128x128xf32>
    %247 = arith.subf %243, %246 : vector<128x128xf32>
    %248 = math.exp %247 : vector<128x128xf32>
    %cst_114 = arith.constant dense<0.000000e+00> : vector<128xf32>
    %249 = vector.multi_reduction <add>, %248, %cst_114 [1] : vector<128x128xf32> to vector<128xf32>
    %250 = vector.shape_cast %249 : vector<128xf32> to vector<128x1xf32>
    %251 = tpu.reciprocal %250 {approx = true} : vector<128x1xf32> -> vector<128x1xf32>
    %252 = vector.broadcast %251 : vector<128x1xf32> to vector<128x128xf32>
    %253 = arith.mulf %248, %252 : vector<128x128xf32>
    %254 = arith.truncf %253 : vector<128x128xf32> to vector<128x128xbf16>
    %c1_115 = arith.constant 1 : index
    %c1_116 = arith.constant 1 : index
    %c0_117 = arith.constant 0 : index
    %c0_118 = arith.constant 0 : index
    %255 = vector.load %arg3[%c1_115, %c1_116, %c0_117, %c0_118] : memref<2x4x8x32xbf16, #tpu.memory_space<vmem>>, vector<1x1x8x32xbf16>
    %256 = vector.shape_cast %255 : vector<1x1x8x32xbf16> to vector<8x32xbf16>
    %cst_119 = arith.constant dense<0.000000e+00> : vector<128x32xf32>
    %257 = tpu.matmul %238, %256, %cst_119 {dimension_numbers = #tpu.dot_dimension_numbers<[1], [0], [0], [1], [0, 0, 1, 1], [], []>} : vector<128x8xbf16>, vector<8x32xbf16>, vector<128x32xf32> -> vector<128x32xf32>
    %258 = arith.truncf %257 : vector<128x32xf32> to vector<128x32xbf16>
    %259 = vector.extract_strided_slice %206 {offsets = [0, 16], sizes = [128, 8], strides = [1, 1]} : vector<128x96xf32> to vector<128x8xf32>
    %260 = arith.truncf %259 : vector<128x8xf32> to vector<128x8xbf16>
    %261 = vector.extract_strided_slice %206 {offsets = [0, 48], sizes = [128, 8], strides = [1, 1]} : vector<128x96xf32> to vector<128x8xf32>
    %262 = arith.truncf %261 : vector<128x8xf32> to vector<128x8xbf16>
    %263 = vector.extract_strided_slice %206 {offsets = [0, 80], sizes = [128, 8], strides = [1, 1]} : vector<128x96xf32> to vector<128x8xf32>
    %264 = arith.truncf %263 : vector<128x8xf32> to vector<128x8xbf16>
    %cst_120 = arith.constant dense<0.000000e+00> : vector<128x128xf32>
    %265 = tpu.matmul %260, %262, %cst_120 {dimension_numbers = #tpu.dot_dimension_numbers<[1], [1], [0], [0], [0, 0, 1, 0], [], []>} : vector<128x8xbf16>, vector<128x8xbf16>, vector<128x128xf32> -> vector<128x128xf32>
    %c1_121 = arith.constant 1 : index
    %c2_122 = arith.constant 2 : index
    %c0_123 = arith.constant 0 : index
    %c0_124 = arith.constant 0 : index
    %266 = vector.load %arg5[%c1_121, %c2_122, %c0_123, %c0_124] : memref<2x4x128x128xbf16, #tpu.memory_space<vmem>>, vector<1x1x128x128xbf16>
    %267 = vector.shape_cast %266 : vector<1x1x128x128xbf16> to vector<128x128xbf16>
    %268 = arith.extf %267 : vector<128x128xbf16> to vector<128x128xf32>
    %269 = arith.addf %265, %268 : vector<128x128xf32>
    %cst_125 = arith.constant dense<0xFF800000> : vector<128xf32>
    %270 = vector.multi_reduction <maximumf>, %269, %cst_125 [1] : vector<128x128xf32> to vector<128xf32>
    %271 = vector.shape_cast %270 : vector<128xf32> to vector<128x1xf32>
    %272 = vector.broadcast %271 : vector<128x1xf32> to vector<128x128xf32>
    %273 = arith.subf %269, %272 : vector<128x128xf32>
    %274 = math.exp %273 : vector<128x128xf32>
    %cst_126 = arith.constant dense<0.000000e+00> : vector<128xf32>
    %275 = vector.multi_reduction <add>, %274, %cst_126 [1] : vector<128x128xf32> to vector<128xf32>
    %276 = vector.shape_cast %275 : vector<128xf32> to vector<128x1xf32>
    %277 = tpu.reciprocal %276 {approx = true} : vector<128x1xf32> -> vector<128x1xf32>
    %278 = vector.broadcast %277 : vector<128x1xf32> to vector<128x128xf32>
    %279 = arith.mulf %274, %278 : vector<128x128xf32>
    %280 = arith.truncf %279 : vector<128x128xf32> to vector<128x128xbf16>
    %c1_127 = arith.constant 1 : index
    %c2_128 = arith.constant 2 : index
    %c0_129 = arith.constant 0 : index
    %c0_130 = arith.constant 0 : index
    %281 = vector.load %arg3[%c1_127, %c2_128, %c0_129, %c0_130] : memref<2x4x8x32xbf16, #tpu.memory_space<vmem>>, vector<1x1x8x32xbf16>
    %282 = vector.shape_cast %281 : vector<1x1x8x32xbf16> to vector<8x32xbf16>
    %cst_131 = arith.constant dense<0.000000e+00> : vector<128x32xf32>
    %283 = tpu.matmul %264, %282, %cst_131 {dimension_numbers = #tpu.dot_dimension_numbers<[1], [0], [0], [1], [0, 0, 1, 1], [], []>} : vector<128x8xbf16>, vector<8x32xbf16>, vector<128x32xf32> -> vector<128x32xf32>
    %284 = arith.truncf %283 : vector<128x32xf32> to vector<128x32xbf16>
    %285 = vector.extract_strided_slice %206 {offsets = [0, 24], sizes = [128, 8], strides = [1, 1]} : vector<128x96xf32> to vector<128x8xf32>
    %286 = arith.truncf %285 : vector<128x8xf32> to vector<128x8xbf16>
    %287 = vector.extract_strided_slice %206 {offsets = [0, 56], sizes = [128, 8], strides = [1, 1]} : vector<128x96xf32> to vector<128x8xf32>
    %288 = arith.truncf %287 : vector<128x8xf32> to vector<128x8xbf16>
    %289 = vector.extract_strided_slice %206 {offsets = [0, 88], sizes = [128, 8], strides = [1, 1]} : vector<128x96xf32> to vector<128x8xf32>
    %290 = arith.truncf %289 : vector<128x8xf32> to vector<128x8xbf16>
    %cst_132 = arith.constant dense<0.000000e+00> : vector<128x128xf32>
    %291 = tpu.matmul %286, %288, %cst_132 {dimension_numbers = #tpu.dot_dimension_numbers<[1], [1], [0], [0], [0, 0, 1, 0], [], []>} : vector<128x8xbf16>, vector<128x8xbf16>, vector<128x128xf32> -> vector<128x128xf32>
    %c1_133 = arith.constant 1 : index
    %c3_134 = arith.constant 3 : index
    %c0_135 = arith.constant 0 : index
    %c0_136 = arith.constant 0 : index
    %292 = vector.load %arg5[%c1_133, %c3_134, %c0_135, %c0_136] : memref<2x4x128x128xbf16, #tpu.memory_space<vmem>>, vector<1x1x128x128xbf16>
    %293 = vector.shape_cast %292 : vector<1x1x128x128xbf16> to vector<128x128xbf16>
    %294 = arith.extf %293 : vector<128x128xbf16> to vector<128x128xf32>
    %295 = arith.addf %291, %294 : vector<128x128xf32>
    %cst_137 = arith.constant dense<0xFF800000> : vector<128xf32>
    %296 = vector.multi_reduction <maximumf>, %295, %cst_137 [1] : vector<128x128xf32> to vector<128xf32>
    %297 = vector.shape_cast %296 : vector<128xf32> to vector<128x1xf32>
    %298 = vector.broadcast %297 : vector<128x1xf32> to vector<128x128xf32>
    %299 = arith.subf %295, %298 : vector<128x128xf32>
    %300 = math.exp %299 : vector<128x128xf32>
    %cst_138 = arith.constant dense<0.000000e+00> : vector<128xf32>
    %301 = vector.multi_reduction <add>, %300, %cst_138 [1] : vector<128x128xf32> to vector<128xf32>
    %302 = vector.shape_cast %301 : vector<128xf32> to vector<128x1xf32>
    %303 = tpu.reciprocal %302 {approx = true} : vector<128x1xf32> -> vector<128x1xf32>
    %304 = vector.broadcast %303 : vector<128x1xf32> to vector<128x128xf32>
    %305 = arith.mulf %300, %304 : vector<128x128xf32>
    %306 = arith.truncf %305 : vector<128x128xf32> to vector<128x128xbf16>
    %c1_139 = arith.constant 1 : index
    %c3_140 = arith.constant 3 : index
    %c0_141 = arith.constant 0 : index
    %c0_142 = arith.constant 0 : index
    %307 = vector.load %arg3[%c1_139, %c3_140, %c0_141, %c0_142] : memref<2x4x8x32xbf16, #tpu.memory_space<vmem>>, vector<1x1x8x32xbf16>
    %308 = vector.shape_cast %307 : vector<1x1x8x32xbf16> to vector<8x32xbf16>
    %cst_143 = arith.constant dense<0.000000e+00> : vector<128x32xf32>
    %309 = tpu.matmul %290, %308, %cst_143 {dimension_numbers = #tpu.dot_dimension_numbers<[1], [0], [0], [1], [0, 0, 1, 1], [], []>} : vector<128x8xbf16>, vector<8x32xbf16>, vector<128x32xf32> -> vector<128x32xf32>
    %310 = arith.truncf %309 : vector<128x32xf32> to vector<128x32xbf16>
    %311 = tpu.concatenate %228, %254, %280, %306 in 1 : vector<128x128xbf16>, vector<128x128xbf16>, vector<128x128xbf16>, vector<128x128xbf16> -> vector<128x512xbf16>
    %312 = tpu.concatenate %232, %258, %284, %310 in 0 : vector<128x32xbf16>, vector<128x32xbf16>, vector<128x32xbf16>, vector<128x32xbf16> -> vector<512x32xbf16>
    %cst_144 = arith.constant dense<0.000000e+00> : vector<128x32xf32>
    %313 = tpu.matmul %311, %312, %cst_144 {dimension_numbers = #tpu.dot_dimension_numbers<[1], [0], [0], [1], [0, 0, 1, 1], [], []>} : vector<128x512xbf16>, vector<512x32xbf16>, vector<128x32xf32> -> vector<128x32xf32>
    %314 = arith.addf %182, %313 : vector<128x32xf32>
    %c1_145 = arith.constant 1 : index
    %c0_146 = arith.constant 0 : index
    %c0_147 = arith.constant 0 : index
    %315 = vector.load %arg4[%c1_145, %c0_146, %c0_147] : memref<2x1x32xf32, #tpu.memory_space<vmem>>, vector<1x1x32xf32>
    %316 = vector.shape_cast %315 : vector<1x1x32xf32> to vector<1x32xf32>
    %317 = vector.broadcast %316 : vector<1x32xf32> to vector<128x32xf32>
    %318 = arith.addf %314, %317 : vector<128x32xf32>
    %cst_148 = arith.constant dense<0.000000e+00> : vector<128xf32>
    %319 = vector.multi_reduction <add>, %318, %cst_148 [1] : vector<128x32xf32> to vector<128xf32>
    %320 = vector.shape_cast %319 : vector<128xf32> to vector<128x1xf32>
    %cst_149 = arith.constant 3.200000e+01 : f32
    %321 = vector.broadcast %cst_149 : f32 to vector<128x1xf32>
    %322 = arith.divf %320, %321 : vector<128x1xf32>
    %323 = vector.broadcast %322 : vector<128x1xf32> to vector<128x32xf32>
    %324 = arith.subf %318, %323 : vector<128x32xf32>
    %325 = arith.mulf %324, %324 : vector<128x32xf32>
    %cst_150 = arith.constant dense<0.000000e+00> : vector<128xf32>
    %326 = vector.multi_reduction <add>, %325, %cst_150 [1] : vector<128x32xf32> to vector<128xf32>
    %327 = vector.shape_cast %326 : vector<128xf32> to vector<128x1xf32>
    %cst_151 = arith.constant 3.200000e+01 : f32
    %328 = vector.broadcast %cst_151 : f32 to vector<128x1xf32>
    %329 = arith.divf %327, %328 : vector<128x1xf32>
    %cst_152 = arith.constant 9.99999974E-6 : f32
    %330 = vector.broadcast %cst_152 : f32 to vector<128x1xf32>
    %331 = arith.addf %329, %330 : vector<128x1xf32>
    %332 = math.rsqrt %331 : vector<128x1xf32>
    %333 = vector.broadcast %332 : vector<128x1xf32> to vector<128x32xf32>
    %334 = arith.mulf %324, %333 : vector<128x32xf32>
    %335 = arith.truncf %334 : vector<128x32xf32> to vector<128x32xbf16>
    %c1_153 = arith.constant 1 : index
    %c0_154 = arith.constant 0 : index
    %c0_155 = arith.constant 0 : index
    %336 = vector.load %arg6[%c1_153, %c0_154, %c0_155] : memref<2x32x128xbf16, #tpu.memory_space<vmem>>, vector<1x32x128xbf16>
    %337 = vector.shape_cast %336 : vector<1x32x128xbf16> to vector<32x128xbf16>
    %cst_156 = arith.constant dense<0.000000e+00> : vector<128x128xf32>
    %338 = tpu.matmul %335, %337, %cst_156 {dimension_numbers = #tpu.dot_dimension_numbers<[1], [0], [0], [1], [0, 0, 1, 1], [], []>} : vector<128x32xbf16>, vector<32x128xbf16>, vector<128x128xf32> -> vector<128x128xf32>
    %c1_157 = arith.constant 1 : index
    %c0_158 = arith.constant 0 : index
    %c0_159 = arith.constant 0 : index
    %339 = vector.load %arg7[%c1_157, %c0_158, %c0_159] : memref<2x1x128xf32, #tpu.memory_space<vmem>>, vector<1x1x128xf32>
    %340 = vector.shape_cast %339 : vector<1x1x128xf32> to vector<1x128xf32>
    %341 = vector.broadcast %340 : vector<1x128xf32> to vector<128x128xf32>
    %342 = arith.addf %338, %341 : vector<128x128xf32>
    %cst_160 = arith.constant 5.000000e-01 : f32
    %343 = vector.broadcast %cst_160 : f32 to vector<128x128xf32>
    %344 = arith.mulf %343, %342 : vector<128x128xf32>
    %cst_161 = arith.constant 4.471500e-02 : f32
    %345 = vector.broadcast %cst_161 : f32 to vector<128x128xf32>
    %346 = arith.mulf %345, %342 : vector<128x128xf32>
    %347 = arith.mulf %346, %342 : vector<128x128xf32>
    %348 = arith.mulf %347, %342 : vector<128x128xf32>
    %349 = arith.addf %342, %348 : vector<128x128xf32>
    %cst_162 = arith.constant 0.797884583 : f32
    %350 = vector.broadcast %cst_162 : f32 to vector<128x128xf32>
    %351 = arith.mulf %350, %349 : vector<128x128xf32>
    %352 = math.tanh %351 : vector<128x128xf32>
    %cst_163 = arith.constant 1.000000e+00 : f32
    %353 = vector.broadcast %cst_163 : f32 to vector<128x128xf32>
    %354 = arith.addf %353, %352 : vector<128x128xf32>
    %355 = arith.mulf %344, %354 : vector<128x128xf32>
    %356 = arith.truncf %355 : vector<128x128xf32> to vector<128x128xbf16>
    %c1_164 = arith.constant 1 : index
    %c0_165 = arith.constant 0 : index
    %c0_166 = arith.constant 0 : index
    %357 = vector.load %arg8[%c1_164, %c0_165, %c0_166] : memref<2x128x32xbf16, #tpu.memory_space<vmem>>, vector<1x128x32xbf16>
    %358 = vector.shape_cast %357 : vector<1x128x32xbf16> to vector<128x32xbf16>
    %cst_167 = arith.constant dense<0.000000e+00> : vector<128x32xf32>
    %359 = tpu.matmul %356, %358, %cst_167 {dimension_numbers = #tpu.dot_dimension_numbers<[1], [0], [0], [1], [0, 0, 1, 1], [], []>} : vector<128x128xbf16>, vector<128x32xbf16>, vector<128x32xf32> -> vector<128x32xf32>
    %c1_168 = arith.constant 1 : index
    %c0_169 = arith.constant 0 : index
    %c0_170 = arith.constant 0 : index
    %360 = vector.load %arg9[%c1_168, %c0_169, %c0_170] : memref<2x1x32xf32, #tpu.memory_space<vmem>>, vector<1x1x32xf32>
    %361 = vector.shape_cast %360 : vector<1x1x32xf32> to vector<1x32xf32>
    %362 = vector.broadcast %361 : vector<1x32xf32> to vector<128x32xf32>
    %363 = arith.addf %359, %362 : vector<128x32xf32>
    %364 = arith.addf %318, %363 : vector<128x32xf32>
    %c0_171 = arith.constant 0 : index
    %c0_172 = arith.constant 0 : index
    %365 = vector.load %arg10[%c0_171, %c0_172] : memref<128x32xf32, #tpu.memory_space<vmem>>, vector<128x32xf32>
    tpu.vector_store %arg10[%c0_171, %c0_172], %364 {strides = array<i32>} : memref<128x32xf32, #tpu.memory_space<vmem>>, vector<128x32xf32>,
    return
  }
}

</mosaic_0001>

<bundles_post_ra>
// kernel: tpu_custom_call.1
= control target key start
LH: loop header
LB: loop body
LE: loop exit
PB: predicated region body
PF: predicated region fallthrough
CT: control target
= control target key end

     0   :  { %15 = vsyncpa [#allocation3], 0  ;;  %s9250_s13 = smov [#allocation2]   ;;  %s12865_s0 = inlined_call_operand.vmem [shape: f32[128,32], index: 0, kind: input, shape index: {}]   ;;  %s12866_s1 = inlined_call_operand.vmem [shape: bf16[2,32,96], index: 1, kind: input, shape index: {}]   ;;  %s12867_s2 = inlined_call_operand.vmem [shape: f32[2,1,96], index: 2, kind: input, shape index: {}]   ;;  %s12868_s3 = inlined_call_operand.vmem [shape: bf16[2,4,8,32], index: 3, kind: input, shape index: {}]   ;;  %s12869_s4 = inlined_call_operand.vmem [shape: f32[2,1,32], index: 4, kind: input, shape index: {}]   ;;  %s12870_s5 = inlined_call_operand.hbm [shape: bf16[2,4,128,128], index: 5, kind: input, shape index: {}]   ;;  %s12871_s6 = inlined_call_operand.vmem [shape: bf16[2,32,128], index: 6, kind: input, shape index: {}]   ;;  %s12872_s7 = inlined_call_operand.vmem [shape: f32[2,1,128], index: 7, kind: input, shape index: {}]   ;;  %s12873_s8 = inlined_call_operand.vmem [shape: bf16[2,128,32], index: 8, kind: input, shape index: {}]   ;;  %s12874_s9 = inlined_call_operand.vmem [shape: f32[2,1,32], index: 9, kind: input, shape index: {}]   ;;  %s12875_s10 = inlined_call_operand.vmem [shape: f32[128,32], index: 10, kind: output, shape index: {}]  }
   0x1   :  { %s31_s14 = sshll.u32 %s9250_s13, 4  ;;  %s9226_s17 = scalar_lea.hbm %s12870_s5, 8192  ;;  %s32_s14 = int_to_ptr.vmem [resolvable:$true] %s31_s14 }
   0x2   :  { %p9227_p0 = scmp.ne.s32.totalorder %s12870_s5, %s9226_s17  ;;  %p9230_p1 = scmp.lt.u32.totalorder %s9226_s17, %s12870_s5 }
   0x4   :  { %p9232_p2 = pnand %p9230_p1, %p9227_p0 }
   0x6   :  { %9235 = shalt.err (!%p9232_p2)
}
   0x7   :  { %s9236_s22 = scalar_lea.vmem %s32_s14, 8192  ;;  %p9241_p4 = scmp.lt.s32.totalorder %s32_s14, %s32_s14 }
   0x8   :  { %p9237_p3 = scmp.ne.s32.totalorder %s32_s14, %s9236_s22  ;;  %p9242_p5 = scmp.lt.s32.totalorder %s9236_s22, %s9236_s22 }
   0xa   :  { %p9243_p6 = por %p9242_p5, %p9241_p4 }
   0xc   :  { %p9244_p7 = pnand %p9243_p6, %p9237_p3 }
   0xe   :  { %9247 = shalt.err (!%p9244_p7)
}
   0xf   :  { %s9251_s23 = smov 64   ;;  %s9252_s24 = smov 4  }
  0x10   :  { %37 = dma.hbm_to_vmem [thread:$0]  %s12870_s5, 8192, %s32_s14, [#allocation3], %s9251_s23, %s9251_s23, %s9252_s24  }
  0x11   :  { %9248 = dma.done.wait [#allocation3], 8192  }
  0x12   :  { %9249 = vsyncadd [#allocation3], 4294959104  ;;  %vm66_vm0 = vcmask 261120   ;;  %v50_v0 = vld [vmem:[%s12865_s0] sm:$0xff]  ;;  %v52_v1 = vld [vmem:[%s12865_s0 + $0x10] sm:$0xff]  ;;  %vm831_vm1 = vcmask 1043456  }
  0x13   :  { %v51_v2 = vld [vmem:[%s12865_s0 + $0x8] sm:$0xff]  ;;  %v67_v3 = vsel %vm66_vm0, %v50_v0, 0.0  ;;  %v73_v4 = vsel %vm66_vm0, %v52_v1, 0.0  ;;  %v53_v5 = vld [vmem:[%s12865_s0 + $0x18] sm:$0xff]  ;;  %v9349_v6 = vld [vmem:[%s12865_s0 + $0x20] sm:$0xff]  ;;  %vm492_vm2 = vcmask 64512  }
  0x14   :  { %v9354_v7 = vld [vmem:[%s12865_s0 + $0x28] sm:$0xff]  ;;  %68 = vadd.xlane.f32.xlu0 %v67_v3  ;;  %74 = vadd.xlane.f32.xlu1 %v73_v4  ;;  %v9359_v8 = vld [vmem:[%s12865_s0 + $0x30] sm:$0xff]  ;;  %v9364_v9 = vld [vmem:[%s12865_s0 + $0x38] sm:$0xff]  ;;  %v70_v11 = vsel %vm66_vm0, %v51_v2, 0.0  ;;  %v76_v12 = vsel %vm66_vm0, %v53_v5, 0.0  ;;  %v79_v16 = vsel %vm66_vm0, %v9349_v6, 0.0 }
  0x15   :  { %v9369_v10 = vld [vmem:[%s12865_s0 + $0x40] sm:$0xff]  ;;  %v9376_v13 = vld [vmem:[%s12865_s0 + $0x48] sm:$0xff]  ;;  %v9381_v14 = vld [vmem:[%s12865_s0 + $0x50] sm:$0xff]  ;;  %v82_v17 = vsel %vm66_vm0, %v9354_v7, 0.0  ;;  %v85_v18 = vsel %vm66_vm0, %v9359_v8, 0.0  ;;  %v88_v19 = vsel %vm66_vm0, %v9364_v9, 0.0 }
  0x16   :  { %v9386_v15 = vld [vmem:[%s12865_s0 + $0x58] sm:$0xff]  ;;  %v91_v20 = vsel %vm66_vm0, %v9369_v10, 0.0  ;;  %v94_v21 = vsel %vm66_vm0, %v9376_v13, 0.0  ;;  %v97_v22 = vsel %vm66_vm0, %v9381_v14, 0.0  ;;  %v9407_v24 = vld [vmem:[%s12865_s0 + $0x60] sm:$0xff]  ;;  %v9412_v25 = vld [vmem:[%s12865_s0 + $0x68] sm:$0xff] }
  0x17   :  { %v100_v23 = vsel %vm66_vm0, %v9386_v15, 0.0  ;;  %v103_v26 = vsel %vm66_vm0, %v9407_v24, 0.0  ;;  %v106_v27 = vsel %vm66_vm0, %v9412_v25, 0.0  ;;  %v9421_v28 = vld [vmem:[%s12865_s0 + $0x70] sm:$0xff]  ;;  %v9426_v29 = vld [vmem:[%s12865_s0 + $0x78] sm:$0xff]  ;;  %s9253_s27 = smov 88  }
  0x18   :  { %71 = vadd.xlane.f32.xlu0 %v70_v11  ;;  %77 = vadd.xlane.f32.xlu1 %v76_v12  ;;  %v109_v30 = vsel %vm66_vm0, %v9421_v28, 0.0  ;;  %v112_v31 = vsel %vm66_vm0, %v9426_v29, 0.0  ;;  %s9254_s28 = smov 96   ;;  %s9255_s29 = smov 120  }
  0x19   :  { %s9256_s30 = smov 48   ;;  %s9257_s11 = smov 56  }
  0x1a   :  { %s9258_s12 = smov 72   ;;  %s9259_s5 = smov 80  }
  0x1b   :  { %s9260_s13 = smov 104   ;;  %s9261_s14 = smov 112  }
  0x1c   :  { %80 = vadd.xlane.f32.xlu0 %v79_v16  ;;  %83 = vadd.xlane.f32.xlu1 %v82_v17  ;;  %s9262_s15 = smov 40  }
  0x20   :  { %86 = vadd.xlane.f32.xlu0 %v85_v18  ;;  %89 = vadd.xlane.f32.xlu1 %v88_v19 }
  0x24   :  { %92 = vadd.xlane.f32.xlu0 %v91_v20  ;;  %95 = vadd.xlane.f32.xlu1 %v94_v21 }
  0x28   :  { %98 = vadd.xlane.f32.xlu0 %v97_v22  ;;  %101 = vadd.xlane.f32.xlu1 %v100_v23 }
  0x2c   :  { %104 = vadd.xlane.f32.xlu0 %v103_v26  ;;  %107 = vadd.xlane.f32.xlu1 %v106_v27 }
  0x30   :  { %110 = vadd.xlane.f32.xlu0 %v109_v30  ;;  %113 = vadd.xlane.f32.xlu1 %v112_v31 }
  0xa1   :  { %v69_v32 = vpop.xlane.xlu0 %68  ;;  %v75_v33 = vpop.xlane.xlu1 %74 }
  0xa2   :  { %v116_v34 = vmul.f32 0.03125, %v69_v32  ;;  %v118_v35 = vmul.f32 0.03125, %v75_v33 }
  0xa4   :  { %v9432_v36 = vsub.f32 %v50_v0, %v116_v34  ;;  %v9434_v37 = vsub.f32 %v52_v1, %v118_v35 }
  0xa5   :  { %v72_v38 = vpop.xlane.xlu0 %71  ;;  %v78_v39 = vpop.xlane.xlu1 %77 }
  0xa6   :  { %v117_v40 = vmul.f32 0.03125, %v72_v38  ;;  %v119_v41 = vmul.f32 0.03125, %v78_v39  ;;  %v148_v42 = vmul.f32 %v9432_v36, %v9432_v36  ;;  %v150_v43 = vmul.f32 %v9434_v37, %v9434_v37 }
  0xa8   :  { %v9440_v44 = vsub.f32 %v51_v2, %v117_v40  ;;  %v9442_v45 = vsub.f32 %v53_v5, %v119_v41  ;;  %v164_v46 = vsel %vm66_vm0, %v148_v42, 0.0  ;;  %v170_v49 = vsel %vm66_vm0, %v150_v43, 0.0 }
  0xa9   :  { %165 = vadd.xlane.f32.xlu0 %v164_v46  ;;  %v81_v47 = vpop.xlane.xlu0 %80  ;;  %v84_v48 = vpop.xlane.xlu1 %83 }
  0xaa   :  { %v120_v50 = vmul.f32 0.03125, %v81_v47  ;;  %v121_v51 = vmul.f32 0.03125, %v84_v48  ;;  %v149_v52 = vmul.f32 %v9440_v44, %v9440_v44  ;;  %v151_v53 = vmul.f32 %v9442_v45, %v9442_v45 }
  0xac   :  { %v9451_v54 = vsub.f32 %v9349_v6, %v120_v50  ;;  %v9454_v55 = vsub.f32 %v9354_v7, %v121_v51  ;;  %v167_v56 = vsel %vm66_vm0, %v149_v52, 0.0  ;;  %v173_v59 = vsel %vm66_vm0, %v151_v53, 0.0  ;;  %v8483_v53 = vld [vmem:[%s12866_s1 + $0x8] sm:$0xff]  }
  0xad   :  { %171 = vadd.xlane.f32.xlu0 %v170_v49  ;;  %168 = vadd.xlane.f32.xlu1 %v167_v56  ;;  %v87_v57 = vpop.xlane.xlu0 %86  ;;  %v90_v58 = vpop.xlane.xlu1 %89 }
  0xae   :  { %v122_v60 = vmul.f32 0.03125, %v87_v57  ;;  %v123_v61 = vmul.f32 0.03125, %v90_v58  ;;  %v152_v62 = vmul.f32 %v9451_v54, %v9451_v54  ;;  %v153_v63 = vmul.f32 %v9454_v55, %v9454_v55 }
  0xb0   :  { %v9463_v0 = vsub.f32 %v9359_v8, %v122_v60  ;;  %v9466_v1 = vsub.f32 %v9364_v9, %v123_v61  ;;  %v176_v2 = vsel %vm66_vm0, %v152_v62, 0.0  ;;  %v179_v5 = vsel %vm66_vm0, %v153_v63, 0.0 }
  0xb1   :  { %174 = vadd.xlane.f32.xlu1 %v173_v59  ;;  %177 = vadd.xlane.f32.xlu0 %v176_v2  ;;  %v93_v3 = vpop.xlane.xlu0 %92  ;;  %v96_v4 = vpop.xlane.xlu1 %95 }
  0xb2   :  { %v124_v6 = vmul.f32 0.03125, %v93_v3  ;;  %v125_v7 = vmul.f32 0.03125, %v96_v4  ;;  %v154_v11 = vmul.f32 %v9463_v0, %v9463_v0  ;;  %v155_v8 = vmul.f32 %v9466_v1, %v9466_v1 }
  0xb4   :  { %v9475_v12 = vsub.f32 %v9369_v10, %v124_v6  ;;  %v9478_v9 = vsub.f32 %v9376_v13, %v125_v7  ;;  %v182_v16 = vsel %vm66_vm0, %v154_v11, 0.0  ;;  %v185_v19 = vsel %vm66_vm0, %v155_v8, 0.0 }
  0xb5   :  { %180 = vadd.xlane.f32.xlu1 %v179_v5  ;;  %183 = vadd.xlane.f32.xlu0 %v182_v16  ;;  %v99_v17 = vpop.xlane.xlu0 %98  ;;  %v102_v18 = vpop.xlane.xlu1 %101 }
  0xb6   :  { %v126_v20 = vmul.f32 0.03125, %v99_v17  ;;  %v127_v21 = vmul.f32 0.03125, %v102_v18  ;;  %v156_v22 = vmul.f32 %v9475_v12, %v9475_v12  ;;  %v157_v10 = vmul.f32 %v9478_v9, %v9478_v9 }
  0xb8   :  { %v9487_v23 = vsub.f32 %v9381_v14, %v126_v20  ;;  %v9490_v13 = vsub.f32 %v9386_v15, %v127_v21  ;;  %v188_v26 = vsel %vm66_vm0, %v156_v22, 0.0  ;;  %v191_v31 = vsel %vm66_vm0, %v157_v10, 0.0 }
  0xb9   :  { %186 = vadd.xlane.f32.xlu1 %v185_v19  ;;  %189 = vadd.xlane.f32.xlu0 %v188_v26  ;;  %v105_v27 = vpop.xlane.xlu0 %104  ;;  %v108_v30 = vpop.xlane.xlu1 %107 }
  0xba   :  { %v128_v32 = vmul.f32 0.03125, %v105_v27  ;;  %v129_v33 = vmul.f32 0.03125, %v108_v30  ;;  %v158_v34 = vmul.f32 %v9487_v23, %v9487_v23  ;;  %v159_v14 = vmul.f32 %v9490_v13, %v9490_v13 }
  0xbc   :  { %v9499_v35 = vsub.f32 %v9407_v24, %v128_v32  ;;  %v9502_v15 = vsub.f32 %v9412_v25, %v129_v33  ;;  %v194_v38 = vsel %vm66_vm0, %v158_v34, 0.0  ;;  %v197_v41 = vsel %vm66_vm0, %v159_v14, 0.0 }
  0xbd   :  { %192 = vadd.xlane.f32.xlu1 %v191_v31  ;;  %195 = vadd.xlane.f32.xlu0 %v194_v38  ;;  %v111_v39 = vpop.xlane.xlu0 %110  ;;  %v114_v40 = vpop.xlane.xlu1 %113 }
  0xbe   :  { %v130_v42 = vmul.f32 0.03125, %v111_v39  ;;  %v131_v43 = vmul.f32 0.03125, %v114_v40  ;;  %v160_v46 = vmul.f32 %v9499_v35, %v9499_v35  ;;  %v161_v24 = vmul.f32 %v9502_v15, %v9502_v15 }
  0xc0   :  { %v9511_v47 = vsub.f32 %v9421_v28, %v130_v42  ;;  %v9514_v25 = vsub.f32 %v9426_v29, %v131_v43  ;;  %v200_v48 = vsel %vm66_vm0, %v160_v46, 0.0  ;;  %v203_v49 = vsel %vm66_vm0, %v161_v24, 0.0  ;;  %v8482_v29 = vld [vmem:[%s12866_s1] sm:$0xff]  }
  0xc1   :  { %198 = vadd.xlane.f32.xlu1 %v197_v41  ;;  %201 = vadd.xlane.f32.xlu0 %v200_v48 }
  0xc2   :  { %v162_v50 = vmul.f32 %v9511_v47, %v9511_v47  ;;  %v163_v51 = vmul.f32 %v9514_v25, %v9514_v25  ;;  %7837 = vmatprep.subr.bf16.mxu0 %v8482_v29 }
  0xc3   :  { %7838 = vmatpush3.bf16.msra.mxu0 %v8482_v29 }
  0xc4   :  { %v206_v52 = vsel %vm66_vm0, %v162_v50, 0.0  ;;  %v209_v28 = vsel %vm66_vm0, %v163_v51, 0.0  ;;  %7839 = vmatprep.subr.bf16.mxu0 %v8483_v53 }
  0xc5   :  { %204 = vadd.xlane.f32.xlu1 %v203_v49  ;;  %207 = vadd.xlane.f32.xlu0 %v206_v52 }
  0xc7   :  { %7840 = vmatpush3.bf16.msra.mxu0 %v8483_v53 }
  0xc9   :  { %210 = vadd.xlane.f32.xlu1 %v209_v28 }
 0x136   :  { %v166_v56 = vpop.xlane.xlu0 %165 }
 0x137   :  { %v212_v57 = vmul.f32 0.03125, %v166_v56 }
 0x139   :  { %v228_v58 = vadd.f32 1e-05, %v212_v57 }
 0x13a   :  { %v169_v59 = vpop.xlane.xlu1 %168  ;;  %v172_v60 = vpop.xlane.xlu0 %171 }
 0x13b   :  { %v213_v61 = vmul.f32 0.03125, %v169_v59  ;;  %v214_v62 = vmul.f32 0.03125, %v172_v60  ;;  %8506 = vrsqrt.f32 %v228_v58 }
 0x13d   :  { %v229_v63 = vadd.f32 1e-05, %v213_v61  ;;  %v230_v2 = vadd.f32 1e-05, %v214_v62 }
 0x13e   :  { %v175_v3 = vpop.xlane.xlu1 %174  ;;  %v178_v4 = vpop.xlane.xlu0 %177 }
 0x13f   :  { %8508 = vrsqrt.f32 %v229_v63  ;;  %v215_v5 = vmul.f32 0.03125, %v175_v3  ;;  %v216_v6 = vmul.f32 0.03125, %v178_v4 }
 0x140   :  { %8510 = vrsqrt.f32 %v230_v2 }
 0x141   :  { %v231_v7 = vadd.f32 1e-05, %v215_v5  ;;  %v232_v11 = vadd.f32 1e-05, %v216_v6 }
 0x142   :  { %v181_v8 = vpop.xlane.xlu1 %180  ;;  %v184_v16 = vpop.xlane.xlu0 %183 }
 0x143   :  { %8512 = vrsqrt.f32 %v231_v7  ;;  %v217_v17 = vmul.f32 0.03125, %v181_v8  ;;  %v218_v18 = vmul.f32 0.03125, %v184_v16 }
 0x144   :  { %8514 = vrsqrt.f32 %v232_v11 }
 0x145   :  { %v233_v19 = vadd.f32 1e-05, %v217_v17  ;;  %v234_v20 = vadd.f32 1e-05, %v218_v18  ;;  %v8507_v10 = vpop.eup %8506 }
 0x146   :  { %v187_v21 = vpop.xlane.xlu1 %186  ;;  %v190_v22 = vpop.xlane.xlu0 %189  ;;  %v260_v14 = vmul.f32 %v8507_v10, %v9432_v36 }
 0x147   :  { %8516 = vrsqrt.f32 %v233_v19  ;;  %v219_v26 = vmul.f32 0.03125, %v187_v21  ;;  %v220_v27 = vmul.f32 0.03125, %v190_v22 }
 0x148   :  { %8518 = vrsqrt.f32 %v234_v20 }
 0x149   :  { %v8509_v30 = vpop.eup %8508  ;;  %v235_v31 = vadd.f32 1e-05, %v219_v26  ;;  %v236_v32 = vadd.f32 1e-05, %v220_v27 }
 0x14a   :  { %v193_v33 = vpop.xlane.xlu1 %192  ;;  %v196_v34 = vpop.xlane.xlu0 %195  ;;  %v261_v38 = vmul.f32 %v8509_v30, %v9440_v44 }
 0x14b   :  { %v8511_v39 = vpop.eup %8510  ;;  %8520 = vrsqrt.f32 %v235_v31  ;;  %v221_v40 = vmul.f32 0.03125, %v193_v33  ;;  %v222_v41 = vmul.f32 0.03125, %v196_v34 }
 0x14c   :  { %v276_v42 = vpack.c.bf16 %v261_v38, %v260_v14  ;;  %8522 = vrsqrt.f32 %v236_v32  ;;  %v262_v50 = vmul.f32 %v8511_v39, %v9434_v37 }
 0x14d   :  { %v8513_v43 = vpop.eup %8512  ;;  %v237_v46 = vadd.f32 1e-05, %v221_v40  ;;  %v238_v24 = vadd.f32 1e-05, %v222_v41 }
 0x14e   :  { %v199_v48 = vpop.xlane.xlu1 %198  ;;  %7841 = vmatprep.mubr.msk.bf16.mxu0 %vm66_vm0, %v276_v42  ;;  %v202_v49 = vpop.xlane.xlu0 %201  ;;  %v263_v51 = vmul.f32 %v8513_v43, %v9442_v45 }
 0x14f   :  { %v8515_v36 = vpop.eup %8514  ;;  %8524 = vrsqrt.f32 %v237_v46  ;;  %v223_v44 = vmul.f32 0.03125, %v199_v48  ;;  %v224_v52 = vmul.f32 0.03125, %v202_v49 }
 0x150   :  { %v277_v28 = vpack.c.bf16 %v263_v51, %v262_v50  ;;  %8526 = vrsqrt.f32 %v238_v24  ;;  %v264_v59 = vmul.f32 %v8515_v36, %v9451_v54 }
 0x151   :  { %v8517_v29 = vpop.eup %8516  ;;  %v239_v53 = vadd.f32 1e-05, %v223_v44  ;;  %v240_v56 = vadd.f32 1e-05, %v224_v52 }
 0x152   :  { %v205_v57 = vpop.xlane.xlu1 %204  ;;  %7842 = vmatmul.mubr.msk.bf16.vlgmr.msra.gmra.mrb[0].mxu0 %vm66_vm0, %v277_v28  ;;  %v208_v58 = vpop.xlane.xlu0 %207  ;;  %v265_v60 = vmul.f32 %v8517_v29, %v9454_v55 }
 0x153   :  { %v8519_v37 = vpop.eup %8518  ;;  %8528 = vrsqrt.f32 %v239_v53  ;;  %v225_v45 = vmul.f32 0.03125, %v205_v57  ;;  %v226_v61 = vmul.f32 0.03125, %v208_v58 }
 0x154   :  { %v278_v62 = vpack.c.bf16 %v265_v60, %v264_v59  ;;  %8530 = vrsqrt.f32 %v240_v56  ;;  %v266_v5 = vmul.f32 %v8519_v37, %v9463_v0 }
 0x155   :  { %v8521_v63 = vpop.eup %8520  ;;  %v241_v2 = vadd.f32 1e-05, %v225_v45  ;;  %v242_v3 = vadd.f32 1e-05, %v226_v61 }
 0x156   :  { %v211_v4 = vpop.xlane.xlu1 %210  ;;  %7845 = vmatprep.mubr.msk.bf16.mxu0 %vm66_vm0, %v278_v62  ;;  %v267_v6 = vmul.f32 %v8521_v63, %v9466_v1  ;;  %v8523_v7 = vpop.eup %8522 }
 0x157   :  { %8532 = vrsqrt.f32 %v241_v2  ;;  %v227_v54 = vmul.f32 0.03125, %v211_v4  ;;  %v268_v16 = vmul.f32 %v8523_v7, %v9475_v12 }
 0x158   :  { %v279_v55 = vpack.c.bf16 %v267_v6, %v266_v5  ;;  %8534 = vrsqrt.f32 %v242_v3 }
 0x159   :  { %v8525_v11 = vpop.eup %8524  ;;  %v243_v8 = vadd.f32 1e-05, %v227_v54 }
 0x15a   :  { %7846 = vmatmul.mubr.msk.bf16.gmra.mrb[4].mxu0 %vm66_vm0, %v279_v55  ;;  %v269_v17 = vmul.f32 %v8525_v11, %v9478_v9  ;;  %v8527_v18 = vpop.eup %8526 }
 0x15b   :  { %8536 = vrsqrt.f32 %v243_v8  ;;  %v270_v0 = vmul.f32 %v8527_v18, %v9487_v23 }
 0x15c   :  { %v280_v19 = vpack.c.bf16 %v269_v17, %v268_v16 }
 0x15d   :  { %v8529_v20 = vpop.eup %8528 }
 0x15e   :  { %7849 = vmatprep.mubr.msk.bf16.mxu0 %vm66_vm0, %v280_v19  ;;  %v271_v1 = vmul.f32 %v8529_v20, %v9490_v13  ;;  %v8531_v21 = vpop.eup %8530  ;;  %v790_v13 = vld [vmem:[%s12868_s3] sm:$0xf] }
 0x15f   :  { %v272_v26 = vmul.f32 %v8531_v21, %v9499_v35  ;;  %8405 = vmatprep.subr.msk.bf16.mxu0 %vm831_vm1, %v790_v13  ;;  %v833_v35 = vsel %vm831_vm1, %v790_v13, 0 }
 0x160   :  { %v281_v22 = vpack.c.bf16 %v271_v1, %v270_v0  ;;  %7890 = vmatpush3.bf16.msra.mxu0 %v833_v35 }
 0x161   :  { %v8533_v10 = vpop.eup %8532 }
 0x162   :  { %7850 = vmatmul.mubr.msk.bf16.gmra.mrb[8].mxu0 %vm66_vm0, %v281_v22  ;;  %v273_v12 = vmul.f32 %v8533_v10, %v9502_v15  ;;  %v8535_v9 = vpop.eup %8534 }
 0x163   :  { %v274_v31 = vmul.f32 %v8535_v9, %v9511_v47  ;;  %v6770_v47 = vld [vmem:[%s12867_s2] ss:$0 sm:$0xff] }
 0x164   :  { %v282_v27 = vpack.c.bf16 %v273_v12, %v272_v26 }
 0x165   :  { %v8537_v30 = vpop.eup %8536 }
 0x166   :  { %7853 = vmatprep.mubr.msk.bf16.mxu0 %vm66_vm0, %v282_v27  ;;  %v275_v23 = vmul.f32 %v8537_v30, %v9514_v25 }
 0x168   :  { %v283_v32 = vpack.c.bf16 %v275_v23, %v274_v31 }
 0x16a   :  { %7854 = vmatmul.mubr.msk.bf16.gmra.mrb[12].mxu0 %vm66_vm0, %v283_v32 }
 0x225   :  { %v7843_v15 = vpop.f32.mrb[0].mxu0 }
 0x226   :  { %v365_v33 = vpop.f32.mrb[1].mxu0  ;;  %v374_v34 = vadd.f32 %v7843_v15, %v6770_v47 }
 0x227   :  { %v7844_v25 = vpop.f32.mrb[2].mxu0  ;;  %v366_v39 = vadd.f32 %v6770_v47, %v365_v33 }
 0x228   :  { %v377_v14 = vadd.f32 %v7844_v25, %v6770_v47  ;;  %v368_v38 = vpop.f32.mrb[3].mxu0 }
 0x229   :  { %v369_v40 = vadd.f32 %v6770_v47, %v368_v38 }
 0x22a   :  { %v9562_v41 = vpack.c.bf16 %v377_v14, %v374_v34 }
 0x22b   :  { %v9564_v42 = vpack.c.bf16 %v369_v40, %v366_v39 }
 0x22d   :  { %989 = vrot.lane.b32.xlu1 %v9564_v42, %s9253_s27  ;;  %791 = vrot.lane.b32.xlu0 %v9564_v42, %s9251_s23  ;;  %v7847_v43 = vpop.f32.mrb[4].mxu0 }
 0x22e   :  { %7873 = vmatprep.mubr.msk.bf16.mxu1 %vm492_vm2, %v9564_v42  ;;  %v381_v46 = vpop.f32.mrb[5].mxu0  ;;  %v390_v48 = vadd.f32 %v7847_v43, %v6770_v47 }
 0x22f   :  { %v7848_v24 = vpop.f32.mrb[6].mxu0  ;;  %v382_v51 = vadd.f32 %v6770_v47, %v381_v46 }
 0x230   :  { %v393_v49 = vadd.f32 %v7848_v24, %v6770_v47  ;;  %v384_v50 = vpop.f32.mrb[7].mxu0 }
 0x231   :  { %v385_v36 = vadd.f32 %v6770_v47, %v384_v50  ;;  %476 = vrot.lane.b32.xlu1 %v9564_v42, %s9254_s28  ;;  %991 = vrot.lane.b32.xlu0 %v9562_v41, %s9253_s27 }
 0x232   :  { %v9576_v44 = vpack.c.bf16 %v393_v49, %v390_v48 }
 0x233   :  { %v9578_v52 = vpack.c.bf16 %v385_v36, %v382_v51 }
 0x235   :  { %793 = vrot.lane.b32.xlu1 %v9562_v41, %s9251_s23  ;;  %993 = vrot.lane.b32.xlu0 %v9578_v52, %s9253_s27  ;;  %v7851_v28 = vpop.f32.mrb[8].mxu0 }
 0x236   :  { %v397_v29 = vpop.f32.mrb[9].mxu0  ;;  %v406_v56 = vadd.f32 %v7851_v28, %v6770_v47 }
 0x237   :  { %v7852_v53 = vpop.f32.mrb[10].mxu0  ;;  %v398_v59 = vadd.f32 %v6770_v47, %v397_v29 }
 0x238   :  { %v409_v57 = vadd.f32 %v7852_v53, %v6770_v47  ;;  %v400_v58 = vpop.f32.mrb[11].mxu0 }
 0x239   :  { %v401_v60 = vadd.f32 %v6770_v47, %v400_v58  ;;  %478 = vrot.lane.b32.xlu1 %v9562_v41, %s9254_s28  ;;  %995 = vrot.lane.b32.xlu0 %v9576_v44, %s9253_s27  ;;  %v6805_v58 = vld [vmem:[%s12868_s3 + $0x4] sm:$0xf] }
 0x23a   :  { %v9588_v37 = vpack.c.bf16 %v409_v57, %v406_v56 }
 0x23b   :  { %v9590_v45 = vpack.c.bf16 %v401_v60, %v398_v59 }
 0x23d   :  { %480 = vrot.lane.b32.xlu1 %v9578_v52, %s9254_s28  ;;  %997 = vrot.lane.b32.xlu0 %v9590_v45, %s9253_s27  ;;  %v7855_v61 = vpop.f32.mrb[12].mxu0 }
 0x23e   :  { %v413_v62 = vpop.f32.mrb[13].mxu0  ;;  %v422_v2 = vadd.f32 %v7855_v61, %v6770_v47 }
 0x23f   :  { %v7856_v63 = vpop.f32.mrb[14].mxu0  ;;  %v414_v5 = vadd.f32 %v6770_v47, %v413_v62  ;;  %v6822_v62 = vld [vmem:[%s12868_s3 + $0x8] sm:$0xf] }
 0x240   :  { %v425_v3 = vadd.f32 %v7856_v63, %v6770_v47  ;;  %v416_v4 = vpop.f32.mrb[15].mxu0 }
 0x241   :  { %v417_v6 = vadd.f32 %v6770_v47, %v416_v4  ;;  %482 = vrot.lane.b32.xlu1 %v9576_v44, %s9254_s28  ;;  %795 = vrot.lane.b32.xlu0 %v9578_v52, %s9251_s23 }
 0x242   :  { %v9600_v7 = vpack.c.bf16 %v425_v3, %v422_v2  ;;  %v1345_v2 = vsel %vm831_vm1, %v6805_v58, 0 }
 0x243   :  { %v9602_v54 = vpack.c.bf16 %v417_v6, %v414_v5  ;;  %v1857_v5 = vsel %vm831_vm1, %v6822_v62, 0 }
 0x245   :  { %484 = vrot.lane.b32.xlu1 %v9590_v45, %s9254_s28  ;;  %999 = vrot.lane.b32.xlu0 %v9588_v37, %s9253_s27 }
 0x249   :  { %797 = vrot.lane.b32.xlu1 %v9576_v44, %s9251_s23  ;;  %799 = vrot.lane.b32.xlu0 %v9590_v45, %s9251_s23 }
 0x24d   :  { %486 = vrot.lane.b32.xlu1 %v9588_v37, %s9254_s28  ;;  %1001 = vrot.lane.b32.xlu0 %v9602_v54, %s9253_s27 }
 0x251   :  { %801 = vrot.lane.b32.xlu1 %v9588_v37, %s9251_s23  ;;  %803 = vrot.lane.b32.xlu0 %v9602_v54, %s9251_s23 }
 0x255   :  { %488 = vrot.lane.b32.xlu1 %v9602_v54, %s9254_s28  ;;  %1003 = vrot.lane.b32.xlu0 %v9600_v7, %s9253_s27 }
 0x259   :  { %805 = vrot.lane.b32.xlu1 %v9600_v7, %s9251_s23  ;;  %973 = vrot.lane.b32.xlu0 %v9564_v42, %s9255_s29 }
 0x25d   :  { %490 = vrot.lane.b32.xlu1 %v9600_v7, %s9254_s28  ;;  %977 = vrot.lane.b32.xlu0 %v9578_v52, %s9255_s29 }
 0x261   :  { %975 = vrot.lane.b32.xlu1 %v9562_v41, %s9255_s29  ;;  %981 = vrot.lane.b32.xlu0 %v9590_v45, %s9255_s29 }
 0x265   :  { %979 = vrot.lane.b32.xlu1 %v9576_v44, %s9255_s29  ;;  %985 = vrot.lane.b32.xlu0 %v9602_v54, %s9255_s29 }
 0x269   :  { %983 = vrot.lane.b32.xlu1 %v9588_v37, %s9255_s29  ;;  %1816 = vrot.lane.b32.xlu0 %v9564_v42, %s9256_s30 }
 0x26d   :  { %987 = vrot.lane.b32.xlu1 %v9600_v7, %s9255_s29  ;;  %1304 = vrot.lane.b32.xlu0 %v9564_v42, %s9257_s11 }
 0x271   :  { %2013 = vrot.lane.b32.xlu1 %v9564_v42, %s9258_s12  ;;  %1818 = vrot.lane.b32.xlu0 %v9562_v41, %s9256_s30 }
 0x275   :  { %1501 = vrot.lane.b32.xlu1 %v9564_v42, %s9259_s5  ;;  %2015 = vrot.lane.b32.xlu0 %v9562_v41, %s9258_s12 }
 0x279   :  { %1306 = vrot.lane.b32.xlu1 %v9562_v41, %s9257_s11  ;;  %2017 = vrot.lane.b32.xlu0 %v9578_v52, %s9258_s12 }
 0x27d   :  { %1503 = vrot.lane.b32.xlu1 %v9562_v41, %s9259_s5  ;;  %2019 = vrot.lane.b32.xlu0 %v9576_v44, %s9258_s12 }
 0x281   :  { %1505 = vrot.lane.b32.xlu1 %v9578_v52, %s9259_s5  ;;  %2021 = vrot.lane.b32.xlu0 %v9590_v45, %s9258_s12 }
 0x285   :  { %1507 = vrot.lane.b32.xlu1 %v9576_v44, %s9259_s5  ;;  %1820 = vrot.lane.b32.xlu0 %v9578_v52, %s9256_s30 }
 0x289   :  { %1509 = vrot.lane.b32.xlu1 %v9590_v45, %s9259_s5  ;;  %1822 = vrot.lane.b32.xlu0 %v9576_v44, %s9256_s30 }
 0x28d   :  { %1308 = vrot.lane.b32.xlu1 %v9578_v52, %s9257_s11  ;;  %1310 = vrot.lane.b32.xlu0 %v9576_v44, %s9257_s11 }
 0x291   :  { %2023 = vrot.lane.b32.xlu1 %v9588_v37, %s9258_s12  ;;  %1824 = vrot.lane.b32.xlu0 %v9590_v45, %s9256_s30 }
 0x295   :  { %1511 = vrot.lane.b32.xlu1 %v9588_v37, %s9259_s5  ;;  %1826 = vrot.lane.b32.xlu0 %v9588_v37, %s9256_s30 }
 0x299   :  { %1312 = vrot.lane.b32.xlu1 %v9590_v45, %s9257_s11  ;;  %1314 = vrot.lane.b32.xlu0 %v9588_v37, %s9257_s11 }
 0x29d   :  { %2027 = vrot.lane.b32.xlu1 %v9600_v7, %s9258_s12  ;;  %1830 = vrot.lane.b32.xlu0 %v9600_v7, %s9256_s30 }
 0x29f   :  { %v990_v55 = vpop.permute.xlu1 %989  ;;  %v792_v11 = vpop.permute.xlu0 %791 }
 0x2a0   :  { %7891 = vmatprep.mubr.msk.bf16.mxu0 %vm492_vm2, %v792_v11  ;;  %8406 = vmatprep.subr.msk.bf16.mxu0 %vm492_vm2, %v990_v55  ;;  %v1030_v20 = vsel %vm492_vm2, %v990_v55, 0 }
 0x2a1   :  { %2025 = vrot.lane.b32.xlu1 %v9602_v54, %s9258_s12  ;;  %1828 = vrot.lane.b32.xlu0 %v9602_v54, %s9256_s30 }
 0x2a3   :  { %v477_v8 = vpop.permute.xlu1 %476  ;;  %v992_v16 = vpop.permute.xlu0 %991 }
 0x2a4   :  { %8397 = vmatprep.subr.msk.bf16.mxu1 %vm492_vm2, %v477_v8  ;;  %v518_v17 = vsel %vm492_vm2, %v477_v8, 0  ;;  %v1033_v26 = vsel %vm492_vm2, %v992_v16, 0 }
 0x2a5   :  { %7858 = vmatpush3.bf16.xpose.msra.mxu1 %v518_v17  ;;  %1513 = vrot.lane.b32.xlu1 %v9602_v54, %s9259_s5 }
 0x2a6   :  { %1318 = vrot.lane.b32.xlu0 %v9600_v7, %s9257_s11 }
 0x2a7   :  { %v794_v18 = vpop.permute.xlu1 %793  ;;  %v994_v19 = vpop.permute.xlu0 %993 }
 0x2a8   :  { %7892 = vmatmul.mubr.msk.bf16.vlgmr.msra.gmra.mrb[16].mxu0 %vm492_vm2, %v794_v18  ;;  %v1036_v23 = vsel %vm492_vm2, %v994_v19, 0 }
 0x2a9   :  { %7908 = vmatpush3.bf16.xpose.msra.mxu0 %v1030_v20  ;;  %1316 = vrot.lane.b32.xlu1 %v9602_v54, %s9257_s11 }
 0x2aa   :  { %1997 = vrot.lane.b32.xlu0 %v9564_v42, %s9260_s13  ;;  %8407 = vmatprep.subr.msk.bf16.mxu0 %vm492_vm2, %v992_v16 }
 0x2ab   :  { %v479_v0 = vpop.permute.xlu1 %478  ;;  %v996_v1 = vpop.permute.xlu0 %995 }
 0x2ac   :  { %8398 = vmatprep.subr.msk.bf16.mxu1 %vm492_vm2, %v479_v0  ;;  %v521_v21 = vsel %vm492_vm2, %v479_v0, 0  ;;  %v1039_v33 = vsel %vm492_vm2, %v996_v1, 0 }
 0x2ad   :  { %7860 = vmatpush3.bf16.xpose.msra.mxu1 %v521_v21  ;;  %1515 = vrot.lane.b32.xlu1 %v9600_v7, %s9259_s5 }
 0x2ae   :  { %1999 = vrot.lane.b32.xlu0 %v9562_v41, %s9260_s13 }
 0x2af   :  { %v481_v22 = vpop.permute.xlu1 %480  ;;  %v998_v10 = vpop.permute.xlu0 %997 }
 0x2b0   :  { %8399 = vmatprep.subr.msk.bf16.mxu1 %vm492_vm2, %v481_v22  ;;  %v524_v27 = vsel %vm492_vm2, %v481_v22, 0  ;;  %v1042_v40 = vsel %vm492_vm2, %v998_v10, 0 }
 0x2b1   :  { %7910 = vmatpush3.bf16.xpose.msra.mxu0 %v1033_v26  ;;  %1485 = vrot.lane.b32.xlu1 %v9564_v42, %s9261_s14 }
 0x2b2   :  { %2001 = vrot.lane.b32.xlu0 %v9578_v52, %s9260_s13  ;;  %8408 = vmatprep.subr.msk.bf16.mxu0 %vm492_vm2, %v994_v19 }
 0x2b3   :  { %v483_v12 = vpop.permute.xlu1 %482  ;;  %v796_v9 = vpop.permute.xlu0 %795 }
 0x2b4   :  { %7895 = vmatprep.mubr.msk.bf16.mxu0 %vm492_vm2, %v796_v9  ;;  %v527_v35 = vsel %vm492_vm2, %v483_v12, 0 }
 0x2b5   :  { %7862 = vmatpush3.bf16.xpose.msra.mxu1 %v524_v27  ;;  %1487 = vrot.lane.b32.xlu1 %v9562_v41, %s9261_s14 }
 0x2b6   :  { %2003 = vrot.lane.b32.xlu0 %v9576_v44, %s9260_s13  ;;  %8400 = vmatprep.subr.msk.bf16.mxu1 %vm492_vm2, %v483_v12 }
 0x2b7   :  { %v485_v30 = vpop.permute.xlu1 %484  ;;  %v1000_v31 = vpop.permute.xlu0 %999 }
 0x2b8   :  { %v530_v14 = vsel %vm492_vm2, %v485_v30, 0  ;;  %v1045_v49 = vsel %vm492_vm2, %v1000_v31, 0 }
 0x2b9   :  { %7912 = vmatpush3.bf16.xpose.msra.mxu0 %v1036_v23  ;;  %1489 = vrot.lane.b32.xlu1 %v9578_v52, %s9261_s14 }
 0x2ba   :  { %2005 = vrot.lane.b32.xlu0 %v9590_v45, %s9260_s13  ;;  %8409 = vmatprep.subr.msk.bf16.mxu0 %vm492_vm2, %v996_v1 }
 0x2bb   :  { %v798_v32 = vpop.permute.xlu1 %797  ;;  %v800_v13 = vpop.permute.xlu0 %799 }
 0x2bc   :  { %7896 = vmatmul.mubr.msk.bf16.gmra.mrb[20].mxu0 %vm492_vm2, %v798_v32 }
 0x2bd   :  { %7864 = vmatpush3.bf16.xpose.msra.mxu1 %v527_v35  ;;  %1491 = vrot.lane.b32.xlu1 %v9576_v44, %s9261_s14 }
 0x2be   :  { %2007 = vrot.lane.b32.xlu0 %v9588_v37, %s9260_s13  ;;  %7899 = vmatprep.mubr.msk.bf16.mxu0 %vm492_vm2, %v800_v13 }
 0x2bf   :  { %8401 = vmatprep.subr.msk.bf16.mxu1 %vm492_vm2, %v485_v30  ;;  %v487_v15 = vpop.permute.xlu1 %486  ;;  %v1002_v47 = vpop.permute.xlu0 %1001 }
 0x2c0   :  { %v533_v24 = vsel %vm492_vm2, %v487_v15, 0  ;;  %v1048_v53 = vsel %vm492_vm2, %v1002_v47, 0 }
 0x2c1   :  { %7914 = vmatpush3.bf16.xpose.msra.mxu0 %v1039_v33  ;;  %1493 = vrot.lane.b32.xlu1 %v9590_v45, %s9261_s14 }
 0x2c2   :  { %2009 = vrot.lane.b32.xlu0 %v9602_v54, %s9260_s13  ;;  %8410 = vmatprep.subr.msk.bf16.mxu0 %vm492_vm2, %v998_v10 }
 0x2c3   :  { %v802_v25 = vpop.permute.xlu1 %801  ;;  %v804_v34 = vpop.permute.xlu0 %803 }
 0x2c4   :  { %7900 = vmatmul.mubr.msk.bf16.gmra.mrb[24].mxu0 %vm492_vm2, %v802_v25 }
 0x2c5   :  { %7866 = vmatpush3.bf16.xpose.msra.mxu1 %v530_v14  ;;  %1495 = vrot.lane.b32.xlu1 %v9588_v37, %s9261_s14 }
 0x2c6   :  { %2011 = vrot.lane.b32.xlu0 %v9600_v7, %s9260_s13  ;;  %7903 = vmatprep.mubr.msk.bf16.mxu0 %vm492_vm2, %v804_v34 }
 0x2c7   :  { %8402 = vmatprep.subr.msk.bf16.mxu1 %vm492_vm2, %v487_v15  ;;  %v489_v38 = vpop.permute.xlu1 %488  ;;  %v1004_v39 = vpop.permute.xlu0 %1003 }
 0x2c8   :  { %v536_v36 = vsel %vm492_vm2, %v489_v38, 0  ;;  %v1051_v63 = vsel %vm492_vm2, %v1004_v39, 0 }
 0x2c9   :  { %7916 = vmatpush3.bf16.xpose.msra.mxu0 %v1042_v40  ;;  %1497 = vrot.lane.b32.xlu1 %v9602_v54, %s9261_s14 }
 0x2ca   :  { %2328 = vrot.lane.b32.xlu0 %v9564_v42, %s9262_s15  ;;  %8411 = vmatprep.subr.msk.bf16.mxu0 %vm492_vm2, %v1000_v31 }
 0x2cb   :  { %v806_v43 = vpop.permute.xlu1 %805  ;;  %v974_v46 = vpop.permute.xlu0 %973 }
 0x2cc   :  { %7904 = vmatmul.mubr.msk.bf16.gmra.mrb[28].mxu0 %vm492_vm2, %v806_v43 }
 0x2cd   :  { %7868 = vmatpush3.bf16.xpose.msra.mxu1 %v533_v24  ;;  %1499 = vrot.lane.b32.xlu1 %v9600_v7, %s9261_s14 }
 0x2ce   :  { %2332 = vrot.lane.b32.xlu0 %v9578_v52, %s9262_s15  ;;  %7923 = vmatprep.mubr.msk.bf16.mxu0 %vm492_vm2, %v974_v46 }
 0x2cf   :  { %8403 = vmatprep.subr.msk.bf16.mxu1 %vm492_vm2, %v489_v38  ;;  %v491_v42 = vpop.permute.xlu1 %490  ;;  %v978_v48 = vpop.permute.xlu0 %977 }
 0x2d0   :  { %v539_v59 = vsel %vm492_vm2, %v491_v42, 0 }
 0x2d1   :  { %7918 = vmatpush3.bf16.xpose.msra.mxu0 %v1045_v49  ;;  %2330 = vrot.lane.b32.xlu1 %v9562_v41, %s9262_s15 }
 0x2d2   :  { %2336 = vrot.lane.b32.xlu0 %v9590_v45, %s9262_s15  ;;  %8412 = vmatprep.subr.msk.bf16.mxu0 %vm492_vm2, %v1002_v47 }
 0x2d3   :  { %v976_v50 = vpop.permute.xlu1 %975  ;;  %v982_v51 = vpop.permute.xlu0 %981 }
 0x2d5   :  { %2334 = vrot.lane.b32.xlu1 %v9576_v44, %s9262_s15  ;;  %7870 = vmatpush3.bf16.xpose.msra.mxu1 %v536_v36 }
 0x2d6   :  { %2340 = vrot.lane.b32.xlu0 %v9602_v54, %s9262_s15  ;;  %8404 = vmatprep.subr.msk.bf16.mxu1 %vm492_vm2, %v491_v42 }
 0x2d7   :  { %v980_v28 = vpop.permute.xlu1 %979  ;;  %v986_v29 = vpop.permute.xlu0 %985 }
 0x2d9   :  { %7920 = vmatpush3.bf16.xpose.msra.mxu0 %v1048_v53  ;;  %2338 = vrot.lane.b32.xlu1 %v9588_v37, %s9262_s15 }
 0x2da   :  { %8413 = vmatprep.subr.msk.bf16.mxu0 %vm492_vm2, %v1004_v39 }
 0x2db   :  { %v984_v56 = vpop.permute.xlu1 %983  ;;  %v1817_v57 = vpop.permute.xlu0 %1816 }
 0x2dd   :  { %2342 = vrot.lane.b32.xlu1 %v9600_v7, %s9262_s15  ;;  %7872 = vmatpush3.bf16.xpose.msra.mxu1 %v539_v59 }
 0x2de   :  { %8414 = vmatprep.subr.msk.bf16.mxu1 %vm831_vm1, %v6805_v58 }
 0x2df   :  { %v988_v60 = vpop.permute.xlu1 %987  ;;  %v1305_v61 = vpop.permute.xlu0 %1304 }
 0x2e1   :  { %7922 = vmatpush3.bf16.xpose.msra.mxu0 %v1051_v63 }
 0x2e2   :  { %8423 = vmatprep.subr.msk.bf16.mxu0 %vm831_vm1, %v6822_v62 }
 0x2e3   :  { %v2014_v3 = vpop.permute.xlu1 %2013  ;;  %v1819_v4 = vpop.permute.xlu0 %1818 }
 0x2e4   :  { %7874 = vmatmul.mubr.msk.bf16.vlgmr.msra.gmra.mrb[0].mxu1 %vm492_vm2, %v9562_v41  ;;  %v2054_v22 = vsel %vm492_vm2, %v2014_v3, 0 }
 0x2e5   :  { %7877 = vmatprep.mubr.msk.bf16.mxu1 %vm492_vm2, %v9578_v52  ;;  %7940 = vmatpush3.bf16.msra.mxu1 %v1345_v2 }
 0x2e7   :  { %v1502_v6 = vpop.permute.xlu1 %1501  ;;  %v2016_v55 = vpop.permute.xlu0 %2015 }
 0x2e8   :  { %7924 = vmatmul.mubr.msk.bf16.vlgmr.msra.gmra.mrb[32].mxu0 %vm492_vm2, %v976_v50  ;;  %8415 = vmatprep.subr.msk.bf16.mxu1 %vm492_vm2, %v1502_v6  ;;  %v1542_v1 = vsel %vm492_vm2, %v1502_v6, 0  ;;  %v2057_v30 = vsel %vm492_vm2, %v2016_v55, 0 }
 0x2e9   :  { %7927 = vmatprep.mubr.msk.bf16.mxu0 %vm492_vm2, %v978_v48  ;;  %7990 = vmatpush3.bf16.msra.mxu0 %v1857_v5 }
 0x2ea   :  { %8424 = vmatprep.subr.msk.bf16.mxu0 %vm492_vm2, %v2014_v3 }
 0x2eb   :  { %v1307_v11 = vpop.permute.xlu1 %1306  ;;  %v2018_v8 = vpop.permute.xlu0 %2017 }
 0x2ec   :  { %7878 = vmatmul.mubr.msk.bf16.gmra.mrb[4].mxu1 %vm492_vm2, %v9576_v44  ;;  %v2060_v35 = vsel %vm492_vm2, %v2018_v8, 0 }
 0x2ed   :  { %7881 = vmatprep.mubr.msk.bf16.mxu1 %vm492_vm2, %v9590_v45 }
 0x2ef   :  { %v1504_v41 = vpop.permute.xlu1 %1503  ;;  %v9819_v52 = vpop.permute.xlu0 %2019 }
 0x2f0   :  { %7928 = vmatmul.mubr.msk.bf16.gmra.mrb[36].mxu0 %vm492_vm2, %v980_v28  ;;  %v1545_v12 = vsel %vm492_vm2, %v1504_v41, 0  ;;  %v2063_v14 = vsel %vm492_vm2, %v9819_v52, 0 }
 0x2f1   :  { %7931 = vmatprep.mubr.msk.bf16.mxu0 %vm492_vm2, %v982_v51  ;;  %v6839_v51 = vld [vmem:[%s12868_s3 + $0xc] sm:$0xf] }
 0x2f3   :  { %v1506_v16 = vpop.permute.xlu1 %1505  ;;  %v9823_v17 = vpop.permute.xlu0 %2021 }
 0x2f4   :  { %7882 = vmatmul.mubr.msk.bf16.gmra.mrb[8].mxu1 %vm492_vm2, %v9588_v37  ;;  %v1548_v32 = vsel %vm492_vm2, %v1506_v16, 0  ;;  %v2066_v40 = vsel %vm492_vm2, %v9823_v17, 0 }
 0x2f5   :  { %7885 = vmatprep.mubr.msk.bf16.mxu1 %vm492_vm2, %v9602_v54 }
 0x2f7   :  { %v1508_v44 = vpop.permute.xlu1 %1507  ;;  %v1821_v18 = vpop.permute.xlu0 %1820 }
 0x2f8   :  { %7932 = vmatmul.mubr.msk.bf16.gmra.mrb[40].mxu0 %vm492_vm2, %v984_v56  ;;  %v1551_v33 = vsel %vm492_vm2, %v1508_v44, 0 }
 0x2f9   :  { %7935 = vmatprep.mubr.msk.bf16.mxu0 %vm492_vm2, %v986_v29 }
 0x2fb   :  { %v9831_v45 = vpop.permute.xlu1 %1509  ;;  %v1823_v19 = vpop.permute.xlu0 %1822 }
 0x2fc   :  { %7886 = vmatmul.mubr.msk.bf16.gmra.mrb[12].mxu1 %vm492_vm2, %v9600_v7  ;;  %v1554_v39 = vsel %vm492_vm2, %v9831_v45, 0 }
 0x2fd   :  { %7941 = vmatprep.mubr.msk.bf16.mxu1 %vm492_vm2, %v1305_v61 }
 0x2ff   :  { %v1309_v20 = vpop.permute.xlu1 %1308  ;;  %v1311_v0 = vpop.permute.xlu0 %1310 }
 0x300   :  { %7936 = vmatmul.mubr.msk.bf16.gmra.mrb[44].mxu0 %vm492_vm2, %v988_v60 }
 0x301   :  { %7991 = vmatprep.mubr.msk.bf16.mxu0 %vm492_vm2, %v1817_v57  ;;  %v2369_v57 = vsel %vm831_vm1, %v6839_v51, 0 }
 0x303   :  { %v9838_v37 = vpop.permute.xlu1 %2023  ;;  %v1825_v54 = vpop.permute.xlu0 %1824 }
 0x304   :  { %7942 = vmatmul.mubr.msk.bf16.vlgmr.msra.gmra.mrb[16].mxu1 %vm492_vm2, %v1307_v11  ;;  %v2069_v46 = vsel %vm492_vm2, %v9838_v37, 0 }
 0x305   :  { %7958 = vmatpush3.bf16.xpose.msra.mxu1 %v1542_v1  ;;  %7945 = vmatprep.mubr.msk.bf16.mxu1 %vm492_vm2, %v1309_v20 }
 0x306   :  { %8416 = vmatprep.subr.msk.bf16.mxu1 %vm492_vm2, %v1504_v41 }
 0x307   :  { %v1512_v7 = vpop.permute.xlu1 %1511  ;;  %v1827_v21 = vpop.permute.xlu0 %1826 }
 0x308   :  { %7992 = vmatmul.mubr.msk.bf16.vlgmr.msra.gmra.mrb[48].mxu0 %vm492_vm2, %v1819_v4  ;;  %v1557_v43 = vsel %vm492_vm2, %v1512_v7, 0 }
 0x309   :  { %8008 = vmatpush3.bf16.xpose.msra.mxu0 %v2054_v22  ;;  %7995 = vmatprep.mubr.msk.bf16.mxu0 %vm492_vm2, %v1821_v18 }
 0x30a   :  { %8425 = vmatprep.subr.msk.bf16.mxu0 %vm492_vm2, %v2016_v55 }
 0x30b   :  { %v1313_v10 = vpop.permute.xlu1 %1312  ;;  %v1315_v26 = vpop.permute.xlu0 %1314 }
 0x30c   :  { %7946 = vmatmul.mubr.msk.bf16.gmra.mrb[20].mxu1 %vm492_vm2, %v1311_v0 }
 0x30d   :  { %7960 = vmatpush3.bf16.xpose.msra.mxu1 %v1545_v12  ;;  %7949 = vmatprep.mubr.msk.bf16.mxu1 %vm492_vm2, %v1313_v10 }
 0x30e   :  { %8417 = vmatprep.subr.msk.bf16.mxu1 %vm492_vm2, %v1506_v16 }
 0x30f   :  { %v2028_v9 = vpop.permute.xlu1 %2027  ;;  %v1831_v27 = vpop.permute.xlu0 %1830 }
 0x310   :  { %7996 = vmatmul.mubr.msk.bf16.gmra.mrb[52].mxu0 %vm492_vm2, %v1823_v19  ;;  %v2075_v53 = vsel %vm492_vm2, %v2028_v9, 0 }
 0x311   :  { %8010 = vmatpush3.bf16.xpose.msra.mxu0 %v2057_v30  ;;  %7999 = vmatprep.mubr.msk.bf16.mxu0 %vm492_vm2, %v1825_v54 }
 0x312   :  { %8426 = vmatprep.subr.msk.bf16.mxu0 %vm492_vm2, %v2018_v8 }
 0x313   :  { %v2026_v31 = vpop.permute.xlu1 %2025  ;;  %v1829_v23 = vpop.permute.xlu0 %1828 }
 0x314   :  { %7950 = vmatmul.mubr.msk.bf16.gmra.mrb[24].mxu1 %vm492_vm2, %v1315_v26  ;;  %v2072_v50 = vsel %vm492_vm2, %v2026_v31, 0  ;;  %v7257_v26 = vld [vmem:[#allocation2 + $0x28] sm:$0xff]  }
 0x315   :  { %7962 = vmatpush3.bf16.xpose.msra.mxu1 %v1548_v32  ;;  %v7019_v19 = vunpack.c.l.bf16 %v7257_v26 }
 0x316   :  { %8418 = vmatprep.subr.msk.bf16.mxu1 %vm492_vm2, %v1508_v44 }
 0x317   :  { %v1514_v13 = vpop.permute.xlu1 %1513 }
 0x318   :  { %8000 = vmatmul.mubr.msk.bf16.gmra.mrb[56].mxu0 %vm492_vm2, %v1827_v21  ;;  %v1319_v15 = vpop.permute.xlu0 %1318  ;;  %v1560_v42 = vsel %vm492_vm2, %v1514_v13, 0 }
 0x319   :  { %8012 = vmatpush3.bf16.xpose.msra.mxu0 %v2060_v35  ;;  %8003 = vmatprep.mubr.msk.bf16.mxu0 %vm492_vm2, %v1829_v23  ;;  %v7260_v35 = vld [vmem:[#allocation2 + $0x48] sm:$0xff]  }
 0x31a   :  { %8427 = vmatprep.subr.msk.bf16.mxu0 %vm492_vm2, %v9819_v52 }
 0x31b   :  { %v1317_v47 = vpop.permute.xlu1 %1316 }
 0x31c   :  { %7953 = vmatprep.mubr.msk.bf16.mxu1 %vm492_vm2, %v1317_v47  ;;  %v1998_v34 = vpop.permute.xlu0 %1997 }
 0x31d   :  { %7964 = vmatpush3.bf16.xpose.msra.mxu1 %v1551_v33  ;;  %v7035_v33 = vunpack.c.l.bf16 %v7260_v35 }
 0x31e   :  { %7954 = vmatmul.mubr.msk.bf16.gmra.mrb[28].mxu1 %vm492_vm2, %v1319_v15  ;;  %8419 = vmatprep.subr.msk.bf16.mxu1 %vm492_vm2, %v9831_v45 }
 0x31f   :  { %v1516_v25 = vpop.permute.xlu1 %1515 }
 0x320   :  { %8004 = vmatmul.mubr.msk.bf16.gmra.mrb[60].mxu0 %vm492_vm2, %v1831_v27  ;;  %v2000_v24 = vpop.permute.xlu0 %1999  ;;  %v1563_v28 = vsel %vm492_vm2, %v1516_v25, 0 }
 0x321   :  { %8014 = vmatpush3.bf16.xpose.msra.mxu0 %v2063_v14  ;;  %8023 = vmatprep.mubr.msk.bf16.mxu0 %vm492_vm2, %v1998_v34 }
 0x322   :  { %8428 = vmatprep.subr.msk.bf16.mxu0 %vm492_vm2, %v9823_v17 }
 0x323   :  { %v1486_v38 = vpop.permute.xlu1 %1485 }
 0x324   :  { %7973 = vmatprep.mubr.msk.bf16.mxu1 %vm492_vm2, %v1486_v38  ;;  %v2002_v49 = vpop.permute.xlu0 %2001  ;;  %v7036_v38 = vunpack.c.h.bf16 %v7260_v35 }
 0x325   :  { %7966 = vmatpush3.bf16.xpose.msra.mxu1 %v1554_v39 }
 0x326   :  { %8420 = vmatprep.subr.msk.bf16.mxu1 %vm492_vm2, %v1512_v7 }
 0x327   :  { %v1488_v48 = vpop.permute.xlu1 %1487 }
 0x328   :  { %v2004_v29 = vpop.permute.xlu0 %2003 }
 0x329   :  { %8016 = vmatpush3.bf16.xpose.msra.mxu0 %v2066_v40 }
 0x32a   :  { %8429 = vmatprep.subr.msk.bf16.mxu0 %vm492_vm2, %v9838_v37 }
 0x32b   :  { %v1490_v36 = vpop.permute.xlu1 %1489 }
 0x32c   :  { %v2006_v58 = vpop.permute.xlu0 %2005 }
 0x32d   :  { %7968 = vmatpush3.bf16.xpose.msra.mxu1 %v1557_v43 }
 0x32e   :  { %8421 = vmatprep.subr.msk.bf16.mxu1 %vm492_vm2, %v1514_v13 }
 0x32f   :  { %v1492_v56 = vpop.permute.xlu1 %1491 }
 0x330   :  { %v2008_v60 = vpop.permute.xlu0 %2007 }
 0x331   :  { %8018 = vmatpush3.bf16.xpose.msra.mxu0 %v2069_v46 }
 0x332   :  { %8430 = vmatprep.subr.msk.bf16.mxu0 %vm492_vm2, %v2026_v31 }
 0x333   :  { %v1494_v59 = vpop.permute.xlu1 %1493 }
 0x334   :  { %v2010_v62 = vpop.permute.xlu0 %2009 }
 0x335   :  { %7970 = vmatpush3.bf16.xpose.msra.mxu1 %v1560_v42 }
 0x336   :  { %8422 = vmatprep.subr.msk.bf16.mxu1 %vm492_vm2, %v1516_v25  ;;  %v7253_v25 = vld [vmem:[#allocation2 + $0x8] sm:$0xff]  }
 0x337   :  { %v1496_v61 = vpop.permute.xlu1 %1495  ;;  %v7003_v40 = vunpack.c.l.bf16 %v7253_v25 }
 0x338   :  { %v2012_v2 = vpop.permute.xlu0 %2011 }
 0x339   :  { %8020 = vmatpush3.bf16.xpose.msra.mxu0 %v2072_v50 }
 0x33a   :  { %8431 = vmatprep.subr.msk.bf16.mxu0 %vm492_vm2, %v2028_v9 }
 0x33b   :  { %v1498_v63 = vpop.permute.xlu1 %1497 }
 0x33c   :  { %v2329_v4 = vpop.permute.xlu0 %2328 }
 0x33d   :  { %7972 = vmatpush3.bf16.xpose.msra.mxu1 %v1563_v28 }
 0x33e   :  { %8432 = vmatprep.subr.msk.bf16.mxu1 %vm831_vm1, %v6839_v51 }
 0x33f   :  { %v1500_v3 = vpop.permute.xlu1 %1499 }
 0x340   :  { %v2333_v6 = vpop.permute.xlu0 %2332 }
 0x341   :  { %8022 = vmatpush3.bf16.xpose.msra.mxu0 %v2075_v53  ;;  %v6998_v53 = vld [vmem:[#allocation2] sm:$0xff]  }
 0x343   :  { %v2331_v5 = vpop.permute.xlu1 %2330 }
 0x344   :  { %7974 = vmatmul.mubr.msk.bf16.vlgmr.msra.gmra.mrb[32].mxu1 %vm492_vm2, %v1488_v48  ;;  %v2337_v11 = vpop.permute.xlu0 %2336  ;;  %v7004_v48 = vunpack.c.h.bf16 %v7253_v25 }
 0x345   :  { %7977 = vmatprep.mubr.msk.bf16.mxu1 %vm492_vm2, %v1490_v36  ;;  %8040 = vmatpush3.bf16.msra.mxu1 %v2369_v57 }
 0x347   :  { %v2335_v55 = vpop.permute.xlu1 %2334 }
 0x348   :  { %8024 = vmatmul.mubr.msk.bf16.vlgmr.msra.gmra.mrb[64].mxu0 %vm492_vm2, %v2000_v24  ;;  %v2341_v41 = vpop.permute.xlu0 %2340  ;;  %v7030_v24 = vld [vmem:[#allocation2 + $0x40] sm:$0xff]  }
 0x349   :  { %8027 = vmatprep.mubr.msk.bf16.mxu0 %vm492_vm2, %v2002_v49  ;;  %v7031_v28 = vunpack.c.l.bf16 %v7030_v24 }
 0x34b   :  { %v2339_v8 = vpop.permute.xlu1 %2338 }
 0x34c   :  { %7978 = vmatmul.mubr.msk.bf16.gmra.mrb[36].mxu1 %vm492_vm2, %v1492_v56 }
 0x34d   :  { %7981 = vmatprep.mubr.msk.bf16.mxu1 %vm492_vm2, %v1494_v59 }
 0x34f   :  { %v2343_v52 = vpop.permute.xlu1 %2342 }
 0x350   :  { %8028 = vmatmul.mubr.msk.bf16.gmra.mrb[68].mxu0 %vm492_vm2, %v2004_v29 }
 0x351   :  { %8031 = vmatprep.mubr.msk.bf16.mxu0 %vm492_vm2, %v2006_v58  ;;  %v7032_v58 = vunpack.c.h.bf16 %v7030_v24 }
 0x354   :  { %7982 = vmatmul.mubr.msk.bf16.gmra.mrb[40].mxu1 %vm492_vm2, %v1496_v61  ;;  %v6999_v61 = vunpack.c.l.bf16 %v6998_v53 }
 0x355   :  { %7985 = vmatprep.mubr.msk.bf16.mxu1 %vm492_vm2, %v1498_v63 }
 0x358   :  { %8032 = vmatmul.mubr.msk.bf16.gmra.mrb[72].mxu0 %vm492_vm2, %v2008_v60 }
 0x359   :  { %8035 = vmatprep.mubr.msk.bf16.mxu0 %vm492_vm2, %v2010_v62 }
 0x35c   :  { %7986 = vmatmul.mubr.msk.bf16.gmra.mrb[44].mxu1 %vm492_vm2, %v1500_v3 }
 0x35d   :  { %8041 = vmatprep.mubr.msk.bf16.mxu1 %vm492_vm2, %v2329_v4  ;;  %v7000_v4 = vunpack.c.h.bf16 %v6998_v53 }
 0x360   :  { %8036 = vmatmul.mubr.msk.bf16.gmra.mrb[76].mxu0 %vm492_vm2, %v2012_v2  ;;  %v7262_v2 = vld [vmem:[#allocation2 + $0x58] sm:$0xff]  }
 0x364   :  { %8042 = vmatmul.mubr.msk.bf16.vlgmr.msra.gmra.mrb[48].mxu1 %vm492_vm2, %v2331_v5 }
 0x365   :  { %8045 = vmatprep.mubr.msk.bf16.mxu1 %vm492_vm2, %v2333_v6 }
 0x36c   :  { %8046 = vmatmul.mubr.msk.bf16.gmra.mrb[52].mxu1 %vm492_vm2, %v2335_v55 }
 0x36d   :  { %8049 = vmatprep.mubr.msk.bf16.mxu1 %vm492_vm2, %v2337_v11 }
 0x374   :  { %8050 = vmatmul.mubr.msk.bf16.gmra.mrb[56].mxu1 %vm492_vm2, %v2339_v8  ;;  %v7043_v8 = vunpack.c.l.bf16 %v7262_v2 }
 0x375   :  { %8053 = vmatprep.mubr.msk.bf16.mxu1 %vm492_vm2, %v2341_v41 }
 0x37b   :  { %v9920_v16 = vpop.f32.mrb[16].mxu0 }
 0x37c   :  { %8054 = vmatmul.mubr.msk.bf16.gmra.mrb[60].mxu1 %vm492_vm2, %v2343_v52  ;;  %v9923_v17 = vpop.f32.mrb[17].mxu0  ;;  %v7255_v52 = vld [vmem:[#allocation2 + $0x18] sm:$0xff]  }
 0x37d   :  { %v9925_v44 = vpop.f32.mrb[18].mxu0  ;;  %v7012_v24 = vunpack.c.h.bf16 %v7255_v52 }
 0x37e   :  { %v9929_v45 = vpop.f32.mrb[19].mxu0 }
 0x38f   :  { %v9933_v20 = vpop.f32.mrb[20].mxu0 }
 0x390   :  { %v9935_v0 = vpop.f32.mrb[21].mxu0 }
 0x391   :  { %v9937_v37 = vpop.f32.mrb[22].mxu0 }
 0x392   :  { %v9941_v1 = vpop.f32.mrb[23].mxu0 }
 0x397   :  { %v9945_v21 = vpop.f32.mrb[24].mxu0 }
 0x398   :  { %v9947_v22 = vpop.f32.mrb[25].mxu0 }
 0x399   :  { %v9949_v10 = vpop.f32.mrb[26].mxu0 }
 0x39a   :  { %v9953_v12 = vpop.f32.mrb[27].mxu0 }
 0x39f   :  { %v9957_v27 = vpop.f32.mrb[28].mxu0 }
 0x3a0   :  { %v9959_v30 = vpop.f32.mrb[29].mxu0 }
 0x3a1   :  { %v9961_v31 = vpop.f32.mrb[30].mxu0 }
 0x3a2   :  { %v9965_v32 = vpop.f32.mrb[31].mxu0 }
 0x3b7   :  { %v7875_v15 = vpop.f32.mrb[0].mxu1 }
 0x3b8   :  { %v575_v47 = vpop.f32.mrb[1].mxu1  ;;  %v9974_v36 = vadd.f32 %v7875_v15, %v7003_v40  ;;  %v7261_v40 = vld [vmem:[#allocation2 + $0x50] sm:$0xff]  }
 0x3b9   :  { %v7876_v34 = vpop.f32.mrb[2].mxu1  ;;  %v9992_v11 = vadd.f32 %v6999_v61, %v575_v47 }
 0x3ba   :  { %v578_v14 = vpop.f32.mrb[3].mxu1  ;;  %v9979_v57 = vadd.f32 %v7876_v34, %v7004_v48 }
 0x3bb   :  { %v7925_v39 = vpop.f32.mrb[32].mxu0  ;;  %v9999_v15 = vadd.f32 %v7000_v4, %v578_v14 }
 0x3bc   :  { %v9969_v43 = vadd.f32 %v7925_v39, %v7035_v33  ;;  %v1087_v46 = vpop.f32.mrb[33].mxu0  ;;  %v7044_v33 = vunpack.c.h.bf16 %v7262_v2  ;;  %v7040_v2 = vunpack.c.h.bf16 %v7261_v40 }
 0x3bd   :  { %v7926_v42 = vpop.f32.mrb[34].mxu0  ;;  %v9984_v62 = vadd.f32 %v7031_v28, %v1087_v46  ;;  %v7039_v28 = vunpack.c.l.bf16 %v7261_v40 }
 0x3be   :  { %v9971_v49 = vadd.f32 %v7926_v42, %v7036_v38  ;;  %1154 = vmax.xlane.f32.xlu0 %v9969_v43  ;;  %v1090_v50 = vpop.f32.mrb[35].mxu0  ;;  %v7011_v38 = vunpack.c.l.bf16 %v7255_v52 }
 0x3bf   :  { %v7879_v51 = vpop.f32.mrb[4].mxu1  ;;  %v9987_v5 = vadd.f32 %v7032_v58, %v1090_v50  ;;  %v7254_v58 = vld [vmem:[#allocation2 + $0x10] sm:$0xff]  }
 0x3c0   :  { %1156 = vmax.xlane.f32.xlu1 %v9971_v49  ;;  %v9977_v29 = vpop.f32.mrb[5].mxu1  ;;  %v10016_v50 = vadd.f32 %v7879_v51, %v7011_v38  ;;  %v7008_v23 = vunpack.c.h.bf16 %v7254_v58 }
 0x3c1   :  { %v7880_v56 = vpop.f32.mrb[6].mxu1 }
 0x3c2   :  { %642 = vmax.xlane.f32.xlu0 %v9974_v36  ;;  %v9982_v59 = vpop.f32.mrb[7].mxu1  ;;  %v10023_v61 = vadd.f32 %v7880_v56, %v7012_v24 }
 0x3c3   :  { %v7929_v60 = vpop.f32.mrb[36].mxu0  ;;  %v10047_v54 = vadd.f32 %v7008_v23, %v9982_v59  ;;  %v7020_v23 = vunpack.c.h.bf16 %v7257_v26 }
 0x3c4   :  { %644 = vmax.xlane.f32.xlu1 %v9979_v57  ;;  %v1103_v63 = vpop.f32.mrb[37].mxu0  ;;  %v10004_v39 = vadd.f32 %v7929_v60, %v7043_v8  ;;  %v7007_v8 = vunpack.c.l.bf16 %v7254_v58 }
 0x3c5   :  { %v7930_v3 = vpop.f32.mrb[38].mxu0  ;;  %v10030_v51 = vadd.f32 %v7039_v28, %v1103_v63  ;;  %13005 = vst [vmem:[#allocation8_spill] sm:$0xff] %v10047_v54 }
 0x3c6   :  { %1150 = vmax.xlane.f32.xlu0 %v9984_v62  ;;  %v1106_v6 = vpop.f32.mrb[39].mxu0  ;;  %v10009_v42 = vadd.f32 %v7930_v3, %v7044_v33  ;;  %v7264_v33 = vld [vmem:[#allocation2 + $0x68] sm:$0xff]   ;;  %v10043_v13 = vadd.f32 %v7007_v8, %v9977_v29 }
 0x3c7   :  { %v9990_v55 = vpop.f32.mrb[8].mxu1  ;;  %13002 = vst [vmem:[#allocation5_spill] sm:$0xff] %v10030_v51  ;;  %v10037_v56 = vadd.f32 %v7040_v2, %v1106_v6  ;;  %v7051_v63 = vunpack.c.l.bf16 %v7264_v33  ;;  %v7052_v58 = vunpack.c.h.bf16 %v7264_v33 }
 0x3c8   :  { %1152 = vmax.xlane.f32.xlu1 %v9987_v5  ;;  %v9995_v41 = vpop.f32.mrb[9].mxu1  ;;  %13004 = vst [vmem:[#allocation7_spill] sm:$0xff] %v10043_v13 }
 0x3c9   :  { %v9997_v35 = vpop.f32.mrb[10].mxu1  ;;  %13003 = vst [vmem:[#allocation6_spill] sm:$0xff] %v10037_v56 }
 0x3ca   :  { %638 = vmax.xlane.f32.xlu0 %v9992_v11  ;;  %v10002_v25 = vpop.f32.mrb[11].mxu1 }
 0x3cb   :  { %v7933_v34 = vpop.f32.mrb[40].mxu0 }
 0x3cc   :  { %640 = vmax.xlane.f32.xlu1 %v9999_v15  ;;  %v10007_v47 = vpop.f32.mrb[41].mxu0  ;;  %v10052_v29 = vadd.f32 %v7933_v34, %v7051_v63  ;;  %v13008_v34 = vpack.c.bf16 %v9929_v45, %v9923_v17 }
 0x3cd   :  { %v7934_v46 = vpop.f32.mrb[42].mxu0 }
 0x3ce   :  { %1162 = vmax.xlane.f32.xlu0 %v10004_v39  ;;  %v10012_v14 = vpop.f32.mrb[43].mxu0  ;;  %13006 = vst [vmem:[#allocation9_spill] sm:$0xff] %v10052_v29  ;;  %v10059_v59 = vadd.f32 %v7934_v46, %v7052_v58 }
 0x3cf   :  { %v10014_v48 = vpop.f32.mrb[12].mxu1 }
 0x3d0   :  { %1164 = vmax.xlane.f32.xlu1 %v10009_v42  ;;  %v10019_v53 = vpop.f32.mrb[13].mxu1  ;;  %13007 = vst [vmem:[#allocation10_spill] sm:$0xff] %v10059_v59 }
 0x3d1   :  { %v10021_v60 = vpop.f32.mrb[14].mxu1 }
 0x3d2   :  { %650 = vmax.xlane.f32.xlu0 %v10016_v50  ;;  %v10026_v3 = vpop.f32.mrb[15].mxu1 }
 0x3d3   :  { %v10028_v4 = vpop.f32.mrb[44].mxu0 }
 0x3d4   :  { %652 = vmax.xlane.f32.xlu1 %v10023_v61  ;;  %v10033_v52 = vpop.f32.mrb[45].mxu0 }
 0x3d5   :  { %v10035_v38 = vpop.f32.mrb[46].mxu0 }
 0x3d6   :  { %1158 = vmax.xlane.f32.xlu0 %v10030_v51  ;;  %v10040_v40 = vpop.f32.mrb[47].mxu0  ;;  %v7263_v51 = vld [vmem:[#allocation2 + $0x60] sm:$0xff]  }
 0x3d7   :  { %v7943_v24 = vpop.f32.mrb[16].mxu1  ;;  %v7047_v26 = vunpack.c.l.bf16 %v7263_v51 }
 0x3d8   :  { %1160 = vmax.xlane.f32.xlu1 %v10037_v56  ;;  %v1381_v28 = vpop.f32.mrb[17].mxu1 }
 0x3d9   :  { %v7944_v9 = vpop.f32.mrb[18].mxu1 }
 0x3da   :  { %646 = vmax.xlane.f32.xlu0 %v10043_v13  ;;  %v1445_v6 = vpack.c.bf16 %v7944_v9, %v7943_v24  ;;  %v1384_v2 = vpop.f32.mrb[19].mxu1  ;;  %v7048_v9 = vunpack.c.h.bf16 %v7263_v51  ;;  %v10085_v24 = vadd.f32 %v7047_v26, %v10007_v47  ;;  %v7266_v51 = vld [vmem:[#allocation2 + $0x78] sm:$0xff]   ;;  %v13014_v47 = vpack.c.bf16 %v9941_v1, %v9935_v0 }
 0x3db   :  { %v1444_v7 = vpack.c.bf16 %v1384_v2, %v1381_v28  ;;  %v10050_v18 = vpop.f32.mrb[48].mxu0  ;;  %v7256_v28 = vld [vmem:[#allocation2 + $0x20] sm:$0xff]   ;;  %v10076_v2 = vadd.f32 %v9997_v35, %v7020_v23 }
 0x3dc   :  { %648 = vmax.xlane.f32.xlu1 %v10047_v54  ;;  %v10055_v8 = vpop.f32.mrb[49].mxu0  ;;  %13012 = vst [vmem:[#allocation13_spill] sm:$0xff] %v10085_v24 }
 0x3dd   :  { %v10057_v56 = vpop.f32.mrb[50].mxu0  ;;  %7419 = vmatprep.subr.bf16.mxu1 %v1444_v7  ;;  %v10072_v7 = vadd.f32 %v9990_v55, %v7019_v19  ;;  %13010 = vst [vmem:[#allocation12_spill] sm:$0xff] %v10076_v2 }
 0x3de   :  { %1170 = vmax.xlane.f32.xlu0 %v10052_v29  ;;  %v10064_v33 = vpop.f32.mrb[51].mxu0  ;;  %7420 = vmatpush3.bf16.msra.mxu1 %v13008_v34  ;;  %v7015_v34 = vunpack.c.l.bf16 %v7256_v28 }
 0x3df   :  { %v7947_v63 = vpop.f32.mrb[20].mxu1  ;;  %7421 = vmatprep.subr.bf16.mxu1 %v1445_v6  ;;  %13009 = vst [vmem:[#allocation11_spill] sm:$0xff] %v10072_v7  ;;  %v13011_v6 = vpack.c.bf16 %v9925_v44, %v9920_v16  ;;  %v7060_v16 = vunpack.c.h.bf16 %v7266_v51 }
 0x3e0   :  { %1172 = vmax.xlane.f32.xlu1 %v10059_v59  ;;  %v1397_v46 = vpop.f32.mrb[21].mxu1 }
 0x3e1   :  { %v7948_v58 = vpop.f32.mrb[22].mxu1 }
 0x3e2   :  { %658 = vmax.xlane.f32.xlu0 %v10072_v7  ;;  %v1447_v17 = vpack.c.bf16 %v7948_v58, %v7947_v63  ;;  %v1400_v45 = vpop.f32.mrb[23].mxu1  ;;  %7422 = vmatpush3.bf16.msra.mxu1 %v13011_v6  ;;  %v7016_v63 = vunpack.c.h.bf16 %v7256_v28  ;;  %v10093_v58 = vadd.f32 %v7048_v9, %v10012_v14  ;;  %v10106_v28 = vadd.f32 %v7015_v34, %v9995_v41 }
 0x3e3   :  { %v1446_v19 = vpack.c.bf16 %v1400_v45, %v1397_v46  ;;  %v10082_v55 = vpop.f32.mrb[52].mxu0  ;;  %v7059_v14 = vunpack.c.l.bf16 %v7266_v51  ;;  %v7259_v45 = vld [vmem:[#allocation2 + $0x38] sm:$0xff]   ;;  %v7265_v51 = vld [vmem:[#allocation2 + $0x70] sm:$0xff]  }
 0x3e4   :  { %660 = vmax.xlane.f32.xlu1 %v10076_v2  ;;  %v10088_v35 = vpop.f32.mrb[53].mxu0  ;;  %13013 = vst [vmem:[#allocation14_spill] sm:$0xff] %v10093_v58  ;;  %13015 = vst [vmem:[#allocation15_spill] sm:$0xff] %v10106_v28 }
 0x3e5   :  { %v10090_v23 = vpop.f32.mrb[54].mxu0  ;;  %7423 = vmatprep.subr.bf16.mxu1 %v1446_v19  ;;  %v10110_v19 = vadd.f32 %v7016_v63, %v10002_v25  ;;  %v10119_v26 = vadd.f32 %v10028_v4, %v7059_v14  ;;  %v13020_v4 = vpack.c.bf16 %v9953_v12, %v9947_v22  ;;  %v13023_v12 = vpack.c.bf16 %v9949_v10, %v9945_v21 }
 0x3e6   :  { %1166 = vmax.xlane.f32.xlu0 %v10085_v24  ;;  %v10098_v44 = vpop.f32.mrb[55].mxu0  ;;  %7424 = vmatpush3.bf16.msra.mxu1 %v13014_v47  ;;  %v7027_v47 = vunpack.c.l.bf16 %v7259_v45 }
 0x3e7   :  { %v7951_v46 = vpop.f32.mrb[24].mxu1  ;;  %7425 = vmatprep.subr.bf16.mxu1 %v1447_v17  ;;  %13016 = vst [vmem:[#allocation16_spill] sm:$0xff] %v10110_v19  ;;  %v13017_v17 = vpack.c.bf16 %v9937_v37, %v9933_v20  ;;  %13018 = vst [vmem:[#allocation17_spill] sm:$0xff] %v10119_v26 }
 0x3e8   :  { %1168 = vmax.xlane.f32.xlu1 %v10093_v58  ;;  %v1413_v9 = vpop.f32.mrb[25].mxu1 }
 0x3e9   :  { %v7952_v6 = vpop.f32.mrb[26].mxu1 }
 0x3ea   :  { %654 = vmax.xlane.f32.xlu0 %v10106_v28  ;;  %v1449_v0 = vpack.c.bf16 %v7952_v6, %v7951_v46  ;;  %v1416_v1 = vpop.f32.mrb[27].mxu1  ;;  %7426 = vmatpush3.bf16.msra.mxu1 %v13017_v17  ;;  %v7028_v46 = vunpack.c.h.bf16 %v7259_v45  ;;  %v10127_v6 = vadd.f32 %v10035_v38, %v7060_v16  ;;  %v7055_v38 = vunpack.c.l.bf16 %v7265_v51  ;;  %v7258_v16 = vld [vmem:[#allocation2 + $0x30] sm:$0xff]  }
 0x3eb   :  { %v1448_v41 = vpack.c.bf16 %v1416_v1, %v1413_v9  ;;  %v10116_v34 = vpop.f32.mrb[56].mxu0  ;;  %v10140_v9 = vadd.f32 %v10014_v48, %v7027_v47  ;;  %v7056_v17 = vunpack.c.h.bf16 %v7265_v51  ;;  %v7023_v48 = vunpack.c.l.bf16 %v7258_v16 }
 0x3ec   :  { %656 = vmax.xlane.f32.xlu1 %v10110_v19  ;;  %v10122_v25 = vpop.f32.mrb[57].mxu0  ;;  %13019 = vst [vmem:[#allocation18_spill] sm:$0xff] %v10127_v6  ;;  %v10144_v1 = vadd.f32 %v10021_v60, %v7028_v46  ;;  %v10153_v47 = vadd.f32 %v7055_v38, %v10033_v52  ;;  %v7024_v14 = vunpack.c.h.bf16 %v7258_v16 }
 0x3ed   :  { %v10124_v63 = vpop.f32.mrb[58].mxu0  ;;  %7427 = vmatprep.subr.bf16.mxu1 %v1448_v41  ;;  %13021 = vst [vmem:[#allocation19_spill] sm:$0xff] %v10140_v9  ;;  %v10161_v21 = vadd.f32 %v7056_v17, %v10040_v40  ;;  %v13027_v40 = vpack.c.bf16 %v9965_v32, %v9959_v30  ;;  %v13029_v17 = vpack.c.bf16 %v9961_v31, %v9957_v27 }
 0x3ee   :  { %1178 = vmax.xlane.f32.xlu0 %v10119_v26  ;;  %v10132_v37 = vpop.f32.mrb[59].mxu0  ;;  %7428 = vmatpush3.bf16.msra.mxu1 %v13020_v4  ;;  %13022 = vst [vmem:[#allocation20_spill] sm:$0xff] %v10144_v1  ;;  %13024 = vst [vmem:[#allocation21_spill] sm:$0xff] %v10153_v47  ;;  %v10178_v16 = vadd.f32 %v7024_v14, %v10026_v3 }
 0x3ef   :  { %7429 = vmatprep.subr.bf16.mxu1 %v1449_v0  ;;  %13025 = vst [vmem:[#allocation22_spill] sm:$0xff] %v10161_v21 }
 0x3f0   :  { %1180 = vmax.xlane.f32.xlu1 %v10127_v6  ;;  %13028 = vst [vmem:[#allocation24_spill] sm:$0xff] %v10178_v16  ;;  %v7062_v6 = vld [vmem:[#allocation2 + $0x80] sm:$0xff]  }
 0x3f1   :  { %v7955_v45 = vpop.f32.mrb[28].mxu1  ;;  %v7064_v26 = vunpack.c.h.bf16 %v7062_v6 }
 0x3f2   :  { %666 = vmax.xlane.f32.xlu0 %v10140_v9  ;;  %v1429_v22 = vpop.f32.mrb[29].mxu1  ;;  %7430 = vmatpush3.bf16.msra.mxu1 %v13023_v12 }
 0x3f3   :  { %v7956_v0 = vpop.f32.mrb[30].mxu1  ;;  %v10150_v41 = vpop.f32.mrb[60].mxu0 }
 0x3f4   :  { %v1451_v4 = vpack.c.bf16 %v7956_v0, %v7955_v45  ;;  %668 = vmax.xlane.f32.xlu1 %v10144_v1  ;;  %v1432_v60 = vpop.f32.mrb[31].mxu1  ;;  %v10156_v46 = vpop.f32.mrb[61].mxu0  ;;  %v10171_v45 = vadd.f32 %v7023_v48, %v10019_v53  ;;  %v7274_v53 = vld [vmem:[#allocation2 + $0xc8] sm:$0xff]  }
 0x3f5   :  { %v1450_v51 = vpack.c.bf16 %v1432_v60, %v1429_v22  ;;  %v10158_v20 = vpop.f32.mrb[62].mxu0  ;;  %v7099_v0 = vunpack.c.l.bf16 %v7274_v53  ;;  %v7267_v48 = vld [vmem:[#allocation2 + $0x88] sm:$0xff]   ;;  %v7100_v32 = vunpack.c.h.bf16 %v7274_v53 }
 0x3f6   :  { %1174 = vmax.xlane.f32.xlu0 %v10153_v47  ;;  %v10166_v52 = vpop.f32.mrb[63].mxu0  ;;  %13026 = vst [vmem:[#allocation23_spill] sm:$0xff] %v10171_v45  ;;  %v7068_v38 = vunpack.c.h.bf16 %v7267_v48 }
 0x3f7   :  { %7431 = vmatprep.subr.bf16.mxu1 %v1450_v51  ;;  %v7067_v51 = vunpack.c.l.bf16 %v7267_v48 }
 0x3f8   :  { %1176 = vmax.xlane.f32.xlu1 %v10161_v21  ;;  %7432 = vmatpush3.bf16.msra.mxu1 %v13027_v40  ;;  %v7094_v40 = vld [vmem:[#allocation2 + $0xc0] sm:$0xff]  }
 0x3f9   :  { %7433 = vmatprep.subr.bf16.mxu1 %v1451_v4  ;;  %v7095_v9 = vunpack.c.l.bf16 %v7094_v40 }
 0x3fa   :  { %662 = vmax.xlane.f32.xlu0 %v10171_v45 }
 0x3fc   :  { %664 = vmax.xlane.f32.xlu1 %v10178_v16  ;;  %7434 = vmatpush3.bf16.msra.mxu1 %v13029_v17 }
 0x417   :  { %v7975_v22 = vpop.f32.mrb[32].mxu1 }
 0x418   :  { %v1599_v12 = vpop.f32.mrb[33].mxu1  ;;  %v10190_v17 = vadd.f32 %v7975_v22, %v7067_v51  ;;  %v7276_v51 = vld [vmem:[#allocation2 + $0xd8] sm:$0xff]  }
 0x419   :  { %v7976_v60 = vpop.f32.mrb[34].mxu1  ;;  %v7108_v45 = vunpack.c.h.bf16 %v7276_v51  ;;  %v7107_v28 = vunpack.c.l.bf16 %v7276_v51 }
 0x41a   :  { %v1602_v30 = vpop.f32.mrb[35].mxu1  ;;  %13032 = vst [vmem:[#allocation27_spill] sm:$0xff] %v10190_v17 }
 0x41b   :  { %v8025_v4 = vpop.f32.mrb[64].mxu0 }
 0x41c   :  { %v10185_v3 = vadd.f32 %v8025_v4, %v7099_v0  ;;  %v2111_v14 = vpop.f32.mrb[65].mxu0  ;;  %v10195_v4 = vadd.f32 %v7976_v60, %v7068_v38 }
 0x41d   :  { %v8026_v10 = vpop.f32.mrb[66].mxu0 }
 0x41e   :  { %13030 = vst [vmem:[#allocation25_spill] sm:$0xff] %v10185_v3  ;;  %v10187_v1 = vadd.f32 %v8026_v10, %v7100_v32  ;;  %2178 = vmax.xlane.f32.xlu0 %v10185_v3  ;;  %v2114_v27 = vpop.f32.mrb[67].mxu0  ;;  %13033 = vst [vmem:[#allocation28_spill] sm:$0xff] %v10195_v4  ;;  %v7063_v32 = vunpack.c.l.bf16 %v7062_v6  ;;  %v10198_v3 = vadd.f32 %v7095_v9, %v2111_v14  ;;  %v7269_v9 = vld [vmem:[#allocation2 + $0x98] sm:$0xff]  }
 0x41f   :  { %v7979_v31 = vpop.f32.mrb[36].mxu1 }
 0x420   :  { %13031 = vst [vmem:[#allocation26_spill] sm:$0xff] %v10187_v1  ;;  %2180 = vmax.xlane.f32.xlu1 %v10187_v1  ;;  %v10193_v53 = vpop.f32.mrb[37].mxu1  ;;  %13034 = vst [vmem:[#allocation29_spill] sm:$0xff] %v10198_v3  ;;  %v10201_v1 = vadd.f32 %v7064_v26, %v1602_v30  ;;  %v10206_v21 = vadd.f32 %v7063_v32, %v1599_v12 }
 0x421   :  { %v7980_v0 = vpop.f32.mrb[38].mxu1 }
 0x422   :  { %1666 = vmax.xlane.f32.xlu0 %v10190_v17  ;;  %v1618_v10 = vpop.f32.mrb[39].mxu1  ;;  %13035 = vst [vmem:[#allocation30_spill] sm:$0xff] %v10201_v1  ;;  %13036 = vst [vmem:[#allocation31_spill] sm:$0xff] %v10206_v21  ;;  %v7096_v17 = vunpack.c.h.bf16 %v7094_v40  ;;  %v7275_v40 = vld [vmem:[#allocation2 + $0xd0] sm:$0xff]  }
 0x423   :  { %v8029_v48 = vpop.f32.mrb[68].mxu0  ;;  %v7104_v19 = vunpack.c.h.bf16 %v7275_v40 }
 0x424   :  { %1668 = vmax.xlane.f32.xlu1 %v10195_v4  ;;  %v2127_v22 = vpop.f32.mrb[69].mxu0  ;;  %v7076_v4 = vunpack.c.h.bf16 %v7269_v9  ;;  %v10226_v24 = vadd.f32 %v8029_v48, %v7107_v28  ;;  %v7103_v28 = vunpack.c.l.bf16 %v7275_v40 }
 0x425   :  { %v8030_v16 = vpop.f32.mrb[70].mxu0 }
 0x426   :  { %2174 = vmax.xlane.f32.xlu0 %v10198_v3  ;;  %v2130_v38 = vpop.f32.mrb[71].mxu0  ;;  %v10211_v47 = vadd.f32 %v8030_v16, %v7108_v45  ;;  %v10216_v3 = vadd.f32 %v7096_v17, %v2114_v27  ;;  %13040 = vst [vmem:[#allocation35_spill] sm:$0xff] %v10226_v24  ;;  %v7268_v17 = vld [vmem:[#allocation2 + $0x90] sm:$0xff]   ;;  %v10250_v29 = vadd.f32 %v7103_v28, %v2127_v22  ;;  %v7277_v22 = vld [vmem:[#allocation2 + $0xe0] sm:$0xff]  }
 0x427   :  { %v10204_v60 = vpop.f32.mrb[40].mxu1  ;;  %v10233_v58 = vadd.f32 %v7104_v19, %v2130_v38  ;;  %v7112_v28 = vunpack.c.h.bf16 %v7277_v22 }
 0x428   :  { %1664 = vmax.xlane.f32.xlu1 %v10201_v1  ;;  %v10209_v6 = vpop.f32.mrb[41].mxu1  ;;  %13037 = vst [vmem:[#allocation32_spill] sm:$0xff] %v10211_v47  ;;  %13038 = vst [vmem:[#allocation33_spill] sm:$0xff] %v10216_v3  ;;  %v10221_v1 = vadd.f32 %v7980_v0, %v7076_v4 }
 0x429   :  { %v7984_v14 = vpop.f32.mrb[42].mxu1  ;;  %13041 = vst [vmem:[#allocation36_spill] sm:$0xff] %v10233_v58 }
 0x42a   :  { %1662 = vmax.xlane.f32.xlu0 %v10206_v21  ;;  %v10214_v26 = vpop.f32.mrb[43].mxu1  ;;  %13039 = vst [vmem:[#allocation34_spill] sm:$0xff] %v10221_v1  ;;  %v7075_v21 = vunpack.c.l.bf16 %v7269_v9  ;;  %v7278_v9 = vld [vmem:[#allocation2 + $0xe8] sm:$0xff]  }
 0x42b   :  { %v8033_v30 = vpop.f32.mrb[72].mxu0  ;;  %v7116_v2 = vunpack.c.h.bf16 %v7278_v9  ;;  %v7115_v54 = vunpack.c.l.bf16 %v7278_v9 }
 0x42c   :  { %2188 = vmax.xlane.f32.xlu1 %v10211_v47  ;;  %v10219_v12 = vpop.f32.mrb[73].mxu0  ;;  %v7072_v47 = vunpack.c.h.bf16 %v7268_v17 }
 0x42d   :  { %v8034_v32 = vpop.f32.mrb[74].mxu0 }
 0x42e   :  { %2176 = vmax.xlane.f32.xlu0 %v10216_v3  ;;  %v2146_v45 = vpop.f32.mrb[75].mxu0  ;;  %v10240_v3 = vadd.f32 %v7979_v31, %v7075_v21  ;;  %v10245_v7 = vadd.f32 %v7072_v47, %v1618_v10  ;;  %v7271_v31 = vld [vmem:[#allocation2 + $0xa8] sm:$0xff]   ;;  %v10253_v59 = vadd.f32 %v8034_v32, %v7116_v2  ;;  %v13043_v2 = vpack.c.bf16 %v10064_v33, %v10055_v8 }
 0x42f   :  { %v10224_v16 = vpop.f32.mrb[44].mxu1  ;;  %v13044_v8 = vpack.c.bf16 %v10057_v56, %v10050_v18 }
 0x430   :  { %1676 = vmax.xlane.f32.xlu1 %v10221_v1  ;;  %v10229_v27 = vpop.f32.mrb[45].mxu1  ;;  %13042 = vst [vmem:[#allocation37_spill] sm:$0xff] %v10240_v3 }
 0x431   :  { %v10231_v51 = vpop.f32.mrb[46].mxu1 }
 0x432   :  { %2186 = vmax.xlane.f32.xlu0 %v10226_v24  ;;  %v10236_v0 = vpop.f32.mrb[47].mxu1  ;;  %v7071_v24 = vunpack.c.l.bf16 %v7268_v17 }
 0x433   :  { %v10238_v4 = vpop.f32.mrb[76].mxu0 }
 0x434   :  { %2184 = vmax.xlane.f32.xlu1 %v10233_v58  ;;  %v10243_v48 = vpop.f32.mrb[77].mxu0  ;;  %v7084_v58 = vunpack.c.h.bf16 %v7271_v31 }
 0x435   :  { %v8038_v1 = vpop.f32.mrb[78].mxu0 }
 0x436   :  { %1674 = vmax.xlane.f32.xlu0 %v10240_v3  ;;  %v10248_v19 = vpop.f32.mrb[79].mxu0  ;;  %v10257_v3 = vadd.f32 %v7071_v24, %v10193_v53  ;;  %v10260_v17 = vadd.f32 %v7984_v14, %v7084_v58  ;;  %v7270_v53 = vld [vmem:[#allocation2 + $0xa0] sm:$0xff]   ;;  %v10269_v58 = vadd.f32 %v7112_v28, %v2146_v45  ;;  %v7273_v28 = vld [vmem:[#allocation2 + $0xb8] sm:$0xff]  }
 0x437   :  { %v8043_v38 = vpop.f32.mrb[48].mxu1  ;;  %v7079_v56 = vunpack.c.l.bf16 %v7270_v53 }
 0x438   :  { %1672 = vmax.xlane.f32.xlu1 %v10245_v7  ;;  %v2405_v21 = vpop.f32.mrb[49].mxu1 }
 0x439   :  { %v8044_v40 = vpop.f32.mrb[50].mxu1 }
 0x43a   :  { %2182 = vmax.xlane.f32.xlu0 %v10250_v29  ;;  %v2469_v47 = vpack.c.bf16 %v8044_v40, %v8043_v38  ;;  %v2408_v10 = vpop.f32.mrb[51].mxu1  ;;  %v7083_v38 = vunpack.c.l.bf16 %v7271_v31  ;;  %v7280_v31 = vld [vmem:[#allocation2 + $0xf8] sm:$0xff]  }
 0x43b   :  { %v2468_v13 = vpack.c.bf16 %v2408_v10, %v2405_v21  ;;  %v10266_v21 = vadd.f32 %v8033_v30, %v7115_v54  ;;  %v7111_v30 = vunpack.c.l.bf16 %v7277_v22  ;;  %v13045_v10 = vpack.c.bf16 %v10098_v44, %v10088_v35 }
 0x43c   :  { %2196 = vmax.xlane.f32.xlu1 %v10253_v59  ;;  %v10276_v54 = vadd.f32 %v10204_v60, %v7083_v38  ;;  %v13046_v35 = vpack.c.bf16 %v10090_v23, %v10082_v55  ;;  %v13047_v55 = vpack.c.bf16 %v10132_v37, %v10122_v25 }
 0x43d   :  { %7483 = vmatprep.subr.bf16.mxu0 %v2468_v13  ;;  %v7080_v13 = vunpack.c.h.bf16 %v7270_v53  ;;  %v10287_v60 = vadd.f32 %v7111_v30, %v10219_v12  ;;  %v10297_v12 = vadd.f32 %v7079_v56, %v10209_v6  ;;  %v7091_v30 = vunpack.c.l.bf16 %v7273_v28 }
 0x43e   :  { %1670 = vmax.xlane.f32.xlu0 %v10257_v3  ;;  %7484 = vmatpush3.bf16.msra.mxu0 %v13043_v2 }
 0x43f   :  { %v8047_v32 = vpop.f32.mrb[52].mxu1  ;;  %7485 = vmatprep.subr.bf16.mxu0 %v2469_v47  ;;  %v10280_v45 = vadd.f32 %v7080_v13, %v10214_v26  ;;  %v7124_v47 = vunpack.c.h.bf16 %v7280_v31  ;;  %v7092_v26 = vunpack.c.h.bf16 %v7273_v28  ;;  %v7279_v13 = vld [vmem:[#allocation2 + $0xf0] sm:$0xff]  }
 0x440   :  { %1684 = vmax.xlane.f32.xlu1 %v10260_v17  ;;  %v2421_v24 = vpop.f32.mrb[53].mxu1 }
 0x441   :  { %v8048_v9 = vpop.f32.mrb[54].mxu1 }
 0x442   :  { %2194 = vmax.xlane.f32.xlu0 %v10266_v21  ;;  %v2471_v14 = vpack.c.bf16 %v8048_v9, %v8047_v32  ;;  %v2424_v40 = vpop.f32.mrb[55].mxu1  ;;  %7486 = vmatpush3.bf16.msra.mxu0 %v13044_v8  ;;  %v10290_v32 = vadd.f32 %v8038_v1, %v7124_v47  ;;  %v7123_v9 = vunpack.c.l.bf16 %v7280_v31  ;;  %v10301_v1 = vadd.f32 %v10231_v51, %v7092_v26  ;;  %v7272_v31 = vld [vmem:[#allocation2 + $0xb0] sm:$0xff]  }
 0x443   :  { %v2470_v33 = vpack.c.bf16 %v2424_v40, %v2421_v24  ;;  %v7120_v40 = vunpack.c.h.bf16 %v7279_v13 }
 0x444   :  { %2192 = vmax.xlane.f32.xlu1 %v10269_v58  ;;  %v10310_v47 = vadd.f32 %v10238_v4, %v7123_v9  ;;  %v13048_v4 = vpack.c.bf16 %v10124_v63, %v10116_v34  ;;  %v7087_v9 = vunpack.c.l.bf16 %v7272_v31 }
 0x445   :  { %7487 = vmatprep.subr.bf16.mxu0 %v2470_v33  ;;  %v10314_v25 = vadd.f32 %v7120_v40, %v10248_v19  ;;  %v7119_v19 = vunpack.c.l.bf16 %v7279_v13 }
 0x446   :  { %1682 = vmax.xlane.f32.xlu0 %v10276_v54  ;;  %7488 = vmatpush3.bf16.msra.mxu0 %v13045_v10  ;;  %v7088_v10 = vunpack.c.h.bf16 %v7272_v31 }
 0x447   :  { %v8051_v18 = vpop.f32.mrb[56].mxu1  ;;  %7489 = vmatprep.subr.bf16.mxu0 %v2471_v14  ;;  %v10336_v13 = vadd.f32 %v7119_v19, %v10243_v48  ;;  %v13053_v19 = vld [vmem:[#allocation8_spill] sm:$0xff] }
 0x448   :  { %1680 = vmax.xlane.f32.xlu1 %v10280_v45  ;;  %v2437_v22 = vpop.f32.mrb[57].mxu1 }
 0x449   :  { %v8052_v2 = vpop.f32.mrb[58].mxu1 }
 0x44a   :  { %2190 = vmax.xlane.f32.xlu0 %v10287_v60  ;;  %v2473_v38 = vpack.c.bf16 %v8052_v2, %v8051_v18  ;;  %v2440_v24 = vpop.f32.mrb[59].mxu1  ;;  %7490 = vmatpush3.bf16.msra.mxu0 %v13046_v35 }
 0x44b   :  { %v2472_v44 = vpack.c.bf16 %v2440_v24, %v2437_v22  ;;  %v1155_v53 = vpop.xlane.xlu0 %1154  ;;  %v10323_v24 = vadd.f32 %v10224_v16, %v7091_v30 }
 0x44c   :  { %2204 = vmax.xlane.f32.xlu1 %v10290_v32  ;;  %v1184_v23 = vsub.f32 %v9969_v43, %v1155_v53 }
 0x44d   :  { %v1157_v14 = vpop.xlane.xlu1 %1156  ;;  %7491 = vmatprep.subr.bf16.mxu0 %v2472_v44  ;;  %v10327_v44 = vadd.f32 %v7088_v10, %v10236_v0 }
 0x44e   :  { %v1185_v8 = vsub.f32 %v9971_v49, %v1157_v14  ;;  %1678 = vmax.xlane.f32.xlu0 %v10297_v12  ;;  %7492 = vmatpush3.bf16.msra.mxu0 %v13047_v55  ;;  %v1202_v28 = vmul.f32 1.442695, %v1184_v23 }
 0x44f   :  { %v8055_v6 = vpop.f32.mrb[60].mxu1  ;;  %7493 = vmatprep.subr.bf16.mxu0 %v2473_v38  ;;  %v643_v33 = vpop.xlane.xlu0 %642 }
 0x450   :  { %v1204_v51 = vmul.f32 1.442695, %v1185_v8  ;;  %1692 = vmax.xlane.f32.xlu1 %v10301_v1  ;;  %v2453_v49 = vpop.f32.mrb[61].mxu1  ;;  %v672_v2 = vsub.f32 %v9974_v36, %v643_v33  ;;  %v13049_v36 = vpack.c.bf16 %v10166_v52, %v10156_v46  ;;  %v13050_v46 = vpack.c.bf16 %v10158_v20, %v10150_v41 }
 0x451   :  { %v645_v18 = vpop.xlane.xlu1 %644  ;;  %v8056_v56 = vpop.f32.mrb[62].mxu1  ;;  %v10348_v8 = vadd.f32 %v7087_v9, %v10229_v27 }
 0x452   :  { %8538 = vpow2.f32 %v1204_v51  ;;  %v673_v43 = vsub.f32 %v9979_v57, %v645_v18  ;;  %2202 = vmax.xlane.f32.xlu0 %v10310_v47  ;;  %v2475_v37 = vpack.c.bf16 %v8056_v56, %v8055_v6  ;;  %v2456_v22 = vpop.f32.mrb[63].mxu1  ;;  %7494 = vmatpush3.bf16.msra.mxu0 %v13048_v4  ;;  %v690_v63 = vmul.f32 1.442695, %v672_v2 }
 0x453   :  { %v2474_v26 = vpack.c.bf16 %v2456_v22, %v2453_v49  ;;  %v1151_v38 = vpop.xlane.xlu0 %1150  ;;  %v13052_v22 = vld [vmem:[#allocation5_spill] sm:$0xff] }
 0x454   :  { %v692_v35 = vmul.f32 1.442695, %v673_v43  ;;  %2200 = vmax.xlane.f32.xlu1 %v10314_v25  ;;  %v1182_v16 = vsub.f32 %v9984_v62, %v1151_v38  ;;  %v13051_v43 = vld [vmem:[#allocation6_spill] sm:$0xff] }
 0x455   :  { %v1153_v57 = vpop.xlane.xlu1 %1152  ;;  %7495 = vmatprep.subr.bf16.mxu0 %v2474_v26 }
 0x456   :  { %8540 = vpow2.f32 %v692_v35  ;;  %v1183_v34 = vsub.f32 %v9987_v5, %v1153_v57  ;;  %1690 = vmax.xlane.f32.xlu0 %v10323_v24  ;;  %7496 = vmatpush3.bf16.msra.mxu0 %v13049_v36  ;;  %v1198_v62 = vmul.f32 1.442695, %v1182_v16 }
 0x457   :  { %8542 = vpow2.f32 %v1202_v28  ;;  %7497 = vmatprep.subr.bf16.mxu0 %v2475_v37  ;;  %v639_v53 = vpop.xlane.xlu0 %638 }
 0x458   :  { %v1200_v0 = vmul.f32 1.442695, %v1183_v34  ;;  %1688 = vmax.xlane.f32.xlu1 %v10327_v44  ;;  %v670_v52 = vsub.f32 %v9992_v11, %v639_v53  ;;  %v13054_v34 = vld [vmem:[#allocation7_spill] sm:$0xff] }
 0x459   :  { %v641_v5 = vpop.xlane.xlu1 %640 }
 0x45a   :  { %8544 = vpow2.f32 %v1200_v0  ;;  %v671_v14 = vsub.f32 %v9999_v15, %v641_v5  ;;  %2198 = vmax.xlane.f32.xlu0 %v10336_v13  ;;  %7498 = vmatpush3.bf16.msra.mxu0 %v13050_v46  ;;  %v686_v20 = vmul.f32 1.442695, %v670_v52  ;;  %v13055_v5 = vld [vmem:[#allocation10_spill] sm:$0xff] }
 0x45b   :  { %8546 = vpow2.f32 %v690_v63  ;;  %v1163_v40 = vpop.xlane.xlu0 %1162 }
 0x45c   :  { %v10345_v48 = vpop.eup %8538  ;;  %v688_v55 = vmul.f32 1.442695, %v671_v14  ;;  %v1188_v41 = vsub.f32 %v10004_v39, %v1163_v40 }
 0x45d   :  { %v1165_v23 = vpop.xlane.xlu1 %1164  ;;  %1236 = vadd.xlane.f32.xlu1 %v10345_v48 }
 0x45e   :  { %8548 = vpow2.f32 %v688_v55  ;;  %v1189_v15 = vsub.f32 %v10009_v42, %v1165_v23  ;;  %1686 = vmax.xlane.f32.xlu0 %v10348_v8  ;;  %v1210_v42 = vmul.f32 1.442695, %v1188_v41  ;;  %v13057_v41 = vld [vmem:[#allocation12_spill] sm:$0xff] }
 0x45f   :  { %8550 = vpow2.f32 %v1198_v62  ;;  %v651_v11 = vpop.xlane.xlu0 %650  ;;  %v13056_v62 = vld [vmem:[#allocation9_spill] sm:$0xff] }
 0x460   :  { %v10354_v6 = vpop.eup %8540  ;;  %v1212_v33 = vmul.f32 1.442695, %v1189_v15  ;;  %v676_v51 = vsub.f32 %v10016_v50, %v651_v11 }
 0x461   :  { %v10356_v30 = vpop.eup %8542  ;;  %v653_v27 = vpop.xlane.xlu1 %652  ;;  %724 = vadd.xlane.f32.xlu1 %v10354_v6 }
 0x462   :  { %8552 = vpow2.f32 %v1212_v33  ;;  %v677_v31 = vsub.f32 %v10023_v61, %v653_v27  ;;  %1234 = vadd.xlane.f32.xlu0 %v10356_v30  ;;  %v698_v61 = vmul.f32 1.442695, %v676_v51  ;;  %v13058_v27 = vld [vmem:[#allocation11_spill] sm:$0xff] }
 0x463   :  { %8554 = vpow2.f32 %v686_v20  ;;  %v1159_v49 = vpop.xlane.xlu0 %1158 }
 0x464   :  { %v10362_v39 = vpop.eup %8544  ;;  %v700_v10 = vmul.f32 1.442695, %v677_v31  ;;  %v1186_v4 = vsub.f32 %v13052_v22, %v1159_v49  ;;  %v13060_v22 = vld [vmem:[#allocation13_spill] sm:$0xff] }
 0x465   :  { %v10364_v18 = vpop.eup %8546  ;;  %v1161_v56 = vpop.xlane.xlu1 %1160  ;;  %1232 = vadd.xlane.f32.xlu1 %v10362_v39 }
 0x466   :  { %8556 = vpow2.f32 %v700_v10  ;;  %v1187_v37 = vsub.f32 %v13051_v43, %v1161_v56  ;;  %722 = vadd.xlane.f32.xlu0 %v10364_v18  ;;  %v1206_v57 = vmul.f32 1.442695, %v1186_v4  ;;  %v13059_v43 = vld [vmem:[#allocation14_spill] sm:$0xff] }
 0x467   :  { %8558 = vpow2.f32 %v1210_v42  ;;  %v647_v28 = vpop.xlane.xlu0 %646 }
 0x468   :  { %v10370_v50 = vpop.eup %8548  ;;  %v1208_v2 = vmul.f32 1.442695, %v1187_v37  ;;  %v674_v36 = vsub.f32 %v13054_v34, %v647_v28 }
 0x469   :  { %v10372_v26 = vpop.eup %8550  ;;  %v649_v38 = vpop.xlane.xlu1 %648  ;;  %720 = vadd.xlane.f32.xlu1 %v10370_v50 }
 0x46a   :  { %8560 = vpow2.f32 %v1208_v2  ;;  %v675_v35 = vsub.f32 %v13053_v19, %v649_v38  ;;  %1230 = vadd.xlane.f32.xlu0 %v10372_v26  ;;  %v694_v46 = vmul.f32 1.442695, %v674_v36 }
 0x46b   :  { %8562 = vpow2.f32 %v698_v61  ;;  %v1171_v63 = vpop.xlane.xlu0 %1170 }
 0x46c   :  { %v10378_v16 = vpop.eup %8552  ;;  %v696_v53 = vmul.f32 1.442695, %v675_v35  ;;  %v1192_v52 = vsub.f32 %v13056_v62, %v1171_v63  ;;  %v13062_v63 = vld [vmem:[#allocation15_spill] sm:$0xff] }
 0x46d   :  { %v10380_v9 = vpop.eup %8554  ;;  %v1173_v0 = vpop.xlane.xlu1 %1172  ;;  %1244 = vadd.xlane.f32.xlu1 %v10378_v16 }
 0x46e   :  { %8564 = vpow2.f32 %v696_v53  ;;  %v1193_v14 = vsub.f32 %v13055_v5, %v1173_v0  ;;  %718 = vadd.xlane.f32.xlu0 %v10380_v9  ;;  %v1218_v33 = vmul.f32 1.442695, %v1192_v52 }
 0x46f   :  { %8566 = vpow2.f32 %v1206_v57  ;;  %v659_v40 = vpop.xlane.xlu0 %658  ;;  %v13061_v57 = vld [vmem:[#allocation16_spill] sm:$0xff] }
 0x470   :  { %v10386_v55 = vpop.eup %8556  ;;  %v1220_v23 = vmul.f32 1.442695, %v1193_v14  ;;  %v680_v31 = vsub.f32 %v13058_v27, %v659_v40  ;;  %v13064_v27 = vld [vmem:[#allocation21_spill] sm:$0xff] }
 0x471   :  { %v10388_v15 = vpop.eup %8558  ;;  %v661_v20 = vpop.xlane.xlu1 %660  ;;  %732 = vadd.xlane.f32.xlu1 %v10386_v55 }
 0x472   :  { %8568 = vpow2.f32 %v1220_v23  ;;  %v681_v11 = vsub.f32 %v13057_v41, %v661_v20  ;;  %1242 = vadd.xlane.f32.xlu0 %v10388_v15  ;;  %v706_v61 = vmul.f32 1.442695, %v680_v31 }
 0x473   :  { %8570 = vpow2.f32 %v694_v46  ;;  %v1167_v42 = vpop.xlane.xlu0 %1166 }
 0x474   :  { %v10394_v51 = vpop.eup %8560  ;;  %v708_v49 = vmul.f32 1.442695, %v681_v11  ;;  %v1190_v4 = vsub.f32 %v13060_v22, %v1167_v42 }
 0x475   :  { %v10396_v10 = vpop.eup %8562  ;;  %v1169_v56 = vpop.xlane.xlu1 %1168  ;;  %1240 = vadd.xlane.f32.xlu1 %v10394_v51 }
 0x476   :  { %8572 = vpow2.f32 %v708_v49  ;;  %v1191_v37 = vsub.f32 %v13059_v43, %v1169_v56  ;;  %730 = vadd.xlane.f32.xlu0 %v10396_v10  ;;  %v1214_v36 = vmul.f32 1.442695, %v1190_v4  ;;  %v13066_v43 = vld [vmem:[#allocation22_spill] sm:$0xff] }
 0x477   :  { %8574 = vpow2.f32 %v1218_v33  ;;  %v655_v28 = vpop.xlane.xlu0 %654 }
 0x478   :  { %v10402_v2 = vpop.eup %8564  ;;  %v1216_v38 = vmul.f32 1.442695, %v1191_v37  ;;  %v678_v53 = vsub.f32 %v13062_v63, %v655_v28  ;;  %v13067_v28 = vld [vmem:[#allocation23_spill] sm:$0xff] }
 0x479   :  { %v10404_v19 = vpop.eup %8566  ;;  %v657_v35 = vpop.xlane.xlu1 %656  ;;  %728 = vadd.xlane.f32.xlu1 %v10402_v2 }
 0x47a   :  { %8576 = vpow2.f32 %v1216_v38  ;;  %v679_v34 = vsub.f32 %v13061_v57, %v657_v35  ;;  %1238 = vadd.xlane.f32.xlu0 %v10404_v19  ;;  %v702_v52 = vmul.f32 1.442695, %v678_v53 }
 0x47b   :  { %8578 = vpow2.f32 %v706_v61  ;;  %v10410_v0 = vpop.xlane.xlu0 %1178 }
 0x47c   :  { %v10412_v5 = vpop.eup %8568  ;;  %v704_v14 = vmul.f32 1.442695, %v679_v34 }
 0x47d   :  { %v10414_v46 = vpop.eup %8570  ;;  %v10416_v62 = vpop.xlane.xlu1 %1180  ;;  %1252 = vadd.xlane.f32.xlu1 %v10412_v5 }
 0x47e   :  { %8580 = vpow2.f32 %v704_v14  ;;  %726 = vadd.xlane.f32.xlu0 %v10414_v46 }
 0x47f   :  { %8582 = vpow2.f32 %v1214_v36  ;;  %v10420_v40 = vpop.xlane.xlu0 %666  ;;  %v13068_v36 = vld [vmem:[#allocation24_spill] sm:$0xff] }
 0x480   :  { %v10422_v23 = vpop.eup %8572  ;;  %8584 = vpow2.f32 %v702_v52 }
 0x481   :  { %13063 = vst [vmem:[#allocation6_spill] sm:$0xff] %v10422_v23  ;;  %v10424_v20 = vpop.eup %8574  ;;  %v10426_v41 = vpop.xlane.xlu1 %668  ;;  %740 = vadd.xlane.f32.xlu1 %v10422_v23 }
 0x482   :  { %1250 = vadd.xlane.f32.xlu0 %v10424_v20 }
 0x483   :  { %v1175_v11 = vpop.xlane.xlu0 %1174 }
 0x484   :  { %v10430_v33 = vpop.eup %8576  ;;  %v1194_v31 = vsub.f32 %v13064_v27, %v1175_v11 }
 0x485   :  { %v10433_v42 = vpop.eup %8578  ;;  %v1177_v49 = vpop.xlane.xlu1 %1176  ;;  %1248 = vadd.xlane.f32.xlu1 %v10430_v33 }
 0x486   :  { %13065 = vst [vmem:[#allocation5_spill] sm:$0xff] %v10433_v42  ;;  %v1222_v56 = vmul.f32 1.442695, %v1194_v31  ;;  %v1195_v37 = vsub.f32 %v13066_v43, %v1177_v49  ;;  %738 = vadd.xlane.f32.xlu0 %v10433_v42 }
 0x487   :  { %v663_v61 = vpop.xlane.xlu0 %662 }
 0x488   :  { %v10438_v22 = vpop.eup %8580  ;;  %8586 = vpow2.f32 %v1222_v56  ;;  %v1224_v4 = vmul.f32 1.442695, %v1195_v37  ;;  %v682_v38 = vsub.f32 %v13067_v28, %v663_v61  ;;  %v13073_v56 = vld [vmem:[#allocation25_spill] sm:$0xff] }
 0x489   :  { %v10441_v35 = vpop.eup %8582  ;;  %v665_v57 = vpop.xlane.xlu1 %664  ;;  %736 = vadd.xlane.f32.xlu1 %v10438_v22 }
 0x48a   :  { %8588 = vpow2.f32 %v1224_v4  ;;  %v710_v34 = vmul.f32 1.442695, %v682_v38  ;;  %v683_v63 = vsub.f32 %v13068_v36, %v665_v57  ;;  %1246 = vadd.xlane.f32.xlu0 %v10441_v35  ;;  %v10446_v14 = vpop.eup %8584  ;;  %v13074_v4 = vld [vmem:[#allocation26_spill] sm:$0xff] }
 0x48c   :  { %8590 = vpow2.f32 %v710_v34  ;;  %v712_v53 = vmul.f32 1.442695, %v683_v63  ;;  %v13075_v34 = vld [vmem:[#allocation27_spill] sm:$0xff] }
 0x48e   :  { %8592 = vpow2.f32 %v712_v53  ;;  %734 = vadd.xlane.f32.xlu0 %v10446_v14 }
 0x492   :  { %v10449_v52 = vpop.eup %8586 }
 0x493   :  { %13069 = vst [vmem:[#allocation8_spill] sm:$0xff] %v10449_v52  ;;  %1254 = vadd.xlane.f32.xlu0 %v10449_v52  ;;  %v13077_v52 = vld [vmem:[#allocation29_spill] sm:$0xff] }
 0x494   :  { %v10452_v11 = vpop.eup %8588 }
 0x495   :  { %13070 = vst [vmem:[#allocation7_spill] sm:$0xff] %v10452_v11  ;;  %1256 = vadd.xlane.f32.xlu1 %v10452_v11 }
 0x496   :  { %v10455_v27 = vpop.eup %8590 }
 0x497   :  { %13071 = vst [vmem:[#allocation10_spill] sm:$0xff] %v10455_v27  ;;  %742 = vadd.xlane.f32.xlu0 %v10455_v27  ;;  %v13076_v27 = vld [vmem:[#allocation28_spill] sm:$0xff] }
 0x498   :  { %v10458_v31 = vpop.eup %8592 }
 0x499   :  { %13072 = vst [vmem:[#allocation9_spill] sm:$0xff] %v10458_v31  ;;  %744 = vadd.xlane.f32.xlu1 %v10458_v31 }
 0x4ab   :  { %v2179_v49 = vpop.xlane.xlu0 %2178 }
 0x4ac   :  { %v2208_v43 = vsub.f32 %v13073_v56, %v2179_v49 }
 0x4ad   :  { %v2181_v37 = vpop.xlane.xlu1 %2180 }
 0x4ae   :  { %v2226_v61 = vmul.f32 1.442695, %v2208_v43  ;;  %v2209_v28 = vsub.f32 %v13074_v4, %v2181_v37  ;;  %v13078_v37 = vld [vmem:[#allocation31_spill] sm:$0xff] }
 0x4af   :  { %v1667_v38 = vpop.xlane.xlu0 %1666 }
 0x4b0   :  { %8594 = vpow2.f32 %v2226_v61  ;;  %v2228_v57 = vmul.f32 1.442695, %v2209_v28  ;;  %v1696_v36 = vsub.f32 %v13075_v34, %v1667_v38 }
 0x4b1   :  { %v1669_v63 = vpop.xlane.xlu1 %1668 }
 0x4b2   :  { %8596 = vpow2.f32 %v2228_v57  ;;  %v1714_v53 = vmul.f32 1.442695, %v1696_v36  ;;  %v1697_v23 = vsub.f32 %v13076_v27, %v1669_v63  ;;  %v13080_v57 = vld [vmem:[#allocation30_spill] sm:$0xff] }
 0x4b3   :  { %v2175_v11 = vpop.xlane.xlu0 %2174 }
 0x4b4   :  { %8598 = vpow2.f32 %v1714_v53  ;;  %v1716_v31 = vmul.f32 1.442695, %v1697_v23  ;;  %v2206_v42 = vsub.f32 %v13077_v52, %v2175_v11  ;;  %v13082_v23 = vld [vmem:[#allocation33_spill] sm:$0xff]  ;;  %v13084_v53 = vld [vmem:[#allocation32_spill] sm:$0xff] }
 0x4b5   :  { %v1665_v49 = vpop.xlane.xlu1 %1664 }
 0x4b6   :  { %8600 = vpow2.f32 %v1716_v31  ;;  %v2222_v56 = vmul.f32 1.442695, %v2206_v42  ;;  %v1695_v34 = vsub.f32 %v13080_v57, %v1665_v49 }
 0x4b7   :  { %v1663_v43 = vpop.xlane.xlu0 %1662 }
 0x4b8   :  { %8602 = vpow2.f32 %v2222_v56  ;;  %v1694_v61 = vsub.f32 %v13078_v37, %v1663_v43  ;;  %v1712_v63 = vmul.f32 1.442695, %v1695_v34  ;;  %v13086_v37 = vld [vmem:[#allocation35_spill] sm:$0xff] }
 0x4b9   :  { %v2189_v4 = vpop.xlane.xlu1 %2188 }
 0x4ba   :  { %v10467_v28 = vpop.eup %8594  ;;  %v1710_v38 = vmul.f32 1.442695, %v1694_v61  ;;  %v2213_v56 = vsub.f32 %v13084_v53, %v2189_v4  ;;  %v13088_v53 = vld [vmem:[#allocation37_spill] sm:$0xff] }
 0x4bb   :  { %13079 = vst [vmem:[#allocation12_spill] sm:$0xff] %v10467_v28  ;;  %2258 = vadd.xlane.f32.xlu0 %v10467_v28  ;;  %v2177_v27 = vpop.xlane.xlu0 %2176 }
 0x4bc   :  { %v10471_v36 = vpop.eup %8596  ;;  %8604 = vpow2.f32 %v1710_v38  ;;  %v2207_v52 = vsub.f32 %v13082_v23, %v2177_v27  ;;  %v2236_v23 = vmul.f32 1.442695, %v2213_v56 }
 0x4bd   :  { %13081 = vst [vmem:[#allocation11_spill] sm:$0xff] %v10471_v36  ;;  %v1677_v11 = vpop.xlane.xlu1 %1676  ;;  %2260 = vadd.xlane.f32.xlu1 %v10471_v36 }
 0x4be   :  { %v10475_v42 = vpop.eup %8598  ;;  %v2224_v31 = vmul.f32 1.442695, %v2207_v52  ;;  %v13087_v52 = vld [vmem:[#allocation34_spill] sm:$0xff] }
 0x4bf   :  { %13083 = vst [vmem:[#allocation14_spill] sm:$0xff] %v10475_v42  ;;  %1746 = vadd.xlane.f32.xlu0 %v10475_v42  ;;  %v2187_v49 = vpop.xlane.xlu0 %2186  ;;  %v1701_v34 = vsub.f32 %v13087_v52, %v1677_v11 }
 0x4c0   :  { %v10479_v43 = vpop.eup %8600  ;;  %8606 = vpow2.f32 %v2224_v31  ;;  %v2212_v61 = vsub.f32 %v13086_v37, %v2187_v49 }
 0x4c1   :  { %13085 = vst [vmem:[#allocation13_spill] sm:$0xff] %v10479_v43  ;;  %v2185_v38 = vpop.xlane.xlu1 %2184  ;;  %1748 = vadd.xlane.f32.xlu1 %v10479_v43  ;;  %8608 = vpow2.f32 %v1712_v63  ;;  %v1724_v37 = vmul.f32 1.442695, %v1701_v34  ;;  %v13089_v43 = vld [vmem:[#allocation36_spill] sm:$0xff] }
 0x4c2   :  { %v10483_v57 = vpop.eup %8602  ;;  %v2234_v27 = vmul.f32 1.442695, %v2212_v61  ;;  %v2211_v36 = vsub.f32 %v13089_v43, %v2185_v38 }
 0x4c3   :  { %2254 = vadd.xlane.f32.xlu0 %v10483_v57  ;;  %v1675_v4 = vpop.xlane.xlu0 %1674 }
 0x4c4   :  { %8610 = vpow2.f32 %v2234_v27  ;;  %v1700_v42 = vsub.f32 %v13088_v53, %v1675_v4  ;;  %v2232_v52 = vmul.f32 1.442695, %v2211_v36 }
 0x4c5   :  { %v1673_v28 = vpop.xlane.xlu1 %1672  ;;  %8612 = vpow2.f32 %v2236_v23 }
 0x4c6   :  { %v10488_v31 = vpop.eup %8604  ;;  %v1722_v49 = vmul.f32 1.442695, %v1700_v42  ;;  %v1699_v4 = vsub.f32 %v10245_v7, %v1673_v28 }
 0x4c7   :  { %1742 = vadd.xlane.f32.xlu0 %v10488_v31  ;;  %v2183_v63 = vpop.xlane.xlu0 %2182 }
 0x4c8   :  { %8614 = vpow2.f32 %v1722_v49  ;;  %v2210_v11 = vsub.f32 %v10250_v29, %v2183_v63  ;;  %v1720_v53 = vmul.f32 1.442695, %v1699_v4 }
 0x4c9   :  { %v2197_v56 = vpop.xlane.xlu1 %2196  ;;  %8616 = vpow2.f32 %v1724_v37 }
 0x4ca   :  { %v10493_v61 = vpop.eup %8606  ;;  %v2230_v27 = vmul.f32 1.442695, %v2210_v11  ;;  %v2217_v49 = vsub.f32 %v10253_v59, %v2197_v56 }
 0x4cb   :  { %2256 = vadd.xlane.f32.xlu1 %v10493_v61  ;;  %v1671_v42 = vpop.xlane.xlu0 %1670  ;;  %v10498_v38 = vpop.eup %8608 }
 0x4cc   :  { %8618 = vpow2.f32 %v2230_v27  ;;  %v1698_v43 = vsub.f32 %v10257_v3, %v1671_v42  ;;  %v2244_v11 = vmul.f32 1.442695, %v2217_v49 }
 0x4cd   :  { %v1685_v23 = vpop.xlane.xlu1 %1684  ;;  %8620 = vpow2.f32 %v2232_v52 }
 0x4ce   :  { %v10500_v34 = vpop.eup %8610  ;;  %v1718_v29 = vmul.f32 1.442695, %v1698_v43  ;;  %v1705_v27 = vsub.f32 %v10260_v17, %v1685_v23 }
 0x4cf   :  { %1744 = vadd.xlane.f32.xlu1 %v10498_v38  ;;  %2266 = vadd.xlane.f32.xlu0 %v10500_v34  ;;  %v2195_v7 = vpop.xlane.xlu0 %2194  ;;  %v10506_v36 = vpop.eup %8612 }
 0x4d0   :  { %8622 = vpow2.f32 %v1718_v29  ;;  %v2216_v28 = vsub.f32 %v10266_v21, %v2195_v7  ;;  %v1732_v43 = vmul.f32 1.442695, %v1705_v27 }
 0x4d1   :  { %v2193_v3 = vpop.xlane.xlu1 %2192  ;;  %8624 = vpow2.f32 %v1720_v53 }
 0x4d2   :  { %v10508_v37 = vpop.eup %8614  ;;  %v2242_v63 = vmul.f32 1.442695, %v2216_v28  ;;  %v2215_v29 = vsub.f32 %v10269_v58, %v2193_v3  ;;  %v13090_v28 = vld [vmem:[#allocation17_spill] sm:$0xff] }
 0x4d3   :  { %2268 = vadd.xlane.f32.xlu1 %v10506_v36  ;;  %1754 = vadd.xlane.f32.xlu0 %v10508_v37  ;;  %v1683_v59 = vpop.xlane.xlu0 %1682  ;;  %v10514_v52 = vpop.eup %8616 }
 0x4d4   :  { %8626 = vpow2.f32 %v2242_v63  ;;  %v1704_v56 = vsub.f32 %v10276_v54, %v1683_v59  ;;  %v1196_v63 = vsub.f32 %v13090_v28, %v10410_v0 }
 0x4d5   :  { %v1681_v21 = vpop.xlane.xlu1 %1680  ;;  %8628 = vpow2.f32 %v2244_v11  ;;  %v2240_v11 = vmul.f32 1.442695, %v2215_v29 }
 0x4d6   :  { %v10516_v4 = vpop.eup %8618  ;;  %v1730_v42 = vmul.f32 1.442695, %v1704_v56  ;;  %v1703_v3 = vsub.f32 %v10280_v45, %v1681_v21  ;;  %v1226_v0 = vmul.f32 1.442695, %v1196_v63 }
 0x4d7   :  { %1756 = vadd.xlane.f32.xlu1 %v10514_v52  ;;  %2262 = vadd.xlane.f32.xlu0 %v10516_v4  ;;  %v2191_v17 = vpop.xlane.xlu0 %2190  ;;  %v10522_v53 = vpop.eup %8620 }
 0x4d8   :  { %8630 = vpow2.f32 %v1730_v42  ;;  %v2214_v23 = vsub.f32 %v10287_v60, %v2191_v17  ;;  %v1728_v21 = vmul.f32 1.442695, %v1703_v3 }
 0x4d9   :  { %v2205_v54 = vpop.xlane.xlu1 %2204  ;;  %8632 = vpow2.f32 %v1732_v43  ;;  %v13091_v43 = vld [vmem:[#allocation18_spill] sm:$0xff] }
 0x4da   :  { %v10524_v49 = vpop.eup %8622  ;;  %v2238_v7 = vmul.f32 1.442695, %v2214_v23  ;;  %v1197_v29 = vsub.f32 %v13091_v43, %v10416_v62  ;;  %v2221_v63 = vsub.f32 %v10290_v32, %v2205_v54 }
 0x4db   :  { %2264 = vadd.xlane.f32.xlu1 %v10522_v53  ;;  %1750 = vadd.xlane.f32.xlu0 %v10524_v49  ;;  %v1679_v58 = vpop.xlane.xlu0 %1678  ;;  %v10532_v27 = vpop.eup %8624 }
 0x4dc   :  { %8634 = vpow2.f32 %v2238_v7  ;;  %v1702_v60 = vsub.f32 %v10297_v12, %v1679_v58  ;;  %v1228_v28 = vmul.f32 1.442695, %v1197_v29  ;;  %v13093_v29 = vld [vmem:[#allocation19_spill] sm:$0xff] }
 0x4dd   :  { %v10534_v59 = vpop.xlane.xlu1 %1692  ;;  %8636 = vpow2.f32 %v2240_v11 }
 0x4de   :  { %v10536_v56 = vpop.eup %8626  ;;  %v1726_v42 = vmul.f32 1.442695, %v1702_v60  ;;  %v2252_v60 = vmul.f32 1.442695, %v2221_v63 }
 0x4df   :  { %1752 = vadd.xlane.f32.xlu1 %v10532_v27  ;;  %2274 = vadd.xlane.f32.xlu0 %v10536_v56  ;;  %v2203_v45 = vpop.xlane.xlu0 %2202  ;;  %v10543_v17 = vpop.eup %8628 }
 0x4e0   :  { %8638 = vpow2.f32 %v1726_v42  ;;  %v2220_v12 = vsub.f32 %v10310_v47, %v2203_v45  ;;  %v684_v45 = vsub.f32 %v13093_v29, %v10420_v40  ;;  %v1709_v40 = vsub.f32 %v10301_v1, %v10534_v59 }
 0x4e1   :  { %v2201_v23 = vpop.xlane.xlu1 %2200  ;;  %8640 = vpow2.f32 %v1226_v0 }
 0x4e2   :  { %v10545_v7 = vpop.eup %8630  ;;  %8642 = vpow2.f32 %v1728_v21  ;;  %v2250_v11 = vmul.f32 1.442695, %v2220_v12  ;;  %v2219_v42 = vsub.f32 %v10314_v25, %v2201_v23 }
 0x4e3   :  { %13092 = vst [vmem:[#allocation16_spill] sm:$0xff] %v10545_v7  ;;  %2276 = vadd.xlane.f32.xlu1 %v10543_v17  ;;  %1762 = vadd.xlane.f32.xlu0 %v10545_v7  ;;  %v1691_v62 = vpop.xlane.xlu0 %1690  ;;  %v10550_v58 = vpop.eup %8632  ;;  %8644 = vpow2.f32 %v1228_v28  ;;  %v13094_v28 = vld [vmem:[#allocation20_spill] sm:$0xff] }
 0x4e4   :  { %8646 = vpow2.f32 %v2250_v11  ;;  %v685_v25 = vsub.f32 %v13094_v28, %v10426_v41  ;;  %v2248_v23 = vmul.f32 1.442695, %v2219_v42  ;;  %v714_v41 = vmul.f32 1.442695, %v684_v45 }
 0x4e5   :  { %v1689_v47 = vpop.xlane.xlu1 %1688  ;;  %8648 = vpow2.f32 %v2252_v60  ;;  %v1708_v28 = vsub.f32 %v10323_v24, %v1691_v62 }
 0x4e6   :  { %v10552_v3 = vpop.eup %8634  ;;  %v716_v29 = vmul.f32 1.442695, %v685_v25 }
 0x4e7   :  { %1764 = vadd.xlane.f32.xlu1 %v10550_v58  ;;  %2270 = vadd.xlane.f32.xlu0 %v10552_v3  ;;  %v2199_v32 = vpop.xlane.xlu0 %2198  ;;  %v10558_v0 = vpop.eup %8636  ;;  %v1738_v45 = vmul.f32 1.442695, %v1708_v28 }
 0x4e8   :  { %v2218_v54 = vsub.f32 %v10336_v13, %v2199_v32  ;;  %v1707_v13 = vsub.f32 %v10327_v44, %v1689_v47 }
 0x4ea   :  { %v10560_v43 = vpop.eup %8638  ;;  %v2246_v21 = vmul.f32 1.442695, %v2218_v54  ;;  %v1237_v12 = vpop.xlane.xlu1 %1236 }
 0x4eb   :  { %2272 = vadd.xlane.f32.xlu1 %v10558_v0  ;;  %1758 = vadd.xlane.f32.xlu0 %v10560_v43  ;;  %v1687_v63 = vpop.xlane.xlu0 %1686  ;;  %v10570_v32 = vpop.eup %8640 }
 0x4ec   :  { %8650 = vpow2.f32 %v2246_v21  ;;  %v1706_v11 = vsub.f32 %v10348_v8, %v1687_v63  ;;  %v10574_v54 = vpop.eup %8642  ;;  %v1736_v8 = vmul.f32 1.442695, %v1707_v13  ;;  %v1740_v21 = vmul.f32 1.442695, %v1709_v40 }
 0x4ed   :  { %8652 = vpow2.f32 %v2248_v23  ;;  %v10579_v47 = vpop.eup %8644 }
 0x4ee   :  { %v1734_v60 = vmul.f32 1.442695, %v1706_v11  ;;  %v725_v42 = vpop.xlane.xlu1 %724  ;;  %v10581_v1 = vpop.eup %8646 }
 0x4ef   :  { %1760 = vadd.xlane.f32.xlu1 %v10574_v54  ;;  %1258 = vadd.xlane.f32.xlu0 %v10570_v32  ;;  %v1235_v44 = vpop.xlane.xlu0 %1234  ;;  %13095 = vst [vmem:[#allocation15_spill] sm:$0xff] %v10581_v1  ;;  %v10585_v62 = vpop.eup %8648 }
 0x4f0   :  { %8654 = vpow2.f32 %v1734_v60  ;;  %13096 = vst [vmem:[#allocation21_spill] sm:$0xff] %v10585_v62 }
 0x4f1   :  { %8656 = vpow2.f32 %v714_v41 }
 0x4f2   :  { %v1233_v59 = vpop.xlane.xlu1 %1232  ;;  %8658 = vpow2.f32 %v716_v29 }
 0x4f3   :  { %1260 = vadd.xlane.f32.xlu1 %v10579_v47  ;;  %2282 = vadd.xlane.f32.xlu0 %v10581_v1  ;;  %v723_v24 = vpop.xlane.xlu0 %722  ;;  %8660 = vpow2.f32 %v1736_v8 }
 0x4f4   :  { %8662 = vpow2.f32 %v1740_v21 }
 0x4f5   :  { %8664 = vrcp.f32 %v1233_v59 }
 0x4f6   :  { %v10587_v25 = vpop.eup %8650  ;;  %v721_v23 = vpop.xlane.xlu1 %720  ;;  %8666 = vpow2.f32 %v1738_v45 }
 0x4f7   :  { %13097 = vst [vmem:[#allocation22_spill] sm:$0xff] %v10587_v25  ;;  %2284 = vadd.xlane.f32.xlu1 %v10585_v62  ;;  %2278 = vadd.xlane.f32.xlu0 %v10587_v25  ;;  %v1231_v63 = vpop.xlane.xlu0 %1230  ;;  %v10591_v13 = vpop.eup %8652 }
 0x4f8   :  { %8668 = vrcp.f32 %v1231_v63  ;;  %13098 = vst [vmem:[#allocation23_spill] sm:$0xff] %v10591_v13 }
 0x4f9   :  { %8670 = vrcp.f32 %v1235_v44 }
 0x4fa   :  { %v10593_v11 = vpop.eup %8654  ;;  %8672 = vrcp.f32 %v721_v23  ;;  %v1245_v40 = vpop.xlane.xlu1 %1244 }
 0x4fb   :  { %13099 = vst [vmem:[#allocation24_spill] sm:$0xff] %v10593_v11  ;;  %8674 = vrcp.f32 %v1237_v12  ;;  %2280 = vadd.xlane.f32.xlu1 %v10591_v13  ;;  %1766 = vadd.xlane.f32.xlu0 %v10593_v11  ;;  %v719_v41 = vpop.xlane.xlu0 %718  ;;  %v10597_v60 = vpop.eup %8656 }
 0x4fc   :  { %13100 = vst [vmem:[#allocation25_spill] sm:$0xff] %v10597_v60  ;;  %8676 = vrcp.f32 %v719_v41  ;;  %v10599_v29 = vpop.eup %8658 }
 0x4fd   :  { %v10601_v28 = vpop.eup %8660  ;;  %8678 = vrcp.f32 %v723_v24 }
 0x4fe   :  { %13101 = vst [vmem:[#allocation26_spill] sm:$0xff] %v10601_v28  ;;  %v733_v8 = vpop.xlane.xlu1 %732  ;;  %v10603_v21 = vpop.eup %8662  ;;  %8680 = vrcp.f32 %v725_v42 }
 0x4ff   :  { %1768 = vadd.xlane.f32.xlu1 %v10601_v28  ;;  %746 = vadd.xlane.f32.xlu0 %v10597_v60  ;;  %v1243_v12 = vpop.xlane.xlu0 %1242  ;;  %v8665_v44 = vpop.eup %8664 }
 0x500   :  { %v10607_v59 = vpop.eup %8666  ;;  %v1279_v28 = vmul.f32 %v8665_v44, %v10362_v39 }
 0x501   :  { %13102 = vst [vmem:[#allocation27_spill] sm:$0xff] %v10607_v59 }
 0x502   :  { %v8669_v45 = vpop.eup %8668  ;;  %v1241_v23 = vpop.xlane.xlu1 %1240 }
 0x503   :  { %v8671_v63 = vpop.eup %8670  ;;  %748 = vadd.xlane.f32.xlu1 %v10599_v29  ;;  %1770 = vadd.xlane.f32.xlu0 %v10607_v59  ;;  %v731_v41 = vpop.xlane.xlu0 %730  ;;  %v1278_v1 = vmul.f32 %v8669_v45, %v10372_v26  ;;  %8682 = vrcp.f32 %v1241_v23 }
 0x504   :  { %v8673_v11 = vpop.eup %8672  ;;  %v1280_v25 = vmul.f32 %v8671_v63, %v10356_v30 }
 0x505   :  { %v8675_v60 = vpop.eup %8674  ;;  %v1294_v62 = vpack.c.bf16 %v1279_v28, %v1278_v1  ;;  %v767_v42 = vmul.f32 %v8673_v11, %v10370_v50 }
 0x506   :  { %v8677_v13 = vpop.eup %8676  ;;  %v729_v24 = vpop.xlane.xlu1 %728  ;;  %v1281_v26 = vmul.f32 %v8675_v60, %v10345_v48 }
 0x507   :  { %v766_v7 = vmul.f32 %v8677_v13, %v10380_v9  ;;  %1772 = vadd.xlane.f32.xlu1 %v10603_v21  ;;  %2508 = vmatprep.mubr.bf16.mxu1 %v1294_v62  ;;  %v1239_v59 = vpop.xlane.xlu0 %1238  ;;  %v8679_v44 = vpop.eup %8678 }
 0x508   :  { %8684 = vrcp.f32 %v1239_v59  ;;  %v1295_v28 = vpack.c.bf16 %v1281_v26, %v1280_v25  ;;  %v8681_v45 = vpop.eup %8680  ;;  %v768_v50 = vmul.f32 %v8679_v44, %v10364_v18 }
 0x509   :  { %8686 = vrcp.f32 %v1243_v12  ;;  %v782_v39 = vpack.c.bf16 %v767_v42, %v766_v7  ;;  %v769_v13 = vmul.f32 %v8681_v45, %v10354_v6 }
 0x50a   :  { %8688 = vrcp.f32 %v729_v24  ;;  %v1253_v1 = vpop.xlane.xlu1 %1252 }
 0x50b   :  { %8690 = vrcp.f32 %v1245_v40  ;;  %2509 = vmatmul.mubr.bf16.vlgmr.msra.gmra.mrb[64].mxu1 %v782_v39  ;;  %v727_v30 = vpop.xlane.xlu0 %726  ;;  %v783_v48 = vpack.c.bf16 %v769_v13, %v768_v50 }
 0x50c   :  { %8692 = vrcp.f32 %v727_v30  ;;  %2516 = vmatprep.mubr.bf16.mxu1 %v1295_v28 }
 0x50d   :  { %v8683_v11 = vpop.eup %8682  ;;  %8694 = vrcp.f32 %v731_v41 }
 0x50e   :  { %v741_v9 = vpop.xlane.xlu1 %740  ;;  %8696 = vrcp.f32 %v733_v8  ;;  %v1283_v59 = vmul.f32 %v8683_v11, %v10394_v51 }
 0x50f   :  { %v1251_v62 = vpop.xlane.xlu0 %1250 }
 0x512   :  { %v8685_v7 = vpop.eup %8684  ;;  %v1249_v60 = vpop.xlane.xlu1 %1248 }
 0x513   :  { %v8687_v12 = vpop.eup %8686  ;;  %2517 = vmatmul.mubr.bf16.gmra.mrb[68].mxu1 %v783_v48  ;;  %v739_v25 = vpop.xlane.xlu0 %738  ;;  %v1282_v40 = vmul.f32 %v8685_v7, %v10404_v19  ;;  %8698 = vrcp.f32 %v1249_v60 }
 0x514   :  { %v8689_v23 = vpop.eup %8688  ;;  %v1284_v6 = vmul.f32 %v8687_v12, %v10388_v15 }
 0x515   :  { %v8691_v63 = vpop.eup %8690  ;;  %v1296_v18 = vpack.c.bf16 %v1283_v59, %v1282_v40  ;;  %v771_v26 = vmul.f32 %v8689_v23, %v10402_v2 }
 0x516   :  { %v8693_v24 = vpop.eup %8692  ;;  %v737_v42 = vpop.xlane.xlu1 %736  ;;  %v1285_v39 = vmul.f32 %v8691_v63, %v10378_v16 }
 0x517   :  { %2524 = vmatprep.mubr.bf16.mxu1 %v1296_v18  ;;  %v1247_v41 = vpop.xlane.xlu0 %1246  ;;  %v770_v8 = vmul.f32 %v8693_v24, %v10414_v46  ;;  %v8695_v51 = vpop.eup %8694 }
 0x518   :  { %8700 = vrcp.f32 %v1247_v41  ;;  %v1297_v44 = vpack.c.bf16 %v1285_v39, %v1284_v6  ;;  %v8697_v30 = vpop.eup %8696  ;;  %v772_v15 = vmul.f32 %v8695_v51, %v10396_v10  ;;  %v13103_v6 = vld [vmem:[#allocation5_spill] sm:$0xff] }
 0x519   :  { %8702 = vrcp.f32 %v1251_v62  ;;  %v784_v19 = vpack.c.bf16 %v771_v26, %v770_v8  ;;  %v773_v46 = vmul.f32 %v8697_v30, %v10386_v55  ;;  %v13105_v8 = vld [vmem:[#allocation7_spill] sm:$0xff]  ;;  %v13106_v26 = vld [vmem:[#allocation6_spill] sm:$0xff] }
 0x51a   :  { %8704 = vrcp.f32 %v737_v42  ;;  %v13104_v42 = vld [vmem:[#allocation8_spill] sm:$0xff]  ;;  %v13108_v30 = vld [vmem:[#allocation10_spill] sm:$0xff] }
 0x51b   :  { %8706 = vrcp.f32 %v1253_v1  ;;  %2525 = vmatmul.mubr.bf16.gmra.mrb[72].mxu1 %v784_v19  ;;  %v735_v28 = vpop.xlane.xlu0 %734  ;;  %v785_v16 = vpack.c.bf16 %v773_v46, %v772_v15 }
 0x51c   :  { %8708 = vrcp.f32 %v735_v28  ;;  %2532 = vmatprep.mubr.bf16.mxu1 %v1297_v44  ;;  %v13107_v44 = vld [vmem:[#allocation9_spill] sm:$0xff] }
 0x51d   :  { %v8699_v45 = vpop.eup %8698  ;;  %8710 = vrcp.f32 %v739_v25 }
 0x51e   :  { %v1287_v11 = vmul.f32 %v8699_v45, %v10430_v33 }
 0x520   :  { %v1255_v2 = vpop.xlane.xlu0 %1254 }
 0x521   :  { %8712 = vrcp.f32 %v1255_v2 }
 0x522   :  { %v8701_v50 = vpop.eup %8700  ;;  %8714 = vrcp.f32 %v741_v9  ;;  %v1257_v62 = vpop.xlane.xlu1 %1256 }
 0x523   :  { %v8703_v13 = vpop.eup %8702  ;;  %8716 = vrcp.f32 %v1257_v62  ;;  %2533 = vmatmul.mubr.bf16.gmra.mrb[76].mxu1 %v785_v16  ;;  %v1286_v1 = vmul.f32 %v8701_v50, %v10441_v35 }
 0x524   :  { %v8705_v48 = vpop.eup %8704  ;;  %v1288_v12 = vmul.f32 %v8703_v13, %v10424_v20  ;;  %v743_v25 = vpop.xlane.xlu0 %742 }
 0x525   :  { %v8707_v7 = vpop.eup %8706  ;;  %v1298_v10 = vpack.c.bf16 %v1287_v11, %v1286_v1  ;;  %v775_v9 = vmul.f32 %v8705_v48, %v10438_v22 }
 0x526   :  { %v8709_v60 = vpop.eup %8708  ;;  %v745_v55 = vpop.xlane.xlu1 %744  ;;  %v1289_v59 = vmul.f32 %v8707_v7, %v10412_v5 }
 0x527   :  { %2540 = vmatprep.mubr.bf16.mxu1 %v1298_v10  ;;  %v774_v40 = vmul.f32 %v8709_v60, %v10446_v14  ;;  %8718 = vrcp.f32 %v745_v55  ;;  %v8711_v35 = vpop.eup %8710 }
 0x528   :  { %8720 = vrcp.f32 %v743_v25  ;;  %v1299_v33 = vpack.c.bf16 %v1289_v59, %v1288_v12  ;;  %v776_v20 = vmul.f32 %v8711_v35, %v13103_v6 }
 0x529   :  { %v786_v23 = vpack.c.bf16 %v775_v9, %v774_v40 }
 0x52b   :  { %v8713_v63 = vpop.eup %8712  ;;  %2541 = vmatmul.mubr.bf16.gmra.mrb[80].mxu1 %v786_v23 }
 0x52c   :  { %v8715_v18 = vpop.eup %8714  ;;  %2548 = vmatprep.mubr.bf16.mxu1 %v1299_v33  ;;  %v1290_v41 = vmul.f32 %v8713_v63, %v13104_v42 }
 0x52d   :  { %v8717_v24 = vpop.eup %8716  ;;  %v777_v22 = vmul.f32 %v8715_v18, %v13106_v26  ;;  %v13109_v18 = vld [vmem:[#allocation11_spill] sm:$0xff] }
 0x52e   :  { %v1291_v14 = vmul.f32 %v8717_v24, %v13105_v8  ;;  %v13110_v8 = vld [vmem:[#allocation12_spill] sm:$0xff] }
 0x52f   :  { %v787_v19 = vpack.c.bf16 %v777_v22, %v776_v20 }
 0x530   :  { %v1300_v39 = vpack.c.bf16 %v1291_v14, %v1290_v41 }
 0x531   :  { %v8719_v5 = vpop.eup %8718 }
 0x532   :  { %v8721_v51 = vpop.eup %8720  ;;  %v779_v28 = vmul.f32 %v8719_v5, %v13107_v44  ;;  %v13112_v44 = vld [vmem:[#allocation14_spill] sm:$0xff] }
 0x533   :  { %2549 = vmatmul.mubr.bf16.gmra.mrb[84].mxu1 %v787_v19  ;;  %v778_v15 = vmul.f32 %v8721_v51, %v13108_v30 }
 0x534   :  { %2556 = vmatprep.mubr.bf16.mxu1 %v1300_v39 }
 0x535   :  { %v788_v46 = vpack.c.bf16 %v779_v28, %v778_v15 }
 0x53b   :  { %2557 = vmatmul.mubr.bf16.gmra.mrb[88].mxu1 %v788_v46 }
 0x548   :  { %v2259_v45 = vpop.xlane.xlu0 %2258 }
 0x54a   :  { %v2261_v16 = vpop.xlane.xlu1 %2260 }
 0x54c   :  { %v1747_v2 = vpop.xlane.xlu0 %1746 }
 0x54e   :  { %v1749_v62 = vpop.xlane.xlu1 %1748 }
 0x550   :  { %v2255_v50 = vpop.xlane.xlu0 %2254 }
 0x551   :  { %8722 = vrcp.f32 %v2255_v50 }
 0x554   :  { %v1743_v13 = vpop.xlane.xlu0 %1742 }
 0x558   :  { %v2257_v1 = vpop.xlane.xlu1 %2256 }
 0x559   :  { %8724 = vrcp.f32 %v2257_v1 }
 0x55a   :  { %8726 = vrcp.f32 %v2261_v16 }
 0x55b   :  { %8728 = vrcp.f32 %v1743_v13  ;;  %v8723_v60 = vpop.eup %8722 }
 0x55c   :  { %8730 = vrcp.f32 %v2259_v45  ;;  %v1745_v11 = vpop.xlane.xlu1 %1744  ;;  %v2267_v48 = vpop.xlane.xlu0 %2266  ;;  %v2302_v9 = vmul.f32 %v8723_v60, %v10483_v57 }
 0x55d   :  { %8732 = vrcp.f32 %v1745_v11 }
 0x55e   :  { %8734 = vrcp.f32 %v1749_v62 }
 0x55f   :  { %8736 = vrcp.f32 %v1747_v2 }
 0x560   :  { %v2269_v7 = vpop.xlane.xlu1 %2268  ;;  %v1755_v10 = vpop.xlane.xlu0 %1754 }
 0x563   :  { %v8725_v55 = vpop.eup %8724 }
 0x564   :  { %v8727_v12 = vpop.eup %8726  ;;  %v1757_v25 = vpop.xlane.xlu1 %1756  ;;  %v2303_v59 = vmul.f32 %v8725_v55, %v10493_v61 }
 0x565   :  { %v2263_v40 = vpop.xlane.xlu0 %2262  ;;  %v8729_v23 = vpop.eup %8728  ;;  %v2305_v24 = vmul.f32 %v8727_v12, %v13109_v18 }
 0x566   :  { %v8731_v35 = vpop.eup %8730  ;;  %v2318_v33 = vpack.c.bf16 %v2303_v59, %v2302_v9  ;;  %8738 = vrcp.f32 %v2263_v40  ;;  %v1790_v6 = vmul.f32 %v8729_v23, %v10488_v31  ;;  %v13111_v31 = vld [vmem:[#allocation13_spill] sm:$0xff] }
 0x567   :  { %v8733_v63 = vpop.eup %8732  ;;  %v2304_v14 = vmul.f32 %v8731_v35, %v13110_v8 }
 0x568   :  { %v1791_v20 = vmul.f32 %v8733_v63, %v10498_v38  ;;  %v2265_v42 = vpop.xlane.xlu1 %2264  ;;  %2605 = vmatprep.mubr.bf16.mxu0 %v2318_v33  ;;  %v8735_v61 = vpop.eup %8734 }
 0x569   :  { %v1751_v41 = vpop.xlane.xlu0 %1750  ;;  %8740 = vrcp.f32 %v2265_v42  ;;  %v2319_v26 = vpack.c.bf16 %v2305_v24, %v2304_v14  ;;  %v8737_v19 = vpop.eup %8736  ;;  %v1793_v38 = vmul.f32 %v8735_v61, %v13111_v31 }
 0x56a   :  { %8742 = vrcp.f32 %v2269_v7  ;;  %v1806_v57 = vpack.c.bf16 %v1791_v20, %v1790_v6  ;;  %v1792_v28 = vmul.f32 %v8737_v19, %v13112_v44 }
 0x56b   :  { %8744 = vrcp.f32 %v1751_v41 }
 0x56c   :  { %8746 = vrcp.f32 %v2267_v48  ;;  %v1753_v22 = vpop.xlane.xlu1 %1752  ;;  %2606 = vmatmul.mubr.bf16.vlgmr.msra.gmra.mrb[80].mxu0 %v1806_v57  ;;  %v1807_v15 = vpack.c.bf16 %v1793_v38, %v1792_v28 }
 0x56d   :  { %v2275_v39 = vpop.xlane.xlu0 %2274  ;;  %8748 = vrcp.f32 %v1753_v22  ;;  %2613 = vmatprep.mubr.bf16.mxu0 %v2319_v26 }
 0x56e   :  { %8750 = vrcp.f32 %v1757_v25 }
 0x56f   :  { %8752 = vrcp.f32 %v1755_v10 }
 0x570   :  { %v2277_v5 = vpop.xlane.xlu1 %2276  ;;  %v8739_v30 = vpop.eup %8738 }
 0x571   :  { %v1763_v51 = vpop.xlane.xlu0 %1762  ;;  %v2306_v50 = vmul.f32 %v8739_v30, %v10516_v4 }
 0x573   :  { %v8741_v46 = vpop.eup %8740 }
 0x574   :  { %v8743_v45 = vpop.eup %8742  ;;  %v1765_v2 = vpop.xlane.xlu1 %1764  ;;  %2614 = vmatmul.mubr.bf16.gmra.mrb[84].mxu0 %v1807_v15  ;;  %v2307_v62 = vmul.f32 %v8741_v46, %v10522_v53  ;;  %v13113_v15 = vld [vmem:[#allocation16_spill] sm:$0xff] }
 0x575   :  { %v2271_v16 = vpop.xlane.xlu0 %2270  ;;  %v8745_v13 = vpop.eup %8744  ;;  %v2309_v7 = vmul.f32 %v8743_v45, %v10506_v36 }
 0x576   :  { %v8747_v1 = vpop.eup %8746  ;;  %v2320_v11 = vpack.c.bf16 %v2307_v62, %v2306_v50  ;;  %8754 = vrcp.f32 %v2271_v16  ;;  %v1794_v10 = vmul.f32 %v8745_v13, %v10524_v49  ;;  %v13115_v13 = vld [vmem:[#allocation23_spill] sm:$0xff] }
 0x577   :  { %v8749_v48 = vpop.eup %8748  ;;  %v2308_v25 = vmul.f32 %v8747_v1, %v10500_v34 }
 0x578   :  { %v2273_v60 = vpop.xlane.xlu1 %2272  ;;  %2621 = vmatprep.mubr.bf16.mxu0 %v2320_v11  ;;  %v1795_v12 = vmul.f32 %v8749_v48, %v10532_v27  ;;  %v8751_v53 = vpop.eup %8750 }
 0x579   :  { %v1759_v55 = vpop.xlane.xlu0 %1758  ;;  %8756 = vrcp.f32 %v2273_v60  ;;  %v2321_v40 = vpack.c.bf16 %v2309_v7, %v2308_v25  ;;  %v8753_v36 = vpop.eup %8752  ;;  %v1797_v23 = vmul.f32 %v8751_v53, %v10514_v52  ;;  %v13116_v60 = vld [vmem:[#allocation21_spill] sm:$0xff]  ;;  %v13118_v25 = vld [vmem:[#allocation26_spill] sm:$0xff] }
 0x57a   :  { %8758 = vrcp.f32 %v2277_v5  ;;  %v1808_v4 = vpack.c.bf16 %v1795_v12, %v1794_v10  ;;  %v1796_v34 = vmul.f32 %v8753_v36, %v10508_v37  ;;  %v13117_v10 = vld [vmem:[#allocation24_spill] sm:$0xff] }
 0x57b   :  { %8760 = vrcp.f32 %v1759_v55 }
 0x57c   :  { %8762 = vrcp.f32 %v2275_v39  ;;  %v1761_v9 = vpop.xlane.xlu1 %1760  ;;  %2622 = vmatmul.mubr.bf16.gmra.mrb[88].mxu0 %v1808_v4  ;;  %v1809_v33 = vpack.c.bf16 %v1797_v23, %v1796_v34 }
 0x57d   :  { %v1259_v59 = vpop.xlane.xlu0 %1258  ;;  %8764 = vrcp.f32 %v1761_v9  ;;  %2629 = vmatprep.mubr.bf16.mxu0 %v2321_v40  ;;  %v13119_v40 = vld [vmem:[#allocation15_spill] sm:$0xff] }
 0x57e   :  { %8766 = vrcp.f32 %v1259_v59 }
 0x57f   :  { %8768 = vrcp.f32 %v1765_v2 }
 0x580   :  { %v1261_v49 = vpop.xlane.xlu1 %1260  ;;  %v8755_v35 = vpop.eup %8754 }
 0x581   :  { %v2283_v27 = vpop.xlane.xlu0 %2282  ;;  %8770 = vrcp.f32 %v1261_v49  ;;  %v2310_v20 = vmul.f32 %v8755_v35, %v10552_v3  ;;  %v13120_v49 = vld [vmem:[#allocation25_spill] sm:$0xff] }
 0x582   :  { %8772 = vrcp.f32 %v1763_v51 }
 0x583   :  { %v8757_v63 = vpop.eup %8756 }
 0x584   :  { %v8759_v18 = vpop.eup %8758  ;;  %v2285_v24 = vpop.xlane.xlu1 %2284  ;;  %2630 = vmatmul.mubr.bf16.gmra.mrb[92].mxu0 %v1809_v33  ;;  %v2311_v42 = vmul.f32 %v8757_v63, %v10558_v0 }
 0x585   :  { %v2279_v6 = vpop.xlane.xlu0 %2278  ;;  %v8761_v52 = vpop.eup %8760  ;;  %v2313_v37 = vmul.f32 %v8759_v18, %v10543_v17  ;;  %v13121_v18 = vld [vmem:[#allocation27_spill] sm:$0xff] }
 0x586   :  { %v8763_v41 = vpop.eup %8762  ;;  %v2322_v8 = vpack.c.bf16 %v2311_v42, %v2310_v20  ;;  %8774 = vrcp.f32 %v2279_v6  ;;  %v1798_v26 = vmul.f32 %v8761_v52, %v10560_v43 }
 0x587   :  { %v8765_v14 = vpop.eup %8764  ;;  %v2312_v3 = vmul.f32 %v8763_v41, %v10536_v56 }
 0x588   :  { %v2281_v57 = vpop.xlane.xlu1 %2280  ;;  %2637 = vmatprep.mubr.bf16.mxu0 %v2322_v8  ;;  %v1799_v22 = vmul.f32 %v8765_v14, %v10574_v54  ;;  %v8767_v39 = vpop.eup %8766 }
 0x589   :  { %v1767_v61 = vpop.xlane.xlu0 %1766  ;;  %8776 = vrcp.f32 %v2281_v57  ;;  %v8769_v19 = vpop.eup %8768  ;;  %v2323_v38 = vpack.c.bf16 %v2313_v37, %v2312_v3  ;;  %v1292_v51 = vmul.f32 %v8767_v39, %v10570_v32 }
 0x58a   :  { %8778 = vrcp.f32 %v2285_v24  ;;  %v1810_v0 = vpack.c.bf16 %v1799_v22, %v1798_v26  ;;  %v1801_v56 = vmul.f32 %v8769_v19, %v10550_v58 }
 0x58b   :  { %v8771_v31 = vpop.eup %8770  ;;  %8780 = vrcp.f32 %v1767_v61 }
 0x58c   :  { %8782 = vrcp.f32 %v2283_v27  ;;  %v1769_v5 = vpop.xlane.xlu1 %1768  ;;  %2638 = vmatmul.mubr.bf16.gmra.mrb[96].mxu0 %v1810_v0  ;;  %v1293_v43 = vmul.f32 %v8771_v31, %v10579_v47  ;;  %v8773_v44 = vpop.eup %8772  ;;  %v13114_v47 = vld [vmem:[#allocation22_spill] sm:$0xff] }
 0x58d   :  { %v747_v17 = vpop.xlane.xlu0 %746  ;;  %8784 = vrcp.f32 %v1769_v5  ;;  %2645 = vmatprep.mubr.bf16.mxu0 %v2323_v38  ;;  %v1800_v46 = vmul.f32 %v8773_v44, %v13113_v15 }
 0x58e   :  { %v1301_v54 = vpack.c.bf16 %v1293_v43, %v1292_v51  ;;  %8786 = vrcp.f32 %v747_v17 }
 0x58f   :  { %v1811_v2 = vpack.c.bf16 %v1801_v56, %v1800_v46 }
 0x590   :  { %v749_v28 = vpop.xlane.xlu1 %748  ;;  %2564 = vmatprep.mubr.bf16.mxu1 %v1301_v54  ;;  %v8775_v45 = vpop.eup %8774 }
 0x591   :  { %v1771_v30 = vpop.xlane.xlu0 %1770  ;;  %8788 = vrcp.f32 %v749_v28  ;;  %v2314_v62 = vmul.f32 %v8775_v45, %v13114_v47 }
 0x592   :  { %8790 = vrcp.f32 %v1771_v30 }
 0x593   :  { %v8777_v16 = vpop.eup %8776 }
 0x594   :  { %v8779_v32 = vpop.eup %8778  ;;  %v1773_v50 = vpop.xlane.xlu1 %1772  ;;  %2646 = vmatmul.mubr.bf16.gmra.mrb[100].mxu0 %v1811_v2  ;;  %v2315_v1 = vmul.f32 %v8777_v16, %v13115_v13 }
 0x595   :  { %v8781_v11 = vpop.eup %8780  ;;  %8792 = vrcp.f32 %v1773_v50  ;;  %v2317_v55 = vmul.f32 %v8779_v32, %v13116_v60 }
 0x596   :  { %v8783_v58 = vpop.eup %8782  ;;  %v2324_v48 = vpack.c.bf16 %v2315_v1, %v2314_v62  ;;  %v1802_v12 = vmul.f32 %v8781_v11, %v13117_v10 }
 0x597   :  { %v8785_v7 = vpop.eup %8784  ;;  %v2316_v9 = vmul.f32 %v8783_v58, %v13119_v40  ;;  %v10699_v40 = vld [vmem:[%s12869_s4] ss:$0 sm:$0xff] }
 0x598   :  { %2653 = vmatprep.mubr.bf16.mxu0 %v2324_v48  ;;  %v1803_v4 = vmul.f32 %v8785_v7, %v13118_v25  ;;  %v8787_v53 = vpop.eup %8786 }
 0x599   :  { %v2325_v23 = vpack.c.bf16 %v2317_v55, %v2316_v9  ;;  %v780_v27 = vmul.f32 %v8787_v53, %v13120_v49  ;;  %v9210_v9 = vld [vmem:[%s12865_s0] sm:$0xff] }
 0x59a   :  { %v1812_v59 = vpack.c.bf16 %v1803_v4, %v1802_v12 }
 0x59b   :  { %v8789_v36 = vpop.eup %8788 }
 0x59c   :  { %2654 = vmatmul.mubr.bf16.gmra.mrb[104].mxu0 %v1812_v59  ;;  %v781_v34 = vmul.f32 %v8789_v36, %v10599_v29  ;;  %v8791_v35 = vpop.eup %8790 }
 0x59d   :  { %2661 = vmatprep.mubr.bf16.mxu0 %v2325_v23  ;;  %v1804_v24 = vmul.f32 %v8791_v35, %v13121_v18  ;;  %v9211_v23 = vld [vmem:[%s12865_s0 + $0x8] sm:$0xff] }
 0x59e   :  { %v789_v33 = vpack.c.bf16 %v781_v34, %v780_v27 }
 0x59f   :  { %v8793_v63 = vpop.eup %8792 }
 0x5a0   :  { %2565 = vmatmul.mubr.bf16.gmra.mrb[92].mxu1 %v789_v33  ;;  %v1805_v6 = vmul.f32 %v8793_v63, %v10603_v21 }
 0x5a2   :  { %v1813_v20 = vpack.c.bf16 %v1805_v6, %v1804_v24 }
 0x5a4   :  { %2662 = vmatmul.mubr.bf16.gmra.mrb[108].mxu0 %v1813_v20 }
 0x5de   :  { %v7435_v42 = vpop.f32.mrb[64].mxu1 }
 0x5df   :  { %v7436_v52 = vpop.f32.mrb[65].mxu1 }
 0x5e0   :  { %v7437_v41 = vadd.f32 %v7436_v52, %v7435_v42  ;;  %v7438_v8 = vpop.f32.mrb[66].mxu1 }
 0x5e1   :  { %v7439_v14 = vpop.f32.mrb[67].mxu1 }
 0x5e2   :  { %v7440_v37 = vadd.f32 %v7439_v14, %v7438_v8 }
 0x5e6   :  { %v7441_v57 = vpop.f32.mrb[68].mxu1 }
 0x5e7   :  { %v7442_v61 = vpop.f32.mrb[69].mxu1 }
 0x5e8   :  { %v7443_v29 = vadd.f32 %v7442_v61, %v7441_v57  ;;  %v7444_v26 = vpop.f32.mrb[70].mxu1 }
 0x5e9   :  { %v7445_v22 = vpop.f32.mrb[71].mxu1 }
 0x5ea   :  { %v7446_v39 = vadd.f32 %v7445_v22, %v7444_v26 }
 0x5ee   :  { %v7447_v3 = vpop.f32.mrb[72].mxu1 }
 0x5ef   :  { %v7448_v19 = vpop.f32.mrb[73].mxu1 }
 0x5f0   :  { %v10676_v0 = vadd.f32 %v7448_v19, %v7447_v3  ;;  %v7450_v31 = vpop.f32.mrb[74].mxu1 }
 0x5f1   :  { %v7451_v21 = vpop.f32.mrb[75].mxu1 }
 0x5f2   :  { %v10678_v38 = vadd.f32 %v7451_v21, %v7450_v31 }
 0x5f6   :  { %v7453_v5 = vpop.f32.mrb[76].mxu1 }
 0x5f7   :  { %v7454_v17 = vpop.f32.mrb[77].mxu1 }
 0x5f8   :  { %v10680_v51 = vadd.f32 %v7454_v17, %v7453_v5  ;;  %v7456_v43 = vpop.f32.mrb[78].mxu1 }
 0x5f9   :  { %v7457_v44 = vpop.f32.mrb[79].mxu1 }
 0x5fa   :  { %v10682_v54 = vadd.f32 %v7457_v44, %v7456_v43  ;;  %v9214_v43 = vld [vmem:[%s12865_s0 + $0x20] sm:$0xff] }
 0x5fe   :  { %v7459_v56 = vpop.f32.mrb[80].mxu1 }
 0x5ff   :  { %v7460_v28 = vpop.f32.mrb[81].mxu1 }
 0x600   :  { %v10684_v30 = vadd.f32 %v7460_v28, %v7459_v56  ;;  %v7462_v15 = vpop.f32.mrb[82].mxu1  ;;  %v9215_v28 = vld [vmem:[%s12865_s0 + $0x28] sm:$0xff] }
 0x601   :  { %v7463_v46 = vpop.f32.mrb[83].mxu1 }
 0x602   :  { %v10686_v45 = vadd.f32 %v7463_v46, %v7462_v15 }
 0x606   :  { %v7465_v2 = vpop.f32.mrb[84].mxu1 }
 0x607   :  { %v7466_v16 = vpop.f32.mrb[85].mxu1 }
 0x608   :  { %v10688_v32 = vadd.f32 %v7466_v16, %v7465_v2  ;;  %v7468_v50 = vpop.f32.mrb[86].mxu1 }
 0x609   :  { %v7469_v47 = vpop.f32.mrb[87].mxu1 }
 0x60a   :  { %v10690_v62 = vadd.f32 %v7469_v47, %v7468_v50 }
 0x60e   :  { %v7471_v13 = vpop.f32.mrb[88].mxu1 }
 0x60f   :  { %v7472_v1 = vpop.f32.mrb[89].mxu1 }
 0x610   :  { %v10692_v11 = vadd.f32 %v7472_v1, %v7471_v13  ;;  %v7474_v58 = vpop.f32.mrb[90].mxu1 }
 0x611   :  { %v7475_v48 = vpop.f32.mrb[91].mxu1 }
 0x612   :  { %v10694_v7 = vadd.f32 %v7475_v48, %v7474_v58 }
 0x63f   :  { %v7499_v60 = vpop.f32.mrb[80].mxu0 }
 0x640   :  { %v7500_v55 = vpop.f32.mrb[81].mxu0 }
 0x641   :  { %v7501_v10 = vadd.f32 %v7500_v55, %v7499_v60  ;;  %v7502_v12 = vpop.f32.mrb[82].mxu0  ;;  %v9216_v60 = vld [vmem:[%s12865_s0 + $0x30] sm:$0xff] }
 0x642   :  { %v7503_v25 = vpop.f32.mrb[83].mxu0 }
 0x643   :  { %v2608_v4 = vadd.f32 %v7501_v10, %v7437_v41  ;;  %v7504_v53 = vadd.f32 %v7503_v25, %v7502_v12  ;;  %v9212_v41 = vld [vmem:[%s12865_s0 + $0x10] sm:$0xff]  ;;  %v9217_v12 = vld [vmem:[%s12865_s0 + $0x38] sm:$0xff] }
 0x645   :  { %v2670_v59 = vadd.f32 %v9210_v9, %v2608_v4  ;;  %v2611_v36 = vadd.f32 %v7504_v53, %v7440_v37  ;;  %v9213_v37 = vld [vmem:[%s12865_s0 + $0x18] sm:$0xff] }
 0x647   :  { %v2671_v49 = vadd.f32 %v9211_v23, %v2611_v36  ;;  %v7505_v27 = vpop.f32.mrb[84].mxu0  ;;  %v10708_v34 = vadd.f32 %v10699_v40, %v2670_v59 }
 0x648   :  { %v7506_v35 = vpop.f32.mrb[85].mxu0 }
 0x649   :  { %v7507_v33 = vadd.f32 %v7506_v35, %v7505_v27  ;;  %v7508_v63 = vpop.f32.mrb[86].mxu0  ;;  %v2709_v18 = vsel %vm66_vm0, %v10708_v34, 0.0  ;;  %v10713_v24 = vadd.f32 %v10699_v40, %v2671_v49 }
 0x64a   :  { %v7509_v6 = vpop.f32.mrb[87].mxu0  ;;  %2710 = vadd.xlane.f32.xlu0 %v2709_v18 }
 0x64b   :  { %v2616_v20 = vadd.f32 %v7507_v33, %v7443_v29  ;;  %v7510_v42 = vadd.f32 %v7509_v6, %v7508_v63  ;;  %v2712_v52 = vsel %vm66_vm0, %v10713_v24, 0.0  ;;  %v9218_v33 = vld [vmem:[%s12865_s0 + $0x40] sm:$0xff]  ;;  %v9219_v6 = vld [vmem:[%s12865_s0 + $0x48] sm:$0xff] }
 0x64c   :  { %2713 = vadd.xlane.f32.xlu1 %v2712_v52 }
 0x64d   :  { %v2672_v8 = vadd.f32 %v9212_v41, %v2616_v20  ;;  %v2619_v14 = vadd.f32 %v7510_v42, %v7446_v39 }
 0x64f   :  { %v2673_v57 = vadd.f32 %v9213_v37, %v2619_v14  ;;  %v7511_v61 = vpop.f32.mrb[88].mxu0  ;;  %v10724_v26 = vadd.f32 %v10699_v40, %v2672_v8 }
 0x650   :  { %v7512_v29 = vpop.f32.mrb[89].mxu0 }
 0x651   :  { %v7513_v22 = vadd.f32 %v7512_v29, %v7511_v61  ;;  %v7514_v3 = vpop.f32.mrb[90].mxu0  ;;  %v2715_v19 = vsel %vm66_vm0, %v10724_v26, 0.0  ;;  %v10729_v31 = vadd.f32 %v10699_v40, %v2673_v57 }
 0x652   :  { %2716 = vadd.xlane.f32.xlu0 %v2715_v19  ;;  %v7515_v39 = vpop.f32.mrb[91].mxu0 }
 0x653   :  { %v2624_v21 = vadd.f32 %v7513_v22, %v10676_v0  ;;  %v7516_v5 = vadd.f32 %v7515_v39, %v7514_v3  ;;  %v2718_v17 = vsel %vm66_vm0, %v10729_v31, 0.0  ;;  %v9220_v22 = vld [vmem:[%s12865_s0 + $0x50] sm:$0xff]  ;;  %v9221_v39 = vld [vmem:[%s12865_s0 + $0x58] sm:$0xff] }
 0x654   :  { %2719 = vadd.xlane.f32.xlu1 %v2718_v17 }
 0x655   :  { %v2674_v44 = vadd.f32 %v9214_v43, %v2624_v21  ;;  %v2627_v56 = vadd.f32 %v7516_v5, %v10678_v38 }
 0x657   :  { %v2675_v15 = vadd.f32 %v9215_v28, %v2627_v56  ;;  %v7517_v46 = vpop.f32.mrb[92].mxu0  ;;  %v10742_v0 = vadd.f32 %v10699_v40, %v2674_v44 }
 0x658   :  { %v7518_v2 = vpop.f32.mrb[93].mxu0 }
 0x659   :  { %v7519_v16 = vadd.f32 %v7518_v2, %v7517_v46  ;;  %v7520_v50 = vpop.f32.mrb[94].mxu0  ;;  %v2721_v47 = vsel %vm66_vm0, %v10742_v0, 0.0  ;;  %v10747_v13 = vadd.f32 %v10699_v40, %v2675_v15 }
 0x65a   :  { %v7521_v1 = vpop.f32.mrb[95].mxu0  ;;  %2722 = vadd.xlane.f32.xlu0 %v2721_v47  ;;  %v9222_v47 = vld [vmem:[%s12865_s0 + $0x60] sm:$0xff] }
 0x65b   :  { %v2632_v38 = vadd.f32 %v7519_v16, %v10680_v51  ;;  %v7522_v58 = vadd.f32 %v7521_v1, %v7520_v50  ;;  %v2724_v48 = vsel %vm66_vm0, %v10747_v13, 0.0 }
 0x65c   :  { %2725 = vadd.xlane.f32.xlu1 %v2724_v48 }
 0x65d   :  { %v2676_v55 = vadd.f32 %v9216_v60, %v2632_v38  ;;  %v2635_v10 = vadd.f32 %v7522_v58, %v10682_v54 }
 0x65f   :  { %v2677_v25 = vadd.f32 %v9217_v12, %v2635_v10  ;;  %v7523_v4 = vpop.f32.mrb[96].mxu0  ;;  %v10760_v51 = vadd.f32 %v10699_v40, %v2676_v55 }
 0x660   :  { %v7524_v53 = vpop.f32.mrb[97].mxu0 }
 0x661   :  { %v7525_v9 = vadd.f32 %v7524_v53, %v7523_v4  ;;  %v7526_v59 = vpop.f32.mrb[98].mxu0  ;;  %v2727_v36 = vsel %vm66_vm0, %v10760_v51, 0.0  ;;  %v10765_v23 = vadd.f32 %v10699_v40, %v2677_v25 }
 0x662   :  { %2728 = vadd.xlane.f32.xlu0 %v2727_v36  ;;  %v7527_v54 = vpop.f32.mrb[99].mxu0 }
 0x663   :  { %v2640_v49 = vadd.f32 %v7525_v9, %v10684_v30  ;;  %v7528_v27 = vadd.f32 %v7527_v54, %v7526_v59  ;;  %v2730_v35 = vsel %vm66_vm0, %v10765_v23, 0.0 }
 0x664   :  { %2731 = vadd.xlane.f32.xlu1 %v2730_v35  ;;  %v9224_v35 = vld [vmem:[%s12865_s0 + $0x70] sm:$0xff] }
 0x665   :  { %v2678_v63 = vadd.f32 %v9218_v33, %v2640_v49  ;;  %v2643_v18 = vadd.f32 %v7528_v27, %v10686_v45 }
 0x667   :  { %v2679_v20 = vadd.f32 %v9219_v6, %v2643_v18  ;;  %v7529_v42 = vpop.f32.mrb[100].mxu0  ;;  %v10778_v30 = vadd.f32 %v10699_v40, %v2678_v63  ;;  %v9225_v18 = vld [vmem:[%s12865_s0 + $0x78] sm:$0xff] }
 0x668   :  { %v7530_v52 = vpop.f32.mrb[101].mxu0 }
 0x669   :  { %v7531_v41 = vadd.f32 %v7530_v52, %v7529_v42  ;;  %v7532_v8 = vpop.f32.mrb[102].mxu0  ;;  %v2733_v14 = vsel %vm66_vm0, %v10778_v30, 0.0  ;;  %v10783_v37 = vadd.f32 %v10699_v40, %v2679_v20 }
 0x66a   :  { %v7533_v57 = vpop.f32.mrb[103].mxu0  ;;  %2734 = vadd.xlane.f32.xlu0 %v2733_v14  ;;  %v8485_v14 = vld [vmem:[%s12871_s6 + $0x8] sm:$0xff]  }
 0x66b   :  { %v2648_v45 = vadd.f32 %v7531_v41, %v10688_v32  ;;  %v7534_v61 = vadd.f32 %v7533_v57, %v7532_v8  ;;  %v2736_v29 = vsel %vm66_vm0, %v10783_v37, 0.0  ;;  %v8484_v8 = vld [vmem:[%s12871_s6] sm:$0xff]  }
 0x66c   :  { %2737 = vadd.xlane.f32.xlu1 %v2736_v29  ;;  %8057 = vmatprep.subr.bf16.mxu1 %v8484_v8 }
 0x66d   :  { %v2680_v3 = vadd.f32 %v9220_v22, %v2648_v45  ;;  %v2651_v19 = vadd.f32 %v7534_v61, %v10690_v62  ;;  %8058 = vmatpush3.bf16.msra.mxu1 %v8484_v8 }
 0x66e   :  { %8059 = vmatprep.subr.bf16.mxu1 %v8485_v14 }
 0x66f   :  { %v2681_v21 = vadd.f32 %v9221_v39, %v2651_v19  ;;  %v7535_v5 = vpop.f32.mrb[104].mxu0  ;;  %v10796_v32 = vadd.f32 %v10699_v40, %v2680_v3 }
 0x670   :  { %v7536_v17 = vpop.f32.mrb[105].mxu0 }
 0x671   :  { %v7537_v43 = vadd.f32 %v7536_v17, %v7535_v5  ;;  %v7538_v44 = vpop.f32.mrb[106].mxu0  ;;  %v2739_v56 = vsel %vm66_vm0, %v10796_v32, 0.0  ;;  %v10801_v28 = vadd.f32 %v10699_v40, %v2681_v21  ;;  %8060 = vmatpush3.bf16.msra.mxu1 %v8485_v14 }
 0x672   :  { %2740 = vadd.xlane.f32.xlu0 %v2739_v56  ;;  %v7539_v62 = vpop.f32.mrb[107].mxu0 }
 0x673   :  { %v2656_v15 = vadd.f32 %v7537_v43, %v10692_v11  ;;  %v7540_v46 = vadd.f32 %v7539_v62, %v7538_v44  ;;  %v7477_v2 = vpop.f32.mrb[92].mxu1  ;;  %v2742_v16 = vsel %vm66_vm0, %v10801_v28, 0.0  ;;  %v9223_v11 = vld [vmem:[%s12865_s0 + $0x68] sm:$0xff] }
 0x674   :  { %2743 = vadd.xlane.f32.xlu1 %v2742_v16  ;;  %v7478_v50 = vpop.f32.mrb[93].mxu1 }
 0x675   :  { %v2682_v1 = vadd.f32 %v9222_v47, %v2656_v15  ;;  %v2659_v38 = vadd.f32 %v7540_v46, %v10694_v7  ;;  %v7479_v58 = vadd.f32 %v7478_v50, %v7477_v2  ;;  %v7480_v48 = vpop.f32.mrb[94].mxu1 }
 0x676   :  { %v7481_v60 = vpop.f32.mrb[95].mxu1 }
 0x677   :  { %v2683_v55 = vadd.f32 %v9223_v11, %v2659_v38  ;;  %v7482_v10 = vadd.f32 %v7481_v60, %v7480_v48  ;;  %v7541_v12 = vpop.f32.mrb[108].mxu0  ;;  %v10814_v25 = vadd.f32 %v10699_v40, %v2682_v1 }
 0x678   :  { %v7542_v4 = vpop.f32.mrb[109].mxu0 }
 0x679   :  { %v7543_v53 = vadd.f32 %v7542_v4, %v7541_v12  ;;  %v7544_v9 = vpop.f32.mrb[110].mxu0  ;;  %v2745_v59 = vsel %vm66_vm0, %v10814_v25, 0.0  ;;  %v10819_v7 = vadd.f32 %v10699_v40, %v2683_v55 }
 0x67a   :  { %2746 = vadd.xlane.f32.xlu0 %v2745_v59  ;;  %v7545_v36 = vpop.f32.mrb[111].mxu0 }
 0x67b   :  { %v2664_v54 = vadd.f32 %v7543_v53, %v7479_v58  ;;  %v7546_v49 = vadd.f32 %v7545_v36, %v7544_v9  ;;  %v2748_v27 = vsel %vm66_vm0, %v10819_v7, 0.0 }
 0x67c   :  { %2749 = vadd.xlane.f32.xlu1 %v2748_v27 }
 0x67d   :  { %v2684_v33 = vadd.f32 %v9224_v35, %v2664_v54  ;;  %v2667_v63 = vadd.f32 %v7546_v49, %v7482_v10 }
 0x67f   :  { %v2685_v6 = vadd.f32 %v9225_v18, %v2667_v63  ;;  %v10830_v20 = vadd.f32 %v10699_v40, %v2684_v33 }
 0x681   :  { %v2751_v42 = vsel %vm66_vm0, %v10830_v20, 0.0  ;;  %v10835_v52 = vadd.f32 %v10699_v40, %v2685_v6 }
 0x682   :  { %2752 = vadd.xlane.f32.xlu0 %v2751_v42 }
 0x683   :  { %v2754_v41 = vsel %vm66_vm0, %v10835_v52, 0.0 }
 0x684   :  { %2755 = vadd.xlane.f32.xlu1 %v2754_v41 }
 0x6d7   :  { %v2711_v57 = vpop.xlane.xlu0 %2710 }
 0x6d8   :  { %v2757_v40 = vmul.f32 0.03125, %v2711_v57 }
 0x6d9   :  { %v2714_v45 = vpop.xlane.xlu1 %2713 }
 0x6da   :  { %v10846_v61 = vsub.f32 %v10708_v34, %v2757_v40  ;;  %v2758_v29 = vmul.f32 0.03125, %v2714_v45 }
 0x6dc   :  { %v10849_v22 = vsub.f32 %v10713_v24, %v2758_v29  ;;  %v2789_v3 = vmul.f32 %v10846_v61, %v10846_v61 }
 0x6de   :  { %v2805_v19 = vsel %vm66_vm0, %v2789_v3, 0.0  ;;  %v2790_v39 = vmul.f32 %v10849_v22, %v10849_v22 }
 0x6df   :  { %2806 = vadd.xlane.f32.xlu0 %v2805_v19  ;;  %v2717_v21 = vpop.xlane.xlu0 %2716 }
 0x6e0   :  { %v2759_v5 = vmul.f32 0.03125, %v2717_v21  ;;  %v2808_v17 = vsel %vm66_vm0, %v2790_v39, 0.0 }
 0x6e1   :  { %v2720_v43 = vpop.xlane.xlu1 %2719  ;;  %2809 = vadd.xlane.f32.xlu1 %v2808_v17 }
 0x6e2   :  { %v10858_v44 = vsub.f32 %v10724_v26, %v2759_v5  ;;  %v2760_v56 = vmul.f32 0.03125, %v2720_v43 }
 0x6e4   :  { %v10861_v62 = vsub.f32 %v10729_v31, %v2760_v56  ;;  %v2791_v15 = vmul.f32 %v10858_v44, %v10858_v44 }
 0x6e6   :  { %v2811_v46 = vsel %vm66_vm0, %v2791_v15, 0.0  ;;  %v2792_v2 = vmul.f32 %v10861_v62, %v10861_v62 }
 0x6e7   :  { %2812 = vadd.xlane.f32.xlu0 %v2811_v46  ;;  %v2723_v16 = vpop.xlane.xlu0 %2722 }
 0x6e8   :  { %v2761_v50 = vmul.f32 0.03125, %v2723_v16  ;;  %v2814_v47 = vsel %vm66_vm0, %v2792_v2, 0.0 }
 0x6e9   :  { %v2726_v1 = vpop.xlane.xlu1 %2725  ;;  %2815 = vadd.xlane.f32.xlu1 %v2814_v47 }
 0x6ea   :  { %v10870_v38 = vsub.f32 %v10742_v0, %v2761_v50  ;;  %v2762_v58 = vmul.f32 0.03125, %v2726_v1 }
 0x6ec   :  { %v10873_v48 = vsub.f32 %v10747_v13, %v2762_v58  ;;  %v2793_v60 = vmul.f32 %v10870_v38, %v10870_v38 }
 0x6ee   :  { %v2817_v11 = vsel %vm66_vm0, %v2793_v60, 0.0  ;;  %v2794_v55 = vmul.f32 %v10873_v48, %v10873_v48 }
 0x6ef   :  { %2818 = vadd.xlane.f32.xlu0 %v2817_v11  ;;  %v2729_v10 = vpop.xlane.xlu0 %2728 }
 0x6f0   :  { %v2763_v12 = vmul.f32 0.03125, %v2729_v10  ;;  %v2820_v4 = vsel %vm66_vm0, %v2794_v55, 0.0 }
 0x6f1   :  { %v2732_v53 = vpop.xlane.xlu1 %2731  ;;  %2821 = vadd.xlane.f32.xlu1 %v2820_v4 }
 0x6f2   :  { %v10882_v9 = vsub.f32 %v10760_v51, %v2763_v12  ;;  %v2764_v59 = vmul.f32 0.03125, %v2732_v53 }
 0x6f4   :  { %v10885_v36 = vsub.f32 %v10765_v23, %v2764_v59  ;;  %v2795_v54 = vmul.f32 %v10882_v9, %v10882_v9 }
 0x6f6   :  { %v2823_v49 = vsel %vm66_vm0, %v2795_v54, 0.0  ;;  %v2796_v27 = vmul.f32 %v10885_v36, %v10885_v36 }
 0x6f7   :  { %2824 = vadd.xlane.f32.xlu0 %v2823_v49  ;;  %v2735_v35 = vpop.xlane.xlu0 %2734 }
 0x6f8   :  { %v2765_v33 = vmul.f32 0.03125, %v2735_v35  ;;  %v2826_v63 = vsel %vm66_vm0, %v2796_v27, 0.0 }
 0x6f9   :  { %v2738_v18 = vpop.xlane.xlu1 %2737  ;;  %2827 = vadd.xlane.f32.xlu1 %v2826_v63  ;;  %v8487_v63 = vld [vmem:[%s12873_s8 + $0x8] sm:$0xff]  }
 0x6fa   :  { %v10894_v6 = vsub.f32 %v10778_v30, %v2765_v33  ;;  %v2766_v42 = vmul.f32 0.03125, %v2738_v18  ;;  %v8486_v33 = vld [vmem:[%s12873_s8] sm:$0xff]   ;;  %v8488_v18 = vld [vmem:[%s12873_s8 + $0x10] sm:$0xff]  }
 0x6fb   :  { %8077 = vmatprep.subr.bf16.mxu0 %v8486_v33 }
 0x6fc   :  { %v10897_v41 = vsub.f32 %v10783_v37, %v2766_v42  ;;  %v2797_v8 = vmul.f32 %v10894_v6, %v10894_v6  ;;  %8078 = vmatpush3.bf16.msra.mxu0 %v8486_v33  ;;  %v8489_v42 = vld [vmem:[%s12873_s8 + $0x18] sm:$0xff]  }
 0x6fd   :  { %8079 = vmatprep.subr.bf16.mxu0 %v8487_v63 }
 0x6fe   :  { %v2829_v14 = vsel %vm66_vm0, %v2797_v8, 0.0  ;;  %v2798_v57 = vmul.f32 %v10897_v41, %v10897_v41 }
 0x6ff   :  { %2830 = vadd.xlane.f32.xlu0 %v2829_v14  ;;  %v2741_v40 = vpop.xlane.xlu0 %2740 }
 0x700   :  { %v2767_v45 = vmul.f32 0.03125, %v2741_v40  ;;  %v2832_v29 = vsel %vm66_vm0, %v2798_v57, 0.0  ;;  %8080 = vmatpush3.bf16.msra.mxu0 %v8487_v63 }
 0x701   :  { %v2744_v3 = vpop.xlane.xlu1 %2743  ;;  %2833 = vadd.xlane.f32.xlu1 %v2832_v29  ;;  %8081 = vmatprep.subr.bf16.mxu0 %v8488_v18 }
 0x702   :  { %v10906_v19 = vsub.f32 %v10796_v32, %v2767_v45  ;;  %v2768_v39 = vmul.f32 0.03125, %v2744_v3 }
 0x704   :  { %v10909_v21 = vsub.f32 %v10801_v28, %v2768_v39  ;;  %v2799_v5 = vmul.f32 %v10906_v19, %v10906_v19  ;;  %8082 = vmatpush3.bf16.msra.mxu0 %v8488_v18 }
 0x705   :  { %8083 = vmatprep.subr.bf16.mxu0 %v8489_v42 }
 0x706   :  { %v2835_v17 = vsel %vm66_vm0, %v2799_v5, 0.0  ;;  %v2800_v43 = vmul.f32 %v10909_v21, %v10909_v21 }
 0x707   :  { %2836 = vadd.xlane.f32.xlu0 %v2835_v17  ;;  %v2747_v56 = vpop.xlane.xlu0 %2746 }
 0x708   :  { %v2769_v15 = vmul.f32 0.03125, %v2747_v56  ;;  %v2838_v46 = vsel %vm66_vm0, %v2800_v43, 0.0  ;;  %8084 = vmatpush3.bf16.msra.mxu0 %v8489_v42 }
 0x709   :  { %v2750_v2 = vpop.xlane.xlu1 %2749  ;;  %2839 = vadd.xlane.f32.xlu1 %v2838_v46 }
 0x70a   :  { %v10918_v16 = vsub.f32 %v10814_v25, %v2769_v15  ;;  %v2770_v50 = vmul.f32 0.03125, %v2750_v2 }
 0x70c   :  { %v10921_v47 = vsub.f32 %v10819_v7, %v2770_v50  ;;  %v2801_v1 = vmul.f32 %v10918_v16, %v10918_v16 }
 0x70e   :  { %v2841_v58 = vsel %vm66_vm0, %v2801_v1, 0.0  ;;  %v2802_v60 = vmul.f32 %v10921_v47, %v10921_v47 }
 0x70f   :  { %2842 = vadd.xlane.f32.xlu0 %v2841_v58  ;;  %v2753_v11 = vpop.xlane.xlu0 %2752 }
 0x710   :  { %v2771_v55 = vmul.f32 0.03125, %v2753_v11  ;;  %v2844_v10 = vsel %vm66_vm0, %v2802_v60, 0.0 }
 0x711   :  { %2845 = vadd.xlane.f32.xlu1 %v2844_v10  ;;  %v2756_v12 = vpop.xlane.xlu1 %2755 }
 0x712   :  { %v10930_v4 = vsub.f32 %v10830_v20, %v2771_v55  ;;  %v2772_v53 = vmul.f32 0.03125, %v2756_v12 }
 0x714   :  { %v10933_v59 = vsub.f32 %v10835_v52, %v2772_v53  ;;  %v2803_v54 = vmul.f32 %v10930_v4, %v10930_v4 }
 0x716   :  { %v2847_v49 = vsel %vm66_vm0, %v2803_v54, 0.0  ;;  %v2804_v27 = vmul.f32 %v10933_v59, %v10933_v59 }
 0x717   :  { %2848 = vadd.xlane.f32.xlu0 %v2847_v49 }
 0x718   :  { %v2850_v35 = vsel %vm66_vm0, %v2804_v27, 0.0 }
 0x719   :  { %2851 = vadd.xlane.f32.xlu1 %v2850_v35 }
 0x76c   :  { %v2807_v8 = vpop.xlane.xlu0 %2806 }
 0x76d   :  { %v2853_v14 = vmul.f32 0.03125, %v2807_v8 }
 0x76e   :  { %v2810_v57 = vpop.xlane.xlu1 %2809 }
 0x76f   :  { %v2869_v40 = vadd.f32 1e-05, %v2853_v14  ;;  %v2854_v45 = vmul.f32 0.03125, %v2810_v57 }
 0x771   :  { %8794 = vrsqrt.f32 %v2869_v40  ;;  %v2870_v29 = vadd.f32 1e-05, %v2854_v45 }
 0x773   :  { %8796 = vrsqrt.f32 %v2870_v29 }
 0x774   :  { %v2813_v3 = vpop.xlane.xlu0 %2812 }
 0x775   :  { %v2855_v39 = vmul.f32 0.03125, %v2813_v3 }
 0x776   :  { %v2816_v5 = vpop.xlane.xlu1 %2815 }
 0x777   :  { %v2871_v17 = vadd.f32 1e-05, %v2855_v39  ;;  %v2856_v43 = vmul.f32 0.03125, %v2816_v5 }
 0x779   :  { %8798 = vrsqrt.f32 %v2871_v17  ;;  %v2872_v56 = vadd.f32 1e-05, %v2856_v43 }
 0x77b   :  { %v8795_v15 = vpop.eup %8794  ;;  %8800 = vrsqrt.f32 %v2872_v56 }
 0x77c   :  { %v2819_v46 = vpop.xlane.xlu0 %2818  ;;  %v2901_v58 = vmul.f32 %v8795_v15, %v10846_v61 }
 0x77d   :  { %v8797_v2 = vpop.eup %8796  ;;  %v2857_v50 = vmul.f32 0.03125, %v2819_v46 }
 0x77e   :  { %v2822_v1 = vpop.xlane.xlu1 %2821  ;;  %v2902_v60 = vmul.f32 %v8797_v2, %v10849_v22 }
 0x77f   :  { %v2873_v11 = vadd.f32 1e-05, %v2857_v50  ;;  %v2858_v55 = vmul.f32 0.03125, %v2822_v1 }
 0x780   :  { %v2917_v10 = vpack.c.bf16 %v2902_v60, %v2901_v58 }
 0x781   :  { %8802 = vrsqrt.f32 %v2873_v11  ;;  %v2874_v12 = vadd.f32 1e-05, %v2858_v55 }
 0x782   :  { %8061 = vmatprep.mubr.msk.bf16.mxu1 %vm66_vm0, %v2917_v10 }
 0x783   :  { %v8799_v53 = vpop.eup %8798  ;;  %8804 = vrsqrt.f32 %v2874_v12 }
 0x784   :  { %v2825_v54 = vpop.xlane.xlu0 %2824  ;;  %v2903_v35 = vmul.f32 %v8799_v53, %v10858_v44 }
 0x785   :  { %v8801_v49 = vpop.eup %8800  ;;  %v2859_v27 = vmul.f32 0.03125, %v2825_v54 }
 0x786   :  { %v2904_v33 = vmul.f32 %v8801_v49, %v10861_v62  ;;  %v2828_v63 = vpop.xlane.xlu1 %2827 }
 0x787   :  { %v2875_v61 = vadd.f32 1e-05, %v2859_v27  ;;  %v2860_v18 = vmul.f32 0.03125, %v2828_v63 }
 0x788   :  { %v2918_v22 = vpack.c.bf16 %v2904_v33, %v2903_v35 }
 0x789   :  { %8806 = vrsqrt.f32 %v2875_v61  ;;  %v2876_v42 = vadd.f32 1e-05, %v2860_v18 }
 0x78a   :  { %8062 = vmatmul.mubr.msk.bf16.vlgmr.msra.gmra.mrb[96].mxu1 %vm66_vm0, %v2918_v22 }
 0x78b   :  { %v8803_v8 = vpop.eup %8802  ;;  %8808 = vrsqrt.f32 %v2876_v42 }
 0x78c   :  { %v2831_v14 = vpop.xlane.xlu0 %2830  ;;  %v2905_v29 = vmul.f32 %v8803_v8, %v10870_v38 }
 0x78d   :  { %v8805_v57 = vpop.eup %8804  ;;  %v2861_v40 = vmul.f32 0.03125, %v2831_v14 }
 0x78e   :  { %v2834_v45 = vpop.xlane.xlu1 %2833  ;;  %v2906_v44 = vmul.f32 %v8805_v57, %v10873_v48 }
 0x78f   :  { %v2877_v3 = vadd.f32 1e-05, %v2861_v40  ;;  %v2862_v62 = vmul.f32 0.03125, %v2834_v45 }
 0x790   :  { %v2919_v39 = vpack.c.bf16 %v2906_v44, %v2905_v29 }
 0x791   :  { %8810 = vrsqrt.f32 %v2877_v3  ;;  %v2878_v5 = vadd.f32 1e-05, %v2862_v62 }
 0x792   :  { %8065 = vmatprep.mubr.msk.bf16.mxu1 %vm66_vm0, %v2919_v39 }
 0x793   :  { %v8807_v17 = vpop.eup %8806  ;;  %8812 = vrsqrt.f32 %v2878_v5  ;;  %v8490_v5 = vld [vmem:[%s12873_s8 + $0x20] sm:$0xff]  }
 0x794   :  { %v2837_v43 = vpop.xlane.xlu0 %2836  ;;  %v2907_v2 = vmul.f32 %v8807_v17, %v10882_v9  ;;  %8085 = vmatprep.subr.bf16.mxu0 %v8490_v5 }
 0x795   :  { %v8809_v56 = vpop.eup %8808  ;;  %v2863_v15 = vmul.f32 0.03125, %v2837_v43  ;;  %8086 = vmatpush3.bf16.msra.mxu0 %v8490_v5 }
 0x796   :  { %v2840_v46 = vpop.xlane.xlu1 %2839  ;;  %v2908_v50 = vmul.f32 %v8809_v56, %v10885_v36 }
 0x797   :  { %v2879_v38 = vadd.f32 1e-05, %v2863_v15  ;;  %v2864_v1 = vmul.f32 0.03125, %v2840_v46 }
 0x798   :  { %v2920_v48 = vpack.c.bf16 %v2908_v50, %v2907_v2 }
 0x799   :  { %8814 = vrsqrt.f32 %v2879_v38  ;;  %v2880_v58 = vadd.f32 1e-05, %v2864_v1 }
 0x79a   :  { %8066 = vmatmul.mubr.msk.bf16.gmra.mrb[100].mxu1 %vm66_vm0, %v2920_v48 }
 0x79b   :  { %v8811_v60 = vpop.eup %8810  ;;  %8816 = vrsqrt.f32 %v2880_v58 }
 0x79c   :  { %v2843_v11 = vpop.xlane.xlu0 %2842  ;;  %v2909_v53 = vmul.f32 %v8811_v60, %v10894_v6 }
 0x79d   :  { %v8813_v55 = vpop.eup %8812  ;;  %v2865_v10 = vmul.f32 0.03125, %v2843_v11 }
 0x79e   :  { %v2846_v12 = vpop.xlane.xlu1 %2845  ;;  %v2910_v54 = vmul.f32 %v8813_v55, %v10897_v41 }
 0x79f   :  { %v2881_v9 = vadd.f32 1e-05, %v2865_v10  ;;  %v2866_v49 = vmul.f32 0.03125, %v2846_v12 }
 0x7a0   :  { %v2921_v36 = vpack.c.bf16 %v2910_v54, %v2909_v53 }
 0x7a1   :  { %8818 = vrsqrt.f32 %v2881_v9  ;;  %v2882_v27 = vadd.f32 1e-05, %v2866_v49 }
 0x7a2   :  { %8069 = vmatprep.mubr.msk.bf16.mxu1 %vm66_vm0, %v2921_v36 }
 0x7a3   :  { %v8815_v35 = vpop.eup %8814  ;;  %8820 = vrsqrt.f32 %v2882_v27 }
 0x7a4   :  { %v2849_v33 = vpop.xlane.xlu0 %2848  ;;  %v2911_v22 = vmul.f32 %v8815_v35, %v10906_v19 }
 0x7a5   :  { %v8817_v63 = vpop.eup %8816  ;;  %v2867_v61 = vmul.f32 0.03125, %v2849_v33 }
 0x7a6   :  { %v2852_v18 = vpop.xlane.xlu1 %2851  ;;  %v2912_v42 = vmul.f32 %v8817_v63, %v10909_v21 }
 0x7a7   :  { %v2883_v6 = vadd.f32 1e-05, %v2867_v61  ;;  %v2868_v8 = vmul.f32 0.03125, %v2852_v18 }
 0x7a8   :  { %v2922_v41 = vpack.c.bf16 %v2912_v42, %v2911_v22 }
 0x7a9   :  { %8822 = vrsqrt.f32 %v2883_v6  ;;  %v2884_v14 = vadd.f32 1e-05, %v2868_v8 }
 0x7aa   :  { %8070 = vmatmul.mubr.msk.bf16.gmra.mrb[104].mxu1 %vm66_vm0, %v2922_v41 }
 0x7ab   :  { %v8819_v57 = vpop.eup %8818  ;;  %8824 = vrsqrt.f32 %v2884_v14 }
 0x7ac   :  { %v2913_v45 = vmul.f32 %v8819_v57, %v10918_v16  ;;  %v8491_v16 = vld [vmem:[%s12873_s8 + $0x28] sm:$0xff]  }
 0x7ad   :  { %v8821_v40 = vpop.eup %8820  ;;  %8087 = vmatprep.subr.bf16.mxu0 %v8491_v16 }
 0x7ae   :  { %v2914_v29 = vmul.f32 %v8821_v40, %v10921_v47  ;;  %8088 = vmatpush3.bf16.msra.mxu0 %v8491_v16  ;;  %v8492_v47 = vld [vmem:[%s12873_s8 + $0x30] sm:$0xff]  }
 0x7af   :  { %8089 = vmatprep.subr.bf16.mxu0 %v8492_v47 }
 0x7b0   :  { %v2923_v44 = vpack.c.bf16 %v2914_v29, %v2913_v45 }
 0x7b2   :  { %8073 = vmatprep.mubr.msk.bf16.mxu1 %vm66_vm0, %v2923_v44  ;;  %8090 = vmatpush3.bf16.msra.mxu0 %v8492_v47 }
 0x7b3   :  { %v8823_v19 = vpop.eup %8822 }
 0x7b4   :  { %v2915_v21 = vmul.f32 %v8823_v19, %v10930_v4  ;;  %v8493_v4 = vld [vmem:[%s12873_s8 + $0x38] sm:$0xff]  }
 0x7b5   :  { %v8825_v3 = vpop.eup %8824  ;;  %8091 = vmatprep.subr.bf16.mxu0 %v8493_v4 }
 0x7b6   :  { %v2916_v62 = vmul.f32 %v8825_v3, %v10933_v59  ;;  %8092 = vmatpush3.bf16.msra.mxu0 %v8493_v4  ;;  %v10992_v59 = vld [vmem:[%s12872_s7] ss:$0 sm:$0xff] }
 0x7b8   :  { %v2924_v39 = vpack.c.bf16 %v2916_v62, %v2915_v21 }
 0x7ba   :  { %8074 = vmatmul.mubr.msk.bf16.gmra.mrb[108].mxu1 %vm66_vm0, %v2924_v39 }
 0x85d   :  { %v8063_v17 = vpop.f32.mrb[96].mxu1 }
 0x85e   :  { %v3015_v43 = vadd.f32 %v8063_v17, %v10992_v59  ;;  %v3006_v56 = vpop.f32.mrb[97].mxu1 }
 0x85f   :  { %v3007_v15 = vadd.f32 %v10992_v59, %v3006_v56  ;;  %v8064_v46 = vpop.f32.mrb[98].mxu1 }
 0x860   :  { %v3087_v2 = vmul.f32 0.044715, %v3015_v43  ;;  %v3018_v50 = vadd.f32 %v8064_v46, %v10992_v59  ;;  %v3009_v38 = vpop.f32.mrb[99].mxu1  ;;  %v3071_v4 = vmul.f32 0.5, %v3015_v43 }
 0x861   :  { %v3085_v1 = vmul.f32 0.044715, %v3007_v15  ;;  %v3010_v48 = vadd.f32 %v10992_v59, %v3009_v38 }
 0x862   :  { %v3103_v58 = vmul.f32 %v3087_v2, %v3015_v43  ;;  %v3088_v60 = vmul.f32 0.044715, %v3018_v50 }
 0x863   :  { %v3101_v11 = vmul.f32 %v3085_v1, %v3007_v15  ;;  %v3086_v55 = vmul.f32 0.044715, %v3010_v48  ;;  %v3069_v1 = vmul.f32 0.5, %v3007_v15 }
 0x864   :  { %v3119_v10 = vmul.f32 %v3103_v58, %v3015_v43  ;;  %v3104_v12 = vmul.f32 %v3088_v60, %v3018_v50 }
 0x865   :  { %v3117_v53 = vmul.f32 %v3101_v11, %v3007_v15  ;;  %v3102_v54 = vmul.f32 %v3086_v55, %v3010_v48  ;;  %v3072_v55 = vmul.f32 0.5, %v3018_v50 }
 0x866   :  { %v3135_v9 = vadd.f32 %v3119_v10, %v3015_v43  ;;  %v3120_v49 = vmul.f32 %v3104_v12, %v3018_v50  ;;  %v3070_v43 = vmul.f32 0.5, %v3010_v48 }
 0x867   :  { %v3118_v36 = vmul.f32 %v3102_v54, %v3010_v48  ;;  %v3133_v27 = vadd.f32 %v3117_v53, %v3007_v15 }
 0x868   :  { %v3151_v35 = vmul.f32 0.7978846, %v3135_v9  ;;  %v3136_v33 = vadd.f32 %v3120_v49, %v3018_v50 }
 0x869   :  { %v3134_v63 = vadd.f32 %v3118_v36, %v3010_v48  ;;  %v3149_v61 = vmul.f32 0.7978846, %v3133_v27 }
 0x86a   :  { %8826 = vtanh.f32 %v3151_v35  ;;  %v3152_v18 = vmul.f32 0.7978846, %v3136_v33 }
 0x86b   :  { %v3150_v22 = vmul.f32 0.7978846, %v3134_v63  ;;  %8828 = vtanh.f32 %v3149_v61 }
 0x86c   :  { %8830 = vtanh.f32 %v3152_v18 }
 0x86d   :  { %v8067_v42 = vpop.f32.mrb[100].mxu1  ;;  %8832 = vtanh.f32 %v3150_v22 }
 0x86e   :  { %v10999_v6 = vadd.f32 %v8067_v42, %v10992_v59  ;;  %v3022_v8 = vpop.f32.mrb[101].mxu1 }
 0x86f   :  { %v11002_v41 = vadd.f32 %v10992_v59, %v3022_v8  ;;  %v8068_v14 = vpop.f32.mrb[102].mxu1 }
 0x870   :  { %v3091_v57 = vmul.f32 0.044715, %v10999_v6  ;;  %v11006_v40 = vadd.f32 %v8068_v14, %v10992_v59  ;;  %v3025_v45 = vpop.f32.mrb[103].mxu1 }
 0x871   :  { %v3089_v29 = vmul.f32 0.044715, %v11002_v41  ;;  %v11010_v44 = vadd.f32 %v10992_v59, %v3025_v45 }
 0x872   :  { %v3107_v19 = vmul.f32 %v3091_v57, %v10999_v6  ;;  %v3092_v3 = vmul.f32 0.044715, %v11006_v40 }
 0x873   :  { %v3105_v21 = vmul.f32 %v3089_v29, %v11002_v41  ;;  %v3090_v62 = vmul.f32 0.044715, %v11010_v44 }
 0x874   :  { %v8827_v39 = vpop.eup %8826  ;;  %v3123_v5 = vmul.f32 %v3107_v19, %v10999_v6  ;;  %v3108_v16 = vmul.f32 %v3092_v3, %v11006_v40 }
 0x875   :  { %v8829_v47 = vpop.eup %8828  ;;  %v3121_v17 = vmul.f32 %v3105_v21, %v11002_v41  ;;  %v3106_v56 = vmul.f32 %v3090_v62, %v11010_v44  ;;  %v3183_v46 = vadd.f32 1.0, %v8827_v39 }
 0x876   :  { %v8831_v2 = vpop.eup %8830  ;;  %v3124_v38 = vmul.f32 %v3108_v16, %v11006_v40  ;;  %v3181_v58 = vadd.f32 1.0, %v8829_v47  ;;  %v3139_v60 = vadd.f32 %v3123_v5, %v10999_v6 }
 0x877   :  { %v8833_v11 = vpop.eup %8832  ;;  %v3122_v10 = vmul.f32 %v3106_v56, %v11010_v44  ;;  %v3184_v12 = vadd.f32 1.0, %v8831_v2  ;;  %v3137_v53 = vadd.f32 %v3121_v17, %v11002_v41  ;;  %v3199_v36 = vmul.f32 %v3183_v46, %v3071_v4 }
 0x878   :  { %v3182_v54 = vadd.f32 1.0, %v8833_v11  ;;  %v3140_v9 = vadd.f32 %v3124_v38, %v11006_v40  ;;  %v3155_v49 = vmul.f32 0.7978846, %v3139_v60  ;;  %v3197_v33 = vmul.f32 %v3181_v58, %v3069_v1 }
 0x879   :  { %v3200_v27 = vmul.f32 %v3184_v12, %v3072_v55  ;;  %v3138_v35 = vadd.f32 %v3122_v10, %v11010_v44  ;;  %v3153_v15 = vmul.f32 0.7978846, %v3137_v53  ;;  %v3075_v38 = vmul.f32 0.5, %v10999_v6 }
 0x87a   :  { %v3198_v63 = vmul.f32 %v3182_v54, %v3070_v43  ;;  %v3156_v61 = vmul.f32 0.7978846, %v3140_v9  ;;  %8834 = vtanh.f32 %v3155_v49  ;;  %v3073_v11 = vmul.f32 0.5, %v11002_v41 }
 0x87b   :  { %v3214_v50 = vpack.c.bf16 %v3200_v27, %v3199_v36  ;;  %v3154_v18 = vmul.f32 0.7978846, %v3138_v35  ;;  %8836 = vtanh.f32 %v3153_v15  ;;  %v3076_v43 = vmul.f32 0.5, %v11006_v40 }
 0x87c   :  { %v3213_v22 = vpack.c.bf16 %v3198_v63, %v3197_v33  ;;  %8838 = vtanh.f32 %v3156_v61  ;;  %v3074_v49 = vmul.f32 0.5, %v11010_v44 }
 0x87d   :  { %v8071_v42 = vpop.f32.mrb[104].mxu1  ;;  %8840 = vtanh.f32 %v3154_v18 }
 0x87e   :  { %v11027_v48 = vadd.f32 %v8071_v42, %v10992_v59  ;;  %v3038_v8 = vpop.f32.mrb[105].mxu1  ;;  %8093 = vmatprep.mubr.bf16.mxu0 %v3213_v22 }
 0x87f   :  { %v11030_v14 = vadd.f32 %v10992_v59, %v3038_v8  ;;  %v8072_v57 = vpop.f32.mrb[106].mxu1  ;;  %8094 = vmatmul.mubr.bf16.vlgmr.msra.gmra.mrb[112].mxu0 %v3214_v50 }
 0x880   :  { %v3095_v45 = vmul.f32 0.044715, %v11027_v48  ;;  %v11034_v29 = vadd.f32 %v8072_v57, %v10992_v59  ;;  %v3041_v19 = vpop.f32.mrb[107].mxu1 }
 0x881   :  { %v3093_v3 = vmul.f32 0.044715, %v11030_v14  ;;  %v11038_v21 = vadd.f32 %v10992_v59, %v3041_v19 }
 0x882   :  { %v3111_v62 = vmul.f32 %v3095_v45, %v11027_v48  ;;  %v3096_v39 = vmul.f32 0.044715, %v11034_v29 }
 0x883   :  { %v3109_v5 = vmul.f32 %v3093_v3, %v11030_v14  ;;  %v3094_v16 = vmul.f32 0.044715, %v11038_v21 }
 0x884   :  { %v8835_v47 = vpop.eup %8834  ;;  %v3127_v4 = vmul.f32 %v3111_v62, %v11027_v48  ;;  %v3112_v17 = vmul.f32 %v3096_v39, %v11034_v29 }
 0x885   :  { %v8837_v56 = vpop.eup %8836  ;;  %v3125_v46 = vmul.f32 %v3109_v5, %v11030_v14  ;;  %v3110_v2 = vmul.f32 %v3094_v16, %v11038_v21  ;;  %v3187_v1 = vadd.f32 1.0, %v8835_v47 }
 0x886   :  { %v8839_v58 = vpop.eup %8838  ;;  %v3128_v60 = vmul.f32 %v3112_v17, %v11034_v29  ;;  %v3185_v55 = vadd.f32 1.0, %v8837_v56  ;;  %v3143_v10 = vadd.f32 %v3127_v4, %v11027_v48 }
 0x887   :  { %v8841_v12 = vpop.eup %8840  ;;  %v3126_v53 = vmul.f32 %v3110_v2, %v11038_v21  ;;  %v3188_v54 = vadd.f32 1.0, %v8839_v58  ;;  %v3141_v9 = vadd.f32 %v3125_v46, %v11030_v14  ;;  %v3203_v35 = vmul.f32 %v3187_v1, %v3075_v38 }
 0x888   :  { %v3186_v6 = vadd.f32 1.0, %v8841_v12  ;;  %v3144_v36 = vadd.f32 %v3128_v60, %v11034_v29  ;;  %v3159_v27 = vmul.f32 0.7978846, %v3143_v10  ;;  %v3201_v63 = vmul.f32 %v3185_v55, %v3073_v11 }
 0x889   :  { %v3204_v15 = vmul.f32 %v3188_v54, %v3076_v43  ;;  %v3142_v41 = vadd.f32 %v3126_v53, %v11038_v21  ;;  %v3157_v33 = vmul.f32 0.7978846, %v3141_v9  ;;  %v3079_v60 = vmul.f32 0.5, %v11027_v48 }
 0x88a   :  { %v3202_v61 = vmul.f32 %v3186_v6, %v3074_v49  ;;  %v3160_v50 = vmul.f32 0.7978846, %v3144_v36  ;;  %8842 = vtanh.f32 %v3159_v27  ;;  %v3077_v12 = vmul.f32 0.5, %v11030_v14 }
 0x88b   :  { %v3216_v18 = vpack.c.bf16 %v3204_v15, %v3203_v35  ;;  %v3158_v40 = vmul.f32 0.7978846, %v3142_v41  ;;  %8844 = vtanh.f32 %v3157_v33  ;;  %v3080_v9 = vmul.f32 0.5, %v11034_v29 }
 0x88c   :  { %v3215_v22 = vpack.c.bf16 %v3202_v61, %v3201_v63  ;;  %8846 = vtanh.f32 %v3160_v50  ;;  %v3078_v36 = vmul.f32 0.5, %v11038_v21 }
 0x88d   :  { %v8075_v42 = vpop.f32.mrb[108].mxu1  ;;  %8848 = vtanh.f32 %v3158_v40 }
 0x88e   :  { %v3063_v44 = vadd.f32 %v8075_v42, %v10992_v59  ;;  %v3054_v8 = vpop.f32.mrb[109].mxu1  ;;  %8097 = vmatprep.mubr.bf16.mxu0 %v3215_v22 }
 0x88f   :  { %v3055_v57 = vadd.f32 %v10992_v59, %v3054_v8  ;;  %v8076_v45 = vpop.f32.mrb[110].mxu1  ;;  %8098 = vmatmul.mubr.bf16.gmra.mrb[116].mxu0 %v3216_v18 }
 0x890   :  { %v3099_v19 = vmul.f32 0.044715, %v3063_v44  ;;  %v3066_v3 = vadd.f32 %v8076_v45, %v10992_v59  ;;  %v3057_v62 = vpop.f32.mrb[111].mxu1 }
 0x891   :  { %v3097_v39 = vmul.f32 0.044715, %v3055_v57  ;;  %v3058_v5 = vadd.f32 %v10992_v59, %v3057_v62  ;;  %v3083_v62 = vmul.f32 0.5, %v3063_v44 }
 0x892   :  { %v3115_v16 = vmul.f32 %v3099_v19, %v3063_v44  ;;  %v3100_v47 = vmul.f32 0.044715, %v3066_v3 }
 0x893   :  { %v3113_v4 = vmul.f32 %v3097_v39, %v3055_v57  ;;  %v3098_v17 = vmul.f32 0.044715, %v3058_v5  ;;  %v3084_v39 = vmul.f32 0.5, %v3066_v3 }
 0x894   :  { %v8843_v56 = vpop.eup %8842  ;;  %v3131_v46 = vmul.f32 %v3115_v16, %v3063_v44  ;;  %v3116_v2 = vmul.f32 %v3100_v47, %v3066_v3  ;;  %v3081_v47 = vmul.f32 0.5, %v3055_v57 }
 0x895   :  { %v8845_v38 = vpop.eup %8844  ;;  %v3129_v1 = vmul.f32 %v3113_v4, %v3055_v57  ;;  %v3114_v58 = vmul.f32 %v3098_v17, %v3058_v5  ;;  %v3191_v11 = vadd.f32 1.0, %v8843_v56  ;;  %v3082_v4 = vmul.f32 0.5, %v3058_v5 }
 0x896   :  { %v8847_v55 = vpop.eup %8846  ;;  %v3132_v10 = vmul.f32 %v3116_v2, %v3066_v3  ;;  %v3189_v53 = vadd.f32 1.0, %v8845_v38  ;;  %v3147_v43 = vadd.f32 %v3131_v46, %v3063_v44 }
 0x897   :  { %v8849_v59 = vpop.eup %8848  ;;  %v3130_v54 = vmul.f32 %v3114_v58, %v3058_v5  ;;  %v3192_v49 = vadd.f32 1.0, %v8847_v55  ;;  %v3145_v6 = vadd.f32 %v3129_v1, %v3055_v57  ;;  %v3207_v41 = vmul.f32 %v3191_v11, %v3079_v60  ;;  %v11069_v60 = vld [vmem:[%s12874_s9] ss:$0 sm:$0xff] }
 0x898   :  { %v3190_v27 = vadd.f32 1.0, %v8849_v59  ;;  %v3148_v35 = vadd.f32 %v3132_v10, %v3066_v3  ;;  %v3163_v15 = vmul.f32 0.7978846, %v3147_v43  ;;  %v3205_v61 = vmul.f32 %v3189_v53, %v3077_v12 }
 0x899   :  { %v3208_v48 = vmul.f32 %v3192_v49, %v3080_v9  ;;  %v3146_v33 = vadd.f32 %v3130_v54, %v3058_v5  ;;  %v3161_v63 = vmul.f32 0.7978846, %v3145_v6 }
 0x89a   :  { %v3206_v50 = vmul.f32 %v3190_v27, %v3078_v36  ;;  %v3164_v14 = vmul.f32 0.7978846, %v3148_v35  ;;  %8850 = vtanh.f32 %v3163_v15 }
 0x89b   :  { %v3218_v18 = vpack.c.bf16 %v3208_v48, %v3207_v41  ;;  %v3162_v40 = vmul.f32 0.7978846, %v3146_v33  ;;  %8852 = vtanh.f32 %v3161_v63 }
 0x89c   :  { %v3217_v22 = vpack.c.bf16 %v3206_v50, %v3205_v61  ;;  %8854 = vtanh.f32 %v3164_v14 }
 0x89d   :  { %8856 = vtanh.f32 %v3162_v40 }
 0x89e   :  { %8101 = vmatprep.mubr.bf16.mxu0 %v3217_v22 }
 0x89f   :  { %8102 = vmatmul.mubr.bf16.gmra.mrb[120].mxu0 %v3218_v18 }
 0x8a4   :  { %v8851_v29 = vpop.eup %8850 }
 0x8a5   :  { %v8853_v21 = vpop.eup %8852  ;;  %v3195_v42 = vadd.f32 1.0, %v8851_v29 }
 0x8a6   :  { %v8855_v8 = vpop.eup %8854  ;;  %v3193_v45 = vadd.f32 1.0, %v8853_v21 }
 0x8a7   :  { %v8857_v19 = vpop.eup %8856  ;;  %v3196_v16 = vadd.f32 1.0, %v8855_v8  ;;  %v3211_v56 = vmul.f32 %v3195_v42, %v3083_v62 }
 0x8a8   :  { %v3194_v17 = vadd.f32 1.0, %v8857_v19  ;;  %v3209_v2 = vmul.f32 %v3193_v45, %v3081_v47 }
 0x8a9   :  { %v3212_v46 = vmul.f32 %v3196_v16, %v3084_v39 }
 0x8aa   :  { %v3210_v38 = vmul.f32 %v3194_v17, %v3082_v4 }
 0x8ab   :  { %v3220_v1 = vpack.c.bf16 %v3212_v46, %v3211_v56 }
 0x8ac   :  { %v3219_v58 = vpack.c.bf16 %v3210_v38, %v3209_v2 }
 0x8ae   :  { %8105 = vmatprep.mubr.bf16.mxu0 %v3219_v58 }
 0x8af   :  { %8106 = vmatmul.mubr.bf16.gmra.mrb[124].mxu0 %v3220_v1 }
 0x952   :  { %v8095_v11 = vpop.f32.mrb[112].mxu0 }
 0x953   :  { %v3326_v44 = vpop.f32.mrb[113].mxu0  ;;  %v3335_v3 = vadd.f32 %v8095_v11, %v11069_v60 }
 0x954   :  { %v3327_v57 = vadd.f32 %v11069_v60, %v3326_v44  ;;  %v8096_v5 = vpop.f32.mrb[114].mxu0 }
 0x955   :  { %v3329_v55 = vpop.f32.mrb[115].mxu0  ;;  %v3338_v12 = vadd.f32 %v8096_v5, %v11069_v60  ;;  %v11079_v43 = vadd.f32 %v3335_v3, %v10724_v26 }
 0x956   :  { %v11074_v10 = vadd.f32 %v3327_v57, %v10708_v34  ;;  %v3330_v53 = vadd.f32 %v11069_v60, %v3329_v55 }
 0x957   :  { %13123 = vst [vmem:[#allocation29_spill] sm:$0xff] %v11079_v43  ;;  %v11087_v9 = vadd.f32 %v3338_v12, %v10729_v31  ;;  %v3411_v49 = vsel %vm66_vm0, %v11079_v43, 0.0 }
 0x958   :  { %13122 = vst [vmem:[#allocation28_spill] sm:$0xff] %v11074_v10  ;;  %v11082_v59 = vadd.f32 %v3330_v53, %v10713_v24  ;;  %v3405_v54 = vsel %vm66_vm0, %v11074_v10, 0.0 }
 0x959   :  { %3406 = vadd.xlane.f32.xlu0 %v3405_v54  ;;  %13125 = vst [vmem:[#allocation30_spill] sm:$0xff] %v11087_v9  ;;  %v3414_v26 = vsel %vm66_vm0, %v11087_v9, 0.0 }
 0x95a   :  { %13124 = vst [vmem:[#allocation31_spill] sm:$0xff] %v11082_v59  ;;  %v3408_v34 = vsel %vm66_vm0, %v11082_v59, 0.0 }
 0x95b   :  { %3409 = vadd.xlane.f32.xlu1 %v3408_v34 }
 0x95d   :  { %3412 = vadd.xlane.f32.xlu0 %v3411_v49 }
 0x95f   :  { %3415 = vadd.xlane.f32.xlu1 %v3414_v26 }
 0x962   :  { %v8099_v24 = vpop.f32.mrb[116].mxu0 }
 0x963   :  { %v3342_v6 = vpop.f32.mrb[117].mxu0  ;;  %v3351_v36 = vadd.f32 %v8099_v24, %v11069_v60 }
 0x964   :  { %v3343_v27 = vadd.f32 %v11069_v60, %v3342_v6  ;;  %v8100_v31 = vpop.f32.mrb[118].mxu0 }
 0x965   :  { %v3345_v35 = vpop.f32.mrb[119].mxu0  ;;  %v3354_v41 = vadd.f32 %v8100_v31, %v11069_v60  ;;  %v11103_v33 = vadd.f32 %v3351_v36, %v10760_v51 }
 0x966   :  { %v11098_v15 = vadd.f32 %v3343_v27, %v10742_v0  ;;  %v3346_v48 = vadd.f32 %v11069_v60, %v3345_v35 }
 0x967   :  { %13127 = vst [vmem:[#allocation32_spill] sm:$0xff] %v11103_v33  ;;  %v11111_v50 = vadd.f32 %v3354_v41, %v10765_v23  ;;  %v3423_v14 = vsel %vm66_vm0, %v11103_v33, 0.0 }
 0x968   :  { %13126 = vst [vmem:[#allocation33_spill] sm:$0xff] %v11098_v15  ;;  %v11106_v63 = vadd.f32 %v3346_v48, %v10747_v13  ;;  %v3417_v61 = vsel %vm66_vm0, %v11098_v15, 0.0 }
 0x969   :  { %3418 = vadd.xlane.f32.xlu0 %v3417_v61  ;;  %13129 = vst [vmem:[#allocation34_spill] sm:$0xff] %v11111_v50  ;;  %v3426_v51 = vsel %vm66_vm0, %v11111_v50, 0.0 }
 0x96a   :  { %13128 = vst [vmem:[#allocation35_spill] sm:$0xff] %v11106_v63  ;;  %v3420_v0 = vsel %vm66_vm0, %v11106_v63, 0.0 }
 0x96b   :  { %3421 = vadd.xlane.f32.xlu1 %v3420_v0 }
 0x96d   :  { %3424 = vadd.xlane.f32.xlu0 %v3423_v14 }
 0x96f   :  { %3427 = vadd.xlane.f32.xlu1 %v3426_v51 }
 0x972   :  { %v8103_v13 = vpop.f32.mrb[120].mxu0 }
 0x973   :  { %v3358_v18 = vpop.f32.mrb[121].mxu0  ;;  %v3367_v40 = vadd.f32 %v8103_v13, %v11069_v60 }
 0x974   :  { %v3359_v22 = vadd.f32 %v11069_v60, %v3358_v18  ;;  %v8104_v23 = vpop.f32.mrb[122].mxu0 }
 0x975   :  { %v3361_v29 = vpop.f32.mrb[123].mxu0  ;;  %v3370_v42 = vadd.f32 %v8104_v23, %v11069_v60  ;;  %v11127_v45 = vadd.f32 %v3367_v40, %v10796_v32 }
 0x976   :  { %v11122_v21 = vadd.f32 %v3359_v22, %v10778_v30  ;;  %v3362_v8 = vadd.f32 %v11069_v60, %v3361_v29 }
 0x977   :  { %13131 = vst [vmem:[#allocation36_spill] sm:$0xff] %v11127_v45  ;;  %v11135_v39 = vadd.f32 %v3370_v42, %v10801_v28  ;;  %v3435_v16 = vsel %vm66_vm0, %v11127_v45, 0.0 }
 0x978   :  { %13130 = vst [vmem:[#allocation37_spill] sm:$0xff] %v11122_v21  ;;  %v11130_v19 = vadd.f32 %v3362_v8, %v10783_v37  ;;  %v3429_v62 = vsel %vm66_vm0, %v11122_v21, 0.0 }
 0x979   :  { %3430 = vadd.xlane.f32.xlu0 %v3429_v62  ;;  %13133 = vst [vmem:[#allocation18_spill] sm:$0xff] %v11135_v39  ;;  %v3438_v32 = vsel %vm66_vm0, %v11135_v39, 0.0 }
 0x97a   :  { %13132 = vst [vmem:[#allocation17_spill] sm:$0xff] %v11130_v19  ;;  %v3432_v30 = vsel %vm66_vm0, %v11130_v19, 0.0 }
 0x97b   :  { %3433 = vadd.xlane.f32.xlu1 %v3432_v30 }
 0x97d   :  { %3436 = vadd.xlane.f32.xlu0 %v3435_v16 }
 0x97f   :  { %3439 = vadd.xlane.f32.xlu1 %v3438_v32 }
 0x982   :  { %v8107_v37 = vpop.f32.mrb[124].mxu0 }
 0x983   :  { %v3374_v47 = vpop.f32.mrb[125].mxu0  ;;  %v3383_v4 = vadd.f32 %v8107_v37, %v11069_v60 }
 0x984   :  { %v3375_v17 = vadd.f32 %v11069_v60, %v3374_v47  ;;  %v8108_v28 = vpop.f32.mrb[126].mxu0 }
 0x985   :  { %v3377_v56 = vpop.f32.mrb[127].mxu0  ;;  %v3386_v2 = vadd.f32 %v8108_v28, %v11069_v60  ;;  %v11151_v1 = vadd.f32 %v3383_v4, %v10830_v20 }
 0x986   :  { %v11146_v46 = vadd.f32 %v3375_v17, %v10814_v25  ;;  %v3378_v38 = vadd.f32 %v11069_v60, %v3377_v56 }
 0x987   :  { %13135 = vst [vmem:[#allocation20_spill] sm:$0xff] %v11151_v1  ;;  %v11159_v44 = vadd.f32 %v3386_v2, %v10835_v52  ;;  %v3447_v60 = vsel %vm66_vm0, %v11151_v1, 0.0 }
 0x988   :  { %13134 = vst [vmem:[#allocation19_spill] sm:$0xff] %v11146_v46  ;;  %v11154_v58 = vadd.f32 %v3378_v38, %v10819_v7  ;;  %v3441_v11 = vsel %vm66_vm0, %v11146_v46, 0.0  ;;  %v8494_v7 = vld [vmem:[%s12866_s1 + $0x10] sm:$0xff]  }
 0x989   :  { %3442 = vadd.xlane.f32.xlu0 %v3441_v11  ;;  %13137 = vst [vmem:[#allocation8_spill] sm:$0xff] %v11159_v44  ;;  %v3450_v20 = vsel %vm66_vm0, %v11159_v44, 0.0  ;;  %8109 = vmatprep.subr.bf16.mxu1 %v8494_v7 }
 0x98a   :  { %13136 = vst [vmem:[#allocation5_spill] sm:$0xff] %v11154_v58  ;;  %v3444_v25 = vsel %vm66_vm0, %v11154_v58, 0.0  ;;  %8110 = vmatpush3.bf16.msra.mxu1 %v8494_v7 }
 0x98b   :  { %3445 = vadd.xlane.f32.xlu1 %v3444_v25 }
 0x98d   :  { %3448 = vadd.xlane.f32.xlu0 %v3447_v60 }
 0x98f   :  { %3451 = vadd.xlane.f32.xlu1 %v3450_v20 }
 0x9e6   :  { %v3407_v52 = vpop.xlane.xlu0 %3406 }
 0x9e7   :  { %v3453_v3 = vmul.f32 0.03125, %v3407_v52 }
 0x9e8   :  { %v3410_v57 = vpop.xlane.xlu1 %3409 }
 0x9e9   :  { %v11171_v5 = vsub.f32 %v11074_v10, %v3453_v3  ;;  %v3454_v55 = vmul.f32 0.03125, %v3410_v57 }
 0x9ea   :  { %v3413_v12 = vpop.xlane.xlu0 %3412 }
 0x9eb   :  { %v11174_v53 = vsub.f32 %v11082_v59, %v3454_v55  ;;  %v3455_v54 = vmul.f32 0.03125, %v3413_v12  ;;  %v3485_v34 = vmul.f32 %v11171_v5, %v11171_v5 }
 0x9ec   :  { %v3416_v49 = vpop.xlane.xlu1 %3415 }
 0x9ed   :  { %v11179_v26 = vsub.f32 %v11079_v43, %v3455_v54  ;;  %v3456_v24 = vmul.f32 0.03125, %v3416_v49  ;;  %v3501_v6 = vsel %vm66_vm0, %v3485_v34, 0.0  ;;  %v3486_v36 = vmul.f32 %v11174_v53, %v11174_v53 }
 0x9ee   :  { %3502 = vadd.xlane.f32.xlu0 %v3501_v6  ;;  %v8495_v6 = vld [vmem:[%s12866_s1 + $0x18] sm:$0xff]  }
 0x9ef   :  { %v11185_v27 = vsub.f32 %v11087_v9, %v3456_v24  ;;  %v3504_v31 = vsel %vm66_vm0, %v3486_v36, 0.0  ;;  %v3487_v35 = vmul.f32 %v11179_v26, %v11179_v26  ;;  %8111 = vmatprep.subr.bf16.mxu1 %v8495_v6 }
 0x9f0   :  { %3505 = vadd.xlane.f32.xlu1 %v3504_v31  ;;  %8112 = vmatpush3.bf16.msra.mxu1 %v8495_v6 }
 0x9f1   :  { %v3507_v41 = vsel %vm66_vm0, %v3487_v35, 0.0  ;;  %v3488_v48 = vmul.f32 %v11185_v27, %v11185_v27 }
 0x9f2   :  { %3508 = vadd.xlane.f32.xlu0 %v3507_v41 }
 0x9f3   :  { %v3510_v61 = vsel %vm66_vm0, %v3488_v48, 0.0 }
 0x9f4   :  { %3511 = vadd.xlane.f32.xlu1 %v3510_v61 }
 0x9f6   :  { %v3419_v0 = vpop.xlane.xlu0 %3418 }
 0x9f7   :  { %v3457_v14 = vmul.f32 0.03125, %v3419_v0 }
 0x9f8   :  { %v3422_v51 = vpop.xlane.xlu1 %3421 }
 0x9f9   :  { %v11195_v13 = vsub.f32 %v11098_v15, %v3457_v14  ;;  %v3458_v18 = vmul.f32 0.03125, %v3422_v51 }
 0x9fa   :  { %v3425_v40 = vpop.xlane.xlu0 %3424 }
 0x9fb   :  { %v11198_v22 = vsub.f32 %v11106_v63, %v3458_v18  ;;  %v3459_v23 = vmul.f32 0.03125, %v3425_v40  ;;  %v3489_v29 = vmul.f32 %v11195_v13, %v11195_v13 }
 0x9fc   :  { %v3428_v42 = vpop.xlane.xlu1 %3427 }
 0x9fd   :  { %v11203_v8 = vsub.f32 %v11103_v33, %v3459_v23  ;;  %v3460_v62 = vmul.f32 0.03125, %v3428_v42  ;;  %v3513_v30 = vsel %vm66_vm0, %v3489_v29, 0.0  ;;  %v3490_v16 = vmul.f32 %v11198_v22, %v11198_v22 }
 0x9fe   :  { %3514 = vadd.xlane.f32.xlu0 %v3513_v30 }
 0x9ff   :  { %v11209_v32 = vsub.f32 %v11111_v50, %v3460_v62  ;;  %v3516_v37 = vsel %vm66_vm0, %v3490_v16, 0.0  ;;  %v3491_v47 = vmul.f32 %v11203_v8, %v11203_v8 }
 0xa00   :  { %3517 = vadd.xlane.f32.xlu1 %v3516_v37 }
 0xa01   :  { %v3519_v4 = vsel %vm66_vm0, %v3491_v47, 0.0  ;;  %v3492_v17 = vmul.f32 %v11209_v32, %v11209_v32 }
 0xa02   :  { %3520 = vadd.xlane.f32.xlu0 %v3519_v4 }
 0xa03   :  { %v3522_v28 = vsel %vm66_vm0, %v3492_v17, 0.0 }
 0xa04   :  { %3523 = vadd.xlane.f32.xlu1 %v3522_v28 }
 0xa06   :  { %v3431_v56 = vpop.xlane.xlu0 %3430 }
 0xa07   :  { %v3461_v2 = vmul.f32 0.03125, %v3431_v56 }
 0xa08   :  { %v3434_v38 = vpop.xlane.xlu1 %3433 }
 0xa09   :  { %v11219_v11 = vsub.f32 %v11122_v21, %v3461_v2  ;;  %v3462_v25 = vmul.f32 0.03125, %v3434_v38 }
 0xa0a   :  { %v3437_v60 = vpop.xlane.xlu0 %3436 }
 0xa0b   :  { %v11222_v20 = vsub.f32 %v11130_v19, %v3462_v25  ;;  %v3463_v7 = vmul.f32 0.03125, %v3437_v60  ;;  %v3493_v52 = vmul.f32 %v11219_v11, %v11219_v11 }
 0xa0c   :  { %v3440_v3 = vpop.xlane.xlu1 %3439 }
 0xa0d   :  { %v11227_v57 = vsub.f32 %v11127_v45, %v3463_v7  ;;  %v3464_v55 = vmul.f32 0.03125, %v3440_v3  ;;  %v3525_v12 = vsel %vm66_vm0, %v3493_v52, 0.0  ;;  %v3494_v54 = vmul.f32 %v11222_v20, %v11222_v20 }
 0xa0e   :  { %3526 = vadd.xlane.f32.xlu0 %v3525_v12 }
 0xa0f   :  { %v11233_v34 = vsub.f32 %v11135_v39, %v3464_v55  ;;  %v3528_v49 = vsel %vm66_vm0, %v3494_v54, 0.0  ;;  %v3495_v24 = vmul.f32 %v11227_v57, %v11227_v57 }
 0xa10   :  { %3529 = vadd.xlane.f32.xlu1 %v3528_v49 }
 0xa11   :  { %v3531_v36 = vsel %vm66_vm0, %v3495_v24, 0.0  ;;  %v3496_v31 = vmul.f32 %v11233_v34, %v11233_v34 }
 0xa12   :  { %3532 = vadd.xlane.f32.xlu0 %v3531_v36 }
 0xa13   :  { %v3534_v35 = vsel %vm66_vm0, %v3496_v31, 0.0 }
 0xa14   :  { %3535 = vadd.xlane.f32.xlu1 %v3534_v35 }
 0xa16   :  { %v3443_v41 = vpop.xlane.xlu0 %3442 }
 0xa17   :  { %v3465_v48 = vmul.f32 0.03125, %v3443_v41 }
 0xa18   :  { %v3446_v61 = vpop.xlane.xlu1 %3445 }
 0xa19   :  { %v11246_v0 = vsub.f32 %v11146_v46, %v3465_v48  ;;  %v3466_v14 = vmul.f32 0.03125, %v3446_v61 }
 0xa1a   :  { %v3449_v51 = vpop.xlane.xlu0 %3448 }
 0xa1b   :  { %v11249_v18 = vsub.f32 %v11154_v58, %v3466_v14  ;;  %v3467_v40 = vmul.f32 0.03125, %v3449_v51  ;;  %v3497_v23 = vmul.f32 %v11246_v0, %v11246_v0 }
 0xa1c   :  { %v3452_v29 = vpop.xlane.xlu1 %3451 }
 0xa1d   :  { %v11254_v42 = vsub.f32 %v11151_v1, %v3467_v40  ;;  %v3468_v62 = vmul.f32 0.03125, %v3452_v29  ;;  %v3537_v30 = vsel %vm66_vm0, %v3497_v23, 0.0  ;;  %v3498_v16 = vmul.f32 %v11249_v18, %v11249_v18 }
 0xa1e   :  { %3538 = vadd.xlane.f32.xlu0 %v3537_v30 }
 0xa1f   :  { %v11260_v37 = vsub.f32 %v11159_v44, %v3468_v62  ;;  %v3540_v47 = vsel %vm66_vm0, %v3498_v16, 0.0  ;;  %v3499_v4 = vmul.f32 %v11254_v42, %v11254_v42 }
 0xa20   :  { %3541 = vadd.xlane.f32.xlu1 %v3540_v47 }
 0xa21   :  { %v3543_v17 = vsel %vm66_vm0, %v3499_v4, 0.0  ;;  %v3500_v28 = vmul.f32 %v11260_v37, %v11260_v37 }
 0xa22   :  { %3544 = vadd.xlane.f32.xlu0 %v3543_v17 }
 0xa23   :  { %v3546_v56 = vsel %vm66_vm0, %v3500_v28, 0.0 }
 0xa24   :  { %3547 = vadd.xlane.f32.xlu1 %v3546_v56 }
 0xa7b   :  { %v3503_v2 = vpop.xlane.xlu0 %3502 }
 0xa7c   :  { %v3549_v38 = vmul.f32 0.03125, %v3503_v2 }
 0xa7d   :  { %v3506_v25 = vpop.xlane.xlu1 %3505 }
 0xa7e   :  { %v3565_v60 = vadd.f32 1e-05, %v3549_v38  ;;  %v3550_v7 = vmul.f32 0.03125, %v3506_v25 }
 0xa7f   :  { %v3509_v52 = vpop.xlane.xlu0 %3508 }
 0xa80   :  { %8858 = vrsqrt.f32 %v3565_v60  ;;  %v3566_v3 = vadd.f32 1e-05, %v3550_v7  ;;  %v3551_v55 = vmul.f32 0.03125, %v3509_v52 }
 0xa81   :  { %v3512_v12 = vpop.xlane.xlu1 %3511 }
 0xa82   :  { %8860 = vrsqrt.f32 %v3566_v3  ;;  %v3567_v54 = vadd.f32 1e-05, %v3551_v55  ;;  %v3552_v49 = vmul.f32 0.03125, %v3512_v12 }
 0xa84   :  { %8862 = vrsqrt.f32 %v3567_v54  ;;  %v3568_v24 = vadd.f32 1e-05, %v3552_v49 }
 0xa86   :  { %8864 = vrsqrt.f32 %v3568_v24 }
 0xa8a   :  { %v8859_v6 = vpop.eup %8858 }
 0xa8b   :  { %v3515_v36 = vpop.xlane.xlu0 %3514  ;;  %v3597_v48 = vmul.f32 %v8859_v6, %v11171_v5 }
 0xa8c   :  { %v8861_v31 = vpop.eup %8860  ;;  %v3553_v35 = vmul.f32 0.03125, %v3515_v36 }
 0xa8d   :  { %v3518_v41 = vpop.xlane.xlu1 %3517  ;;  %v3598_v61 = vmul.f32 %v8861_v31, %v11174_v53 }
 0xa8e   :  { %v8863_v14 = vpop.eup %8862  ;;  %v3569_v51 = vadd.f32 1e-05, %v3553_v35  ;;  %v3554_v40 = vmul.f32 0.03125, %v3518_v41 }
 0xa8f   :  { %v3521_v23 = vpop.xlane.xlu0 %3520  ;;  %v3613_v29 = vpack.c.bf16 %v3598_v61, %v3597_v48  ;;  %v3599_v47 = vmul.f32 %v8863_v14, %v11179_v26 }
 0xa90   :  { %v8865_v62 = vpop.eup %8864  ;;  %8866 = vrsqrt.f32 %v3569_v51  ;;  %v3570_v30 = vadd.f32 1e-05, %v3554_v40  ;;  %v3555_v16 = vmul.f32 0.03125, %v3521_v23 }
 0xa91   :  { %v3600_v4 = vmul.f32 %v8865_v62, %v11185_v27  ;;  %v3524_v17 = vpop.xlane.xlu1 %3523  ;;  %8113 = vmatprep.mubr.msk.bf16.mxu1 %vm66_vm0, %v3613_v29 }
 0xa92   :  { %8868 = vrsqrt.f32 %v3570_v30  ;;  %v3571_v5 = vadd.f32 1e-05, %v3555_v16  ;;  %v3556_v28 = vmul.f32 0.03125, %v3524_v17 }
 0xa93   :  { %v3614_v53 = vpack.c.bf16 %v3600_v4, %v3599_v47 }
 0xa94   :  { %8870 = vrsqrt.f32 %v3571_v5  ;;  %v3572_v56 = vadd.f32 1e-05, %v3556_v28 }
 0xa95   :  { %8114 = vmatmul.mubr.msk.bf16.vlgmr.msra.gmra.mrb[112].mxu1 %vm66_vm0, %v3614_v53 }
 0xa96   :  { %8872 = vrsqrt.f32 %v3572_v56 }
 0xa9a   :  { %v8867_v2 = vpop.eup %8866 }
 0xa9b   :  { %v3527_v38 = vpop.xlane.xlu0 %3526  ;;  %v3601_v26 = vmul.f32 %v8867_v2, %v11195_v13 }
 0xa9c   :  { %v8869_v25 = vpop.eup %8868  ;;  %v3557_v60 = vmul.f32 0.03125, %v3527_v38 }
 0xa9d   :  { %v3530_v7 = vpop.xlane.xlu1 %3529  ;;  %v3602_v27 = vmul.f32 %v8869_v25, %v11198_v22 }
 0xa9e   :  { %v8871_v52 = vpop.eup %8870  ;;  %v3573_v3 = vadd.f32 1e-05, %v3557_v60  ;;  %v3558_v55 = vmul.f32 0.03125, %v3530_v7 }
 0xa9f   :  { %v3533_v12 = vpop.xlane.xlu0 %3532  ;;  %v3615_v54 = vpack.c.bf16 %v3602_v27, %v3601_v26  ;;  %v3603_v31 = vmul.f32 %v8871_v52, %v11203_v8 }
 0xaa0   :  { %v8873_v49 = vpop.eup %8872  ;;  %8874 = vrsqrt.f32 %v3573_v3  ;;  %v3574_v24 = vadd.f32 1e-05, %v3558_v55  ;;  %v3559_v6 = vmul.f32 0.03125, %v3533_v12  ;;  %v6893_v12 = vld [vmem:[%s12868_s3 + $0x10] sm:$0xf] }
 0xaa1   :  { %v3536_v36 = vpop.xlane.xlu1 %3535  ;;  %8117 = vmatprep.mubr.msk.bf16.mxu1 %vm66_vm0, %v3615_v54  ;;  %v3604_v35 = vmul.f32 %v8873_v49, %v11209_v32  ;;  %8441 = vmatprep.subr.msk.bf16.mxu1 %vm831_vm1, %v6893_v12  ;;  %v6874_v54 = vld [vmem:[%s12867_s2 + $0x1] ss:$0 sm:$0xff] }
 0xaa2   :  { %8876 = vrsqrt.f32 %v3574_v24  ;;  %v3575_v13 = vadd.f32 1e-05, %v3559_v6  ;;  %v3560_v41 = vmul.f32 0.03125, %v3536_v36 }
 0xaa3   :  { %v3616_v22 = vpack.c.bf16 %v3604_v35, %v3603_v31 }
 0xaa4   :  { %8878 = vrsqrt.f32 %v3575_v13  ;;  %v3576_v48 = vadd.f32 1e-05, %v3560_v41 }
 0xaa5   :  { %8118 = vmatmul.mubr.msk.bf16.gmra.mrb[116].mxu1 %vm66_vm0, %v3616_v22 }
 0xaa6   :  { %8880 = vrsqrt.f32 %v3576_v48 }
 0xaaa   :  { %v8875_v61 = vpop.eup %8874 }
 0xaab   :  { %v3539_v14 = vpop.xlane.xlu0 %3538  ;;  %v3605_v29 = vmul.f32 %v8875_v61, %v11219_v11 }
 0xaac   :  { %v8877_v51 = vpop.eup %8876  ;;  %v3561_v40 = vmul.f32 0.03125, %v3539_v14 }
 0xaad   :  { %v3542_v23 = vpop.xlane.xlu1 %3541  ;;  %v3606_v8 = vmul.f32 %v8877_v51, %v11222_v20 }
 0xaae   :  { %v8879_v62 = vpop.eup %8878  ;;  %v3577_v32 = vadd.f32 1e-05, %v3561_v40  ;;  %v3562_v30 = vmul.f32 0.03125, %v3542_v23 }
 0xaaf   :  { %v3545_v16 = vpop.xlane.xlu0 %3544  ;;  %v3617_v47 = vpack.c.bf16 %v3606_v8, %v3605_v29  ;;  %v3607_v53 = vmul.f32 %v8879_v62, %v11227_v57 }
 0xab0   :  { %v8881_v4 = vpop.eup %8880  ;;  %8882 = vrsqrt.f32 %v3577_v32  ;;  %v3578_v17 = vadd.f32 1e-05, %v3562_v30  ;;  %v3563_v5 = vmul.f32 0.03125, %v3545_v16 }
 0xab1   :  { %v3548_v28 = vpop.xlane.xlu1 %3547  ;;  %8121 = vmatprep.mubr.msk.bf16.mxu1 %vm66_vm0, %v3617_v47  ;;  %v3608_v56 = vmul.f32 %v8881_v4, %v11233_v34 }
 0xab2   :  { %8884 = vrsqrt.f32 %v3578_v17  ;;  %v3579_v11 = vadd.f32 1e-05, %v3563_v5  ;;  %v3564_v2 = vmul.f32 0.03125, %v3548_v28 }
 0xab3   :  { %v3618_v20 = vpack.c.bf16 %v3608_v56, %v3607_v53 }
 0xab4   :  { %8886 = vrsqrt.f32 %v3579_v11  ;;  %v3580_v38 = vadd.f32 1e-05, %v3564_v2 }
 0xab5   :  { %8122 = vmatmul.mubr.msk.bf16.gmra.mrb[120].mxu1 %vm66_vm0, %v3618_v20 }
 0xab6   :  { %8888 = vrsqrt.f32 %v3580_v38 }
 0xaba   :  { %v8883_v25 = vpop.eup %8882 }
 0xabb   :  { %v3609_v7 = vmul.f32 %v8883_v25, %v11246_v0  ;;  %v4172_v0 = vsel %vm831_vm1, %v6893_v12, 0 }
 0xabc   :  { %v8885_v60 = vpop.eup %8884  ;;  %8162 = vmatpush3.bf16.msra.mxu1 %v4172_v0 }
 0xabd   :  { %v3610_v26 = vmul.f32 %v8885_v60, %v11249_v18 }
 0xabe   :  { %v8887_v27 = vpop.eup %8886 }
 0xabf   :  { %v3619_v52 = vpack.c.bf16 %v3610_v26, %v3609_v7  ;;  %v3611_v34 = vmul.f32 %v8887_v27, %v11254_v42 }
 0xac0   :  { %v8889_v57 = vpop.eup %8888 }
 0xac1   :  { %8125 = vmatprep.mubr.msk.bf16.mxu1 %vm66_vm0, %v3619_v52  ;;  %v3612_v3 = vmul.f32 %v8889_v57, %v11260_v37 }
 0xac3   :  { %v3620_v55 = vpack.c.bf16 %v3612_v3, %v3611_v34 }
 0xac5   :  { %8126 = vmatmul.mubr.msk.bf16.gmra.mrb[124].mxu1 %vm66_vm0, %v3620_v55 }
 0xb68   :  { %v8115_v18 = vpop.f32.mrb[112].mxu1 }
 0xb69   :  { %v3704_v42 = vpop.f32.mrb[113].mxu1  ;;  %v3713_v37 = vadd.f32 %v8115_v18, %v6874_v54 }
 0xb6a   :  { %v8116_v49 = vpop.f32.mrb[114].mxu1  ;;  %v3705_v36 = vadd.f32 %v6874_v54, %v3704_v42 }
 0xb6b   :  { %v3716_v24 = vadd.f32 %v8116_v49, %v6874_v54  ;;  %v3707_v6 = vpop.f32.mrb[115].mxu1 }
 0xb6c   :  { %v3708_v31 = vadd.f32 %v6874_v54, %v3707_v6 }
 0xb6d   :  { %v11301_v35 = vpack.c.bf16 %v3716_v24, %v3713_v37 }
 0xb6e   :  { %v11303_v13 = vpack.c.bf16 %v3708_v31, %v3705_v36 }
 0xb70   :  { %4328 = vrot.lane.b32.xlu1 %v11303_v13, %s9253_s27  ;;  %4131 = vrot.lane.b32.xlu0 %v11303_v13, %s9251_s23 }
 0xb71   :  { %8145 = vmatprep.mubr.msk.bf16.mxu0 %vm492_vm2, %v11303_v13 }
 0xb74   :  { %3816 = vrot.lane.b32.xlu1 %v11303_v13, %s9254_s28  ;;  %4330 = vrot.lane.b32.xlu0 %v11301_v35, %s9253_s27 }
 0xb78   :  { %4133 = vrot.lane.b32.xlu1 %v11301_v35, %s9251_s23  ;;  %v8119_v41 = vpop.f32.mrb[116].mxu1 }
 0xb79   :  { %v3720_v22 = vpop.f32.mrb[117].mxu1  ;;  %v3729_v61 = vadd.f32 %v8119_v41, %v6874_v54 }
 0xb7a   :  { %v8120_v48 = vpop.f32.mrb[118].mxu1  ;;  %v3721_v40 = vadd.f32 %v6874_v54, %v3720_v22 }
 0xb7b   :  { %v3732_v14 = vadd.f32 %v8120_v48, %v6874_v54  ;;  %v3723_v51 = vpop.f32.mrb[119].mxu1 }
 0xb7c   :  { %v3724_v23 = vadd.f32 %v6874_v54, %v3723_v51  ;;  %3818 = vrot.lane.b32.xlu1 %v11301_v35, %s9254_s28 }
 0xb7d   :  { %v11319_v29 = vpack.c.bf16 %v3732_v14, %v3729_v61 }
 0xb7e   :  { %v11321_v8 = vpack.c.bf16 %v3724_v23, %v3721_v40 }
 0xb80   :  { %3820 = vrot.lane.b32.xlu1 %v11321_v8, %s9254_s28  ;;  %4332 = vrot.lane.b32.xlu0 %v11321_v8, %s9253_s27 }
 0xb84   :  { %3822 = vrot.lane.b32.xlu1 %v11319_v29, %s9254_s28  ;;  %4334 = vrot.lane.b32.xlu0 %v11319_v29, %s9253_s27 }
 0xb88   :  { %v8123_v62 = vpop.f32.mrb[120].mxu1 }
 0xb89   :  { %v3736_v32 = vpop.f32.mrb[121].mxu1  ;;  %v3745_v16 = vadd.f32 %v8123_v62, %v6874_v54 }
 0xb8a   :  { %v8124_v30 = vpop.f32.mrb[122].mxu1  ;;  %v3737_v17 = vadd.f32 %v6874_v54, %v3736_v32 }
 0xb8b   :  { %v3748_v47 = vadd.f32 %v8124_v30, %v6874_v54  ;;  %v3739_v4 = vpop.f32.mrb[123].mxu1 }
 0xb8c   :  { %v3740_v5 = vadd.f32 %v6874_v54, %v3739_v4 }
 0xb8d   :  { %v11331_v28 = vpack.c.bf16 %v3748_v47, %v3745_v16 }
 0xb8e   :  { %v11333_v53 = vpack.c.bf16 %v3740_v5, %v3737_v17 }
 0xb90   :  { %3824 = vrot.lane.b32.xlu1 %v11333_v53, %s9254_s28  ;;  %4336 = vrot.lane.b32.xlu0 %v11333_v53, %s9253_s27 }
 0xb94   :  { %4137 = vrot.lane.b32.xlu1 %v11319_v29, %s9251_s23  ;;  %4135 = vrot.lane.b32.xlu0 %v11321_v8, %s9251_s23 }
 0xb98   :  { %3826 = vrot.lane.b32.xlu1 %v11331_v28, %s9254_s28  ;;  %4338 = vrot.lane.b32.xlu0 %v11331_v28, %s9253_s27  ;;  %v8127_v56 = vpop.f32.mrb[124].mxu1 }
 0xb99   :  { %v3752_v11 = vpop.f32.mrb[125].mxu1  ;;  %v3761_v20 = vadd.f32 %v8127_v56, %v6874_v54 }
 0xb9a   :  { %v8128_v2 = vpop.f32.mrb[126].mxu1  ;;  %v3753_v60 = vadd.f32 %v6874_v54, %v3752_v11 }
 0xb9b   :  { %v3764_v38 = vadd.f32 %v8128_v2, %v6874_v54  ;;  %v3755_v25 = vpop.f32.mrb[127].mxu1 }
 0xb9c   :  { %v3756_v7 = vadd.f32 %v6874_v54, %v3755_v25  ;;  %4141 = vrot.lane.b32.xlu1 %v11331_v28, %s9251_s23  ;;  %4139 = vrot.lane.b32.xlu0 %v11333_v53, %s9251_s23 }
 0xb9d   :  { %v11351_v26 = vpack.c.bf16 %v3764_v38, %v3761_v20 }
 0xb9e   :  { %v11353_v27 = vpack.c.bf16 %v3756_v7, %v3753_v60 }
 0xba0   :  { %3828 = vrot.lane.b32.xlu1 %v11353_v27, %s9254_s28  ;;  %4340 = vrot.lane.b32.xlu0 %v11353_v27, %s9253_s27 }
 0xba4   :  { %4145 = vrot.lane.b32.xlu1 %v11351_v26, %s9251_s23  ;;  %4143 = vrot.lane.b32.xlu0 %v11353_v27, %s9251_s23 }
 0xba8   :  { %3830 = vrot.lane.b32.xlu1 %v11351_v26, %s9254_s28  ;;  %4342 = vrot.lane.b32.xlu0 %v11351_v26, %s9253_s27 }
 0xbac   :  { %4314 = vrot.lane.b32.xlu1 %v11301_v35, %s9255_s29  ;;  %4312 = vrot.lane.b32.xlu0 %v11303_v13, %s9255_s29 }
 0xbb0   :  { %4318 = vrot.lane.b32.xlu1 %v11319_v29, %s9255_s29  ;;  %4316 = vrot.lane.b32.xlu0 %v11321_v8, %s9255_s29 }
 0xbb4   :  { %4322 = vrot.lane.b32.xlu1 %v11331_v28, %s9255_s29  ;;  %4320 = vrot.lane.b32.xlu0 %v11333_v53, %s9255_s29 }
 0xbb8   :  { %4326 = vrot.lane.b32.xlu1 %v11351_v26, %s9255_s29  ;;  %4324 = vrot.lane.b32.xlu0 %v11353_v27, %s9255_s29 }
 0xbbc   :  { %5352 = vrot.lane.b32.xlu1 %v11303_v13, %s9258_s12  ;;  %5155 = vrot.lane.b32.xlu0 %v11303_v13, %s9256_s30 }
 0xbc0   :  { %4840 = vrot.lane.b32.xlu1 %v11303_v13, %s9259_s5  ;;  %4643 = vrot.lane.b32.xlu0 %v11303_v13, %s9257_s11 }
 0xbc4   :  { %4645 = vrot.lane.b32.xlu1 %v11301_v35, %s9257_s11  ;;  %5157 = vrot.lane.b32.xlu0 %v11301_v35, %s9256_s30 }
 0xbc8   :  { %4842 = vrot.lane.b32.xlu1 %v11301_v35, %s9259_s5  ;;  %5354 = vrot.lane.b32.xlu0 %v11301_v35, %s9258_s12 }
 0xbcc   :  { %4844 = vrot.lane.b32.xlu1 %v11321_v8, %s9259_s5  ;;  %5356 = vrot.lane.b32.xlu0 %v11321_v8, %s9258_s12 }
 0xbd0   :  { %4846 = vrot.lane.b32.xlu1 %v11319_v29, %s9259_s5  ;;  %5358 = vrot.lane.b32.xlu0 %v11319_v29, %s9258_s12 }
 0xbd4   :  { %4848 = vrot.lane.b32.xlu1 %v11333_v53, %s9259_s5  ;;  %5360 = vrot.lane.b32.xlu0 %v11333_v53, %s9258_s12 }
 0xbd8   :  { %4647 = vrot.lane.b32.xlu1 %v11321_v8, %s9257_s11  ;;  %5159 = vrot.lane.b32.xlu0 %v11321_v8, %s9256_s30 }
 0xbdc   :  { %5362 = vrot.lane.b32.xlu1 %v11331_v28, %s9258_s12  ;;  %5161 = vrot.lane.b32.xlu0 %v11319_v29, %s9256_s30 }
 0xbe0   :  { %4850 = vrot.lane.b32.xlu1 %v11331_v28, %s9259_s5  ;;  %4649 = vrot.lane.b32.xlu0 %v11319_v29, %s9257_s11 }
 0xbe2   :  { %v4329_v52 = vpop.permute.xlu1 %4328  ;;  %v4132_v57 = vpop.permute.xlu0 %4131 }
 0xbe3   :  { %8163 = vmatprep.mubr.msk.bf16.mxu1 %vm492_vm2, %v4132_v57  ;;  %8442 = vmatprep.subr.msk.bf16.mxu1 %vm492_vm2, %v4329_v52  ;;  %v4369_v12 = vsel %vm492_vm2, %v4329_v52, 0  ;;  %v6910_v52 = vld [vmem:[%s12868_s3 + $0x14] sm:$0xf] }
 0xbe4   :  { %4651 = vrot.lane.b32.xlu1 %v11333_v53, %s9257_s11  ;;  %5163 = vrot.lane.b32.xlu0 %v11333_v53, %s9256_s30 }
 0xbe6   :  { %v3817_v34 = vpop.permute.xlu1 %3816  ;;  %v4331_v0 = vpop.permute.xlu0 %4330 }
 0xbe7   :  { %8433 = vmatprep.subr.msk.bf16.mxu0 %vm492_vm2, %v3817_v34  ;;  %v3857_v3 = vsel %vm492_vm2, %v3817_v34, 0  ;;  %v4372_v37 = vsel %vm492_vm2, %v4331_v0, 0 }
 0xbe8   :  { %8130 = vmatpush3.bf16.xpose.msra.mxu0 %v3857_v3  ;;  %5366 = vrot.lane.b32.xlu1 %v11351_v26, %s9258_s12  ;;  %v6927_v3 = vld [vmem:[%s12868_s3 + $0x18] sm:$0xf] }
 0xbe9   :  { %5165 = vrot.lane.b32.xlu0 %v11331_v28, %s9256_s30 }
 0xbea   :  { %v4134_v55 = vpop.permute.xlu1 %4133 }
 0xbeb   :  { %8164 = vmatmul.mubr.msk.bf16.vlgmr.msra.gmra.mrb[128].mxu1 %vm492_vm2, %v4134_v55 }
 0xbec   :  { %8180 = vmatpush3.bf16.xpose.msra.mxu1 %v4369_v12  ;;  %5364 = vrot.lane.b32.xlu1 %v11353_v27, %s9258_s12 }
 0xbed   :  { %4653 = vrot.lane.b32.xlu0 %v11331_v28, %s9257_s11  ;;  %8443 = vmatprep.subr.msk.bf16.mxu1 %vm492_vm2, %v4331_v0 }
 0xbee   :  { %v3819_v18 = vpop.permute.xlu1 %3818 }
 0xbef   :  { %8434 = vmatprep.subr.msk.bf16.mxu0 %vm492_vm2, %v3819_v18  ;;  %v3860_v54 = vsel %vm492_vm2, %v3819_v18, 0  ;;  %v4684_v18 = vsel %vm831_vm1, %v6910_v52, 0 }
 0xbf0   :  { %8132 = vmatpush3.bf16.xpose.msra.mxu0 %v3860_v54  ;;  %4852 = vrot.lane.b32.xlu1 %v11353_v27, %s9259_s5  ;;  %v5196_v54 = vsel %vm831_vm1, %v6927_v3, 0 }
 0xbf1   :  { %5169 = vrot.lane.b32.xlu0 %v11351_v26, %s9256_s30 }
 0xbf2   :  { %v3821_v42 = vpop.permute.xlu1 %3820  ;;  %v4333_v49 = vpop.permute.xlu0 %4332 }
 0xbf3   :  { %8435 = vmatprep.subr.msk.bf16.mxu0 %vm492_vm2, %v3821_v42  ;;  %v3863_v24 = vsel %vm492_vm2, %v3821_v42, 0  ;;  %v4375_v36 = vsel %vm492_vm2, %v4333_v49, 0 }
 0xbf4   :  { %8182 = vmatpush3.bf16.xpose.msra.mxu1 %v4372_v37  ;;  %4655 = vrot.lane.b32.xlu1 %v11353_v27, %s9257_s11 }
 0xbf5   :  { %5167 = vrot.lane.b32.xlu0 %v11353_v27, %s9256_s30  ;;  %8444 = vmatprep.subr.msk.bf16.mxu1 %vm492_vm2, %v4333_v49 }
 0xbf6   :  { %v3823_v6 = vpop.permute.xlu1 %3822  ;;  %v4335_v31 = vpop.permute.xlu0 %4334 }
 0xbf7   :  { %v3866_v41 = vsel %vm492_vm2, %v3823_v6, 0  ;;  %v4378_v61 = vsel %vm492_vm2, %v4335_v31, 0 }
 0xbf8   :  { %8134 = vmatpush3.bf16.xpose.msra.mxu0 %v3863_v24  ;;  %4854 = vrot.lane.b32.xlu1 %v11351_v26, %s9259_s5 }
 0xbf9   :  { %4657 = vrot.lane.b32.xlu0 %v11351_v26, %s9257_s11  ;;  %8436 = vmatprep.subr.msk.bf16.mxu0 %vm492_vm2, %v3823_v6 }
 0xbfc   :  { %8184 = vmatpush3.bf16.xpose.msra.mxu1 %v4375_v36  ;;  %4824 = vrot.lane.b32.xlu1 %v11303_v13, %s9261_s14 }
 0xbfd   :  { %5336 = vrot.lane.b32.xlu0 %v11303_v13, %s9260_s13  ;;  %8445 = vmatprep.subr.msk.bf16.mxu1 %vm492_vm2, %v4335_v31 }
 0xc00   :  { %8136 = vmatpush3.bf16.xpose.msra.mxu0 %v3866_v41  ;;  %4826 = vrot.lane.b32.xlu1 %v11301_v35, %s9261_s14 }
 0xc01   :  { %5338 = vrot.lane.b32.xlu0 %v11301_v35, %s9260_s13 }
 0xc02   :  { %v3825_v22 = vpop.permute.xlu1 %3824  ;;  %v4337_v48 = vpop.permute.xlu0 %4336 }
 0xc03   :  { %8437 = vmatprep.subr.msk.bf16.mxu0 %vm492_vm2, %v3825_v22  ;;  %v3869_v40 = vsel %vm492_vm2, %v3825_v22, 0  ;;  %v4381_v32 = vsel %vm492_vm2, %v4337_v48, 0 }
 0xc04   :  { %8186 = vmatpush3.bf16.xpose.msra.mxu1 %v4378_v61  ;;  %4828 = vrot.lane.b32.xlu1 %v11321_v8, %s9261_s14 }
 0xc05   :  { %5340 = vrot.lane.b32.xlu0 %v11321_v8, %s9260_s13  ;;  %8446 = vmatprep.subr.msk.bf16.mxu1 %vm492_vm2, %v4337_v48 }
 0xc06   :  { %v4138_v14 = vpop.permute.xlu1 %4137  ;;  %v4136_v51 = vpop.permute.xlu0 %4135 }
 0xc07   :  { %8167 = vmatprep.mubr.msk.bf16.mxu1 %vm492_vm2, %v4136_v51 }
 0xc08   :  { %8138 = vmatpush3.bf16.xpose.msra.mxu0 %v3869_v40  ;;  %4830 = vrot.lane.b32.xlu1 %v11319_v29, %s9261_s14 }
 0xc09   :  { %5342 = vrot.lane.b32.xlu0 %v11319_v29, %s9260_s13  ;;  %8168 = vmatmul.mubr.msk.bf16.gmra.mrb[132].mxu1 %vm492_vm2, %v4138_v14 }
 0xc0a   :  { %v3827_v23 = vpop.permute.xlu1 %3826  ;;  %v4339_v62 = vpop.permute.xlu0 %4338 }
 0xc0b   :  { %8438 = vmatprep.subr.msk.bf16.mxu0 %vm492_vm2, %v3827_v23  ;;  %v3872_v47 = vsel %vm492_vm2, %v3827_v23, 0  ;;  %v4384_v5 = vsel %vm492_vm2, %v4339_v62, 0 }
 0xc0c   :  { %8188 = vmatpush3.bf16.xpose.msra.mxu1 %v4381_v32  ;;  %4832 = vrot.lane.b32.xlu1 %v11333_v53, %s9261_s14 }
 0xc0d   :  { %5344 = vrot.lane.b32.xlu0 %v11333_v53, %s9260_s13  ;;  %8447 = vmatprep.subr.msk.bf16.mxu1 %vm492_vm2, %v4339_v62 }
 0xc0e   :  { %v4142_v30 = vpop.permute.xlu1 %4141  ;;  %v4140_v16 = vpop.permute.xlu0 %4139 }
 0xc0f   :  { %8171 = vmatprep.mubr.msk.bf16.mxu1 %vm492_vm2, %v4140_v16 }
 0xc10   :  { %8140 = vmatpush3.bf16.xpose.msra.mxu0 %v3872_v47  ;;  %4834 = vrot.lane.b32.xlu1 %v11331_v28, %s9261_s14 }
 0xc11   :  { %5346 = vrot.lane.b32.xlu0 %v11331_v28, %s9260_s13  ;;  %8172 = vmatmul.mubr.msk.bf16.gmra.mrb[136].mxu1 %vm492_vm2, %v4142_v30 }
 0xc12   :  { %v3829_v4 = vpop.permute.xlu1 %3828  ;;  %v4341_v17 = vpop.permute.xlu0 %4340 }
 0xc13   :  { %8439 = vmatprep.subr.msk.bf16.mxu0 %vm492_vm2, %v3829_v4  ;;  %v3875_v2 = vsel %vm492_vm2, %v3829_v4, 0  ;;  %v4387_v25 = vsel %vm492_vm2, %v4341_v17, 0 }
 0xc14   :  { %8190 = vmatpush3.bf16.xpose.msra.mxu1 %v4384_v5  ;;  %4836 = vrot.lane.b32.xlu1 %v11353_v27, %s9261_s14 }
 0xc15   :  { %5348 = vrot.lane.b32.xlu0 %v11353_v27, %s9260_s13  ;;  %8448 = vmatprep.subr.msk.bf16.mxu1 %vm492_vm2, %v4341_v17 }
 0xc16   :  { %v4146_v56 = vpop.permute.xlu1 %4145  ;;  %v4144_v11 = vpop.permute.xlu0 %4143 }
 0xc17   :  { %8175 = vmatprep.mubr.msk.bf16.mxu1 %vm492_vm2, %v4144_v11 }
 0xc18   :  { %4838 = vrot.lane.b32.xlu1 %v11351_v26, %s9261_s14  ;;  %8142 = vmatpush3.bf16.xpose.msra.mxu0 %v3875_v2 }
 0xc19   :  { %5350 = vrot.lane.b32.xlu0 %v11351_v26, %s9260_s13  ;;  %8176 = vmatmul.mubr.msk.bf16.gmra.mrb[140].mxu1 %vm492_vm2, %v4146_v56 }
 0xc1a   :  { %v3831_v20 = vpop.permute.xlu1 %3830  ;;  %v4343_v38 = vpop.permute.xlu0 %4342 }
 0xc1b   :  { %8440 = vmatprep.subr.msk.bf16.mxu0 %vm492_vm2, %v3831_v20  ;;  %v3878_v57 = vsel %vm492_vm2, %v3831_v20, 0  ;;  %v4390_v55 = vsel %vm492_vm2, %v4343_v38, 0 }
 0xc1c   :  { %8192 = vmatpush3.bf16.xpose.msra.mxu1 %v4387_v25  ;;  %5669 = vrot.lane.b32.xlu1 %v11301_v35, %s9262_s15 }
 0xc1d   :  { %5667 = vrot.lane.b32.xlu0 %v11303_v13, %s9262_s15  ;;  %8449 = vmatprep.subr.msk.bf16.mxu1 %vm492_vm2, %v4343_v38 }
 0xc1e   :  { %v4315_v60 = vpop.permute.xlu1 %4314  ;;  %v4313_v7 = vpop.permute.xlu0 %4312 }
 0xc1f   :  { %8195 = vmatprep.mubr.msk.bf16.mxu1 %vm492_vm2, %v4313_v7 }
 0xc20   :  { %5673 = vrot.lane.b32.xlu1 %v11319_v29, %s9262_s15  ;;  %8144 = vmatpush3.bf16.xpose.msra.mxu0 %v3878_v57 }
 0xc21   :  { %5671 = vrot.lane.b32.xlu0 %v11321_v8, %s9262_s15  ;;  %8450 = vmatprep.subr.msk.bf16.mxu0 %vm831_vm1, %v6910_v52 }
 0xc22   :  { %v4319_v13 = vpop.permute.xlu1 %4318  ;;  %v4317_v34 = vpop.permute.xlu0 %4316 }
 0xc24   :  { %8194 = vmatpush3.bf16.xpose.msra.mxu1 %v4390_v55  ;;  %5677 = vrot.lane.b32.xlu1 %v11331_v28, %s9262_s15 }
 0xc25   :  { %5675 = vrot.lane.b32.xlu0 %v11333_v53, %s9262_s15  ;;  %8459 = vmatprep.subr.msk.bf16.mxu1 %vm831_vm1, %v6927_v3 }
 0xc26   :  { %v4323_v12 = vpop.permute.xlu1 %4322  ;;  %v4321_v0 = vpop.permute.xlu0 %4320 }
 0xc27   :  { %8146 = vmatmul.mubr.msk.bf16.vlgmr.msra.gmra.mrb[128].mxu0 %vm492_vm2, %v11301_v35 }
 0xc28   :  { %5681 = vrot.lane.b32.xlu1 %v11351_v26, %s9262_s15  ;;  %8149 = vmatprep.mubr.msk.bf16.mxu0 %vm492_vm2, %v11321_v8 }
 0xc29   :  { %5679 = vrot.lane.b32.xlu0 %v11353_v27, %s9262_s15  ;;  %8212 = vmatpush3.bf16.msra.mxu0 %v4684_v18 }
 0xc2a   :  { %v4327_v42 = vpop.permute.xlu1 %4326  ;;  %v4325_v49 = vpop.permute.xlu0 %4324 }
 0xc2b   :  { %8196 = vmatmul.mubr.msk.bf16.vlgmr.msra.gmra.mrb[144].mxu1 %vm492_vm2, %v4315_v60 }
 0xc2c   :  { %8199 = vmatprep.mubr.msk.bf16.mxu1 %vm492_vm2, %v4317_v34  ;;  %8262 = vmatpush3.bf16.msra.mxu1 %v5196_v54 }
 0xc2e   :  { %v5353_v35 = vpop.permute.xlu1 %5352  ;;  %v5156_v37 = vpop.permute.xlu0 %5155 }
 0xc2f   :  { %8150 = vmatmul.mubr.msk.bf16.gmra.mrb[132].mxu0 %vm492_vm2, %v11319_v29  ;;  %8460 = vmatprep.subr.msk.bf16.mxu1 %vm492_vm2, %v5353_v35 }
 0xc30   :  { %8153 = vmatprep.mubr.msk.bf16.mxu0 %vm492_vm2, %v11333_v53 }
 0xc32   :  { %v4841_v8 = vpop.permute.xlu1 %4840  ;;  %v4644_v24 = vpop.permute.xlu0 %4643 }
 0xc33   :  { %8200 = vmatmul.mubr.msk.bf16.gmra.mrb[148].mxu1 %vm492_vm2, %v4319_v13  ;;  %8451 = vmatprep.subr.msk.bf16.mxu0 %vm492_vm2, %v4841_v8  ;;  %v4881_v61 = vsel %vm492_vm2, %v4841_v8, 0 }
 0xc34   :  { %8203 = vmatprep.mubr.msk.bf16.mxu1 %vm492_vm2, %v4321_v0 }
 0xc36   :  { %v4646_v6 = vpop.permute.xlu1 %4645  ;;  %v5158_v36 = vpop.permute.xlu0 %5157 }
 0xc37   :  { %8154 = vmatmul.mubr.msk.bf16.gmra.mrb[136].mxu0 %vm492_vm2, %v11331_v28 }
 0xc38   :  { %8157 = vmatprep.mubr.msk.bf16.mxu0 %vm492_vm2, %v11353_v27 }
 0xc3a   :  { %v4843_v29 = vpop.permute.xlu1 %4842  ;;  %v5355_v31 = vpop.permute.xlu0 %5354 }
 0xc3b   :  { %8204 = vmatmul.mubr.msk.bf16.gmra.mrb[152].mxu1 %vm492_vm2, %v4323_v12  ;;  %v4884_v62 = vsel %vm492_vm2, %v4843_v29, 0  ;;  %v5396_v16 = vsel %vm492_vm2, %v5355_v31, 0 }
 0xc3c   :  { %8207 = vmatprep.mubr.msk.bf16.mxu1 %vm492_vm2, %v4325_v49 }
 0xc3e   :  { %v4845_v53 = vpop.permute.xlu1 %4844  ;;  %v5357_v41 = vpop.permute.xlu0 %5356 }
 0xc3f   :  { %8158 = vmatmul.mubr.msk.bf16.gmra.mrb[140].mxu0 %vm492_vm2, %v11351_v26  ;;  %v5393_v26 = vsel %vm492_vm2, %v5353_v35, 0  ;;  %v4887_v17 = vsel %vm492_vm2, %v4845_v53, 0  ;;  %v5399_v56 = vsel %vm492_vm2, %v5357_v41, 0 }
 0xc40   :  { %8213 = vmatprep.mubr.msk.bf16.mxu0 %vm492_vm2, %v4644_v24  ;;  %v6944_v24 = vld [vmem:[%s12868_s3 + $0x1c] sm:$0xf] }
 0xc42   :  { %v4847_v22 = vpop.permute.xlu1 %4846  ;;  %v5359_v48 = vpop.permute.xlu0 %5358 }
 0xc43   :  { %8208 = vmatmul.mubr.msk.bf16.gmra.mrb[156].mxu1 %vm492_vm2, %v4327_v42  ;;  %v4890_v38 = vsel %vm492_vm2, %v4847_v22, 0  ;;  %v5402_v60 = vsel %vm492_vm2, %v5359_v48, 0 }
 0xc44   :  { %8263 = vmatprep.mubr.msk.bf16.mxu1 %vm492_vm2, %v5156_v37 }
 0xc46   :  { %v4849_v28 = vpop.permute.xlu1 %4848  ;;  %v5361_v27 = vpop.permute.xlu0 %5360 }
 0xc47   :  { %8214 = vmatmul.mubr.msk.bf16.vlgmr.msra.gmra.mrb[144].mxu0 %vm492_vm2, %v4646_v6  ;;  %v4893_v13 = vsel %vm492_vm2, %v4849_v28, 0  ;;  %v5405_v3 = vsel %vm492_vm2, %v5361_v27, 0 }
 0xc48   :  { %8230 = vmatpush3.bf16.xpose.msra.mxu0 %v4881_v61 }
 0xc49   :  { %8452 = vmatprep.subr.msk.bf16.mxu0 %vm492_vm2, %v4843_v29 }
 0xc4a   :  { %v4648_v14 = vpop.permute.xlu1 %4647  ;;  %v5160_v51 = vpop.permute.xlu0 %5159 }
 0xc4b   :  { %8264 = vmatmul.mubr.msk.bf16.vlgmr.msra.gmra.mrb[160].mxu1 %vm492_vm2, %v5158_v36  ;;  %8217 = vmatprep.mubr.msk.bf16.mxu0 %vm492_vm2, %v4648_v14 }
 0xc4c   :  { %8280 = vmatpush3.bf16.xpose.msra.mxu1 %v5393_v26  ;;  %8267 = vmatprep.mubr.msk.bf16.mxu1 %vm492_vm2, %v5160_v51 }
 0xc4d   :  { %8461 = vmatprep.subr.msk.bf16.mxu1 %vm492_vm2, %v5355_v31 }
 0xc4e   :  { %v5363_v40 = vpop.permute.xlu1 %5362  ;;  %v5162_v23 = vpop.permute.xlu0 %5161 }
 0xc4f   :  { %v5408_v54 = vsel %vm492_vm2, %v5363_v40, 0 }
 0xc50   :  { %8232 = vmatpush3.bf16.xpose.msra.mxu0 %v4884_v62 }
 0xc51   :  { %8453 = vmatprep.subr.msk.bf16.mxu0 %vm492_vm2, %v4845_v53 }
 0xc52   :  { %v4851_v32 = vpop.permute.xlu1 %4850  ;;  %v4650_v30 = vpop.permute.xlu0 %4649 }
 0xc53   :  { %8268 = vmatmul.mubr.msk.bf16.gmra.mrb[164].mxu1 %vm492_vm2, %v5162_v23  ;;  %8218 = vmatmul.mubr.msk.bf16.gmra.mrb[148].mxu0 %vm492_vm2, %v4650_v30  ;;  %v4896_v18 = vsel %vm492_vm2, %v4851_v32, 0 }
 0xc54   :  { %8282 = vmatpush3.bf16.xpose.msra.mxu1 %v5396_v16 }
 0xc55   :  { %8462 = vmatprep.subr.msk.bf16.mxu1 %vm492_vm2, %v5357_v41  ;;  %v5708_v41 = vsel %vm831_vm1, %v6944_v24, 0 }
 0xc56   :  { %v4652_v47 = vpop.permute.xlu1 %4651  ;;  %v5164_v4 = vpop.permute.xlu0 %5163 }
 0xc57   :  { %8221 = vmatprep.mubr.msk.bf16.mxu0 %vm492_vm2, %v4652_v47  ;;  %8271 = vmatprep.mubr.msk.bf16.mxu1 %vm492_vm2, %v5164_v4 }
 0xc58   :  { %8234 = vmatpush3.bf16.xpose.msra.mxu0 %v4887_v17 }
 0xc59   :  { %8454 = vmatprep.subr.msk.bf16.mxu0 %vm492_vm2, %v4847_v22 }
 0xc5a   :  { %v5367_v5 = vpop.permute.xlu1 %5366 }
 0xc5b   :  { %v5166_v11 = vpop.permute.xlu0 %5165  ;;  %v5414_v31 = vsel %vm492_vm2, %v5367_v5, 0 }
 0xc5c   :  { %8284 = vmatpush3.bf16.xpose.msra.mxu1 %v5399_v56 }
 0xc5d   :  { %8272 = vmatmul.mubr.msk.bf16.gmra.mrb[168].mxu1 %vm492_vm2, %v5166_v11  ;;  %8463 = vmatprep.subr.msk.bf16.mxu1 %vm492_vm2, %v5359_v48 }
 0xc5e   :  { %v5365_v2 = vpop.permute.xlu1 %5364 }
 0xc5f   :  { %v4654_v20 = vpop.permute.xlu0 %4653  ;;  %v5411_v37 = vsel %vm492_vm2, %v5365_v2, 0 }
 0xc60   :  { %8222 = vmatmul.mubr.msk.bf16.gmra.mrb[152].mxu0 %vm492_vm2, %v4654_v20 }
 0xc61   :  { %8236 = vmatpush3.bf16.xpose.msra.mxu0 %v4890_v38 }
 0xc62   :  { %8455 = vmatprep.subr.msk.bf16.mxu0 %vm492_vm2, %v4849_v28  ;;  %v4853_v25 = vpop.permute.xlu1 %4852 }
 0xc63   :  { %v5170_v7 = vpop.permute.xlu0 %5169  ;;  %v4899_v49 = vsel %vm492_vm2, %v4853_v25, 0 }
 0xc64   :  { %8286 = vmatpush3.bf16.xpose.msra.mxu1 %v5402_v60 }
 0xc65   :  { %8464 = vmatprep.subr.msk.bf16.mxu1 %vm492_vm2, %v5361_v27 }
 0xc66   :  { %v4656_v52 = vpop.permute.xlu1 %4655 }
 0xc67   :  { %v5168_v57 = vpop.permute.xlu0 %5167  ;;  %8225 = vmatprep.mubr.msk.bf16.mxu0 %vm492_vm2, %v4656_v52 }
 0xc68   :  { %8275 = vmatprep.mubr.msk.bf16.mxu1 %vm492_vm2, %v5168_v57 }
 0xc69   :  { %8238 = vmatpush3.bf16.xpose.msra.mxu0 %v4893_v13  ;;  %8276 = vmatmul.mubr.msk.bf16.gmra.mrb[172].mxu1 %vm492_vm2, %v5170_v7 }
 0xc6a   :  { %8456 = vmatprep.subr.msk.bf16.mxu0 %vm492_vm2, %v4851_v32  ;;  %v4855_v34 = vpop.permute.xlu1 %4854 }
 0xc6b   :  { %v4658_v55 = vpop.permute.xlu0 %4657  ;;  %v4902_v36 = vsel %vm492_vm2, %v4855_v34, 0 }
 0xc6c   :  { %8288 = vmatpush3.bf16.xpose.msra.mxu1 %v5405_v3  ;;  %8226 = vmatmul.mubr.msk.bf16.gmra.mrb[156].mxu0 %vm492_vm2, %v4658_v55 }
 0xc6d   :  { %8465 = vmatprep.subr.msk.bf16.mxu1 %vm492_vm2, %v5363_v40 }
 0xc6e   :  { %v4825_v12 = vpop.permute.xlu1 %4824 }
 0xc6f   :  { %v5337_v0 = vpop.permute.xlu0 %5336  ;;  %8245 = vmatprep.mubr.msk.bf16.mxu0 %vm492_vm2, %v4825_v12 }
 0xc70   :  { %8295 = vmatprep.mubr.msk.bf16.mxu1 %vm492_vm2, %v5337_v0 }
 0xc71   :  { %8240 = vmatpush3.bf16.xpose.msra.mxu0 %v4896_v18 }
 0xc72   :  { %8457 = vmatprep.subr.msk.bf16.mxu0 %vm492_vm2, %v4853_v25  ;;  %v4827_v35 = vpop.permute.xlu1 %4826 }
 0xc73   :  { %v5339_v42 = vpop.permute.xlu0 %5338 }
 0xc74   :  { %8290 = vmatpush3.bf16.xpose.msra.mxu1 %v5408_v54 }
 0xc75   :  { %8466 = vmatprep.subr.msk.bf16.mxu1 %vm492_vm2, %v5365_v2 }
 0xc76   :  { %v4829_v6 = vpop.permute.xlu1 %4828 }
 0xc77   :  { %v5341_v8 = vpop.permute.xlu0 %5340 }
 0xc79   :  { %8242 = vmatpush3.bf16.xpose.msra.mxu0 %v4899_v49 }
 0xc7a   :  { %8458 = vmatprep.subr.msk.bf16.mxu0 %vm492_vm2, %v4855_v34  ;;  %v4831_v53 = vpop.permute.xlu1 %4830 }
 0xc7b   :  { %v5343_v29 = vpop.permute.xlu0 %5342 }
 0xc7c   :  { %8292 = vmatpush3.bf16.xpose.msra.mxu1 %v5411_v37 }
 0xc7d   :  { %8467 = vmatprep.subr.msk.bf16.mxu1 %vm492_vm2, %v5367_v5 }
 0xc7e   :  { %v4833_v48 = vpop.permute.xlu1 %4832 }
 0xc7f   :  { %v5345_v22 = vpop.permute.xlu0 %5344 }
 0xc81   :  { %8244 = vmatpush3.bf16.xpose.msra.mxu0 %v4902_v36 }
 0xc82   :  { %8468 = vmatprep.subr.msk.bf16.mxu0 %vm831_vm1, %v6944_v24  ;;  %v4835_v27 = vpop.permute.xlu1 %4834 }
 0xc83   :  { %v5347_v28 = vpop.permute.xlu0 %5346 }
 0xc84   :  { %8294 = vmatpush3.bf16.xpose.msra.mxu1 %v5414_v31 }
 0xc86   :  { %v4837_v14 = vpop.permute.xlu1 %4836 }
 0xc87   :  { %v5349_v61 = vpop.permute.xlu0 %5348 }
 0xc88   :  { %8246 = vmatmul.mubr.msk.bf16.vlgmr.msra.gmra.mrb[160].mxu0 %vm492_vm2, %v4827_v35 }
 0xc89   :  { %8249 = vmatprep.mubr.msk.bf16.mxu0 %vm492_vm2, %v4829_v6  ;;  %8312 = vmatpush3.bf16.msra.mxu0 %v5708_v41 }
 0xc8a   :  { %v4839_v26 = vpop.permute.xlu1 %4838 }
 0xc8b   :  { %8296 = vmatmul.mubr.msk.bf16.vlgmr.msra.gmra.mrb[176].mxu1 %vm492_vm2, %v5339_v42  ;;  %v5351_v51 = vpop.permute.xlu0 %5350 }
 0xc8c   :  { %8299 = vmatprep.mubr.msk.bf16.mxu1 %vm492_vm2, %v5341_v8  ;;  %v7288_v8 = vld [vmem:[#allocation2 + $0x148] sm:$0xff]  }
 0xc8d   :  { %v7163_v36 = vunpack.c.l.bf16 %v7288_v8  ;;  %v7164_v41 = vunpack.c.h.bf16 %v7288_v8 }
 0xc8e   :  { %v5670_v23 = vpop.permute.xlu1 %5669 }
 0xc8f   :  { %v5668_v40 = vpop.permute.xlu0 %5667 }
 0xc90   :  { %8250 = vmatmul.mubr.msk.bf16.gmra.mrb[164].mxu0 %vm492_vm2, %v4831_v53 }
 0xc91   :  { %8253 = vmatprep.mubr.msk.bf16.mxu0 %vm492_vm2, %v4833_v48 }
 0xc92   :  { %v5674_v32 = vpop.permute.xlu1 %5673 }
 0xc93   :  { %8300 = vmatmul.mubr.msk.bf16.gmra.mrb[180].mxu1 %vm492_vm2, %v5343_v29  ;;  %v5672_v62 = vpop.permute.xlu0 %5671  ;;  %v7281_v29 = vld [vmem:[#allocation2 + $0x108] sm:$0xff]  }
 0xc94   :  { %8303 = vmatprep.mubr.msk.bf16.mxu1 %vm492_vm2, %v5345_v22  ;;  %v7131_v48 = vunpack.c.l.bf16 %v7281_v29 }
 0xc96   :  { %v5678_v16 = vpop.permute.xlu1 %5677 }
 0xc97   :  { %v5676_v30 = vpop.permute.xlu0 %5675 }
 0xc98   :  { %8254 = vmatmul.mubr.msk.bf16.gmra.mrb[168].mxu0 %vm492_vm2, %v4835_v27 }
 0xc99   :  { %8257 = vmatprep.mubr.msk.bf16.mxu0 %vm492_vm2, %v4837_v14 }
 0xc9a   :  { %v5682_v17 = vpop.permute.xlu1 %5681 }
 0xc9b   :  { %8304 = vmatmul.mubr.msk.bf16.gmra.mrb[184].mxu1 %vm492_vm2, %v5347_v28  ;;  %v5680_v47 = vpop.permute.xlu0 %5679 }
 0xc9c   :  { %8307 = vmatprep.mubr.msk.bf16.mxu1 %vm492_vm2, %v5349_v61  ;;  %v7158_v61 = vld [vmem:[#allocation2 + $0x140] sm:$0xff]  }
 0xc9d   :  { %v7160_v8 = vunpack.c.h.bf16 %v7158_v61 }
 0xca0   :  { %8258 = vmatmul.mubr.msk.bf16.gmra.mrb[172].mxu0 %vm492_vm2, %v4839_v26 }
 0xca1   :  { %8313 = vmatprep.mubr.msk.bf16.mxu0 %vm492_vm2, %v5668_v40 }
 0xca3   :  { %8308 = vmatmul.mubr.msk.bf16.gmra.mrb[188].mxu1 %vm492_vm2, %v5351_v51  ;;  %v7132_v51 = vunpack.c.h.bf16 %v7281_v29 }
 0xca8   :  { %8314 = vmatmul.mubr.msk.bf16.vlgmr.msra.gmra.mrb[176].mxu0 %vm492_vm2, %v5670_v23 }
 0xca9   :  { %8317 = vmatprep.mubr.msk.bf16.mxu0 %vm492_vm2, %v5672_v62 }
 0xcb0   :  { %8318 = vmatmul.mubr.msk.bf16.gmra.mrb[180].mxu0 %vm492_vm2, %v5674_v32  ;;  %v7159_v32 = vunpack.c.l.bf16 %v7158_v61 }
 0xcb1   :  { %8321 = vmatprep.mubr.msk.bf16.mxu0 %vm492_vm2, %v5676_v30 }
 0xcb8   :  { %8322 = vmatmul.mubr.msk.bf16.gmra.mrb[184].mxu0 %vm492_vm2, %v5678_v16  ;;  %v7126_v16 = vld [vmem:[#allocation2 + $0x100] sm:$0xff]  }
 0xcb9   :  { %8325 = vmatprep.mubr.msk.bf16.mxu0 %vm492_vm2, %v5680_v47  ;;  %v7128_v55 = vunpack.c.h.bf16 %v7126_v16 }
 0xcbe   :  { %v11643_v4 = vpop.f32.mrb[128].mxu1 }
 0xcbf   :  { %v11645_v5 = vpop.f32.mrb[129].mxu1 }
 0xcc0   :  { %8326 = vmatmul.mubr.msk.bf16.gmra.mrb[188].mxu0 %vm492_vm2, %v5682_v17  ;;  %v11648_v56 = vpop.f32.mrb[130].mxu1 }
 0xcc1   :  { %v11652_v2 = vpop.f32.mrb[131].mxu1 }
 0xcdc   :  { %v11656_v38 = vpop.f32.mrb[132].mxu1 }
 0xcdd   :  { %v11658_v25 = vpop.f32.mrb[133].mxu1 }
 0xcde   :  { %v11660_v60 = vpop.f32.mrb[134].mxu1 }
 0xcdf   :  { %v11664_v52 = vpop.f32.mrb[135].mxu1 }
 0xce4   :  { %v11668_v13 = vpop.f32.mrb[136].mxu1 }
 0xce5   :  { %v11670_v34 = vpop.f32.mrb[137].mxu1 }
 0xce6   :  { %v11672_v3 = vpop.f32.mrb[138].mxu1 }
 0xce7   :  { %v11676_v12 = vpop.f32.mrb[139].mxu1 }
 0xcec   :  { %v11680_v18 = vpop.f32.mrb[140].mxu1 }
 0xced   :  { %v11682_v54 = vpop.f32.mrb[141].mxu1 }
 0xcee   :  { %v11684_v42 = vpop.f32.mrb[142].mxu1 }
 0xcef   :  { %v11688_v35 = vpop.f32.mrb[143].mxu1 }
 0xcfa   :  { %v8147_v24 = vpop.f32.mrb[128].mxu0 }
 0xcfb   :  { %v3914_v6 = vpop.f32.mrb[129].mxu0  ;;  %v11697_v62 = vadd.f32 %v8147_v24, %v7131_v48  ;;  %v7290_v48 = vld [vmem:[#allocation2 + $0x158] sm:$0xff]  }
 0xcfc   :  { %v8148_v31 = vpop.f32.mrb[130].mxu0  ;;  %v7172_v37 = vunpack.c.h.bf16 %v7290_v48 }
 0xcfd   :  { %v3917_v53 = vpop.f32.mrb[131].mxu0  ;;  %v11702_v17 = vadd.f32 %v8148_v31, %v7132_v51 }
 0xcfe   :  { %v8197_v22 = vpop.f32.mrb[144].mxu1  ;;  %v11725_v11 = vadd.f32 %v7128_v55, %v3917_v53  ;;  %v7282_v53 = vld [vmem:[#allocation2 + $0x110] sm:$0xff]  }
 0xcff   :  { %v11692_v28 = vadd.f32 %v8197_v22, %v7163_v36  ;;  %v4426_v27 = vpop.f32.mrb[145].mxu1  ;;  %v7136_v39 = vunpack.c.h.bf16 %v7282_v53  ;;  %v7135_v63 = vunpack.c.l.bf16 %v7282_v53 }
 0xd00   :  { %v8198_v14 = vpop.f32.mrb[146].mxu1  ;;  %v11705_v22 = vadd.f32 %v7159_v32, %v4426_v27  ;;  %v7283_v32 = vld [vmem:[#allocation2 + $0x118] sm:$0xff]  }
 0xd01   :  { %v11694_v26 = vadd.f32 %v8198_v14, %v7164_v41  ;;  %4493 = vmax.xlane.f32.xlu0 %v11692_v28  ;;  %v4429_v40 = vpop.f32.mrb[147].mxu1  ;;  %v7127_v41 = vunpack.c.l.bf16 %v7126_v16  ;;  %v7140_v7 = vunpack.c.h.bf16 %v7283_v32  ;;  %v7139_v58 = vunpack.c.l.bf16 %v7283_v32 }
 0xd02   :  { %v8151_v23 = vpop.f32.mrb[132].mxu0  ;;  %v11708_v49 = vadd.f32 %v7160_v8, %v4429_v40 }
 0xd03   :  { %4495 = vmax.xlane.f32.xlu1 %v11694_v26  ;;  %v11700_v30 = vpop.f32.mrb[133].mxu0  ;;  %v11713_v61 = vadd.f32 %v7127_v41, %v3914_v6  ;;  %v7171_v6 = vunpack.c.l.bf16 %v7290_v48  ;;  %v7289_v41 = vld [vmem:[#allocation2 + $0x150] sm:$0xff]   ;;  %v11749_v19 = vadd.f32 %v8151_v23, %v7139_v58  ;;  %v7285_v23 = vld [vmem:[#allocation2 + $0x128] sm:$0xff]  }
 0xd04   :  { %v8152_v47 = vpop.f32.mrb[134].mxu0  ;;  %v7168_v1 = vunpack.c.h.bf16 %v7289_v41  ;;  %v7148_v59 = vunpack.c.h.bf16 %v7285_v23 }
 0xd05   :  { %3981 = vmax.xlane.f32.xlu0 %v11697_v62  ;;  %v3933_v36 = vpop.f32.mrb[135].mxu0  ;;  %v11730_v44 = vadd.f32 %v8152_v47, %v7140_v7  ;;  %13139 = vst [vmem:[#allocation6_spill] sm:$0xff] %v11749_v19 }
 0xd06   :  { %v8201_v29 = vpop.f32.mrb[148].mxu1  ;;  %v11756_v50 = vadd.f32 %v7136_v39, %v3933_v36 }
 0xd07   :  { %3983 = vmax.xlane.f32.xlu1 %v11702_v17  ;;  %v4442_v24 = vpop.f32.mrb[149].mxu1  ;;  %v11735_v46 = vadd.f32 %v8201_v29, %v7171_v6  ;;  %v7167_v29 = vunpack.c.l.bf16 %v7289_v41  ;;  %v7292_v6 = vld [vmem:[#allocation2 + $0x168] sm:$0xff]  }
 0xd08   :  { %v8202_v14 = vpop.f32.mrb[150].mxu1  ;;  %13140 = vst [vmem:[#allocation9_spill] sm:$0xff] %v11756_v50  ;;  %v7179_v53 = vunpack.c.l.bf16 %v7292_v6 }
 0xd09   :  { %4489 = vmax.xlane.f32.xlu0 %v11705_v22  ;;  %v4445_v31 = vpop.f32.mrb[151].mxu1  ;;  %v11718_v57 = vadd.f32 %v8202_v14, %v7172_v37  ;;  %v11761_v15 = vadd.f32 %v7167_v29, %v4442_v24  ;;  %v7291_v29 = vld [vmem:[#allocation2 + $0x160] sm:$0xff]  }
 0xd0a   :  { %v11711_v51 = vpop.f32.mrb[136].mxu0  ;;  %v11742_v45 = vadd.f32 %v7168_v1, %v4445_v31  ;;  %v7180_v1 = vunpack.c.h.bf16 %v7292_v6 }
 0xd0b   :  { %4491 = vmax.xlane.f32.xlu1 %v11708_v49  ;;  %v11716_v27 = vpop.f32.mrb[137].mxu0 }
 0xd0c   :  { %v8156_v0 = vpop.f32.mrb[138].mxu0  ;;  %13138 = vst [vmem:[#allocation7_spill] sm:$0xff] %v11742_v45 }
 0xd0d   :  { %3977 = vmax.xlane.f32.xlu0 %v11713_v61  ;;  %v11721_v40 = vpop.f32.mrb[139].mxu0 }
 0xd0e   :  { %v11723_v8 = vpop.f32.mrb[152].mxu1 }
 0xd0f   :  { %4503 = vmax.xlane.f32.xlu1 %v11718_v57  ;;  %v11728_v16 = vpop.f32.mrb[153].mxu1  ;;  %v11782_v6 = vadd.f32 %v11723_v8, %v7179_v53 }
 0xd10   :  { %v8206_v20 = vpop.f32.mrb[154].mxu1 }
 0xd11   :  { %3979 = vmax.xlane.f32.xlu0 %v11725_v11  ;;  %v4461_v37 = vpop.f32.mrb[155].mxu1  ;;  %v11764_v9 = vadd.f32 %v8206_v20, %v7180_v1  ;;  %v7176_v20 = vunpack.c.h.bf16 %v7291_v29 }
 0xd12   :  { %v11733_v14 = vpop.f32.mrb[140].mxu0 }
 0xd13   :  { %3991 = vmax.xlane.f32.xlu1 %v11730_v44  ;;  %v11738_v55 = vpop.f32.mrb[141].mxu0 }
 0xd14   :  { %v11740_v48 = vpop.f32.mrb[142].mxu0 }
 0xd15   :  { %4501 = vmax.xlane.f32.xlu0 %v11735_v46  ;;  %v11745_v7 = vpop.f32.mrb[143].mxu0 }
 0xd16   :  { %v11747_v47 = vpop.f32.mrb[156].mxu1 }
 0xd17   :  { %4499 = vmax.xlane.f32.xlu1 %v11742_v45  ;;  %v11752_v32 = vpop.f32.mrb[157].mxu1  ;;  %v11768_v45 = vadd.f32 %v7135_v63, %v11700_v30  ;;  %v7147_v30 = vunpack.c.l.bf16 %v7285_v23  ;;  %v7175_v23 = vunpack.c.l.bf16 %v7291_v29 }
 0xd18   :  { %v11754_v21 = vpop.f32.mrb[158].mxu1 }
 0xd19   :  { %3989 = vmax.xlane.f32.xlu0 %v11749_v19  ;;  %v11759_v31 = vpop.f32.mrb[159].mxu1  ;;  %v11771_v19 = vadd.f32 %v8156_v0, %v7148_v59  ;;  %v11792_v0 = vadd.f32 %v11711_v51, %v7147_v30  ;;  %v11804_v30 = vadd.f32 %v7175_v23, %v11728_v16 }
 0xd1a   :  { %v8215_v33 = vpop.f32.mrb[144].mxu0 }
 0xd1b   :  { %3987 = vmax.xlane.f32.xlu1 %v11756_v50  ;;  %v4720_v58 = vpop.f32.mrb[145].mxu0 }
 0xd1c   :  { %v8216_v41 = vpop.f32.mrb[146].mxu0 }
 0xd1d   :  { %4497 = vmax.xlane.f32.xlu0 %v11761_v15  ;;  %v4784_v39 = vpack.c.bf16 %v8216_v41, %v8215_v33  ;;  %v4723_v36 = vpop.f32.mrb[147].mxu0 }
 0xd1e   :  { %v4783_v10 = vpack.c.bf16 %v4723_v36, %v4720_v58  ;;  %v8265_v43 = vpop.f32.mrb[160].mxu1  ;;  %v13141_v58 = vpack.c.bf16 %v11652_v2, %v11645_v5 }
 0xd1f   :  { %4511 = vmax.xlane.f32.xlu1 %v11764_v9  ;;  %v5232_v24 = vpop.f32.mrb[161].mxu1 }
 0xd20   :  { %v8266_v50 = vpop.f32.mrb[162].mxu1  ;;  %7683 = vmatprep.subr.bf16.mxu0 %v4783_v10  ;;  %v7284_v10 = vld [vmem:[#allocation2 + $0x120] sm:$0xff]  }
 0xd21   :  { %v11773_v1 = vpack.c.bf16 %v8266_v50, %v8265_v43  ;;  %3985 = vmax.xlane.f32.xlu0 %v11768_v45  ;;  %v5235_v33 = vpop.f32.mrb[163].mxu1  ;;  %7684 = vmatpush3.bf16.msra.mxu0 %v13141_v58  ;;  %v7144_v59 = vunpack.c.h.bf16 %v7284_v10  ;;  %v11785_v43 = vadd.f32 %v7176_v20, %v4461_v37  ;;  %v13142_v50 = vpack.c.bf16 %v11648_v56, %v11643_v4 }
 0xd22   :  { %v11779_v63 = vpack.c.bf16 %v5235_v33, %v5232_v24  ;;  %7685 = vmatprep.subr.bf16.mxu0 %v4784_v39  ;;  %v7294_v39 = vld [vmem:[#allocation2 + $0x178] sm:$0xff]   ;;  %v7143_v58 = vunpack.c.l.bf16 %v7284_v10 }
 0xd23   :  { %3999 = vmax.xlane.f32.xlu1 %v11771_v19  ;;  %v11796_v53 = vadd.f32 %v7144_v59, %v11721_v40  ;;  %v7188_v24 = vunpack.c.h.bf16 %v7294_v39  ;;  %v7187_v16 = vunpack.c.l.bf16 %v7294_v39 }
 0xd24   :  { %v11815_v10 = vadd.f32 %v7143_v58, %v11716_v27 }
 0xd25   :  { %4509 = vmax.xlane.f32.xlu0 %v11782_v6  ;;  %7686 = vmatpush3.bf16.msra.mxu0 %v13142_v50  ;;  %v7287_v50 = vld [vmem:[#allocation2 + $0x138] sm:$0xff]   ;;  %v11808_v59 = vadd.f32 %v11754_v21, %v7188_v24  ;;  %v11826_v27 = vadd.f32 %v11747_v47, %v7187_v16  ;;  %v7286_v24 = vld [vmem:[#allocation2 + $0x130] sm:$0xff]  }
 0xd26   :  { %v8269_v5 = vpop.f32.mrb[164].mxu1  ;;  %v8219_v2 = vpop.f32.mrb[148].mxu0  ;;  %v7156_v40 = vunpack.c.h.bf16 %v7287_v50  ;;  %v7151_v16 = vunpack.c.l.bf16 %v7286_v24 }
 0xd27   :  { %4507 = vmax.xlane.f32.xlu1 %v11785_v43  ;;  %v5248_v8 = vpop.f32.mrb[165].mxu1  ;;  %v4736_v41 = vpop.f32.mrb[149].mxu0  ;;  %13145 = vst [vmem:[#allocation12_spill] sm:$0xff] %v11808_v59  ;;  %13149 = vst [vmem:[#allocation14_spill] sm:$0xff] %v11826_v27 }
 0xd28   :  { %v8270_v36 = vpop.f32.mrb[166].mxu1  ;;  %v8220_v37 = vpop.f32.mrb[150].mxu0 }
 0xd29   :  { %v11798_v20 = vpack.c.bf16 %v8270_v36, %v8269_v5  ;;  %3997 = vmax.xlane.f32.xlu0 %v11792_v0  ;;  %v4786_v4 = vpack.c.bf16 %v8220_v37, %v8219_v2  ;;  %v5251_v56 = vpop.f32.mrb[167].mxu1  ;;  %v4739_v51 = vpop.f32.mrb[151].mxu0  ;;  %v13146_v5 = vpack.c.bf16 %v11664_v52, %v11658_v25  ;;  %v7293_v2 = vld [vmem:[#allocation2 + $0x170] sm:$0xff]   ;;  %v13148_v25 = vpack.c.bf16 %v11660_v60, %v11656_v38 }
 0xd2a   :  { %v11801_v33 = vpack.c.bf16 %v5251_v56, %v5248_v8  ;;  %v4785_v29 = vpack.c.bf16 %v4739_v51, %v4736_v41  ;;  %v11819_v8 = vadd.f32 %v11740_v48, %v7156_v40  ;;  %v7184_v21 = vunpack.c.h.bf16 %v7293_v2 }
 0xd2b   :  { %13143 = vst [vmem:[#allocation10_spill] sm:$0xff] %v11798_v20  ;;  %3995 = vmax.xlane.f32.xlu1 %v11796_v53  ;;  %v7155_v36 = vunpack.c.l.bf16 %v7287_v50  ;;  %v7152_v51 = vunpack.c.h.bf16 %v7286_v24  ;;  %v7183_v50 = vunpack.c.l.bf16 %v7293_v2 }
 0xd2c   :  { %13144 = vst [vmem:[#allocation11_spill] sm:$0xff] %v11801_v33  ;;  %7687 = vmatprep.subr.bf16.mxu0 %v4785_v29  ;;  %13147 = vst [vmem:[#allocation13_spill] sm:$0xff] %v11819_v8  ;;  %v11834_v29 = vadd.f32 %v7184_v21, %v11759_v31  ;;  %v13154_v31 = vpack.c.bf16 %v11676_v12, %v11670_v34  ;;  %v13156_v21 = vpack.c.bf16 %v11672_v3, %v11668_v13 }
 0xd2d   :  { %4505 = vmax.xlane.f32.xlu0 %v11804_v30  ;;  %7688 = vmatpush3.bf16.msra.mxu0 %v13146_v5  ;;  %v11838_v58 = vadd.f32 %v11733_v14, %v7155_v36  ;;  %v11842_v5 = vadd.f32 %v7152_v51, %v11745_v7  ;;  %v13160_v13 = vpack.c.bf16 %v11688_v35, %v11682_v54  ;;  %v7222_v54 = vld [vmem:[#allocation2 + $0x1c0] sm:$0xff]  }
 0xd2e   :  { %7689 = vmatprep.subr.bf16.mxu0 %v4786_v4  ;;  %13151 = vst [vmem:[#allocation22_spill] sm:$0xff] %v11834_v29  ;;  %v13161_v3 = vpack.c.bf16 %v11684_v42, %v11680_v18 }
 0xd2f   :  { %4519 = vmax.xlane.f32.xlu1 %v11808_v59  ;;  %13152 = vst [vmem:[#allocation23_spill] sm:$0xff] %v11838_v58  ;;  %13153 = vst [vmem:[#allocation21_spill] sm:$0xff] %v11842_v5 }
 0xd30   :  { %v8273_v23 = vpop.f32.mrb[168].mxu1 }
 0xd31   :  { %v5264_v41 = vpop.f32.mrb[169].mxu1  ;;  %3993 = vmax.xlane.f32.xlu0 %v11815_v10  ;;  %7690 = vmatpush3.bf16.msra.mxu0 %v13148_v25 }
 0xd32   :  { %v8274_v52 = vpop.f32.mrb[170].mxu1 }
 0xd33   :  { %v11828_v39 = vpack.c.bf16 %v8274_v52, %v8273_v23  ;;  %v5267_v37 = vpop.f32.mrb[171].mxu1  ;;  %4007 = vmax.xlane.f32.xlu1 %v11819_v8  ;;  %v8223_v48 = vpop.f32.mrb[152].mxu0  ;;  %v11849_v23 = vadd.f32 %v7183_v50, %v11752_v32 }
 0xd34   :  { %v11831_v4 = vpack.c.bf16 %v5267_v37, %v5264_v41  ;;  %v4752_v56 = vpop.f32.mrb[153].mxu0  ;;  %v11857_v41 = vadd.f32 %v7151_v16, %v11738_v55  ;;  %v7302_v55 = vld [vmem:[#allocation2 + $0x1c8] sm:$0xff]  }
 0xd35   :  { %4517 = vmax.xlane.f32.xlu0 %v11826_v27  ;;  %v8224_v38 = vpop.f32.mrb[154].mxu0  ;;  %13155 = vst [vmem:[#allocation24_spill] sm:$0xff] %v11849_v23  ;;  %v7227_v51 = vunpack.c.l.bf16 %v7302_v55  ;;  %v7228_v50 = vunpack.c.h.bf16 %v7302_v55 }
 0xd36   :  { %13150 = vst [vmem:[#allocation16_spill] sm:$0xff] %v11831_v4  ;;  %v4788_v60 = vpack.c.bf16 %v8224_v38, %v8223_v48  ;;  %v4755_v47 = vpop.f32.mrb[155].mxu0  ;;  %13157 = vst [vmem:[#allocation26_spill] sm:$0xff] %v11857_v41  ;;  %v7295_v38 = vld [vmem:[#allocation2 + $0x188] sm:$0xff]  }
 0xd37   :  { %v4787_v40 = vpack.c.bf16 %v4755_v47, %v4752_v56  ;;  %4515 = vmax.xlane.f32.xlu1 %v11834_v29  ;;  %v7195_v16 = vunpack.c.l.bf16 %v7295_v38 }
 0xd39   :  { %4005 = vmax.xlane.f32.xlu0 %v11838_v58  ;;  %7691 = vmatprep.subr.bf16.mxu0 %v4787_v40 }
 0xd3a   :  { %7692 = vmatpush3.bf16.msra.mxu0 %v13154_v31 }
 0xd3b   :  { %4003 = vmax.xlane.f32.xlu1 %v11842_v5  ;;  %7693 = vmatprep.subr.bf16.mxu0 %v4788_v60 }
 0xd3c   :  { %v8277_v14 = vpop.f32.mrb[172].mxu1 }
 0xd3d   :  { %4513 = vmax.xlane.f32.xlu0 %v11849_v23  ;;  %v5280_v2 = vpop.f32.mrb[173].mxu1 }
 0xd3e   :  { %v8278_v7 = vpop.f32.mrb[174].mxu1  ;;  %7694 = vmatpush3.bf16.msra.mxu0 %v13156_v21 }
 0xd3f   :  { %v11859_v34 = vpack.c.bf16 %v8278_v7, %v8277_v14  ;;  %v8227_v12 = vpop.f32.mrb[156].mxu0  ;;  %v5283_v32 = vpop.f32.mrb[175].mxu1  ;;  %v7196_v7 = vunpack.c.h.bf16 %v7295_v38  ;;  %v7304_v38 = vld [vmem:[#allocation2 + $0x1d8] sm:$0xff]  }
 0xd40   :  { %v11861_v25 = vpack.c.bf16 %v5283_v32, %v5280_v2  ;;  %v4768_v52 = vpop.f32.mrb[157].mxu0 }
 0xd41   :  { %13158 = vst [vmem:[#allocation15_spill] sm:$0xff] %v11859_v34  ;;  %4001 = vmax.xlane.f32.xlu0 %v11857_v41  ;;  %v8228_v36 = vpop.f32.mrb[158].mxu0 }
 0xd42   :  { %13159 = vst [vmem:[#allocation25_spill] sm:$0xff] %v11861_v25  ;;  %v4790_v37 = vpack.c.bf16 %v8228_v36, %v8227_v12  ;;  %v4771_v48 = vpop.f32.mrb[159].mxu0  ;;  %v7223_v12 = vunpack.c.l.bf16 %v7222_v54 }
 0xd43   :  { %v4789_v24 = vpack.c.bf16 %v4771_v48, %v4768_v52  ;;  %v7190_v52 = vld [vmem:[#allocation2 + $0x180] sm:$0xff]   ;;  %v7224_v48 = vunpack.c.h.bf16 %v7222_v54 }
 0xd44   :  { %v7191_v55 = vunpack.c.l.bf16 %v7190_v52 }
 0xd45   :  { %7695 = vmatprep.subr.bf16.mxu0 %v4789_v24 }
 0xd46   :  { %7696 = vmatpush3.bf16.msra.mxu0 %v13160_v13 }
 0xd47   :  { %7697 = vmatprep.subr.bf16.mxu0 %v4790_v37 }
 0xd4a   :  { %7698 = vmatpush3.bf16.msra.mxu0 %v13161_v3 }
 0xd5b   :  { %v8247_v56 = vpop.f32.mrb[160].mxu0 }
 0xd5c   :  { %v4938_v60 = vpop.f32.mrb[161].mxu0  ;;  %v11875_v42 = vadd.f32 %v8247_v56, %v7195_v16 }
 0xd5d   :  { %v8248_v47 = vpop.f32.mrb[162].mxu0  ;;  %v11887_v54 = vadd.f32 %v7191_v55, %v4938_v60 }
 0xd5e   :  { %v4941_v40 = vpop.f32.mrb[163].mxu0  ;;  %v8297_v31 = vpop.f32.mrb[176].mxu1  ;;  %13164 = vst [vmem:[#allocation39_spill] sm:$0xff] %v11875_v42  ;;  %v11878_v37 = vadd.f32 %v8248_v47, %v7196_v7 }
 0xd5f   :  { %v11870_v14 = vadd.f32 %v8297_v31, %v7227_v51  ;;  %v5450_v2 = vpop.f32.mrb[177].mxu1  ;;  %v7192_v31 = vunpack.c.h.bf16 %v7190_v52  ;;  %13168 = vst [vmem:[#allocation43_spill] sm:$0xff] %v11887_v54 }
 0xd60   :  { %v8298_v35 = vpop.f32.mrb[178].mxu1  ;;  %13165 = vst [vmem:[#allocation40_spill] sm:$0xff] %v11878_v37  ;;  %v11881_v51 = vadd.f32 %v7223_v12, %v5450_v2  ;;  %v7297_v2 = vld [vmem:[#allocation2 + $0x198] sm:$0xff]  }
 0xd61   :  { %13162 = vst [vmem:[#allocation27_spill] sm:$0xff] %v11870_v14  ;;  %v11872_v21 = vadd.f32 %v8298_v35, %v7228_v50  ;;  %5517 = vmax.xlane.f32.xlu0 %v11870_v14  ;;  %v5453_v18 = vpop.f32.mrb[179].mxu1  ;;  %v7235_v35 = vunpack.c.l.bf16 %v7304_v38  ;;  %v7203_v60 = vunpack.c.l.bf16 %v7297_v2  ;;  %v7204_v14 = vunpack.c.h.bf16 %v7297_v2 }
 0xd62   :  { %13166 = vst [vmem:[#allocation41_spill] sm:$0xff] %v11881_v51  ;;  %v11884_v16 = vadd.f32 %v7224_v48, %v5453_v18 }
 0xd63   :  { %13163 = vst [vmem:[#allocation38_spill] sm:$0xff] %v11872_v21  ;;  %v8251_v32 = vpop.f32.mrb[164].mxu0  ;;  %5519 = vmax.xlane.f32.xlu1 %v11872_v21 }
 0xd64   :  { %v4954_v36 = vpop.f32.mrb[165].mxu0  ;;  %13167 = vst [vmem:[#allocation42_spill] sm:$0xff] %v11884_v16 }
 0xd65   :  { %v8252_v24 = vpop.f32.mrb[166].mxu0  ;;  %5005 = vmax.xlane.f32.xlu0 %v11875_v42  ;;  %v7236_v42 = vunpack.c.h.bf16 %v7304_v38 }
 0xd66   :  { %v4957_v13 = vpop.f32.mrb[167].mxu0  ;;  %v8301_v3 = vpop.f32.mrb[180].mxu1 }
 0xd67   :  { %5007 = vmax.xlane.f32.xlu1 %v11878_v37  ;;  %v5466_v56 = vpop.f32.mrb[181].mxu1  ;;  %v11894_v37 = vadd.f32 %v7192_v31, %v4941_v40  ;;  %v11901_v48 = vadd.f32 %v8301_v3, %v7235_v35  ;;  %v11911_v31 = vadd.f32 %v8251_v32, %v7203_v60  ;;  %v7296_v3 = vld [vmem:[#allocation2 + $0x190] sm:$0xff]  }
 0xd68   :  { %v8302_v50 = vpop.f32.mrb[182].mxu1  ;;  %v7199_v32 = vunpack.c.l.bf16 %v7296_v3 }
 0xd69   :  { %5513 = vmax.xlane.f32.xlu0 %v11881_v51  ;;  %v5469_v47 = vpop.f32.mrb[183].mxu1  ;;  %13169 = vst [vmem:[#allocation44_spill] sm:$0xff] %v11894_v37  ;;  %13170 = vst [vmem:[#allocation45_spill] sm:$0xff] %v11901_v48  ;;  %v11906_v40 = vadd.f32 %v8302_v50, %v7236_v42 }
 0xd6a   :  { %13172 = vst [vmem:[#allocation47_spill] sm:$0xff] %v11911_v31 }
 0xd6b   :  { %v11889_v7 = vpop.f32.mrb[168].mxu0  ;;  %5515 = vmax.xlane.f32.xlu1 %v11884_v16  ;;  %v7303_v16 = vld [vmem:[#allocation2 + $0x1d0] sm:$0xff]   ;;  %13171 = vst [vmem:[#allocation46_spill] sm:$0xff] %v11906_v40 }
 0xd6c   :  { %v11892_v12 = vpop.f32.mrb[169].mxu0  ;;  %v7232_v5 = vunpack.c.h.bf16 %v7303_v16 }
 0xd6d   :  { %v11896_v21 = vpop.f32.mrb[170].mxu0  ;;  %5001 = vmax.xlane.f32.xlu0 %v11887_v54  ;;  %v7231_v54 = vunpack.c.l.bf16 %v7303_v16 }
 0xd6e   :  { %v11899_v18 = vpop.f32.mrb[171].mxu0  ;;  %v8305_v52 = vpop.f32.mrb[184].mxu1 }
 0xd6f   :  { %5003 = vmax.xlane.f32.xlu1 %v11894_v37  ;;  %v11904_v55 = vpop.f32.mrb[185].mxu1  ;;  %v11918_v37 = vadd.f32 %v8252_v24, %v7204_v14  ;;  %v11927_v60 = vadd.f32 %v7231_v54, %v5466_v56  ;;  %v7200_v14 = vunpack.c.h.bf16 %v7296_v3  ;;  %v11934_v24 = vadd.f32 %v7232_v5, %v5469_v47  ;;  %v7299_v54 = vld [vmem:[#allocation2 + $0x1a8] sm:$0xff]  }
 0xd70   :  { %v8306_v51 = vpop.f32.mrb[186].mxu1 }
 0xd71   :  { %5525 = vmax.xlane.f32.xlu0 %v11901_v48  ;;  %v11909_v38 = vpop.f32.mrb[187].mxu1  ;;  %13173 = vst [vmem:[#allocation48_spill] sm:$0xff] %v11918_v37  ;;  %13174 = vst [vmem:[#allocation49_spill] sm:$0xff] %v11927_v60  ;;  %v7306_v48 = vld [vmem:[#allocation2 + $0x1e8] sm:$0xff]   ;;  %v11942_v58 = vadd.f32 %v7200_v14, %v4957_v13 }
 0xd72   :  { %13175 = vst [vmem:[#allocation50_spill] sm:$0xff] %v11934_v24  ;;  %v7243_v29 = vunpack.c.l.bf16 %v7306_v48  ;;  %v7244_v8 = vunpack.c.h.bf16 %v7306_v48 }
 0xd73   :  { %v11913_v41 = vpop.f32.mrb[172].mxu0  ;;  %5527 = vmax.xlane.f32.xlu1 %v11906_v40 }
 0xd74   :  { %v11916_v35 = vpop.f32.mrb[173].mxu0  ;;  %v11947_v27 = vadd.f32 %v8305_v52, %v7243_v29  ;;  %v11950_v59 = vadd.f32 %v8306_v51, %v7244_v8 }
 0xd75   :  { %v11920_v2 = vpop.f32.mrb[174].mxu0  ;;  %5013 = vmax.xlane.f32.xlu0 %v11911_v31  ;;  %v11939_v31 = vadd.f32 %v7199_v32, %v4954_v36  ;;  %v7305_v32 = vld [vmem:[#allocation2 + $0x1e0] sm:$0xff]  }
 0xd76   :  { %v11923_v42 = vpop.f32.mrb[175].mxu0  ;;  %v11925_v50 = vpop.f32.mrb[188].mxu1  ;;  %v7239_v48 = vunpack.c.l.bf16 %v7305_v32  ;;  %v7240_v51 = vunpack.c.h.bf16 %v7305_v32 }
 0xd77   :  { %5015 = vmax.xlane.f32.xlu1 %v11918_v37  ;;  %v11930_v40 = vpop.f32.mrb[189].mxu1 }
 0xd78   :  { %v11932_v23 = vpop.f32.mrb[190].mxu1 }
 0xd79   :  { %5521 = vmax.xlane.f32.xlu0 %v11927_v60  ;;  %v11937_v16 = vpop.f32.mrb[191].mxu1  ;;  %v7211_v60 = vunpack.c.l.bf16 %v7299_v54 }
 0xd7b   :  { %5523 = vmax.xlane.f32.xlu1 %v11934_v24  ;;  %v8315_v56 = vpop.f32.mrb[176].mxu0  ;;  %v7212_v24 = vunpack.c.h.bf16 %v7299_v54  ;;  %v11954_v13 = vadd.f32 %v11889_v7, %v7211_v60  ;;  %v11966_v54 = vadd.f32 %v7239_v48, %v11904_v55  ;;  %v7301_v48 = vld [vmem:[#allocation2 + $0x1b8] sm:$0xff]  }
 0xd7c   :  { %v5744_v37 = vpop.f32.mrb[177].mxu0 }
 0xd7d   :  { %5009 = vmax.xlane.f32.xlu0 %v11939_v31  ;;  %v8316_v3 = vpop.f32.mrb[178].mxu0  ;;  %v11960_v8 = vadd.f32 %v11896_v21, %v7212_v24  ;;  %v11973_v24 = vadd.f32 %v7240_v51, %v11909_v38 }
 0xd7e   :  { %v11945_v5 = vpack.c.bf16 %v8316_v3, %v8315_v56  ;;  %v5747_v47 = vpop.f32.mrb[179].mxu0 }
 0xd7f   :  { %v5807_v36 = vpack.c.bf16 %v5747_v47, %v5744_v37  ;;  %5011 = vmax.xlane.f32.xlu1 %v11942_v58  ;;  %v7298_v37 = vld [vmem:[#allocation2 + $0x1a0] sm:$0xff]   ;;  %v7308_v47 = vld [vmem:[#allocation2 + $0x1f8] sm:$0xff]  }
 0xd80   :  { %v7207_v60 = vunpack.c.l.bf16 %v7298_v37  ;;  %v7208_v21 = vunpack.c.h.bf16 %v7298_v37  ;;  %v7251_v55 = vunpack.c.l.bf16 %v7308_v47  ;;  %v7252_v37 = vunpack.c.h.bf16 %v7308_v47  ;;  %v7307_v47 = vld [vmem:[#allocation2 + $0x1f0] sm:$0xff]  }
 0xd81   :  { %5533 = vmax.xlane.f32.xlu0 %v11947_v27  ;;  %7747 = vmatprep.subr.bf16.mxu0 %v5807_v36 }
 0xd82   :  { %8381 = vmatprep.subr.bf16.mxu1 %v5807_v36  ;;  %v11978_v36 = vadd.f32 %v7207_v60, %v11892_v12  ;;  %v11984_v38 = vadd.f32 %v7208_v21, %v11899_v18  ;;  %v11990_v60 = vadd.f32 %v11925_v50, %v7251_v55 }
 0xd83   :  { %8389 = vmatpush3.bf16.msra.mxu1 %v11779_v63  ;;  %5535 = vmax.xlane.f32.xlu1 %v11950_v59  ;;  %v8319_v29 = vpop.f32.mrb[180].mxu0 }
 0xd84   :  { %8382 = vmatprep.subr.bf16.mxu1 %v11945_v5  ;;  %v5760_v52 = vpop.f32.mrb[181].mxu0 }
 0xd85   :  { %5021 = vmax.xlane.f32.xlu0 %v11954_v13  ;;  %v8320_v14 = vpop.f32.mrb[182].mxu0 }
 0xd86   :  { %v11963_v56 = vpack.c.bf16 %v8320_v14, %v8319_v29  ;;  %v5763_v7 = vpop.f32.mrb[183].mxu0 }
 0xd87   :  { %v11968_v3 = vpack.c.bf16 %v5763_v7, %v5760_v52  ;;  %8390 = vmatpush3.bf16.msra.mxu1 %v11773_v1  ;;  %5023 = vmax.xlane.f32.xlu1 %v11960_v8  ;;  %v7219_v7 = vunpack.c.l.bf16 %v7301_v48 }
 0xd88   :  { %13176 = vst [vmem:[#allocation51_spill] sm:$0xff] %v11963_v56 }
 0xd89   :  { %5529 = vmax.xlane.f32.xlu0 %v11966_v54  ;;  %8383 = vmatprep.subr.bf16.mxu1 %v11968_v3 }
 0xd8b   :  { %8391 = vmatpush3.bf16.msra.mxu1 %v11801_v33  ;;  %5531 = vmax.xlane.f32.xlu1 %v11973_v24  ;;  %v8323_v32 = vpop.f32.mrb[184].mxu0 }
 0xd8c   :  { %8384 = vmatprep.subr.bf16.mxu1 %v11963_v56  ;;  %v5776_v29 = vpop.f32.mrb[185].mxu0  ;;  %v7220_v56 = vunpack.c.h.bf16 %v7301_v48  ;;  %v7300_v48 = vld [vmem:[#allocation2 + $0x1b0] sm:$0xff]  }
 0xd8d   :  { %5017 = vmax.xlane.f32.xlu0 %v11978_v36  ;;  %v8324_v52 = vpop.f32.mrb[186].mxu0 }
 0xd8e   :  { %v11987_v51 = vpack.c.bf16 %v8324_v52, %v8323_v32  ;;  %v5779_v12 = vpop.f32.mrb[187].mxu0  ;;  %v4494_v14 = vpop.xlane.xlu0 %4493  ;;  %v11998_v32 = vadd.f32 %v11932_v23, %v7252_v37 }
 0xd8f   :  { %v11992_v33 = vpack.c.bf16 %v5779_v12, %v5776_v29  ;;  %8392 = vmatpush3.bf16.msra.mxu1 %v11798_v20  ;;  %5019 = vmax.xlane.f32.xlu1 %v11984_v38  ;;  %v4523_v18 = vsub.f32 %v11692_v28, %v4494_v14  ;;  %v12004_v29 = vadd.f32 %v11913_v41, %v7219_v7  ;;  %v7247_v12 = vunpack.c.l.bf16 %v7307_v47 }
 0xd90   :  { %13177 = vst [vmem:[#allocation52_spill] sm:$0xff] %v11987_v51  ;;  %v4496_v21 = vpop.xlane.xlu1 %4495 }
 0xd91   :  { %13178 = vst [vmem:[#allocation53_spill] sm:$0xff] %v11992_v33  ;;  %v4524_v52 = vsub.f32 %v11694_v26, %v4496_v21  ;;  %5541 = vmax.xlane.f32.xlu0 %v11990_v60  ;;  %8385 = vmatprep.subr.bf16.mxu1 %v11992_v33  ;;  %v4541_v50 = vmul.f32 1.442695, %v4523_v18  ;;  %v12011_v18 = vadd.f32 %v11920_v2, %v7220_v56  ;;  %v7248_v21 = vunpack.c.h.bf16 %v7307_v47 }
 0xd92   :  { %v3982_v55 = vpop.xlane.xlu0 %3981  ;;  %v7216_v47 = vunpack.c.h.bf16 %v7300_v48 }
 0xd93   :  { %8393 = vmatpush3.bf16.msra.mxu1 %v11831_v4  ;;  %5543 = vmax.xlane.f32.xlu1 %v11998_v32  ;;  %v8327_v28 = vpop.f32.mrb[188].mxu0  ;;  %v4011_v23 = vsub.f32 %v11697_v62, %v3982_v55  ;;  %v4543_v37 = vmul.f32 1.442695, %v4524_v52  ;;  %8890 = vpow2.f32 %v4541_v50  ;;  %v7215_v52 = vunpack.c.l.bf16 %v7300_v48 }
 0xd94   :  { %8386 = vmatprep.subr.bf16.mxu1 %v11987_v51  ;;  %v5792_v26 = vpop.f32.mrb[189].mxu0  ;;  %v3984_v14 = vpop.xlane.xlu1 %3983  ;;  %v12018_v51 = vadd.f32 %v7247_v12, %v11930_v40  ;;  %v12026_v50 = vadd.f32 %v7248_v21, %v11937_v16  ;;  %v12039_v48 = vadd.f32 %v7216_v47, %v11923_v42 }
 0xd95   :  { %v4012_v41 = vsub.f32 %v11702_v17, %v3984_v14  ;;  %5029 = vmax.xlane.f32.xlu0 %v12004_v29  ;;  %v8328_v7 = vpop.f32.mrb[190].mxu0  ;;  %v4029_v4 = vmul.f32 1.442695, %v4011_v23  ;;  %8892 = vpow2.f32 %v4543_v37  ;;  %v12032_v23 = vadd.f32 %v7215_v52, %v11916_v35 }
 0xd96   :  { %v12015_v33 = vpack.c.bf16 %v8328_v7, %v8327_v28  ;;  %v5795_v62 = vpop.f32.mrb[191].mxu0  ;;  %v4490_v55 = vpop.xlane.xlu0 %4489 }
 0xd97   :  { %v12020_v20 = vpack.c.bf16 %v5795_v62, %v5792_v26  ;;  %8394 = vmatpush3.bf16.msra.mxu1 %v11828_v39  ;;  %5031 = vmax.xlane.f32.xlu1 %v12011_v18  ;;  %v4521_v17 = vsub.f32 %v11705_v22, %v4490_v55  ;;  %v4031_v2 = vmul.f32 1.442695, %v4012_v41  ;;  %8894 = vpow2.f32 %v4029_v4 }
 0xd98   :  { %13179 = vst [vmem:[#allocation54_spill] sm:$0xff] %v12015_v33  ;;  %v4492_v56 = vpop.xlane.xlu1 %4491 }
 0xd99   :  { %v4522_v28 = vsub.f32 %v11708_v49, %v4492_v56  ;;  %5537 = vmax.xlane.f32.xlu0 %v12018_v51  ;;  %8387 = vmatprep.subr.bf16.mxu1 %v12020_v20  ;;  %v4537_v40 = vmul.f32 1.442695, %v4521_v17  ;;  %8896 = vpow2.f32 %v4031_v2  ;;  %v13180_v56 = vld [vmem:[#allocation6_spill] sm:$0xff] }
 0xd9a   :  { %v3978_v12 = vpop.xlane.xlu0 %3977 }
 0xd9b   :  { %8395 = vmatpush3.bf16.msra.mxu1 %v11861_v25  ;;  %5539 = vmax.xlane.f32.xlu1 %v12026_v50  ;;  %v4009_v22 = vsub.f32 %v11713_v61, %v3978_v12  ;;  %v4539_v16 = vmul.f32 1.442695, %v4522_v28  ;;  %8898 = vpow2.f32 %v4537_v40  ;;  %v13181_v40 = vld [vmem:[#allocation7_spill] sm:$0xff]  ;;  %v13219_v25 = vld [vmem:[#allocation50_spill] sm:$0xff] }
 0xd9c   :  { %8388 = vmatprep.subr.bf16.mxu1 %v12015_v33  ;;  %v4504_v49 = vpop.xlane.xlu1 %4503 }
 0xd9d   :  { %5025 = vmax.xlane.f32.xlu0 %v12032_v23  ;;  %v4025_v4 = vmul.f32 1.442695, %v4009_v22  ;;  %v12045_v61 = vpop.eup %8890  ;;  %8900 = vpow2.f32 %v4539_v16  ;;  %v4528_v26 = vsub.f32 %v11718_v57, %v4504_v49 }
 0xd9e   :  { %v3980_v35 = vpop.xlane.xlu0 %3979 }
 0xd9f   :  { %8396 = vmatpush3.bf16.msra.mxu1 %v11859_v34  ;;  %5027 = vmax.xlane.f32.xlu1 %v12039_v48  ;;  %v4010_v37 = vsub.f32 %v11725_v11, %v3980_v35  ;;  %v12049_v42 = vpop.eup %8892  ;;  %8902 = vpow2.f32 %v4025_v4  ;;  %v4551_v11 = vmul.f32 1.442695, %v4528_v26  ;;  %v13182_v26 = vld [vmem:[#allocation9_spill] sm:$0xff]  ;;  %v13209_v34 = vld [vmem:[#allocation40_spill] sm:$0xff] }
 0xda0   :  { %v3992_v14 = vpop.xlane.xlu1 %3991 }
 0xda1   :  { %v4027_v21 = vmul.f32 1.442695, %v4010_v37  ;;  %4573 = vadd.xlane.f32.xlu0 %v12045_v61  ;;  %v12053_v62 = vpop.eup %8894  ;;  %v4016_v55 = vsub.f32 %v11730_v44, %v3992_v14 }
 0xda2   :  { %v4502_v41 = vpop.xlane.xlu0 %4501 }
 0xda3   :  { %8904 = vpow2.f32 %v4027_v21  ;;  %4575 = vadd.xlane.f32.xlu1 %v12049_v42  ;;  %v4527_v7 = vsub.f32 %v11735_v46, %v4502_v41  ;;  %v12057_v17 = vpop.eup %8896  ;;  %v4039_v46 = vmul.f32 1.442695, %v4016_v55 }
 0xda4   :  { %v4500_v52 = vpop.xlane.xlu1 %4499 }
 0xda5   :  { %v4549_v57 = vmul.f32 1.442695, %v4527_v7  ;;  %4061 = vadd.xlane.f32.xlu0 %v12053_v62  ;;  %v12061_v28 = vpop.eup %8898  ;;  %v4526_v12 = vsub.f32 %v13181_v40, %v4500_v52 }
 0xda6   :  { %v3990_v2 = vpop.xlane.xlu0 %3989 }
 0xda7   :  { %8906 = vpow2.f32 %v4549_v57  ;;  %4063 = vadd.xlane.f32.xlu1 %v12057_v17  ;;  %v4015_v47 = vsub.f32 %v13180_v56, %v3990_v2  ;;  %v12065_v16 = vpop.eup %8900  ;;  %v4547_v37 = vmul.f32 1.442695, %v4526_v12 }
 0xda8   :  { %8908 = vpow2.f32 %v4551_v11  ;;  %v3988_v22 = vpop.xlane.xlu1 %3987 }
 0xda9   :  { %v4037_v44 = vmul.f32 1.442695, %v4015_v47  ;;  %4569 = vadd.xlane.f32.xlu0 %v12061_v28  ;;  %v12069_v35 = vpop.eup %8902  ;;  %v4014_v14 = vsub.f32 %v13182_v26, %v3988_v22 }
 0xdaa   :  { %v4498_v49 = vpop.xlane.xlu0 %4497 }
 0xdab   :  { %8910 = vpow2.f32 %v4037_v44  ;;  %4571 = vadd.xlane.f32.xlu1 %v12065_v16  ;;  %v4525_v4 = vsub.f32 %v11761_v15, %v4498_v49  ;;  %v4035_v15 = vmul.f32 1.442695, %v4014_v14 }
 0xdac   :  { %8912 = vpow2.f32 %v4039_v46  ;;  %v4512_v21 = vpop.xlane.xlu1 %4511 }
 0xdad   :  { %v12072_v41 = vpop.eup %8904  ;;  %v4545_v7 = vmul.f32 1.442695, %v4525_v4  ;;  %4057 = vadd.xlane.f32.xlu0 %v12069_v35  ;;  %v4532_v52 = vsub.f32 %v11764_v9, %v4512_v21 }
 0xdae   :  { %v3986_v11 = vpop.xlane.xlu0 %3985 }
 0xdaf   :  { %8914 = vpow2.f32 %v4545_v7  ;;  %4059 = vadd.xlane.f32.xlu1 %v12072_v41  ;;  %v4013_v55 = vsub.f32 %v11768_v45, %v3986_v11  ;;  %v4559_v45 = vmul.f32 1.442695, %v4532_v52 }
 0xdb0   :  { %8916 = vpow2.f32 %v4547_v37  ;;  %v4000_v57 = vpop.xlane.xlu1 %3999 }
 0xdb1   :  { %v12078_v2 = vpop.eup %8906  ;;  %v4033_v56 = vmul.f32 1.442695, %v4013_v55  ;;  %v4020_v12 = vsub.f32 %v11771_v19, %v4000_v57 }
 0xdb2   :  { %v12080_v47 = vpop.eup %8908  ;;  %4581 = vadd.xlane.f32.xlu0 %v12078_v2  ;;  %v4510_v46 = vpop.xlane.xlu0 %4509 }
 0xdb3   :  { %8918 = vpow2.f32 %v4033_v56  ;;  %4583 = vadd.xlane.f32.xlu1 %v12080_v47  ;;  %v4531_v40 = vsub.f32 %v11782_v6, %v4510_v46  ;;  %v4047_v6 = vmul.f32 1.442695, %v4020_v12 }
 0xdb4   :  { %8920 = vpow2.f32 %v4035_v15  ;;  %v4508_v22 = vpop.xlane.xlu1 %4507 }
 0xdb5   :  { %v12086_v9 = vpop.eup %8910  ;;  %v4557_v44 = vmul.f32 1.442695, %v4531_v40  ;;  %v4530_v26 = vsub.f32 %v11785_v43, %v4508_v22 }
 0xdb6   :  { %v12088_v49 = vpop.eup %8912  ;;  %4069 = vadd.xlane.f32.xlu0 %v12086_v9  ;;  %v3998_v4 = vpop.xlane.xlu0 %3997 }
 0xdb7   :  { %8922 = vpow2.f32 %v4557_v44  ;;  %4071 = vadd.xlane.f32.xlu1 %v12088_v49  ;;  %v4019_v37 = vsub.f32 %v11792_v0, %v3998_v4  ;;  %v4555_v0 = vmul.f32 1.442695, %v4530_v26 }
 0xdb8   :  { %8924 = vpow2.f32 %v4559_v45  ;;  %v3996_v14 = vpop.xlane.xlu1 %3995  ;;  %v13183_v45 = vld [vmem:[#allocation12_spill] sm:$0xff] }
 0xdb9   :  { %v12094_v19 = vpop.eup %8914  ;;  %v4045_v21 = vmul.f32 1.442695, %v4019_v37  ;;  %v4018_v15 = vsub.f32 %v11796_v53, %v3996_v14  ;;  %v13187_v14 = vld [vmem:[#allocation13_spill] sm:$0xff] }
 0xdba   :  { %v12096_v7 = vpop.eup %8916  ;;  %4577 = vadd.xlane.f32.xlu0 %v12094_v19  ;;  %v4506_v11 = vpop.xlane.xlu0 %4505 }
 0xdbb   :  { %8926 = vpow2.f32 %v4045_v21  ;;  %4579 = vadd.xlane.f32.xlu1 %v12096_v7  ;;  %v4529_v55 = vsub.f32 %v11804_v30, %v4506_v11  ;;  %v4043_v30 = vmul.f32 1.442695, %v4018_v15 }
 0xdbc   :  { %8928 = vpow2.f32 %v4047_v6  ;;  %v4520_v52 = vpop.xlane.xlu1 %4519  ;;  %v13186_v6 = vld [vmem:[#allocation14_spill] sm:$0xff] }
 0xdbd   :  { %v12102_v43 = vpop.eup %8918  ;;  %v4553_v57 = vmul.f32 1.442695, %v4529_v55  ;;  %v4536_v12 = vsub.f32 %v13183_v45, %v4520_v52 }
 0xdbe   :  { %v12104_v56 = vpop.eup %8920  ;;  %4065 = vadd.xlane.f32.xlu0 %v12102_v43  ;;  %v3994_v46 = vpop.xlane.xlu0 %3993 }
 0xdbf   :  { %8930 = vpow2.f32 %v4553_v57  ;;  %4067 = vadd.xlane.f32.xlu1 %v12104_v56  ;;  %v4017_v40 = vsub.f32 %v11815_v10, %v3994_v46  ;;  %v4567_v10 = vmul.f32 1.442695, %v4536_v12  ;;  %v13190_v57 = vld [vmem:[#allocation23_spill] sm:$0xff] }
 0xdc0   :  { %8932 = vpow2.f32 %v4555_v0  ;;  %v4008_v22 = vpop.xlane.xlu1 %4007 }
 0xdc1   :  { %v12110_v53 = vpop.eup %8922  ;;  %v4041_v44 = vmul.f32 1.442695, %v4017_v40  ;;  %v4024_v21 = vsub.f32 %v13187_v14, %v4008_v22 }
 0xdc2   :  { %13184 = vst [vmem:[#allocation6_spill] sm:$0xff] %v12110_v53  ;;  %v12112_v4 = vpop.eup %8924  ;;  %4589 = vadd.xlane.f32.xlu0 %v12110_v53  ;;  %v4518_v37 = vpop.xlane.xlu0 %4517 }
 0xdc3   :  { %13185 = vst [vmem:[#allocation7_spill] sm:$0xff] %v12112_v4  ;;  %8934 = vpow2.f32 %v4041_v44  ;;  %4591 = vadd.xlane.f32.xlu1 %v12112_v4  ;;  %v4535_v26 = vsub.f32 %v13186_v6, %v4518_v37  ;;  %v4055_v40 = vmul.f32 1.442695, %v4024_v21 }
 0xdc4   :  { %8936 = vpow2.f32 %v4043_v30  ;;  %v4516_v11 = vpop.xlane.xlu1 %4515  ;;  %v13191_v30 = vld [vmem:[#allocation22_spill] sm:$0xff] }
 0xdc5   :  { %v12118_v55 = vpop.eup %8926  ;;  %v4565_v0 = vmul.f32 1.442695, %v4535_v26  ;;  %v4534_v45 = vsub.f32 %v13191_v30, %v4516_v11  ;;  %v13193_v26 = vld [vmem:[#allocation24_spill] sm:$0xff]  ;;  %v13197_v30 = vld [vmem:[#allocation26_spill] sm:$0xff] }
 0xdc6   :  { %13188 = vst [vmem:[#allocation9_spill] sm:$0xff] %v12118_v55  ;;  %v12120_v15 = vpop.eup %8928  ;;  %4077 = vadd.xlane.f32.xlu0 %v12118_v55  ;;  %v4006_v52 = vpop.xlane.xlu0 %4005 }
 0xdc7   :  { %13189 = vst [vmem:[#allocation12_spill] sm:$0xff] %v12120_v15  ;;  %8938 = vpow2.f32 %v4565_v0  ;;  %4079 = vadd.xlane.f32.xlu1 %v12120_v15  ;;  %v4023_v46 = vsub.f32 %v13190_v57, %v4006_v52  ;;  %v4563_v0 = vmul.f32 1.442695, %v4534_v45 }
 0xdc8   :  { %8940 = vpow2.f32 %v4567_v10  ;;  %v4004_v44 = vpop.xlane.xlu1 %4003  ;;  %v13194_v10 = vld [vmem:[#allocation21_spill] sm:$0xff] }
 0xdc9   :  { %v12126_v12 = vpop.eup %8930  ;;  %v4053_v22 = vmul.f32 1.442695, %v4023_v46  ;;  %v4022_v21 = vsub.f32 %v13194_v10, %v4004_v44 }
 0xdca   :  { %v12128_v37 = vpop.eup %8932  ;;  %4585 = vadd.xlane.f32.xlu0 %v12126_v12  ;;  %v4514_v6 = vpop.xlane.xlu0 %4513 }
 0xdcb   :  { %13192 = vst [vmem:[#allocation14_spill] sm:$0xff] %v12128_v37  ;;  %8942 = vpow2.f32 %v4053_v22  ;;  %4587 = vadd.xlane.f32.xlu1 %v12128_v37  ;;  %v4533_v14 = vsub.f32 %v13193_v26, %v4514_v6  ;;  %v4051_v15 = vmul.f32 1.442695, %v4022_v21  ;;  %v13220_v37 = vld [vmem:[#allocation41_spill] sm:$0xff] }
 0xdcc   :  { %8944 = vpow2.f32 %v4055_v40 }
 0xdcd   :  { %v12134_v52 = vpop.eup %8934  ;;  %v4561_v11 = vmul.f32 1.442695, %v4533_v14 }
 0xdce   :  { %13195 = vst [vmem:[#allocation13_spill] sm:$0xff] %v12134_v52  ;;  %v12136_v57 = vpop.eup %8936  ;;  %4073 = vadd.xlane.f32.xlu0 %v12134_v52  ;;  %v4002_v46 = vpop.xlane.xlu0 %4001 }
 0xdcf   :  { %13196 = vst [vmem:[#allocation23_spill] sm:$0xff] %v12136_v57  ;;  %8946 = vpow2.f32 %v4561_v11  ;;  %4075 = vadd.xlane.f32.xlu1 %v12136_v57  ;;  %v4021_v22 = vsub.f32 %v13197_v30, %v4002_v46  ;;  %v13206_v11 = vld [vmem:[#allocation27_spill] sm:$0xff] }
 0xdd0   :  { %8948 = vpow2.f32 %v4563_v0 }
 0xdd1   :  { %v12141_v6 = vpop.eup %8938  ;;  %v4049_v40 = vmul.f32 1.442695, %v4021_v22 }
 0xdd2   :  { %13198 = vst [vmem:[#allocation22_spill] sm:$0xff] %v12141_v6  ;;  %v12143_v45 = vpop.eup %8940  ;;  %4597 = vadd.xlane.f32.xlu0 %v12141_v6  ;;  %v13208_v6 = vld [vmem:[#allocation39_spill] sm:$0xff] }
 0xdd3   :  { %13199 = vst [vmem:[#allocation24_spill] sm:$0xff] %v12143_v45  ;;  %8950 = vpow2.f32 %v4049_v40  ;;  %4599 = vadd.xlane.f32.xlu1 %v12143_v45  ;;  %v13207_v40 = vld [vmem:[#allocation38_spill] sm:$0xff] }
 0xdd4   :  { %8952 = vpow2.f32 %v4051_v15 }
 0xdd5   :  { %v12147_v44 = vpop.eup %8942 }
 0xdd6   :  { %13200 = vst [vmem:[#allocation21_spill] sm:$0xff] %v12147_v44  ;;  %v12149_v26 = vpop.eup %8944  ;;  %4085 = vadd.xlane.f32.xlu0 %v12147_v44 }
 0xdd7   :  { %13201 = vst [vmem:[#allocation26_spill] sm:$0xff] %v12149_v26  ;;  %4087 = vadd.xlane.f32.xlu1 %v12149_v26 }
 0xdd9   :  { %v12153_v14 = vpop.eup %8946 }
 0xdda   :  { %13202 = vst [vmem:[#allocation55_spill] sm:$0xff] %v12153_v14  ;;  %v12155_v0 = vpop.eup %8948  ;;  %4593 = vadd.xlane.f32.xlu0 %v12153_v14 }
 0xddb   :  { %13203 = vst [vmem:[#allocation56_spill] sm:$0xff] %v12155_v0  ;;  %4595 = vadd.xlane.f32.xlu1 %v12155_v0 }
 0xddd   :  { %v12159_v10 = vpop.eup %8950 }
 0xdde   :  { %13204 = vst [vmem:[#allocation57_spill] sm:$0xff] %v12159_v10  ;;  %v12161_v21 = vpop.eup %8952  ;;  %4081 = vadd.xlane.f32.xlu0 %v12159_v10 }
 0xddf   :  { %13205 = vst [vmem:[#allocation58_spill] sm:$0xff] %v12161_v21  ;;  %4083 = vadd.xlane.f32.xlu1 %v12161_v21 }
 0xdee   :  { %v5518_v15 = vpop.xlane.xlu0 %5517 }
 0xdef   :  { %v5547_v46 = vsub.f32 %v13206_v11, %v5518_v15 }
 0xdf0   :  { %v5520_v30 = vpop.xlane.xlu1 %5519 }
 0xdf1   :  { %v5565_v22 = vmul.f32 1.442695, %v5547_v46  ;;  %v5548_v26 = vsub.f32 %v13207_v40, %v5520_v30  ;;  %v13216_v40 = vld [vmem:[#allocation47_spill] sm:$0xff] }
 0xdf2   :  { %v5006_v44 = vpop.xlane.xlu0 %5005 }
 0xdf3   :  { %8954 = vpow2.f32 %v5565_v22  ;;  %v5567_v45 = vmul.f32 1.442695, %v5548_v26  ;;  %v5035_v0 = vsub.f32 %v13208_v6, %v5006_v44  ;;  %v13212_v6 = vld [vmem:[#allocation45_spill] sm:$0xff] }
 0xdf4   :  { %v5008_v14 = vpop.xlane.xlu1 %5007 }
 0xdf5   :  { %8956 = vpow2.f32 %v5567_v45  ;;  %v5053_v55 = vmul.f32 1.442695, %v5035_v0  ;;  %v5036_v57 = vsub.f32 %v13209_v34, %v5008_v14 }
 0xdf6   :  { %v5514_v10 = vpop.xlane.xlu0 %5513 }
 0xdf7   :  { %8958 = vpow2.f32 %v5053_v55  ;;  %v5055_v21 = vmul.f32 1.442695, %v5036_v57  ;;  %v13214_v57 = vld [vmem:[#allocation46_spill] sm:$0xff] }
 0xdf8   :  { %v5516_v4 = vpop.xlane.xlu1 %5515 }
 0xdf9   :  { %8960 = vpow2.f32 %v5055_v21 }
 0xdfa   :  { %v5002_v15 = vpop.xlane.xlu0 %5001 }
 0xdfc   :  { %v12169_v11 = vpop.xlane.xlu1 %5003 }
 0xdfd   :  { %v12171_v46 = vpop.eup %8954 }
 0xdfe   :  { %13210 = vst [vmem:[#allocation27_spill] sm:$0xff] %v12171_v46  ;;  %5597 = vadd.xlane.f32.xlu0 %v12171_v46  ;;  %v5526_v26 = vpop.xlane.xlu0 %5525 }
 0xdff   :  { %v12174_v30 = vpop.eup %8956  ;;  %v5551_v45 = vsub.f32 %v13212_v6, %v5526_v26  ;;  %v13217_v6 = vld [vmem:[#allocation48_spill] sm:$0xff] }
 0xe00   :  { %13211 = vst [vmem:[#allocation38_spill] sm:$0xff] %v12174_v30  ;;  %v5528_v44 = vpop.xlane.xlu1 %5527  ;;  %5599 = vadd.xlane.f32.xlu1 %v12174_v30 }
 0xe01   :  { %v12178_v34 = vpop.eup %8958  ;;  %v5573_v55 = vmul.f32 1.442695, %v5551_v45  ;;  %v5552_v14 = vsub.f32 %v13214_v57, %v5528_v44  ;;  %v13218_v44 = vld [vmem:[#allocation49_spill] sm:$0xff] }
 0xe02   :  { %13213 = vst [vmem:[#allocation39_spill] sm:$0xff] %v12178_v34  ;;  %5085 = vadd.xlane.f32.xlu0 %v12178_v34  ;;  %v5014_v0 = vpop.xlane.xlu0 %5013 }
 0xe03   :  { %v12182_v21 = vpop.eup %8960  ;;  %8962 = vpow2.f32 %v5573_v55  ;;  %v5575_v22 = vmul.f32 1.442695, %v5552_v14  ;;  %v5039_v46 = vsub.f32 %v13216_v40, %v5014_v0  ;;  %v5545_v0 = vsub.f32 %v13220_v37, %v5514_v10  ;;  %v13222_v37 = vld [vmem:[#allocation43_spill] sm:$0xff] }
 0xe04   :  { %13215 = vst [vmem:[#allocation40_spill] sm:$0xff] %v12182_v21  ;;  %v5016_v53 = vpop.xlane.xlu1 %5015  ;;  %5087 = vadd.xlane.f32.xlu1 %v12182_v21 }
 0xe05   :  { %8964 = vpow2.f32 %v5575_v22  ;;  %v5061_v26 = vmul.f32 1.442695, %v5039_v46  ;;  %v5040_v30 = vsub.f32 %v13217_v6, %v5016_v53  ;;  %v13221_v53 = vld [vmem:[#allocation42_spill] sm:$0xff] }
 0xe06   :  { %v5522_v52 = vpop.xlane.xlu0 %5521 }
 0xe07   :  { %8966 = vpow2.f32 %v5061_v26  ;;  %v5063_v45 = vmul.f32 1.442695, %v5040_v30  ;;  %v5549_v57 = vsub.f32 %v13218_v44, %v5522_v52  ;;  %v5546_v26 = vsub.f32 %v13221_v53, %v5516_v4  ;;  %v13223_v44 = vld [vmem:[#allocation44_spill] sm:$0xff] }
 0xe08   :  { %v5524_v34 = vpop.xlane.xlu1 %5523 }
 0xe09   :  { %8968 = vpow2.f32 %v5063_v45  ;;  %v5569_v33 = vmul.f32 1.442695, %v5549_v57  ;;  %v5550_v55 = vsub.f32 %v13219_v25, %v5524_v34  ;;  %v5561_v34 = vmul.f32 1.442695, %v5545_v0 }
 0xe0a   :  { %v5010_v14 = vpop.xlane.xlu0 %5009  ;;  %v5563_v4 = vmul.f32 1.442695, %v5546_v26  ;;  %v5034_v57 = vsub.f32 %v13223_v44, %v12169_v11 }
 0xe0b   :  { %8970 = vpow2.f32 %v5569_v33  ;;  %v5571_v40 = vmul.f32 1.442695, %v5550_v55  ;;  %v5037_v22 = vsub.f32 %v11939_v31, %v5010_v14  ;;  %v5033_v33 = vsub.f32 %v13222_v37, %v5002_v15 }
 0xe0c   :  { %v5012_v46 = vpop.xlane.xlu1 %5011 }
 0xe0d   :  { %v12191_v21 = vpop.eup %8962  ;;  %8972 = vpow2.f32 %v5571_v40  ;;  %v5057_v30 = vmul.f32 1.442695, %v5037_v22  ;;  %v5038_v52 = vsub.f32 %v11942_v58, %v5012_v46  ;;  %v5049_v14 = vmul.f32 1.442695, %v5033_v33 }
 0xe0e   :  { %5605 = vadd.xlane.f32.xlu0 %v12191_v21  ;;  %v5534_v6 = vpop.xlane.xlu0 %5533  ;;  %v5051_v40 = vmul.f32 1.442695, %v5034_v57 }
 0xe0f   :  { %v12196_v25 = vpop.eup %8964  ;;  %8974 = vpow2.f32 %v5057_v30  ;;  %v5059_v10 = vmul.f32 1.442695, %v5038_v52  ;;  %v5555_v33 = vsub.f32 %v11947_v27, %v5534_v6 }
 0xe10   :  { %v5536_v31 = vpop.xlane.xlu1 %5535  ;;  %5607 = vadd.xlane.f32.xlu1 %v12196_v25 }
 0xe11   :  { %v12200_v45 = vpop.eup %8966  ;;  %8976 = vpow2.f32 %v5059_v10  ;;  %v5556_v57 = vsub.f32 %v11950_v59, %v5536_v31  ;;  %v5581_v27 = vmul.f32 1.442695, %v5555_v33 }
 0xe12   :  { %5093 = vadd.xlane.f32.xlu0 %v12200_v45  ;;  %v5022_v58 = vpop.xlane.xlu0 %5021  ;;  %8978 = vpow2.f32 %v5561_v34 }
 0xe13   :  { %v12205_v55 = vpop.eup %8968  ;;  %8980 = vpow2.f32 %v5563_v4  ;;  %v5043_v6 = vsub.f32 %v11954_v13, %v5022_v58  ;;  %v5583_v59 = vmul.f32 1.442695, %v5556_v57 }
 0xe14   :  { %v5024_v15 = vpop.xlane.xlu1 %5023  ;;  %5095 = vadd.xlane.f32.xlu1 %v12205_v55  ;;  %8982 = vpow2.f32 %v5049_v14 }
 0xe15   :  { %v12208_v0 = vpop.eup %8970  ;;  %8984 = vpow2.f32 %v5051_v40  ;;  %v5044_v31 = vsub.f32 %v11960_v8, %v5024_v15 }
 0xe16   :  { %5601 = vadd.xlane.f32.xlu0 %v12208_v0  ;;  %v5530_v22 = vpop.xlane.xlu0 %5529 }
 0xe17   :  { %v12211_v46 = vpop.eup %8972  ;;  %v5553_v11 = vsub.f32 %v11966_v54, %v5530_v22  ;;  %v5071_v58 = vmul.f32 1.442695, %v5044_v31 }
 0xe18   :  { %v5532_v53 = vpop.xlane.xlu1 %5531  ;;  %5603 = vadd.xlane.f32.xlu1 %v12211_v46 }
 0xe19   :  { %v12215_v26 = vpop.eup %8974  ;;  %v5577_v30 = vmul.f32 1.442695, %v5553_v11  ;;  %v5554_v52 = vsub.f32 %v11973_v24, %v5532_v53 }
 0xe1a   :  { %5089 = vadd.xlane.f32.xlu0 %v12215_v26  ;;  %v5018_v34 = vpop.xlane.xlu0 %5017 }
 0xe1b   :  { %v12219_v37 = vpop.eup %8976  ;;  %8986 = vpow2.f32 %v5577_v30  ;;  %v5579_v10 = vmul.f32 1.442695, %v5554_v52  ;;  %v5041_v54 = vsub.f32 %v11978_v36, %v5018_v34  ;;  %v5069_v52 = vmul.f32 1.442695, %v5043_v6 }
 0xe1c   :  { %v5020_v4 = vpop.xlane.xlu1 %5019  ;;  %5091 = vadd.xlane.f32.xlu1 %v12219_v37  ;;  %v12224_v44 = vpop.eup %8978 }
 0xe1d   :  { %8988 = vpow2.f32 %v5579_v10  ;;  %v5065_v24 = vmul.f32 1.442695, %v5041_v54  ;;  %v5042_v14 = vsub.f32 %v11984_v38, %v5020_v4  ;;  %v12229_v22 = vpop.eup %8980 }
 0xe1e   :  { %5593 = vadd.xlane.f32.xlu0 %v12224_v44  ;;  %v5542_v40 = vpop.xlane.xlu0 %5541  ;;  %v12233_v53 = vpop.eup %8982 }
 0xe1f   :  { %8990 = vpow2.f32 %v5065_v24  ;;  %v5067_v36 = vmul.f32 1.442695, %v5042_v14  ;;  %v12237_v30 = vpop.eup %8984 }
 0xe20   :  { %v5544_v11 = vpop.xlane.xlu1 %5543  ;;  %5595 = vadd.xlane.f32.xlu1 %v12229_v22 }
 0xe21   :  { %8992 = vpow2.f32 %v5067_v36  ;;  %v5560_v31 = vsub.f32 %v11998_v32, %v5544_v11 }
 0xe22   :  { %5081 = vadd.xlane.f32.xlu0 %v12233_v53  ;;  %v5030_v38 = vpop.xlane.xlu0 %5029  ;;  %8994 = vpow2.f32 %v5581_v27  ;;  %v5559_v27 = vsub.f32 %v11990_v60, %v5542_v40 }
 0xe23   :  { %8996 = vpow2.f32 %v5583_v59  ;;  %v5591_v11 = vmul.f32 1.442695, %v5560_v31 }
 0xe24   :  { %v5032_v34 = vpop.xlane.xlu1 %5031  ;;  %5083 = vadd.xlane.f32.xlu1 %v12237_v30  ;;  %8998 = vpow2.f32 %v5069_v52 }
 0xe25   :  { %v12240_v13 = vpop.eup %8986  ;;  %9000 = vpow2.f32 %v5071_v58  ;;  %v5047_v58 = vsub.f32 %v12004_v29, %v5030_v38 }
 0xe26   :  { %5609 = vadd.xlane.f32.xlu0 %v12240_v13  ;;  %v5538_v33 = vpop.xlane.xlu0 %5537 }
 0xe27   :  { %v12243_v10 = vpop.eup %8988  ;;  %v5557_v8 = vsub.f32 %v12018_v51, %v5538_v33  ;;  %v5589_v33 = vmul.f32 1.442695, %v5559_v27 }
 0xe28   :  { %v5540_v15 = vpop.xlane.xlu1 %5539  ;;  %5611 = vadd.xlane.f32.xlu1 %v12243_v10 }
 0xe29   :  { %v12247_v54 = vpop.eup %8990  ;;  %v5585_v4 = vmul.f32 1.442695, %v5557_v8  ;;  %v5558_v57 = vsub.f32 %v12026_v50, %v5540_v15  ;;  %v5048_v8 = vsub.f32 %v12011_v18, %v5032_v34 }
 0xe2a   :  { %5097 = vadd.xlane.f32.xlu0 %v12247_v54  ;;  %v5026_v24 = vpop.xlane.xlu0 %5025 }
 0xe2b   :  { %v12251_v14 = vpop.eup %8992  ;;  %9002 = vpow2.f32 %v5585_v4  ;;  %v5587_v6 = vmul.f32 1.442695, %v5558_v57  ;;  %v5045_v51 = vsub.f32 %v12032_v23, %v5026_v24  ;;  %v5079_v4 = vmul.f32 1.442695, %v5048_v8 }
 0xe2c   :  { %v5028_v36 = vpop.xlane.xlu1 %5027  ;;  %5099 = vadd.xlane.f32.xlu1 %v12251_v14  ;;  %v12256_v59 = vpop.eup %8994 }
 0xe2d   :  { %9004 = vpow2.f32 %v5587_v6  ;;  %v5073_v50 = vmul.f32 1.442695, %v5045_v51  ;;  %v5046_v52 = vsub.f32 %v12039_v48, %v5028_v36  ;;  %v12262_v40 = vpop.eup %8996  ;;  %v5077_v48 = vmul.f32 1.442695, %v5047_v58 }
 0xe2e   :  { %5613 = vadd.xlane.f32.xlu0 %v12256_v59  ;;  %v4574_v60 = vpop.xlane.xlu0 %4573  ;;  %v12266_v32 = vpop.eup %8998 }
 0xe2f   :  { %9006 = vpow2.f32 %v5073_v50  ;;  %v5075_v23 = vmul.f32 1.442695, %v5046_v52  ;;  %v12269_v38 = vpop.eup %9000 }
 0xe30   :  { %v4576_v15 = vpop.xlane.xlu1 %4575  ;;  %5615 = vadd.xlane.f32.xlu1 %v12262_v40 }
 0xe31   :  { %9008 = vpow2.f32 %v5075_v23 }
 0xe32   :  { %5101 = vadd.xlane.f32.xlu0 %v12266_v32  ;;  %v4062_v29 = vpop.xlane.xlu0 %4061  ;;  %9010 = vpow2.f32 %v5589_v33 }
 0xe33   :  { %9012 = vpow2.f32 %v5591_v11 }
 0xe34   :  { %v4064_v57 = vpop.xlane.xlu1 %4063  ;;  %5103 = vadd.xlane.f32.xlu1 %v12269_v38  ;;  %9014 = vpow2.f32 %v5077_v48 }
 0xe35   :  { %v12272_v24 = vpop.eup %9002 }
 0xe36   :  { %5617 = vadd.xlane.f32.xlu0 %v12272_v24  ;;  %v4570_v18 = vpop.xlane.xlu0 %4569 }
 0xe37   :  { %v12275_v34 = vpop.eup %9004  ;;  %9016 = vrcp.f32 %v4570_v18 }
 0xe38   :  { %9018 = vpow2.f32 %v5079_v4  ;;  %v4572_v27 = vpop.xlane.xlu1 %4571  ;;  %5619 = vadd.xlane.f32.xlu1 %v12275_v34 }
 0xe39   :  { %v12278_v6 = vpop.eup %9006  ;;  %9020 = vrcp.f32 %v4572_v27 }
 0xe3a   :  { %13224 = vst [vmem:[#allocation45_spill] sm:$0xff] %v12278_v6  ;;  %9022 = vrcp.f32 %v4576_v15  ;;  %5105 = vadd.xlane.f32.xlu0 %v12278_v6  ;;  %v4058_v51 = vpop.xlane.xlu0 %4057 }
 0xe3b   :  { %v12281_v36 = vpop.eup %9008  ;;  %9024 = vrcp.f32 %v4058_v51 }
 0xe3c   :  { %13225 = vst [vmem:[#allocation46_spill] sm:$0xff] %v12281_v36  ;;  %9026 = vrcp.f32 %v4574_v60  ;;  %5107 = vadd.xlane.f32.xlu1 %v12281_v36  ;;  %v4060_v31 = vpop.xlane.xlu1 %4059  ;;  %v12284_v50 = vpop.eup %9010 }
 0xe3d   :  { %13226 = vst [vmem:[#allocation47_spill] sm:$0xff] %v12284_v50  ;;  %9028 = vrcp.f32 %v4060_v31  ;;  %v12287_v52 = vpop.eup %9012 }
 0xe3e   :  { %5621 = vadd.xlane.f32.xlu0 %v12284_v50  ;;  %13227 = vst [vmem:[#allocation48_spill] sm:$0xff] %v12287_v52  ;;  %v12289_v33 = vpop.eup %9014  ;;  %9030 = vrcp.f32 %v4064_v57 }
 0xe3f   :  { %v4582_v58 = vpop.xlane.xlu0 %4581  ;;  %13228 = vst [vmem:[#allocation49_spill] sm:$0xff] %v12289_v33  ;;  %9032 = vrcp.f32 %v4062_v29 }
 0xe40   :  { %5623 = vadd.xlane.f32.xlu1 %v12287_v52  ;;  %v4584_v23 = vpop.xlane.xlu1 %4583  ;;  %9034 = vrcp.f32 %v4582_v58 }
 0xe41   :  { %v9017_v8 = vpop.eup %9016 }
 0xe42   :  { %v12292_v15 = vpop.eup %9018  ;;  %5109 = vadd.xlane.f32.xlu0 %v12289_v33  ;;  %v4617_v18 = vmul.f32 %v9017_v8, %v12061_v28 }
 0xe43   :  { %v9021_v60 = vpop.eup %9020  ;;  %v4070_v11 = vpop.xlane.xlu0 %4069 }
 0xe44   :  { %v9023_v48 = vpop.eup %9022  ;;  %5111 = vadd.xlane.f32.xlu1 %v12292_v15  ;;  %v4072_v4 = vpop.xlane.xlu1 %4071  ;;  %v4618_v27 = vmul.f32 %v9021_v60, %v12065_v16 }
 0xe45   :  { %v9025_v51 = vpop.eup %9024  ;;  %v4620_v36 = vmul.f32 %v9023_v48, %v12049_v42  ;;  %v13230_v48 = vld [vmem:[#allocation51_spill] sm:$0xff] }
 0xe46   :  { %v9027_v31 = vpop.eup %9026  ;;  %v4633_v52 = vpack.c.bf16 %v4618_v27, %v4617_v18  ;;  %v4105_v33 = vmul.f32 %v9025_v51, %v12069_v35 }
 0xe47   :  { %v9029_v50 = vpop.eup %9028  ;;  %v4578_v57 = vpop.xlane.xlu0 %4577  ;;  %v4619_v28 = vmul.f32 %v9027_v31, %v12045_v61 }
 0xe48   :  { %v4106_v29 = vmul.f32 %v9029_v50, %v12072_v41  ;;  %v4580_v6 = vpop.xlane.xlu1 %4579  ;;  %5847 = vmatprep.mubr.bf16.mxu0 %v4633_v52  ;;  %9036 = vrcp.f32 %v4578_v57  ;;  %v9031_v8 = vpop.eup %9030 }
 0xe49   :  { %9038 = vrcp.f32 %v4580_v6  ;;  %v4634_v18 = vpack.c.bf16 %v4620_v36, %v4619_v28  ;;  %v9033_v58 = vpop.eup %9032  ;;  %v4108_v42 = vmul.f32 %v9031_v8, %v12057_v17 }
 0xe4a   :  { %9040 = vrcp.f32 %v4584_v23  ;;  %v4121_v16 = vpack.c.bf16 %v4106_v29, %v4105_v33  ;;  %v4107_v41 = vmul.f32 %v9033_v58, %v12053_v62  ;;  %v9035_v6 = vpop.eup %9034  ;;  %v13231_v29 = vld [vmem:[#allocation10_spill] sm:$0xff] }
 0xe4b   :  { %v4066_v60 = vpop.xlane.xlu0 %4065  ;;  %v4623_v31 = vmul.f32 %v9035_v6, %v12078_v2  ;;  %v13233_v2 = vld [vmem:[#allocation16_spill] sm:$0xff] }
 0xe4c   :  { %v4068_v27 = vpop.xlane.xlu1 %4067  ;;  %5848 = vmatmul.mubr.bf16.vlgmr.msra.gmra.mrb[192].mxu0 %v4121_v16  ;;  %9042 = vrcp.f32 %v4066_v60  ;;  %v4122_v50 = vpack.c.bf16 %v4108_v42, %v4107_v41  ;;  %v13232_v16 = vld [vmem:[#allocation53_spill] sm:$0xff] }
 0xe4d   :  { %9044 = vrcp.f32 %v4068_v27  ;;  %7748 = vmatpush3.bf16.msra.mxu0 %v11779_v63  ;;  %5855 = vmatprep.mubr.bf16.mxu0 %v4634_v18 }
 0xe4e   :  { %7749 = vmatprep.subr.bf16.mxu0 %v11945_v5  ;;  %9046 = vrcp.f32 %v4070_v11  ;;  %v13229_v11 = vld [vmem:[#allocation11_spill] sm:$0xff] }
 0xe4f   :  { %v4590_v35 = vpop.xlane.xlu0 %4589  ;;  %9048 = vrcp.f32 %v4072_v4 }
 0xe50   :  { %v4592_v61 = vpop.xlane.xlu1 %4591  ;;  %9050 = vrcp.f32 %v4590_v35 }
 0xe51   :  { %7750 = vmatpush3.bf16.msra.mxu0 %v11773_v1 }
 0xe52   :  { %v9037_v36 = vpop.eup %9036  ;;  %7751 = vmatprep.subr.bf16.mxu0 %v11968_v3 }
 0xe53   :  { %v9039_v52 = vpop.eup %9038  ;;  %v4078_v63 = vpop.xlane.xlu0 %4077  ;;  %v4621_v33 = vmul.f32 %v9037_v36, %v12094_v19 }
 0xe54   :  { %v9041_v5 = vpop.eup %9040  ;;  %v4080_v23 = vpop.xlane.xlu1 %4079  ;;  %5856 = vmatmul.mubr.bf16.gmra.mrb[196].mxu0 %v4122_v50  ;;  %v4622_v17 = vmul.f32 %v9039_v52, %v12096_v7 }
 0xe55   :  { %7752 = vmatpush3.bf16.msra.mxu0 %v13229_v11  ;;  %v4624_v19 = vmul.f32 %v9041_v5, %v12080_v47  ;;  %v13234_v47 = vld [vmem:[#allocation52_spill] sm:$0xff]  ;;  %v13237_v11 = vld [vmem:[#allocation54_spill] sm:$0xff] }
 0xe56   :  { %v9043_v62 = vpop.eup %9042  ;;  %7753 = vmatprep.subr.bf16.mxu0 %v13230_v48  ;;  %v4635_v4 = vpack.c.bf16 %v4622_v17, %v4621_v33  ;;  %v13236_v17 = vld [vmem:[#allocation25_spill] sm:$0xff] }
 0xe57   :  { %v9045_v1 = vpop.eup %9044  ;;  %v4586_v51 = vpop.xlane.xlu0 %4585  ;;  %v4109_v3 = vmul.f32 %v9043_v62, %v12102_v43  ;;  %v4636_v43 = vpack.c.bf16 %v4624_v19, %v4623_v31  ;;  %v13241_v31 = vld [vmem:[#allocation23_spill] sm:$0xff] }
 0xe58   :  { %v4588_v57 = vpop.xlane.xlu1 %4587  ;;  %5863 = vmatprep.mubr.bf16.mxu0 %v4635_v4  ;;  %9052 = vrcp.f32 %v4586_v51  ;;  %v4110_v7 = vmul.f32 %v9045_v1, %v12104_v56  ;;  %v9047_v28 = vpop.eup %9046  ;;  %v13239_v4 = vld [vmem:[#allocation6_spill] sm:$0xff]  ;;  %v13240_v51 = vld [vmem:[#allocation7_spill] sm:$0xff] }
 0xe59   :  { %9054 = vrcp.f32 %v4588_v57  ;;  %7754 = vmatpush3.bf16.msra.mxu0 %v13231_v29  ;;  %v9049_v60 = vpop.eup %9048  ;;  %v4111_v56 = vmul.f32 %v9047_v28, %v12086_v9  ;;  %v13235_v9 = vld [vmem:[#allocation14_spill] sm:$0xff]  ;;  %v13242_v57 = vld [vmem:[#allocation15_spill] sm:$0xff] }
 0xe5a   :  { %9056 = vrcp.f32 %v4592_v61  ;;  %7755 = vmatprep.subr.bf16.mxu0 %v13232_v16  ;;  %v4123_v8 = vpack.c.bf16 %v4110_v7, %v4109_v3  ;;  %v4112_v58 = vmul.f32 %v9049_v60, %v12088_v49  ;;  %v9051_v61 = vpop.eup %9050 }
 0xe5b   :  { %v4074_v18 = vpop.xlane.xlu0 %4073  ;;  %v4627_v1 = vmul.f32 %v9051_v61, %v13239_v4 }
 0xe5c   :  { %v4076_v27 = vpop.xlane.xlu1 %4075  ;;  %5864 = vmatmul.mubr.bf16.gmra.mrb[200].mxu0 %v4123_v8  ;;  %9058 = vrcp.f32 %v4074_v18  ;;  %v4124_v6 = vpack.c.bf16 %v4112_v58, %v4111_v56  ;;  %v13243_v18 = vld [vmem:[#allocation9_spill] sm:$0xff] }
 0xe5d   :  { %9060 = vrcp.f32 %v4076_v27  ;;  %7756 = vmatpush3.bf16.msra.mxu0 %v13233_v2  ;;  %5871 = vmatprep.mubr.bf16.mxu0 %v4636_v43  ;;  %v13244_v27 = vld [vmem:[#allocation12_spill] sm:$0xff] }
 0xe5e   :  { %7757 = vmatprep.subr.bf16.mxu0 %v13234_v47  ;;  %9062 = vrcp.f32 %v4078_v63 }
 0xe5f   :  { %v4598_v42 = vpop.xlane.xlu0 %4597  ;;  %9064 = vrcp.f32 %v4080_v23 }
 0xe60   :  { %v4600_v35 = vpop.xlane.xlu1 %4599  ;;  %9066 = vrcp.f32 %v4598_v42 }
 0xe61   :  { %7758 = vmatpush3.bf16.msra.mxu0 %v11828_v39 }
 0xe62   :  { %v9053_v41 = vpop.eup %9052  ;;  %7759 = vmatprep.subr.bf16.mxu0 %v12020_v20  ;;  %v13238_v20 = vld [vmem:[#allocation13_spill] sm:$0xff] }
 0xe63   :  { %v9055_v36 = vpop.eup %9054  ;;  %v4086_v50 = vpop.xlane.xlu0 %4085  ;;  %v4625_v52 = vmul.f32 %v9053_v41, %v12126_v12 }
 0xe64   :  { %v9057_v33 = vpop.eup %9056  ;;  %v4088_v5 = vpop.xlane.xlu1 %4087  ;;  %5872 = vmatmul.mubr.bf16.gmra.mrb[204].mxu0 %v4124_v6  ;;  %v4626_v49 = vmul.f32 %v9055_v36, %v13235_v9  ;;  %v13246_v6 = vld [vmem:[#allocation56_spill] sm:$0xff] }
 0xe65   :  { %7760 = vmatpush3.bf16.msra.mxu0 %v13236_v17  ;;  %v4628_v12 = vmul.f32 %v9057_v33, %v13240_v51 }
 0xe66   :  { %v9059_v63 = vpop.eup %9058  ;;  %7761 = vmatprep.subr.bf16.mxu0 %v13237_v11  ;;  %v4637_v23 = vpack.c.bf16 %v4626_v49, %v4625_v52  ;;  %v13247_v49 = vld [vmem:[#allocation57_spill] sm:$0xff] }
 0xe67   :  { %v9061_v39 = vpop.eup %9060  ;;  %v4594_v62 = vpop.xlane.xlu0 %4593  ;;  %v4113_v48 = vmul.f32 %v9059_v63, %v13238_v20  ;;  %v4638_v8 = vpack.c.bf16 %v4628_v12, %v4627_v1  ;;  %v13248_v63 = vld [vmem:[#allocation22_spill] sm:$0xff]  ;;  %v13251_v1 = vld [vmem:[#allocation21_spill] sm:$0xff] }
 0xe68   :  { %v4596_v3 = vpop.xlane.xlu1 %4595  ;;  %5879 = vmatprep.mubr.bf16.mxu0 %v4637_v23  ;;  %9068 = vrcp.f32 %v4594_v62  ;;  %v4114_v19 = vmul.f32 %v9061_v39, %v13241_v31  ;;  %v9063_v7 = vpop.eup %9062  ;;  %v13249_v23 = vld [vmem:[#allocation24_spill] sm:$0xff]  ;;  %v13252_v12 = vld [vmem:[#allocation26_spill] sm:$0xff] }
 0xe69   :  { %9070 = vrcp.f32 %v4596_v3  ;;  %7762 = vmatpush3.bf16.msra.mxu0 %v13242_v57  ;;  %v9065_v28 = vpop.eup %9064  ;;  %v4115_v43 = vmul.f32 %v9063_v7, %v13243_v18  ;;  %v13254_v18 = vld [vmem:[#allocation38_spill] sm:$0xff] }
 0xe6a   :  { %9072 = vrcp.f32 %v4600_v35  ;;  %v4125_v29 = vpack.c.bf16 %v4114_v19, %v4113_v48  ;;  %v4116_v2 = vmul.f32 %v9065_v28, %v13244_v27  ;;  %v9067_v47 = vpop.eup %9066  ;;  %v13245_v35 = vld [vmem:[#allocation55_spill] sm:$0xff] }
 0xe6b   :  { %v4082_v16 = vpop.xlane.xlu0 %4081  ;;  %v4631_v11 = vmul.f32 %v9067_v47, %v13248_v63 }
 0xe6c   :  { %v4084_v60 = vpop.xlane.xlu1 %4083  ;;  %5880 = vmatmul.mubr.bf16.gmra.mrb[208].mxu0 %v4125_v29  ;;  %9074 = vrcp.f32 %v4082_v16  ;;  %v4126_v58 = vpack.c.bf16 %v4116_v2, %v4115_v43 }
 0xe6d   :  { %9076 = vrcp.f32 %v4084_v60  ;;  %5887 = vmatprep.mubr.bf16.mxu0 %v4638_v8  ;;  %v13253_v8 = vld [vmem:[#allocation27_spill] sm:$0xff] }
 0xe6e   :  { %9078 = vrcp.f32 %v4086_v50 }
 0xe6f   :  { %9080 = vrcp.f32 %v4088_v5  ;;  %v13250_v5 = vld [vmem:[#allocation58_spill] sm:$0xff] }
 0xe72   :  { %v9069_v56 = vpop.eup %9068 }
 0xe73   :  { %v9071_v42 = vpop.eup %9070  ;;  %v4629_v61 = vmul.f32 %v9069_v56, %v13245_v35  ;;  %v13256_v35 = vld [vmem:[#allocation40_spill] sm:$0xff] }
 0xe74   :  { %v9073_v41 = vpop.eup %9072  ;;  %5888 = vmatmul.mubr.bf16.gmra.mrb[212].mxu0 %v4126_v58  ;;  %v4630_v36 = vmul.f32 %v9071_v42, %v13246_v6  ;;  %v13255_v58 = vld [vmem:[#allocation39_spill] sm:$0xff] }
 0xe75   :  { %v4632_v50 = vmul.f32 %v9073_v41, %v13249_v23 }
 0xe76   :  { %v9075_v52 = vpop.eup %9074  ;;  %v4639_v33 = vpack.c.bf16 %v4630_v36, %v4629_v61 }
 0xe77   :  { %v9077_v9 = vpop.eup %9076  ;;  %v4117_v17 = vmul.f32 %v9075_v52, %v13247_v49  ;;  %v4640_v4 = vpack.c.bf16 %v4632_v50, %v4631_v11 }
 0xe78   :  { %5895 = vmatprep.mubr.bf16.mxu0 %v4639_v33  ;;  %v4118_v39 = vmul.f32 %v9077_v9, %v13250_v5  ;;  %v9079_v62 = vpop.eup %9078 }
 0xe79   :  { %v9081_v48 = vpop.eup %9080  ;;  %v4119_v51 = vmul.f32 %v9079_v62, %v13251_v1 }
 0xe7a   :  { %v4127_v20 = vpack.c.bf16 %v4118_v39, %v4117_v17  ;;  %v4120_v3 = vmul.f32 %v9081_v48, %v13252_v12 }
 0xe7c   :  { %5896 = vmatmul.mubr.bf16.gmra.mrb[216].mxu0 %v4127_v20  ;;  %v4128_v31 = vpack.c.bf16 %v4120_v3, %v4119_v51 }
 0xe7d   :  { %5903 = vmatprep.mubr.bf16.mxu0 %v4640_v4 }
 0xe84   :  { %5904 = vmatmul.mubr.bf16.gmra.mrb[220].mxu0 %v4128_v31 }
 0xe8b   :  { %v5598_v19 = vpop.xlane.xlu0 %5597 }
 0xe8c   :  { %9082 = vrcp.f32 %v5598_v19 }
 0xe8d   :  { %v5600_v57 = vpop.xlane.xlu1 %5599 }
 0xe8e   :  { %9084 = vrcp.f32 %v5600_v57 }
 0xe8f   :  { %v5086_v7 = vpop.xlane.xlu0 %5085 }
 0xe90   :  { %9086 = vrcp.f32 %v5086_v7 }
 0xe91   :  { %v5088_v29 = vpop.xlane.xlu1 %5087 }
 0xe92   :  { %9088 = vrcp.f32 %v5088_v29 }
 0xe96   :  { %v9083_v28 = vpop.eup %9082 }
 0xe97   :  { %v5643_v60 = vmul.f32 %v9083_v28, %v13253_v8 }
 0xe98   :  { %v9085_v16 = vpop.eup %9084 }
 0xe99   :  { %v5644_v43 = vmul.f32 %v9085_v16, %v13254_v18 }
 0xe9a   :  { %v9087_v27 = vpop.eup %9086 }
 0xe9b   :  { %v5606_v2 = vpop.xlane.xlu0 %5605  ;;  %v5658_v47 = vpack.c.bf16 %v5644_v43, %v5643_v60  ;;  %v5131_v42 = vmul.f32 %v9087_v27, %v13255_v58 }
 0xe9c   :  { %v9089_v56 = vpop.eup %9088 }
 0xe9d   :  { %v5132_v61 = vmul.f32 %v9089_v56, %v13256_v35  ;;  %v5608_v41 = vpop.xlane.xlu1 %5607  ;;  %5952 = vmatprep.mubr.bf16.mxu1 %v5658_v47 }
 0xe9f   :  { %v5094_v6 = vpop.xlane.xlu0 %5093  ;;  %v5146_v36 = vpack.c.bf16 %v5132_v61, %v5131_v42 }
 0xea1   :  { %v5096_v52 = vpop.xlane.xlu1 %5095  ;;  %5953 = vmatmul.mubr.bf16.vlgmr.msra.gmra.mrb[192].mxu1 %v5146_v36 }
 0xea3   :  { %v5602_v33 = vpop.xlane.xlu0 %5601 }
 0xea4   :  { %9090 = vrcp.f32 %v5602_v33 }
 0xea5   :  { %v5604_v9 = vpop.xlane.xlu1 %5603 }
 0xea6   :  { %9092 = vrcp.f32 %v5604_v9 }
 0xea7   :  { %9094 = vrcp.f32 %v5608_v41  ;;  %v5090_v49 = vpop.xlane.xlu0 %5089 }
 0xea8   :  { %9096 = vrcp.f32 %v5090_v49 }
 0xea9   :  { %9098 = vrcp.f32 %v5606_v2  ;;  %v5092_v17 = vpop.xlane.xlu1 %5091 }
 0xeaa   :  { %9100 = vrcp.f32 %v5092_v17 }
 0xeab   :  { %v5594_v63 = vpop.xlane.xlu0 %5593 }
 0xeac   :  { %9102 = vrcp.f32 %v5594_v63 }
 0xead   :  { %9104 = vrcp.f32 %v5096_v52  ;;  %v5596_v11 = vpop.xlane.xlu1 %5595 }
 0xeae   :  { %v9091_v23 = vpop.eup %9090  ;;  %9106 = vrcp.f32 %v5596_v11 }
 0xeaf   :  { %9108 = vrcp.f32 %v5094_v6  ;;  %v5082_v50 = vpop.xlane.xlu0 %5081  ;;  %v5645_v20 = vmul.f32 %v9091_v23, %v12208_v0 }
 0xeb0   :  { %v9093_v5 = vpop.eup %9092  ;;  %9110 = vrcp.f32 %v5082_v50 }
 0xeb1   :  { %v9095_v39 = vpop.eup %9094  ;;  %v5084_v62 = vpop.xlane.xlu1 %5083  ;;  %v5646_v48 = vmul.f32 %v9093_v5, %v12211_v46 }
 0xeb2   :  { %v9097_v4 = vpop.eup %9096  ;;  %9112 = vrcp.f32 %v5084_v62  ;;  %v5648_v31 = vmul.f32 %v9095_v39, %v12196_v25 }
 0xeb3   :  { %v9099_v1 = vpop.eup %9098  ;;  %v5610_v51 = vpop.xlane.xlu0 %5609  ;;  %v5659_v12 = vpack.c.bf16 %v5646_v48, %v5645_v20  ;;  %v5133_v57 = vmul.f32 %v9097_v4, %v12215_v26 }
 0xeb4   :  { %v9101_v3 = vpop.eup %9100  ;;  %9114 = vrcp.f32 %v5610_v51  ;;  %v5647_v0 = vmul.f32 %v9099_v1, %v12191_v21 }
 0xeb5   :  { %v5612_v19 = vpop.xlane.xlu1 %5611  ;;  %5960 = vmatprep.mubr.bf16.mxu1 %v5659_v12  ;;  %v5134_v7 = vmul.f32 %v9101_v3, %v12219_v37 }
 0xeb6   :  { %v9103_v29 = vpop.eup %9102  ;;  %9116 = vrcp.f32 %v5612_v19  ;;  %v5660_v60 = vpack.c.bf16 %v5648_v31, %v5647_v0 }
 0xeb7   :  { %v9105_v46 = vpop.eup %9104  ;;  %v5098_v28 = vpop.xlane.xlu0 %5097  ;;  %v5147_v16 = vpack.c.bf16 %v5134_v7, %v5133_v57  ;;  %v5641_v25 = vmul.f32 %v9103_v29, %v12224_v44 }
 0xeb8   :  { %v9107_v8 = vpop.eup %9106  ;;  %9118 = vrcp.f32 %v5098_v28  ;;  %v5136_v21 = vmul.f32 %v9105_v46, %v12205_v55 }
 0xeb9   :  { %v9109_v18 = vpop.eup %9108  ;;  %v5100_v43 = vpop.xlane.xlu1 %5099  ;;  %5961 = vmatmul.mubr.bf16.gmra.mrb[196].mxu1 %v5147_v16  ;;  %v5642_v27 = vmul.f32 %v9107_v8, %v12229_v22  ;;  %v13259_v8 = vld [vmem:[#allocation47_spill] sm:$0xff] }
 0xeba   :  { %v9111_v26 = vpop.eup %9110  ;;  %9120 = vrcp.f32 %v5100_v43  ;;  %5968 = vmatprep.mubr.bf16.mxu1 %v5660_v60  ;;  %v5135_v35 = vmul.f32 %v9109_v18, %v12200_v45  ;;  %v13260_v18 = vld [vmem:[#allocation48_spill] sm:$0xff] }
 0xebb   :  { %v5614_v37 = vpop.xlane.xlu0 %5613  ;;  %v5657_v2 = vpack.c.bf16 %v5642_v27, %v5641_v25  ;;  %v5129_v56 = vmul.f32 %v9111_v26, %v12233_v53  ;;  %v13261_v27 = vld [vmem:[#allocation49_spill] sm:$0xff] }
 0xebc   :  { %v9113_v47 = vpop.eup %9112  ;;  %9122 = vrcp.f32 %v5614_v37  ;;  %v5148_v41 = vpack.c.bf16 %v5136_v21, %v5135_v35 }
 0xebd   :  { %v5130_v58 = vmul.f32 %v9113_v47, %v12237_v30  ;;  %v5616_v42 = vpop.xlane.xlu1 %5615  ;;  %5944 = vmatprep.mubr.bf16.mxu0 %v5657_v2 }
 0xebe   :  { %v9115_v44 = vpop.eup %9114  ;;  %9124 = vrcp.f32 %v5616_v42 }
 0xebf   :  { %v5102_v22 = vpop.xlane.xlu0 %5101  ;;  %v5145_v61 = vpack.c.bf16 %v5130_v58, %v5129_v56  ;;  %v5649_v55 = vmul.f32 %v9115_v44, %v12240_v13 }
 0xec0   :  { %v9117_v6 = vpop.eup %9116  ;;  %9126 = vrcp.f32 %v5102_v22 }
 0xec1   :  { %v5104_v36 = vpop.xlane.xlu1 %5103  ;;  %5945 = vmatmul.mubr.bf16.vlgmr.msra.gmra.mrb[224].mxu0 %v5145_v61  ;;  %5969 = vmatmul.mubr.bf16.gmra.mrb[200].mxu1 %v5148_v41  ;;  %v5650_v53 = vmul.f32 %v9117_v6, %v12243_v10 }
 0xec2   :  { %v9119_v52 = vpop.eup %9118  ;;  %9128 = vrcp.f32 %v5104_v36 }
 0xec3   :  { %v5618_v30 = vpop.xlane.xlu0 %5617  ;;  %v5661_v33 = vpack.c.bf16 %v5650_v53, %v5649_v55  ;;  %v5137_v49 = vmul.f32 %v9119_v52, %v12247_v54 }
 0xec4   :  { %v9121_v9 = vpop.eup %9120  ;;  %9130 = vrcp.f32 %v5618_v30 }
 0xec5   :  { %v5620_v45 = vpop.xlane.xlu1 %5619  ;;  %5976 = vmatprep.mubr.bf16.mxu1 %v5661_v33  ;;  %v5138_v17 = vmul.f32 %v9121_v9, %v12251_v14 }
 0xec6   :  { %v9123_v63 = vpop.eup %9122  ;;  %9132 = vrcp.f32 %v5620_v45 }
 0xec7   :  { %v5106_v11 = vpop.xlane.xlu0 %5105  ;;  %v5149_v23 = vpack.c.bf16 %v5138_v17, %v5137_v49  ;;  %v5651_v10 = vmul.f32 %v9123_v63, %v12256_v59 }
 0xec8   :  { %v9125_v50 = vpop.eup %9124  ;;  %9134 = vrcp.f32 %v5106_v11 }
 0xec9   :  { %v5108_v13 = vpop.xlane.xlu1 %5107  ;;  %5977 = vmatmul.mubr.bf16.gmra.mrb[204].mxu1 %v5149_v23  ;;  %v5652_v5 = vmul.f32 %v9125_v50, %v12262_v40 }
 0xeca   :  { %v9127_v39 = vpop.eup %9126  ;;  %9136 = vrcp.f32 %v5108_v13 }
 0xecb   :  { %v5622_v62 = vpop.xlane.xlu0 %5621  ;;  %v5662_v20 = vpack.c.bf16 %v5652_v5, %v5651_v10  ;;  %v5139_v14 = vmul.f32 %v9127_v39, %v12266_v32  ;;  %v13257_v32 = vld [vmem:[#allocation45_spill] sm:$0xff] }
 0xecc   :  { %v9129_v48 = vpop.eup %9128  ;;  %9138 = vrcp.f32 %v5622_v62 }
 0xecd   :  { %v5624_v54 = vpop.xlane.xlu1 %5623  ;;  %5984 = vmatprep.mubr.bf16.mxu1 %v5662_v20  ;;  %v5140_v4 = vmul.f32 %v9129_v48, %v12269_v38  ;;  %v13258_v38 = vld [vmem:[#allocation46_spill] sm:$0xff] }
 0xece   :  { %v9131_v1 = vpop.eup %9130  ;;  %9140 = vrcp.f32 %v5624_v54 }
 0xecf   :  { %v5110_v51 = vpop.xlane.xlu0 %5109  ;;  %v5150_v12 = vpack.c.bf16 %v5140_v4, %v5139_v14  ;;  %v5653_v40 = vmul.f32 %v9131_v1, %v12272_v24 }
 0xed0   :  { %v9133_v3 = vpop.eup %9132  ;;  %9142 = vrcp.f32 %v5110_v51 }
 0xed1   :  { %v5112_v59 = vpop.xlane.xlu1 %5111  ;;  %5985 = vmatmul.mubr.bf16.gmra.mrb[208].mxu1 %v5150_v12  ;;  %v5654_v31 = vmul.f32 %v9133_v3, %v12275_v34 }
 0xed2   :  { %v9135_v19 = vpop.eup %9134  ;;  %9144 = vrcp.f32 %v5112_v59 }
 0xed3   :  { %v5663_v57 = vpack.c.bf16 %v5654_v31, %v5653_v40  ;;  %v5141_v29 = vmul.f32 %v9135_v19, %v13257_v32 }
 0xed4   :  { %v9137_v7 = vpop.eup %9136 }
 0xed5   :  { %5992 = vmatprep.mubr.bf16.mxu1 %v5663_v57  ;;  %v5142_v0 = vmul.f32 %v9137_v7, %v13258_v38 }
 0xed6   :  { %v9139_v46 = vpop.eup %9138 }
 0xed7   :  { %v5151_v28 = vpack.c.bf16 %v5142_v0, %v5141_v29  ;;  %v5655_v60 = vmul.f32 %v9139_v46, %v13259_v8 }
 0xed8   :  { %v9141_v16 = vpop.eup %9140 }
 0xed9   :  { %5993 = vmatmul.mubr.bf16.gmra.mrb[212].mxu1 %v5151_v28  ;;  %v5656_v43 = vmul.f32 %v9141_v16, %v13260_v18 }
 0xeda   :  { %v9143_v24 = vpop.eup %9142 }
 0xedb   :  { %v5664_v25 = vpack.c.bf16 %v5656_v43, %v5655_v60  ;;  %v5143_v26 = vmul.f32 %v9143_v24, %v13261_v27 }
 0xedc   :  { %v9145_v34 = vpop.eup %9144 }
 0xedd   :  { %6000 = vmatprep.mubr.bf16.mxu1 %v5664_v25  ;;  %v5144_v37 = vmul.f32 %v9145_v34, %v12292_v15 }
 0xedf   :  { %v5152_v2 = vpack.c.bf16 %v5144_v37, %v5143_v26 }
 0xee1   :  { %6001 = vmatmul.mubr.bf16.gmra.mrb[216].mxu1 %v5152_v2 }
 0xf1f   :  { %v7699_v21 = vpop.f32.mrb[192].mxu0 }
 0xf20   :  { %v7700_v47 = vpop.f32.mrb[193].mxu0 }
 0xf21   :  { %v12375_v56 = vadd.f32 %v7700_v47, %v7699_v21  ;;  %v7702_v58 = vpop.f32.mrb[194].mxu0 }
 0xf22   :  { %v7703_v42 = vpop.f32.mrb[195].mxu0 }
 0xf23   :  { %v12377_v35 = vadd.f32 %v7703_v42, %v7702_v58 }
 0xf27   :  { %v7705_v44 = vpop.f32.mrb[196].mxu0 }
 0xf28   :  { %v7706_v22 = vpop.f32.mrb[197].mxu0 }
 0xf29   :  { %v7707_v61 = vadd.f32 %v7706_v22, %v7705_v44  ;;  %v7708_v41 = vpop.f32.mrb[198].mxu0 }
 0xf2a   :  { %v7709_v6 = vpop.f32.mrb[199].mxu0 }
 0xf2b   :  { %v7710_v36 = vadd.f32 %v7709_v6, %v7708_v41 }
 0xf2f   :  { %v7711_v55 = vpop.f32.mrb[200].mxu0 }
 0xf30   :  { %v7712_v53 = vpop.f32.mrb[201].mxu0 }
 0xf31   :  { %v7713_v52 = vadd.f32 %v7712_v53, %v7711_v55  ;;  %v7714_v15 = vpop.f32.mrb[202].mxu0 }
 0xf32   :  { %v7715_v30 = vpop.f32.mrb[203].mxu0 }
 0xf33   :  { %v7716_v33 = vadd.f32 %v7715_v30, %v7714_v15 }
 0xf37   :  { %v7717_v9 = vpop.f32.mrb[204].mxu0 }
 0xf38   :  { %v7718_v45 = vpop.f32.mrb[205].mxu0 }
 0xf39   :  { %v7719_v49 = vadd.f32 %v7718_v45, %v7717_v9  ;;  %v7720_v17 = vpop.f32.mrb[206].mxu0  ;;  %v13262_v9 = vld [vmem:[#allocation29_spill] sm:$0xff] }
 0xf3a   :  { %v7721_v63 = vpop.f32.mrb[207].mxu0 }
 0xf3b   :  { %v7722_v11 = vadd.f32 %v7721_v63, %v7720_v17 }
 0xf3f   :  { %v7723_v23 = vpop.f32.mrb[208].mxu0 }
 0xf40   :  { %v7724_v50 = vpop.f32.mrb[209].mxu0 }
 0xf41   :  { %v12379_v13 = vadd.f32 %v7724_v50, %v7723_v23  ;;  %v7726_v10 = vpop.f32.mrb[210].mxu0  ;;  %v12402_v23 = vld [vmem:[%s12869_s4 + $0x1] ss:$0 sm:$0xff]  ;;  %v13264_v50 = vld [vmem:[#allocation30_spill] sm:$0xff] }
 0xf42   :  { %v7727_v5 = vpop.f32.mrb[211].mxu0 }
 0xf43   :  { %v12381_v39 = vadd.f32 %v7727_v5, %v7726_v10  ;;  %v13265_v5 = vld [vmem:[#allocation31_spill] sm:$0xff] }
 0xf47   :  { %v7729_v62 = vpop.f32.mrb[212].mxu0 }
 0xf48   :  { %v7730_v20 = vpop.f32.mrb[213].mxu0 }
 0xf49   :  { %v12383_v48 = vadd.f32 %v7730_v20, %v7729_v62  ;;  %v7732_v54 = vpop.f32.mrb[214].mxu0 }
 0xf4a   :  { %v7733_v14 = vpop.f32.mrb[215].mxu0 }
 0xf4b   :  { %v12385_v4 = vadd.f32 %v7733_v14, %v7732_v54  ;;  %v13266_v14 = vld [vmem:[#allocation33_spill] sm:$0xff] }
 0xf4f   :  { %v7735_v1 = vpop.f32.mrb[216].mxu0 }
 0xf50   :  { %v7736_v51 = vpop.f32.mrb[217].mxu0 }
 0xf51   :  { %v12387_v12 = vadd.f32 %v7736_v51, %v7735_v1  ;;  %v7738_v3 = vpop.f32.mrb[218].mxu0 }
 0xf52   :  { %v7739_v59 = vpop.f32.mrb[219].mxu0 }
 0xf53   :  { %v12389_v40 = vadd.f32 %v7739_v59, %v7738_v3  ;;  %v13267_v59 = vld [vmem:[#allocation35_spill] sm:$0xff] }
 0xf57   :  { %v7741_v31 = vpop.f32.mrb[220].mxu0 }
 0xf58   :  { %v7742_v19 = vpop.f32.mrb[221].mxu0 }
 0xf59   :  { %v12391_v57 = vadd.f32 %v7742_v19, %v7741_v31  ;;  %v7744_v7 = vpop.f32.mrb[222].mxu0 }
 0xf5a   :  { %v7745_v32 = vpop.f32.mrb[223].mxu0 }
 0xf5b   :  { %v12393_v29 = vadd.f32 %v7745_v32, %v7744_v7 }
 0xf74   :  { %v7769_v38 = vpop.f32.mrb[192].mxu1 }
 0xf75   :  { %v7770_v0 = vpop.f32.mrb[193].mxu1 }
 0xf76   :  { %v7771_v46 = vadd.f32 %v7770_v0, %v7769_v38  ;;  %v7772_v28 = vpop.f32.mrb[194].mxu1 }
 0xf77   :  { %v7773_v16 = vpop.f32.mrb[195].mxu1 }
 0xf78   :  { %v5955_v8 = vadd.f32 %v7771_v46, %v7707_v61  ;;  %v7774_v60 = vadd.f32 %v7773_v16, %v7772_v28  ;;  %v13268_v46 = vld [vmem:[#allocation32_spill] sm:$0xff] }
 0xf7a   :  { %v5958_v18 = vadd.f32 %v7774_v60, %v7710_v36  ;;  %v6011_v45 = vadd.f32 %v5955_v8, %v13262_v9 }
 0xf7c   :  { %v6012_v10 = vadd.f32 %v5958_v18, %v13264_v50  ;;  %v12410_v54 = vadd.f32 %v12402_v23, %v6011_v45  ;;  %v13269_v18 = vld [vmem:[#allocation34_spill] sm:$0xff] }
 0xf7e   :  { %v12423_v0 = vadd.f32 %v12402_v23, %v6012_v10  ;;  %v6055_v8 = vsel %vm66_vm0, %v12410_v54, 0.0 }
 0xf8c   :  { %v7775_v43 = vpop.f32.mrb[196].mxu1 }
 0xf8d   :  { %v7776_v24 = vpop.f32.mrb[197].mxu1 }
 0xf8e   :  { %v7777_v25 = vadd.f32 %v7776_v24, %v7775_v43  ;;  %v7778_v34 = vpop.f32.mrb[198].mxu1 }
 0xf8f   :  { %v7779_v27 = vpop.f32.mrb[199].mxu1 }
 0xf90   :  { %v5963_v26 = vadd.f32 %v7777_v25, %v7713_v52  ;;  %v7780_v37 = vadd.f32 %v7779_v27, %v7778_v34  ;;  %v13263_v52 = vld [vmem:[#allocation28_spill] sm:$0xff]  ;;  %v6058_v25 = vsel %vm66_vm0, %v12423_v0, 0.0  ;;  %v13270_v27 = vld [vmem:[#allocation37_spill] sm:$0xff] }
 0xf92   :  { %v5966_v2 = vadd.f32 %v7780_v37, %v7716_v33 }
 0xf94   :  { %v7763_v21 = vpop.f32.mrb[224].mxu0  ;;  %v7781_v47 = vpop.f32.mrb[200].mxu1  ;;  %v6014_v31 = vadd.f32 %v5966_v2, %v13267_v59 }
 0xf95   :  { %v7764_v58 = vpop.f32.mrb[225].mxu0  ;;  %v7782_v42 = vpop.f32.mrb[201].mxu1 }
 0xf96   :  { %v7765_v44 = vadd.f32 %v7764_v58, %v7763_v21  ;;  %v7783_v22 = vadd.f32 %v7782_v42, %v7781_v47  ;;  %v7766_v41 = vpop.f32.mrb[226].mxu0  ;;  %v7784_v6 = vpop.f32.mrb[202].mxu1  ;;  %v13271_v42 = vld [vmem:[#allocation17_spill] sm:$0xff] }
 0xf97   :  { %v7767_v55 = vpop.f32.mrb[227].mxu0  ;;  %v7785_v61 = vpop.f32.mrb[203].mxu1 }
 0xf98   :  { %v5947_v36 = vadd.f32 %v7765_v44, %v12375_v56  ;;  %v5971_v53 = vadd.f32 %v7783_v22, %v7719_v49  ;;  %v7768_v15 = vadd.f32 %v7767_v55, %v7766_v41  ;;  %v7786_v30 = vadd.f32 %v7785_v61, %v7784_v6  ;;  %v13272_v55 = vld [vmem:[#allocation36_spill] sm:$0xff] }
 0xf9a   :  { %v6009_v17 = vadd.f32 %v5947_v36, %v13263_v52  ;;  %v5950_v33 = vadd.f32 %v7768_v15, %v12377_v35  ;;  %v5974_v63 = vadd.f32 %v7786_v30, %v7722_v11  ;;  %v6013_v35 = vadd.f32 %v5963_v26, %v13266_v14  ;;  %v13273_v30 = vld [vmem:[#allocation18_spill] sm:$0xff]  ;;  %v13274_v14 = vld [vmem:[#allocation19_spill] sm:$0xff] }
 0xf9b   :  { %v6015_v28 = vadd.f32 %v5971_v53, %v13268_v46 }
 0xf9c   :  { %v6010_v62 = vadd.f32 %v5950_v33, %v13265_v5  ;;  %v7787_v56 = vpop.f32.mrb[204].mxu1  ;;  %v12407_v49 = vadd.f32 %v12402_v23, %v6009_v17  ;;  %v12430_v60 = vadd.f32 %v12402_v23, %v6013_v35  ;;  %v6016_v43 = vadd.f32 %v5974_v63, %v13269_v18 }
 0xf9d   :  { %v7788_v20 = vpop.f32.mrb[205].mxu1  ;;  %v12442_v21 = vadd.f32 %v12402_v23, %v6015_v28 }
 0xf9e   :  { %v7789_v11 = vadd.f32 %v7788_v20, %v7787_v56  ;;  %v7790_v1 = vpop.f32.mrb[206].mxu1  ;;  %v6049_v51 = vsel %vm66_vm0, %v12407_v49, 0.0  ;;  %v12416_v3 = vadd.f32 %v12402_v23, %v6010_v62  ;;  %v6061_v2 = vsel %vm66_vm0, %v12430_v60, 0.0 }
 0xf9f   :  { %6050 = vadd.xlane.f32.xlu0 %v6049_v51  ;;  %v7791_v19 = vpop.f32.mrb[207].mxu1  ;;  %v12449_v6 = vadd.f32 %v12402_v23, %v6016_v43  ;;  %v6067_v53 = vsel %vm66_vm0, %v12442_v21, 0.0  ;;  %v13275_v51 = vld [vmem:[#allocation5_spill] sm:$0xff]  ;;  %v13276_v43 = vld [vmem:[#allocation20_spill] sm:$0xff] }
 0xfa0   :  { %v5979_v7 = vadd.f32 %v7789_v11, %v12379_v13  ;;  %v7792_v32 = vadd.f32 %v7791_v19, %v7790_v1  ;;  %v6052_v38 = vsel %vm66_vm0, %v12416_v3, 0.0  ;;  %v12433_v13 = vadd.f32 %v12402_v23, %v6014_v31 }
 0xfa1   :  { %6053 = vadd.xlane.f32.xlu1 %v6052_v38 }
 0xfa2   :  { %v5982_v16 = vadd.f32 %v7792_v32, %v12381_v39  ;;  %v6017_v39 = vadd.f32 %v5979_v7, %v13270_v27  ;;  %v6064_v58 = vsel %vm66_vm0, %v12433_v13, 0.0 }
 0xfa3   :  { %6056 = vadd.xlane.f32.xlu0 %v6055_v8 }
 0xfa4   :  { %v7793_v24 = vpop.f32.mrb[208].mxu1  ;;  %v6018_v44 = vadd.f32 %v5982_v16, %v13271_v42  ;;  %v12456_v15 = vadd.f32 %v12402_v23, %v6017_v39 }
 0xfa5   :  { %6059 = vadd.xlane.f32.xlu1 %v6058_v25  ;;  %v7794_v34 = vpop.f32.mrb[209].mxu1 }
 0xfa6   :  { %v7795_v26 = vadd.f32 %v7794_v34, %v7793_v24  ;;  %v7796_v37 = vpop.f32.mrb[210].mxu1  ;;  %v12462_v52 = vadd.f32 %v12402_v23, %v6018_v44  ;;  %v6073_v63 = vsel %vm66_vm0, %v12456_v15, 0.0  ;;  %v13277_v34 = vld [vmem:[#allocation8_spill] sm:$0xff] }
 0xfa7   :  { %6062 = vadd.xlane.f32.xlu0 %v6061_v2  ;;  %v7797_v47 = vpop.f32.mrb[211].mxu1 }
 0xfa8   :  { %v5987_v22 = vadd.f32 %v7795_v26, %v12383_v48  ;;  %v7798_v41 = vadd.f32 %v7797_v47, %v7796_v37  ;;  %v6070_v48 = vsel %vm66_vm0, %v12449_v6, 0.0  ;;  %v6076_v56 = vsel %vm66_vm0, %v12462_v52, 0.0 }
 0xfa9   :  { %6065 = vadd.xlane.f32.xlu1 %v6064_v58 }
 0xfaa   :  { %v6019_v61 = vadd.f32 %v5987_v22, %v13272_v55  ;;  %v5990_v36 = vadd.f32 %v7798_v41, %v12385_v4 }
 0xfab   :  { %6068 = vadd.xlane.f32.xlu0 %v6067_v53 }
 0xfac   :  { %v6020_v9 = vadd.f32 %v5990_v36, %v13273_v30  ;;  %v7799_v45 = vpop.f32.mrb[212].mxu1  ;;  %v12467_v50 = vadd.f32 %v12402_v23, %v6019_v61 }
 0xfad   :  { %6071 = vadd.xlane.f32.xlu1 %v6070_v48  ;;  %v7800_v17 = vpop.f32.mrb[213].mxu1 }
 0xfae   :  { %v7801_v33 = vadd.f32 %v7800_v17, %v7799_v45  ;;  %v7802_v4 = vpop.f32.mrb[214].mxu1  ;;  %v12473_v20 = vadd.f32 %v12402_v23, %v6020_v9  ;;  %v6079_v1 = vsel %vm66_vm0, %v12467_v50, 0.0 }
 0xfaf   :  { %6074 = vadd.xlane.f32.xlu0 %v6073_v63  ;;  %v7803_v10 = vpop.f32.mrb[215].mxu1 }
 0xfb0   :  { %v5995_v5 = vadd.f32 %v7801_v33, %v12387_v12  ;;  %v7804_v62 = vadd.f32 %v7803_v10, %v7802_v4  ;;  %v6082_v12 = vsel %vm66_vm0, %v12473_v20, 0.0 }
 0xfb1   :  { %6077 = vadd.xlane.f32.xlu1 %v6076_v56 }
 0xfb2   :  { %v6021_v35 = vadd.f32 %v5995_v5, %v13274_v14  ;;  %v5998_v11 = vadd.f32 %v7804_v62, %v12389_v40 }
 0xfb3   :  { %6080 = vadd.xlane.f32.xlu0 %v6079_v1 }
 0xfb4   :  { %v6022_v59 = vadd.f32 %v5998_v11, %v13275_v51  ;;  %v7805_v31 = vpop.f32.mrb[216].mxu1  ;;  %v12483_v19 = vadd.f32 %v12402_v23, %v6021_v35 }
 0xfb5   :  { %6083 = vadd.xlane.f32.xlu1 %v6082_v12  ;;  %v7806_v7 = vpop.f32.mrb[217].mxu1 }
 0xfb6   :  { %v7807_v32 = vadd.f32 %v7806_v7, %v7805_v31  ;;  %v7808_v38 = vpop.f32.mrb[218].mxu1  ;;  %v6085_v40 = vsel %vm66_vm0, %v12483_v19, 0.0  ;;  %v12488_v46 = vadd.f32 %v12402_v23, %v6022_v59 }
 0xfb7   :  { %6086 = vadd.xlane.f32.xlu0 %v6085_v40  ;;  %v7809_v28 = vpop.f32.mrb[219].mxu1 }
 0xfb8   :  { %v6003_v16 = vadd.f32 %v7807_v32, %v12391_v57  ;;  %v7810_v8 = vadd.f32 %v7809_v28, %v7808_v38  ;;  %v6088_v18 = vsel %vm66_vm0, %v12488_v46, 0.0 }
 0xfb9   :  { %6089 = vadd.xlane.f32.xlu1 %v6088_v18 }
 0xfba   :  { %v6023_v24 = vadd.f32 %v6003_v16, %v13276_v43  ;;  %v6006_v25 = vadd.f32 %v7810_v8, %v12393_v29 }
 0xfbc   :  { %v6024_v27 = vadd.f32 %v6006_v25, %v13277_v34  ;;  %v12497_v39 = vadd.f32 %v12402_v23, %v6023_v24 }
 0xfbe   :  { %v6091_v26 = vsel %vm66_vm0, %v12497_v39, 0.0  ;;  %v12502_v37 = vadd.f32 %v12402_v23, %v6024_v27 }
 0xfbf   :  { %6092 = vadd.xlane.f32.xlu0 %v6091_v26 }
 0xfc0   :  { %v6094_v57 = vsel %vm66_vm0, %v12502_v37, 0.0 }
 0xfc1   :  { %6095 = vadd.xlane.f32.xlu1 %v6094_v57 }
0x102c   :  { %v6051_v2 = vpop.xlane.xlu0 %6050 }
0x102d   :  { %v6097_v47 = vmul.f32 0.03125, %v6051_v2 }
0x102e   :  { %v6054_v58 = vpop.xlane.xlu1 %6053 }
0x102f   :  { %v12507_v29 = vsub.f32 %v12407_v49, %v6097_v47  ;;  %v6098_v42 = vmul.f32 0.03125, %v6054_v58 }
0x1030   :  { %v6057_v44 = vpop.xlane.xlu0 %6056 }
0x1031   :  { %v12510_v22 = vsub.f32 %v12416_v3, %v6098_v42  ;;  %v6099_v41 = vmul.f32 0.03125, %v6057_v44  ;;  %v6129_v23 = vmul.f32 %v12507_v29, %v12507_v29 }
0x1032   :  { %v6060_v55 = vpop.xlane.xlu1 %6059 }
0x1033   :  { %v12515_v61 = vsub.f32 %v12410_v54, %v6099_v41  ;;  %v6100_v36 = vmul.f32 0.03125, %v6060_v55  ;;  %v6145_v53 = vsel %vm66_vm0, %v6129_v23, 0.0  ;;  %v6130_v30 = vmul.f32 %v12510_v22, %v12510_v22 }
0x1034   :  { %6146 = vadd.xlane.f32.xlu0 %v6145_v53  ;;  %v6063_v9 = vpop.xlane.xlu0 %6062 }
0x1035   :  { %v12521_v45 = vsub.f32 %v12423_v0, %v6100_v36  ;;  %v6101_v48 = vmul.f32 0.03125, %v6063_v9  ;;  %v6148_v17 = vsel %vm66_vm0, %v6130_v30, 0.0  ;;  %v6131_v33 = vmul.f32 %v12515_v61, %v12515_v61 }
0x1036   :  { %v6066_v4 = vpop.xlane.xlu1 %6065  ;;  %6149 = vadd.xlane.f32.xlu1 %v6148_v17 }
0x1037   :  { %v12527_v63 = vsub.f32 %v12430_v60, %v6101_v48  ;;  %v6102_v10 = vmul.f32 0.03125, %v6066_v4  ;;  %v6151_v5 = vsel %vm66_vm0, %v6131_v33, 0.0  ;;  %v6132_v62 = vmul.f32 %v12521_v45, %v12521_v45 }
0x1038   :  { %6152 = vadd.xlane.f32.xlu0 %v6151_v5  ;;  %v6069_v56 = vpop.xlane.xlu0 %6068 }
0x1039   :  { %v12533_v14 = vsub.f32 %v12433_v13, %v6102_v10  ;;  %v6103_v35 = vmul.f32 0.03125, %v6069_v56  ;;  %v6154_v11 = vsel %vm66_vm0, %v6132_v62, 0.0  ;;  %v6133_v1 = vmul.f32 %v12527_v63, %v12527_v63 }
0x103a   :  { %v6072_v51 = vpop.xlane.xlu1 %6071  ;;  %6155 = vadd.xlane.f32.xlu1 %v6154_v11 }
0x103b   :  { %v12539_v59 = vsub.f32 %v12442_v21, %v6103_v35  ;;  %v6104_v31 = vmul.f32 0.03125, %v6072_v51  ;;  %v6157_v12 = vsel %vm66_vm0, %v6133_v1, 0.0  ;;  %v6134_v7 = vmul.f32 %v12533_v14, %v12533_v14 }
0x103c   :  { %6158 = vadd.xlane.f32.xlu0 %v6157_v12  ;;  %v6075_v32 = vpop.xlane.xlu0 %6074 }
0x103d   :  { %v12545_v38 = vsub.f32 %v12449_v6, %v6104_v31  ;;  %v6105_v40 = vmul.f32 0.03125, %v6075_v32  ;;  %v6160_v28 = vsel %vm66_vm0, %v6134_v7, 0.0  ;;  %v6135_v16 = vmul.f32 %v12539_v59, %v12539_v59 }
0x103e   :  { %v6078_v8 = vpop.xlane.xlu1 %6077  ;;  %6161 = vadd.xlane.f32.xlu1 %v6160_v28  ;;  %v8496_v28 = vld [vmem:[%s12871_s6 + $0x10] sm:$0xff]  }
0x103f   :  { %v12551_v18 = vsub.f32 %v12456_v15, %v6105_v40  ;;  %v6106_v43 = vmul.f32 0.03125, %v6078_v8  ;;  %v6163_v24 = vsel %vm66_vm0, %v6135_v16, 0.0  ;;  %v6136_v25 = vmul.f32 %v12545_v38, %v12545_v38  ;;  %8329 = vmatprep.subr.bf16.mxu0 %v8496_v28 }
0x1040   :  { %6164 = vadd.xlane.f32.xlu0 %v6163_v24  ;;  %v6081_v34 = vpop.xlane.xlu0 %6080  ;;  %8330 = vmatpush3.bf16.msra.mxu0 %v8496_v28  ;;  %v8497_v24 = vld [vmem:[%s12871_s6 + $0x18] sm:$0xff]  }
0x1041   :  { %v12557_v27 = vsub.f32 %v12462_v52, %v6106_v43  ;;  %v6107_v26 = vmul.f32 0.03125, %v6081_v34  ;;  %v6166_v57 = vsel %vm66_vm0, %v6136_v25, 0.0  ;;  %v6137_v2 = vmul.f32 %v12551_v18, %v12551_v18  ;;  %8331 = vmatprep.subr.bf16.mxu0 %v8497_v24  ;;  %v8498_v25 = vld [vmem:[%s12873_s8 + $0x40] sm:$0xff]   ;;  %v8499_v34 = vld [vmem:[%s12873_s8 + $0x48] sm:$0xff]  }
0x1042   :  { %v6084_v47 = vpop.xlane.xlu1 %6083  ;;  %6167 = vadd.xlane.f32.xlu1 %v6166_v57  ;;  %8349 = vmatprep.subr.bf16.mxu1 %v8498_v25 }
0x1043   :  { %v12563_v58 = vsub.f32 %v12467_v50, %v6107_v26  ;;  %v6108_v42 = vmul.f32 0.03125, %v6084_v47  ;;  %v6169_v44 = vsel %vm66_vm0, %v6137_v2, 0.0  ;;  %v6138_v41 = vmul.f32 %v12557_v27, %v12557_v27  ;;  %8350 = vmatpush3.bf16.msra.mxu1 %v8498_v25  ;;  %v8500_v26 = vld [vmem:[%s12873_s8 + $0x50] sm:$0xff]  }
0x1044   :  { %6170 = vadd.xlane.f32.xlu0 %v6169_v44  ;;  %v6087_v23 = vpop.xlane.xlu0 %6086  ;;  %8332 = vmatpush3.bf16.msra.mxu0 %v8497_v24 }
0x1045   :  { %v12569_v55 = vsub.f32 %v12473_v20, %v6108_v42  ;;  %v6109_v36 = vmul.f32 0.03125, %v6087_v23  ;;  %v6172_v53 = vsel %vm66_vm0, %v6138_v41, 0.0  ;;  %v6139_v30 = vmul.f32 %v12563_v58, %v12563_v58  ;;  %8351 = vmatprep.subr.bf16.mxu1 %v8499_v34 }
0x1046   :  { %v6090_v9 = vpop.xlane.xlu1 %6089  ;;  %6173 = vadd.xlane.f32.xlu1 %v6172_v53 }
0x1047   :  { %v12575_v48 = vsub.f32 %v12483_v19, %v6109_v36  ;;  %v6110_v17 = vmul.f32 0.03125, %v6090_v9  ;;  %v6175_v33 = vsel %vm66_vm0, %v6139_v30, 0.0  ;;  %v6140_v4 = vmul.f32 %v12569_v55, %v12569_v55  ;;  %8352 = vmatpush3.bf16.msra.mxu1 %v8499_v34 }
0x1048   :  { %6176 = vadd.xlane.f32.xlu0 %v6175_v33  ;;  %8353 = vmatprep.subr.bf16.mxu1 %v8500_v26 }
0x1049   :  { %v12581_v10 = vsub.f32 %v12488_v46, %v6110_v17  ;;  %v6178_v5 = vsel %vm66_vm0, %v6140_v4, 0.0  ;;  %v6141_v62 = vmul.f32 %v12575_v48, %v12575_v48 }
0x104a   :  { %6179 = vadd.xlane.f32.xlu1 %v6178_v5 }
0x104b   :  { %v6181_v56 = vsel %vm66_vm0, %v6141_v62, 0.0  ;;  %v6142_v35 = vmul.f32 %v12581_v10, %v12581_v10  ;;  %8354 = vmatpush3.bf16.msra.mxu1 %v8500_v26 }
0x104c   :  { %6182 = vadd.xlane.f32.xlu0 %v6181_v56  ;;  %v6093_v11 = vpop.xlane.xlu0 %6092 }
0x104d   :  { %v6111_v1 = vmul.f32 0.03125, %v6093_v11  ;;  %v6184_v51 = vsel %vm66_vm0, %v6142_v35, 0.0 }
0x104e   :  { %6185 = vadd.xlane.f32.xlu1 %v6184_v51  ;;  %v6096_v31 = vpop.xlane.xlu1 %6095 }
0x104f   :  { %v12591_v12 = vsub.f32 %v12497_v39, %v6111_v1  ;;  %v6112_v7 = vmul.f32 0.03125, %v6096_v31 }
0x1051   :  { %v12594_v32 = vsub.f32 %v12502_v37, %v6112_v7  ;;  %v6143_v40 = vmul.f32 %v12591_v12, %v12591_v12 }
0x1053   :  { %v6187_v16 = vsel %vm66_vm0, %v6143_v40, 0.0  ;;  %v6144_v8 = vmul.f32 %v12594_v32, %v12594_v32 }
0x1054   :  { %6188 = vadd.xlane.f32.xlu0 %v6187_v16 }
0x1055   :  { %v6190_v43 = vsel %vm66_vm0, %v6144_v8, 0.0 }
0x1056   :  { %6191 = vadd.xlane.f32.xlu1 %v6190_v43 }
0x10c1   :  { %v6147_v57 = vpop.xlane.xlu0 %6146 }
0x10c2   :  { %v6193_v2 = vmul.f32 0.03125, %v6147_v57 }
0x10c3   :  { %v6150_v47 = vpop.xlane.xlu1 %6149 }
0x10c4   :  { %v6209_v42 = vadd.f32 1e-05, %v6193_v2  ;;  %v6194_v44 = vmul.f32 0.03125, %v6150_v47 }
0x10c5   :  { %v6153_v41 = vpop.xlane.xlu0 %6152 }
0x10c6   :  { %9146 = vrsqrt.f32 %v6209_v42  ;;  %v6210_v23 = vadd.f32 1e-05, %v6194_v44  ;;  %v6195_v36 = vmul.f32 0.03125, %v6153_v41 }
0x10c7   :  { %v6156_v53 = vpop.xlane.xlu1 %6155 }
0x10c8   :  { %9148 = vrsqrt.f32 %v6210_v23  ;;  %v6211_v30 = vadd.f32 1e-05, %v6195_v36  ;;  %v6196_v9 = vmul.f32 0.03125, %v6156_v53 }
0x10c9   :  { %v6159_v17 = vpop.xlane.xlu0 %6158 }
0x10ca   :  { %9150 = vrsqrt.f32 %v6211_v30  ;;  %v6212_v33 = vadd.f32 1e-05, %v6196_v9  ;;  %v6197_v4 = vmul.f32 0.03125, %v6159_v17 }
0x10cb   :  { %v6162_v5 = vpop.xlane.xlu1 %6161 }
0x10cc   :  { %9152 = vrsqrt.f32 %v6212_v33  ;;  %v6213_v62 = vadd.f32 1e-05, %v6197_v4  ;;  %v6198_v56 = vmul.f32 0.03125, %v6162_v5 }
0x10cd   :  { %v6165_v35 = vpop.xlane.xlu0 %6164 }
0x10ce   :  { %9154 = vrsqrt.f32 %v6213_v62  ;;  %v6214_v11 = vadd.f32 1e-05, %v6198_v56  ;;  %v6199_v1 = vmul.f32 0.03125, %v6165_v35 }
0x10cf   :  { %v6168_v51 = vpop.xlane.xlu1 %6167 }
0x10d0   :  { %v9147_v31 = vpop.eup %9146  ;;  %9156 = vrsqrt.f32 %v6214_v11  ;;  %v6215_v7 = vadd.f32 1e-05, %v6199_v1  ;;  %v6200_v40 = vmul.f32 0.03125, %v6168_v51 }
0x10d1   :  { %v6171_v28 = vpop.xlane.xlu0 %6170  ;;  %v6241_v25 = vmul.f32 %v9147_v31, %v12507_v29 }
0x10d2   :  { %v9149_v16 = vpop.eup %9148  ;;  %9158 = vrsqrt.f32 %v6215_v7  ;;  %v6216_v8 = vadd.f32 1e-05, %v6200_v40  ;;  %v6201_v43 = vmul.f32 0.03125, %v6171_v28 }
0x10d3   :  { %v6174_v24 = vpop.xlane.xlu1 %6173  ;;  %v6242_v34 = vmul.f32 %v9149_v16, %v12510_v22 }
0x10d4   :  { %v9151_v26 = vpop.eup %9150  ;;  %9160 = vrsqrt.f32 %v6216_v8  ;;  %v6217_v57 = vadd.f32 1e-05, %v6201_v43  ;;  %v6202_v2 = vmul.f32 0.03125, %v6174_v24 }
0x10d5   :  { %v6177_v47 = vpop.xlane.xlu0 %6176  ;;  %v6257_v42 = vpack.c.bf16 %v6242_v34, %v6241_v25  ;;  %v6243_v36 = vmul.f32 %v9151_v26, %v12515_v61 }
0x10d6   :  { %v9153_v44 = vpop.eup %9152  ;;  %9162 = vrsqrt.f32 %v6217_v57  ;;  %v6218_v41 = vadd.f32 1e-05, %v6202_v2  ;;  %v6203_v23 = vmul.f32 0.03125, %v6177_v47 }
0x10d7   :  { %v6244_v53 = vmul.f32 %v9153_v44, %v12521_v45  ;;  %v6180_v30 = vpop.xlane.xlu1 %6179  ;;  %8333 = vmatprep.mubr.msk.bf16.mxu0 %vm66_vm0, %v6257_v42 }
0x10d8   :  { %v9155_v29 = vpop.eup %9154  ;;  %9164 = vrsqrt.f32 %v6218_v41  ;;  %v6219_v22 = vadd.f32 1e-05, %v6203_v23  ;;  %v6204_v9 = vmul.f32 0.03125, %v6180_v30 }
0x10d9   :  { %v6183_v17 = vpop.xlane.xlu0 %6182  ;;  %v6258_v33 = vpack.c.bf16 %v6244_v53, %v6243_v36  ;;  %v6245_v61 = vmul.f32 %v9155_v29, %v12527_v63 }
0x10da   :  { %v9157_v4 = vpop.eup %9156  ;;  %9166 = vrsqrt.f32 %v6219_v22  ;;  %v6220_v5 = vadd.f32 1e-05, %v6204_v9  ;;  %v6205_v62 = vmul.f32 0.03125, %v6183_v17  ;;  %v8501_v9 = vld [vmem:[%s12873_s8 + $0x58] sm:$0xff]   ;;  %v12659_v17 = vld [vmem:[%s12872_s7 + $0x1] ss:$0 sm:$0xff] }
0x10db   :  { %v6186_v56 = vpop.xlane.xlu1 %6185  ;;  %8334 = vmatmul.mubr.msk.bf16.vlgmr.msra.gmra.mrb[228].mxu0 %vm66_vm0, %v6258_v33  ;;  %v6246_v45 = vmul.f32 %v9157_v4, %v12533_v14  ;;  %8355 = vmatprep.subr.bf16.mxu1 %v8501_v9 }
0x10dc   :  { %v9159_v35 = vpop.eup %9158  ;;  %9168 = vrsqrt.f32 %v6220_v5  ;;  %v6221_v11 = vadd.f32 1e-05, %v6205_v62  ;;  %v6206_v1 = vmul.f32 0.03125, %v6186_v56  ;;  %8356 = vmatpush3.bf16.msra.mxu1 %v8501_v9 }
0x10dd   :  { %v6259_v51 = vpack.c.bf16 %v6246_v45, %v6245_v61  ;;  %v6247_v40 = vmul.f32 %v9159_v35, %v12539_v59 }
0x10de   :  { %v9161_v31 = vpop.eup %9160  ;;  %9170 = vrsqrt.f32 %v6221_v11  ;;  %v6222_v7 = vadd.f32 1e-05, %v6206_v1 }
0x10df   :  { %8337 = vmatprep.mubr.msk.bf16.mxu0 %vm66_vm0, %v6259_v51  ;;  %v6248_v28 = vmul.f32 %v9161_v31, %v12545_v38 }
0x10e0   :  { %v9163_v16 = vpop.eup %9162  ;;  %9172 = vrsqrt.f32 %v6222_v7 }
0x10e1   :  { %v6189_v8 = vpop.xlane.xlu0 %6188  ;;  %v6260_v63 = vpack.c.bf16 %v6248_v28, %v6247_v40  ;;  %v6249_v25 = vmul.f32 %v9163_v16, %v12551_v18 }
0x10e2   :  { %v9165_v43 = vpop.eup %9164  ;;  %v6207_v14 = vmul.f32 0.03125, %v6189_v8 }
0x10e3   :  { %v6192_v24 = vpop.xlane.xlu1 %6191  ;;  %8338 = vmatmul.mubr.msk.bf16.gmra.mrb[232].mxu0 %vm66_vm0, %v6260_v63  ;;  %v6250_v34 = vmul.f32 %v9165_v43, %v12557_v27 }
0x10e4   :  { %v9167_v26 = vpop.eup %9166  ;;  %v6223_v57 = vadd.f32 1e-05, %v6207_v14  ;;  %v6208_v2 = vmul.f32 0.03125, %v6192_v24 }
0x10e5   :  { %v6261_v47 = vpack.c.bf16 %v6250_v34, %v6249_v25  ;;  %v6251_v42 = vmul.f32 %v9167_v26, %v12563_v58 }
0x10e6   :  { %v9169_v59 = vpop.eup %9168  ;;  %9174 = vrsqrt.f32 %v6223_v57  ;;  %v6224_v38 = vadd.f32 1e-05, %v6208_v2 }
0x10e7   :  { %8341 = vmatprep.mubr.msk.bf16.mxu0 %vm66_vm0, %v6261_v47  ;;  %v6252_v44 = vmul.f32 %v9169_v59, %v12569_v55 }
0x10e8   :  { %v9171_v41 = vpop.eup %9170  ;;  %9176 = vrsqrt.f32 %v6224_v38 }
0x10e9   :  { %v6262_v23 = vpack.c.bf16 %v6252_v44, %v6251_v42  ;;  %v6253_v18 = vmul.f32 %v9171_v41, %v12575_v48  ;;  %v8502_v48 = vld [vmem:[%s12873_s8 + $0x60] sm:$0xff]  }
0x10ea   :  { %v9173_v36 = vpop.eup %9172  ;;  %8357 = vmatprep.subr.bf16.mxu1 %v8502_v48 }
0x10eb   :  { %8342 = vmatmul.mubr.msk.bf16.gmra.mrb[236].mxu0 %vm66_vm0, %v6262_v23  ;;  %v6254_v27 = vmul.f32 %v9173_v36, %v12581_v10  ;;  %8358 = vmatpush3.bf16.msra.mxu1 %v8502_v48  ;;  %v8503_v10 = vld [vmem:[%s12873_s8 + $0x68] sm:$0xff]  }
0x10ec   :  { %8359 = vmatprep.subr.bf16.mxu1 %v8503_v10 }
0x10ed   :  { %v6263_v53 = vpack.c.bf16 %v6254_v27, %v6253_v18 }
0x10ef   :  { %8345 = vmatprep.mubr.msk.bf16.mxu0 %vm66_vm0, %v6263_v53  ;;  %8360 = vmatpush3.bf16.msra.mxu1 %v8503_v10 }
0x10f0   :  { %v9175_v30 = vpop.eup %9174 }
0x10f1   :  { %v6255_v22 = vmul.f32 %v9175_v30, %v12591_v12  ;;  %v8504_v12 = vld [vmem:[%s12873_s8 + $0x70] sm:$0xff]  }
0x10f2   :  { %v9177_v29 = vpop.eup %9176  ;;  %8361 = vmatprep.subr.bf16.mxu1 %v8504_v12 }
0x10f3   :  { %v6256_v58 = vmul.f32 %v9177_v29, %v12594_v32  ;;  %8362 = vmatpush3.bf16.msra.mxu1 %v8504_v12  ;;  %v8505_v32 = vld [vmem:[%s12873_s8 + $0x78] sm:$0xff]  }
0x10f4   :  { %8363 = vmatprep.subr.bf16.mxu1 %v8505_v32 }
0x10f5   :  { %v6264_v55 = vpack.c.bf16 %v6256_v58, %v6255_v22 }
0x10f7   :  { %8346 = vmatmul.mubr.msk.bf16.gmra.mrb[240].mxu0 %vm66_vm0, %v6264_v55  ;;  %8364 = vmatpush3.bf16.msra.mxu1 %v8505_v32 }
0x11ae   :  { %v8335_v33 = vpop.f32.mrb[228].mxu0 }
0x11af   :  { %v6357_v4 = vadd.f32 %v8335_v33, %v12659_v17  ;;  %v6348_v5 = vpop.f32.mrb[229].mxu0 }
0x11b0   :  { %v12663_v62 = vadd.f32 %v12659_v17, %v6348_v5  ;;  %v8336_v56 = vpop.f32.mrb[230].mxu0 }
0x11b1   :  { %v6429_v61 = vmul.f32 0.044715, %v6357_v4  ;;  %v12666_v45 = vadd.f32 %v8336_v56, %v12659_v17  ;;  %v6351_v35 = vpop.f32.mrb[231].mxu0 }
0x11b2   :  { %v6427_v11 = vmul.f32 0.044715, %v12663_v62  ;;  %v12670_v1 = vadd.f32 %v12659_v17, %v6351_v35 }
0x11b3   :  { %v6445_v51 = vmul.f32 %v6429_v61, %v6357_v4  ;;  %v6430_v31 = vmul.f32 0.044715, %v12666_v45 }
0x11b4   :  { %v6443_v7 = vmul.f32 %v6427_v11, %v12663_v62  ;;  %v6428_v40 = vmul.f32 0.044715, %v12670_v1 }
0x11b5   :  { %v6461_v28 = vmul.f32 %v6445_v51, %v6357_v4  ;;  %v6446_v16 = vmul.f32 %v6430_v31, %v12666_v45 }
0x11b6   :  { %v6459_v8 = vmul.f32 %v6443_v7, %v12663_v62  ;;  %v6444_v63 = vmul.f32 %v6428_v40, %v12670_v1  ;;  %v8339_v43 = vpop.f32.mrb[232].mxu0  ;;  %v6413_v7 = vmul.f32 0.5, %v6357_v4 }
0x11b7   :  { %v6477_v14 = vadd.f32 %v6461_v28, %v6357_v4  ;;  %v6462_v24 = vmul.f32 %v6446_v16, %v12666_v45  ;;  %v12680_v25 = vadd.f32 %v8339_v43, %v12659_v17  ;;  %v6364_v34 = vpop.f32.mrb[233].mxu0 }
0x11b8   :  { %v6460_v26 = vmul.f32 %v6444_v63, %v12670_v1  ;;  %v12684_v57 = vadd.f32 %v12659_v17, %v6364_v34  ;;  %v8340_v2 = vpop.f32.mrb[234].mxu0  ;;  %v6475_v47 = vadd.f32 %v6459_v8, %v12663_v62 }
0x11b9   :  { %v6493_v59 = vmul.f32 0.7978846, %v6477_v14  ;;  %v6478_v38 = vadd.f32 %v6462_v24, %v12666_v45  ;;  %v6433_v42 = vmul.f32 0.044715, %v12680_v25  ;;  %v12690_v44 = vadd.f32 %v8340_v2, %v12659_v17  ;;  %v6367_v41 = vpop.f32.mrb[235].mxu0 }
0x11ba   :  { %v6431_v23 = vmul.f32 0.044715, %v12684_v57  ;;  %v12694_v36 = vadd.f32 %v12659_v17, %v6367_v41  ;;  %v6476_v18 = vadd.f32 %v6460_v26, %v12670_v1  ;;  %v6491_v27 = vmul.f32 0.7978846, %v6475_v47 }
0x11bb   :  { %9178 = vtanh.f32 %v6493_v59  ;;  %v6494_v53 = vmul.f32 0.7978846, %v6478_v38  ;;  %v6449_v30 = vmul.f32 %v6433_v42, %v12680_v25  ;;  %v6434_v29 = vmul.f32 0.044715, %v12690_v44 }
0x11bc   :  { %v6447_v22 = vmul.f32 %v6431_v23, %v12684_v57  ;;  %v6432_v58 = vmul.f32 0.044715, %v12694_v36  ;;  %v6492_v55 = vmul.f32 0.7978846, %v6476_v18  ;;  %9180 = vtanh.f32 %v6491_v27 }
0x11bd   :  { %9182 = vtanh.f32 %v6494_v53  ;;  %v6465_v9 = vmul.f32 %v6449_v30, %v12680_v25  ;;  %v6450_v48 = vmul.f32 %v6434_v29, %v12690_v44  ;;  %v6411_v18 = vmul.f32 0.5, %v12663_v62 }
0x11be   :  { %v6463_v10 = vmul.f32 %v6447_v22, %v12684_v57  ;;  %v6448_v12 = vmul.f32 %v6432_v58, %v12694_v36  ;;  %v8343_v32 = vpop.f32.mrb[236].mxu0  ;;  %9184 = vtanh.f32 %v6492_v55  ;;  %v6414_v58 = vmul.f32 0.5, %v12666_v45 }
0x11bf   :  { %v6466_v33 = vmul.f32 %v6450_v48, %v12690_v44  ;;  %v12707_v5 = vadd.f32 %v8343_v32, %v12659_v17  ;;  %v6380_v56 = vpop.f32.mrb[237].mxu0  ;;  %v6481_v31 = vadd.f32 %v6465_v9, %v12680_v25  ;;  %v6412_v62 = vmul.f32 0.5, %v12670_v1 }
0x11c0   :  { %v6464_v61 = vmul.f32 %v6448_v12, %v12694_v36  ;;  %v12711_v35 = vadd.f32 %v12659_v17, %v6380_v56  ;;  %v8344_v11 = vpop.f32.mrb[238].mxu0  ;;  %v6479_v51 = vadd.f32 %v6463_v10, %v12684_v57 }
0x11c1   :  { %v6437_v40 = vmul.f32 0.044715, %v12707_v5  ;;  %v12717_v28 = vadd.f32 %v8344_v11, %v12659_v17  ;;  %v6383_v16 = vpop.f32.mrb[239].mxu0  ;;  %v6482_v8 = vadd.f32 %v6466_v33, %v12690_v44  ;;  %v6497_v26 = vmul.f32 0.7978846, %v6481_v31 }
0x11c2   :  { %v6435_v63 = vmul.f32 0.044715, %v12711_v35  ;;  %v12722_v43 = vadd.f32 %v12659_v17, %v6383_v16  ;;  %v6480_v14 = vadd.f32 %v6464_v61, %v12694_v36  ;;  %v6495_v24 = vmul.f32 0.7978846, %v6479_v51 }
0x11c3   :  { %v6453_v34 = vmul.f32 %v6437_v40, %v12707_v5  ;;  %v6438_v4 = vmul.f32 0.044715, %v12717_v28  ;;  %v6498_v2 = vmul.f32 0.7978846, %v6482_v8  ;;  %v6415_v61 = vmul.f32 0.5, %v12684_v57 }
0x11c4   :  { %v6451_v47 = vmul.f32 %v6435_v63, %v12711_v35  ;;  %v6436_v59 = vmul.f32 0.044715, %v12722_v43  ;;  %v6496_v38 = vmul.f32 0.7978846, %v6480_v14  ;;  %9186 = vtanh.f32 %v6495_v24 }
0x11c5   :  { %v9179_v42 = vpop.eup %9178  ;;  %v6469_v41 = vmul.f32 %v6453_v34, %v12707_v5  ;;  %v6454_v23 = vmul.f32 %v6438_v4, %v12717_v28  ;;  %9188 = vtanh.f32 %v6497_v26 }
0x11c6   :  { %v9181_v27 = vpop.eup %9180  ;;  %v6467_v53 = vmul.f32 %v6451_v47, %v12711_v35  ;;  %v6452_v30 = vmul.f32 %v6436_v59, %v12722_v43  ;;  %v6525_v29 = vadd.f32 1.0, %v9179_v42  ;;  %9190 = vtanh.f32 %v6496_v38 }
0x11c7   :  { %v9183_v22 = vpop.eup %9182  ;;  %v6470_v55 = vmul.f32 %v6454_v23, %v12717_v28  ;;  %v6523_v9 = vadd.f32 1.0, %v9181_v27  ;;  %9192 = vtanh.f32 %v6498_v2  ;;  %v6485_v11 = vadd.f32 %v6469_v41, %v12707_v5 }
0x11c8   :  { %v9185_v48 = vpop.eup %9184  ;;  %v6468_v10 = vmul.f32 %v6452_v30, %v12722_v43  ;;  %v6526_v12 = vadd.f32 1.0, %v9183_v22  ;;  %v6483_v32 = vadd.f32 %v6467_v53, %v12711_v35  ;;  %v6541_v56 = vmul.f32 %v6525_v29, %v6413_v7 }
0x11c9   :  { %v6524_v33 = vadd.f32 1.0, %v9185_v48  ;;  %v6486_v16 = vadd.f32 %v6470_v55, %v12717_v28  ;;  %v6539_v63 = vmul.f32 %v6523_v9, %v6411_v18  ;;  %v6501_v24 = vmul.f32 0.7978846, %v6485_v11 }
0x11ca   :  { %v8347_v51 = vpop.f32.mrb[240].mxu0  ;;  %v6542_v45 = vmul.f32 %v6526_v12, %v6414_v58  ;;  %v6484_v31 = vadd.f32 %v6468_v10, %v12722_v43  ;;  %v6499_v40 = vmul.f32 0.7978846, %v6483_v32  ;;  %v6416_v18 = vmul.f32 0.5, %v12694_v36 }
0x11cb   :  { %v12744_v8 = vadd.f32 %v8347_v51, %v12659_v17  ;;  %v6396_v1 = vpop.f32.mrb[241].mxu0  ;;  %v6540_v14 = vmul.f32 %v6524_v33, %v6412_v62  ;;  %v6502_v38 = vmul.f32 0.7978846, %v6486_v16  ;;  %v6417_v62 = vmul.f32 0.5, %v12680_v25 }
0x11cc   :  { %v12747_v7 = vadd.f32 %v12659_v17, %v6396_v1  ;;  %v8348_v57 = vpop.f32.mrb[242].mxu0  ;;  %v6556_v34 = vpack.c.bf16 %v6542_v45, %v6541_v56  ;;  %v6500_v4 = vmul.f32 0.7978846, %v6484_v31  ;;  %9194 = vtanh.f32 %v6499_v40 }
0x11cd   :  { %v6441_v26 = vmul.f32 0.044715, %v12744_v8  ;;  %v12751_v2 = vadd.f32 %v8348_v57, %v12659_v17  ;;  %v6399_v47 = vpop.f32.mrb[243].mxu0  ;;  %v6555_v59 = vpack.c.bf16 %v6540_v14, %v6539_v63  ;;  %v6418_v33 = vmul.f32 0.5, %v12690_v44 }
0x11ce   :  { %v9187_v42 = vpop.eup %9186  ;;  %v6439_v41 = vmul.f32 0.044715, %v12747_v7  ;;  %v12755_v23 = vadd.f32 %v12659_v17, %v6399_v47  ;;  %9196 = vtanh.f32 %v6500_v4 }
0x11cf   :  { %v9189_v27 = vpop.eup %9188  ;;  %v6457_v53 = vmul.f32 %v6441_v26, %v12744_v8  ;;  %v6442_v30 = vmul.f32 0.044715, %v12751_v2  ;;  %8365 = vmatprep.mubr.bf16.mxu1 %v6555_v59  ;;  %v6527_v29 = vadd.f32 1.0, %v9187_v42  ;;  %9198 = vtanh.f32 %v6501_v24 }
0x11d0   :  { %v9191_v22 = vpop.eup %9190  ;;  %v6455_v58 = vmul.f32 %v6439_v41, %v12747_v7  ;;  %v6440_v55 = vmul.f32 0.044715, %v12755_v23  ;;  %8366 = vmatmul.mubr.bf16.vlgmr.msra.gmra.mrb[220].mxu1 %v6556_v34  ;;  %v6529_v9 = vadd.f32 1.0, %v9189_v27  ;;  %9200 = vtanh.f32 %v6502_v38 }
0x11d1   :  { %v9193_v17 = vpop.eup %9192  ;;  %v6473_v36 = vmul.f32 %v6457_v53, %v12744_v8  ;;  %v6458_v48 = vmul.f32 %v6442_v30, %v12751_v2  ;;  %v6528_v10 = vadd.f32 1.0, %v9191_v22  ;;  %v6543_v51 = vmul.f32 %v6527_v29, %v6415_v61 }
0x11d2   :  { %v6471_v12 = vmul.f32 %v6455_v58, %v12747_v7  ;;  %v6456_v32 = vmul.f32 %v6440_v55, %v12755_v23  ;;  %v6530_v56 = vadd.f32 1.0, %v9193_v17  ;;  %v6545_v40 = vmul.f32 %v6529_v9, %v6417_v62 }
0x11d3   :  { %v6474_v11 = vmul.f32 %v6458_v48, %v12751_v2  ;;  %v6544_v45 = vmul.f32 %v6528_v10, %v6416_v18  ;;  %v6489_v25 = vadd.f32 %v6473_v36, %v12744_v8  ;;  %v6419_v42 = vmul.f32 0.5, %v12711_v35 }
0x11d4   :  { %v6472_v31 = vmul.f32 %v6456_v32, %v12755_v23  ;;  %v6546_v16 = vmul.f32 %v6530_v56, %v6418_v33  ;;  %v6487_v1 = vadd.f32 %v6471_v12, %v12747_v7  ;;  %v6420_v41 = vmul.f32 0.5, %v12722_v43 }
0x11d5   :  { %v6557_v63 = vpack.c.bf16 %v6544_v45, %v6543_v51  ;;  %v6490_v14 = vadd.f32 %v6474_v11, %v12751_v2  ;;  %v6505_v61 = vmul.f32 0.7978846, %v6489_v25  ;;  %v6421_v53 = vmul.f32 0.5, %v12707_v5 }
0x11d6   :  { %v9195_v24 = vpop.eup %9194  ;;  %v6558_v57 = vpack.c.bf16 %v6546_v16, %v6545_v40  ;;  %v6488_v44 = vadd.f32 %v6472_v31, %v12755_v23  ;;  %v6503_v34 = vmul.f32 0.7978846, %v6487_v1  ;;  %v6422_v30 = vmul.f32 0.5, %v12717_v28 }
0x11d7   :  { %8369 = vmatprep.mubr.bf16.mxu1 %v6557_v63  ;;  %v6531_v4 = vadd.f32 1.0, %v9195_v24  ;;  %v6506_v26 = vmul.f32 0.7978846, %v6490_v14  ;;  %v6423_v28 = vmul.f32 0.5, %v12747_v7  ;;  %v6424_v32 = vmul.f32 0.5, %v12755_v23 }
0x11d8   :  { %v9197_v47 = vpop.eup %9196  ;;  %8370 = vmatmul.mubr.bf16.gmra.mrb[224].mxu1 %v6558_v57  ;;  %v6504_v59 = vmul.f32 0.7978846, %v6488_v44  ;;  %9202 = vtanh.f32 %v6503_v34  ;;  %v6425_v56 = vmul.f32 0.5, %v12744_v8  ;;  %v6426_v11 = vmul.f32 0.5, %v12751_v2  ;;  %v6988_v7 = vld [vmem:[%s12874_s9 + $0x1] ss:$0 sm:$0xff] }
0x11d9   :  { %v9199_v38 = vpop.eup %9198  ;;  %v6532_v18 = vadd.f32 1.0, %v9197_v47  ;;  %9204 = vtanh.f32 %v6505_v61  ;;  %v6547_v22 = vmul.f32 %v6531_v4, %v6419_v42 }
0x11da   :  { %v9201_v27 = vpop.eup %9200  ;;  %v6533_v29 = vadd.f32 1.0, %v9199_v38  ;;  %9206 = vtanh.f32 %v6504_v59 }
0x11db   :  { %v6548_v58 = vmul.f32 %v6532_v18, %v6420_v41  ;;  %v6534_v55 = vadd.f32 1.0, %v9201_v27  ;;  %9208 = vtanh.f32 %v6506_v26 }
0x11dc   :  { %v6549_v17 = vmul.f32 %v6533_v29, %v6421_v53 }
0x11dd   :  { %v6559_v9 = vpack.c.bf16 %v6548_v58, %v6547_v22  ;;  %v6550_v36 = vmul.f32 %v6534_v55, %v6422_v30 }
0x11df   :  { %8373 = vmatprep.mubr.bf16.mxu1 %v6559_v9  ;;  %v6560_v35 = vpack.c.bf16 %v6550_v36, %v6549_v17 }
0x11e1   :  { %8374 = vmatmul.mubr.bf16.gmra.mrb[228].mxu1 %v6560_v35 }
0x11e2   :  { %v9203_v43 = vpop.eup %9202 }
0x11e3   :  { %v9205_v48 = vpop.eup %9204  ;;  %v6535_v10 = vadd.f32 1.0, %v9203_v43 }
0x11e4   :  { %v9207_v62 = vpop.eup %9206  ;;  %v6537_v12 = vadd.f32 1.0, %v9205_v48 }
0x11e5   :  { %v9209_v5 = vpop.eup %9208  ;;  %v6536_v33 = vadd.f32 1.0, %v9207_v62  ;;  %v6551_v45 = vmul.f32 %v6535_v10, %v6423_v28 }
0x11e6   :  { %v6538_v51 = vadd.f32 1.0, %v9209_v5  ;;  %v6553_v40 = vmul.f32 %v6537_v12, %v6425_v56 }
0x11e7   :  { %v6552_v31 = vmul.f32 %v6536_v33, %v6424_v32 }
0x11e8   :  { %v6554_v16 = vmul.f32 %v6538_v51, %v6426_v11 }
0x11e9   :  { %v6561_v1 = vpack.c.bf16 %v6552_v31, %v6551_v45 }
0x11ea   :  { %v6562_v63 = vpack.c.bf16 %v6554_v16, %v6553_v40 }
0x11eb   :  { %8377 = vmatprep.mubr.bf16.mxu1 %v6561_v1 }
0x11ec   :  { %8378 = vmatmul.mubr.bf16.gmra.mrb[232].mxu1 %v6562_v63 }
0x12a3   :  { %v8367_v25 = vpop.f32.mrb[220].mxu1 }
0x12a4   :  { %v6679_v23 = vadd.f32 %v8367_v25, %v6988_v7  ;;  %v6670_v14 = vpop.f32.mrb[221].mxu1 }
0x12a5   :  { %v6671_v24 = vadd.f32 %v6988_v7, %v6670_v14  ;;  %v8368_v8 = vpop.f32.mrb[222].mxu1 }
0x12a6   :  { %v6735_v2 = vadd.f32 %v6679_v23, %v12410_v54  ;;  %v6682_v57 = vadd.f32 %v8368_v8, %v6988_v7  ;;  %v6673_v44 = vpop.f32.mrb[223].mxu1 }
0x12a7   :  { %v6733_v34 = vadd.f32 %v6671_v24, %v12407_v49  ;;  %v6674_v4 = vadd.f32 %v6988_v7, %v6673_v44 }
0x12a8   :  { %6751 = vst.msk [vmem:[%s12875_s10 + $0x10] sm:$0xff] %vm66_vm0, %v6735_v2  ;;  %v6736_v61 = vadd.f32 %v6682_v57, %v12423_v0 }
0x12a9   :  { %6749 = vst.msk [vmem:[%s12875_s10] sm:$0xff] %vm66_vm0, %v6733_v34  ;;  %v6734_v26 = vadd.f32 %v6674_v4, %v12416_v3 }
0x12aa   :  { %6752 = vst.msk [vmem:[%s12875_s10 + $0x18] sm:$0xff] %vm66_vm0, %v6736_v61 }
0x12ab   :  { %6750 = vst.msk [vmem:[%s12875_s10 + $0x8] sm:$0xff] %vm66_vm0, %v6734_v26  ;;  %v8371_v49 = vpop.f32.mrb[224].mxu1 }
0x12ac   :  { %v6695_v54 = vadd.f32 %v8371_v49, %v6988_v7  ;;  %v6686_v0 = vpop.f32.mrb[225].mxu1 }
0x12ad   :  { %v6687_v47 = vadd.f32 %v6988_v7, %v6686_v0  ;;  %v8372_v59 = vpop.f32.mrb[226].mxu1 }
0x12ae   :  { %v6739_v38 = vadd.f32 %v6695_v54, %v12442_v21  ;;  %v6698_v42 = vadd.f32 %v8372_v59, %v6988_v7  ;;  %v6689_v41 = vpop.f32.mrb[227].mxu1 }
0x12af   :  { %v6737_v3 = vadd.f32 %v6687_v47, %v12430_v60  ;;  %v6690_v18 = vadd.f32 %v6988_v7, %v6689_v41 }
0x12b0   :  { %6755 = vst.msk [vmem:[%s12875_s10 + $0x30] sm:$0xff] %vm66_vm0, %v6739_v38  ;;  %v6740_v27 = vadd.f32 %v6698_v42, %v12449_v6 }
0x12b1   :  { %6753 = vst.msk [vmem:[%s12875_s10 + $0x20] sm:$0xff] %vm66_vm0, %v6737_v3  ;;  %v6738_v53 = vadd.f32 %v6690_v18, %v12433_v13 }
0x12b2   :  { %6756 = vst.msk [vmem:[%s12875_s10 + $0x38] sm:$0xff] %vm66_vm0, %v6740_v27 }
0x12b3   :  { %6754 = vst.msk [vmem:[%s12875_s10 + $0x28] sm:$0xff] %vm66_vm0, %v6738_v53 }
0x12b4   :  { %v8375_v60 = vpop.f32.mrb[228].mxu1 }
0x12b5   :  { %v6711_v21 = vadd.f32 %v8375_v60, %v6988_v7  ;;  %v6702_v6 = vpop.f32.mrb[229].mxu1 }
0x12b6   :  { %v6703_v30 = vadd.f32 %v6988_v7, %v6702_v6  ;;  %v8376_v29 = vpop.f32.mrb[230].mxu1 }
0x12b7   :  { %v6743_v22 = vadd.f32 %v6711_v21, %v12467_v50  ;;  %v6714_v58 = vadd.f32 %v8376_v29, %v6988_v7  ;;  %v6705_v55 = vpop.f32.mrb[231].mxu1 }
0x12b8   :  { %v6741_v13 = vadd.f32 %v6703_v30, %v12456_v15  ;;  %v6706_v9 = vadd.f32 %v6988_v7, %v6705_v55 }
0x12b9   :  { %6759 = vst.msk [vmem:[%s12875_s10 + $0x50] sm:$0xff] %vm66_vm0, %v6743_v22  ;;  %v6744_v17 = vadd.f32 %v6714_v58, %v12473_v20 }
0x12ba   :  { %6757 = vst.msk [vmem:[%s12875_s10 + $0x40] sm:$0xff] %vm66_vm0, %v6741_v13  ;;  %v6742_v36 = vadd.f32 %v6706_v9, %v12462_v52 }
0x12bb   :  { %6760 = vst.msk [vmem:[%s12875_s10 + $0x58] sm:$0xff] %vm66_vm0, %v6744_v17 }
0x12bc   :  { %6758 = vst.msk [vmem:[%s12875_s10 + $0x48] sm:$0xff] %vm66_vm0, %v6742_v36 }
0x12bf   :  { %v8379_v15 = vpop.f32.mrb[232].mxu1 }
0x12c0   :  { %v6727_v50 = vadd.f32 %v8379_v15, %v6988_v7  ;;  %v6718_v20 = vpop.f32.mrb[233].mxu1 }
0x12c1   :  { %v6719_v35 = vadd.f32 %v6988_v7, %v6718_v20  ;;  %v8380_v43 = vpop.f32.mrb[234].mxu1 }
0x12c2   :  { %v6747_v48 = vadd.f32 %v6727_v50, %v12497_v39  ;;  %v6730_v10 = vadd.f32 %v8380_v43, %v6988_v7  ;;  %v6721_v62 = vpop.f32.mrb[235].mxu1 }
0x12c3   :  { %v6745_v52 = vadd.f32 %v6719_v35, %v12483_v19  ;;  %v6722_v12 = vadd.f32 %v6988_v7, %v6721_v62 }
0x12c4   :  { %6763 = vst.msk [vmem:[%s12875_s10 + $0x70] sm:$0xff] %vm66_vm0, %v6747_v48  ;;  %v6748_v5 = vadd.f32 %v6730_v10, %v12502_v37 }
0x12c5   :  { %6761 = vst.msk [vmem:[%s12875_s10 + $0x60] sm:$0xff] %vm66_vm0, %v6745_v52  ;;  %v6746_v28 = vadd.f32 %v6722_v12, %v12488_v46 }
0x12c6   :  { %6764 = vst.msk [vmem:[%s12875_s10 + $0x78] sm:$0xff] %vm66_vm0, %v6748_v5 }
0x12c7   :  { %6762 = vst.msk [vmem:[%s12875_s10 + $0x68] sm:$0xff] %vm66_vm0, %v6746_v28 }
0x12c8   :  { %6769 = vsyncpa [#allocation3], 1 }

</bundles_post_ra>
